<compile_context>
chip_gen: v6e
topology: v6e:2x2x1
jax: 0.10.0
libtpu: 0.0.40
codegen_flags: <defaults>
</compile_context>

<pallas_src>
import functools

import numpy as np
import jax
import jax.numpy as jnp
from jax import lax
from jax.experimental import pallas as pl
from jax.experimental.pallas import tpu as pltpu


# ---------------------------------------------------------------------------
# Helpers (wrapper side)
# ---------------------------------------------------------------------------
def _bilinear_matrix(n_out, n_in):
    """align_corners=True 1-D bilinear interpolation matrix (n_out, n_in)."""
    m = np.zeros((n_out, n_in), np.float32)
    for i in range(n_out):
        src = 0.0 if n_out == 1 else i * (n_in - 1) / (n_out - 1)
        i0 = min(int(np.floor(src)), n_in - 1)
        i1 = min(i0 + 1, n_in - 1)
        f = src - i0
        m[i, i0] += 1.0 - f
        m[i, i1] += f
    return jnp.asarray(m)


def _pack_weights(params, C, Ch, cdt):
    """Fuse head1 + attention_layer1 weights and lay every conv out tap-major."""
    h1, h2, a1 = params['head1'], params['head2'], params['attn1']
    Cx = C + Ch

    # conv1: head1 and attention_layer1 share the same input x -> concat outputs.
    w1x = jnp.concatenate([h1['w1'], a1['w1']], axis=-1).reshape(9, C, Cx)
    sb1x = jnp.stack([jnp.concatenate([h1['bn1'][0], a1['bn1'][0]]),
                      jnp.concatenate([h1['bn1'][1], a1['bn1'][1]])])      # (2, Cx)

    # conv2: block-diagonal over the fused Cx channels.
    w2x4 = jnp.zeros((3, 3, Cx, Cx), jnp.float32)
    w2x4 = w2x4.at[:, :, :C, :C].set(h1['w2']).at[:, :, C:, C:].set(a1['w2'])
    w2x = w2x4.reshape(9, Cx, Cx)
    sb2x = jnp.stack([jnp.concatenate([h1['bn2'][0], a1['bn2'][0]]),
                      jnp.concatenate([h1['bn2'][1], a1['bn2'][1]])])      # (2, Cx)

    # conv3 (1x1): block-diagonal -> rows [seg1 | attention logits] (transposed).
    w3x = jnp.zeros((Cx, 2 * C), jnp.float32)
    w3x = w3x.at[:C, :C].set(h1['w3'][0, 0]).at[C:, C:].set(a1['w3'][0, 0])
    w3xt = w3x.T                                                           # (2C, Cx)

    # y branch (Semantic_Head2).
    w1y = h2['w1'].reshape(9, C, C)
    sb1y = jnp.stack([h2['bn1'][0], h2['bn1'][1]])
    w2y = h2['w2'].reshape(9, C, C)
    sb2y = jnp.stack([h2['bn2'][0], h2['bn2'][1]])
    w3yt = h2['w3'][0, 0].T                                                # (C, C)

    c = lambda a: a.astype(cdt)
    f = lambda a: a.astype(jnp.float32)
    return dict(w1x=c(w1x), sb1x=f(sb1x), w2x=c(w2x), sb2x=f(sb2x), w3xt=c(w3xt),
                w1y=c(w1y), sb1y=f(sb1y), w2y=c(w2y), sb2y=f(sb2y), w3yt=c(w3yt))


# ---------------------------------------------------------------------------
# The fused Pallas kernel (one batch element per grid step)
# ---------------------------------------------------------------------------
def _branch_attention_kernel(
        xpad_ref, ypad_ref,
        w1x_ref, sb1x_ref, w2x_ref, sb2x_ref, w3xt_ref,
        w1y_ref, sb1y_ref, w2y_ref, sb2y_ref, w3yt_ref,
        rh_ref, rwt_ref,
        o_ref,
        padx_ref, pady_ref, cs_ref,
        *, Hx, Wx, Hy, Wy, C, Ch):
    cdt = xpad_ref.dtype
    Cx = C + Ch
    C2 = 2 * C

    def bn_relu(t, sb_ref):
        # BatchNorm folded to per-channel scale/bias (inference affine); f32 math.
        return jnp.maximum(t * sb_ref[0:1, :] + sb_ref[1:2, :], 0.0)

    def conv3x3(src_ref, w_ref, H, W):
        # 3x3 conv = 9 shifted matmuls accumulated in f32 (no im2col buffer).
        Cin = src_ref.shape[-1]
        acc = None
        for t in range(9):
            dh, dw = divmod(t, 3)
            tap = src_ref[dh:dh + H, dw:dw + W, :].reshape(H * W, Cin)
            part = jnp.dot(tap, w_ref[t], preferred_element_type=jnp.float32)
            acc = part if acc is None else acc + part
        return acc

    def zero_halo(ref, H, W):
        # Only the 1-pixel halo is zeroed; the interior is overwritten below.
        Cc = ref.shape[-1]
        zrow = jnp.zeros((1, W + 2, Cc), ref.dtype)
        zcol = jnp.zeros((H + 2, 1, Cc), ref.dtype)
        ref[0:1, :, :] = zrow
        ref[H + 1:H + 2, :, :] = zrow
        ref[:, 0:1, :] = zcol
        ref[:, W + 1:W + 2, :] = zcol

    zero_halo(padx_ref, Hx, Wx)
    zero_halo(pady_ref, Hy, Wy)

    # ---- x branch: Semantic_Head1 + attention_layer1 fused (shared input) ----
    t1 = bn_relu(conv3x3(xpad_ref, w1x_ref, Hx, Wx), sb1x_ref)          # (HWx, Cx)
    padx_ref[1:Hx + 1, 1:Wx + 1, :] = t1.astype(cdt).reshape(Hx, Wx, Cx)
    t2 = bn_relu(conv3x3(padx_ref, w2x_ref, Hx, Wx), sb2x_ref)          # (HWx, Cx)
    # 1x1 conv computed transposed -> channel-major result for the upsample.
    t3t = jnp.dot(w3xt_ref[...], t2.astype(cdt).T,
                  preferred_element_type=jnp.float32)                   # (2C, HWx)
    seg1t = t3t[:C, :]
    attt = jax.nn.sigmoid(t3t[C:, :])
    catt = jnp.concatenate([seg1t * attt, 1.0 - attt], axis=0)          # (2C, HWx) f32

    # ---- y branch: Semantic_Head2 --------------------------------------------
    u1 = bn_relu(conv3x3(ypad_ref, w1y_ref, Hy, Wy), sb1y_ref)          # (HWy, C)
    pady_ref[1:Hy + 1, 1:Wy + 1, :] = u1.astype(cdt).reshape(Hy, Wy, C)
    u2 = bn_relu(conv3x3(pady_ref, w2y_ref, Hy, Wy), sb2y_ref)          # (HWy, C)
    seg2t = jnp.dot(w3yt_ref[...], u2.astype(cdt).T,
                    preferred_element_type=jnp.float32)                 # (C, HWy) f32

    # ---- separable align_corners=True bilinear upsample + combine (all f32) --
    # Relayout [seg1*a | 1-a] to (2C, Hx, Wx) with a short static copy loop.
    for h in range(Hx):
        cs_ref[:, h:h + 1, :] = catt[:, h * Wx:(h + 1) * Wx][:, None, :]
    # H direction: batched (over 2C channels) matmul with Rh.
    rhb = jnp.broadcast_to(rh_ref[...], (C2, Hy, Hx))
    g1 = lax.dot_general(rhb, cs_ref[...],
                         dimension_numbers=(((2,), (1,)), ((0,), (0,))),
                         preferred_element_type=jnp.float32)            # (2C, Hy, Wx)
    # W direction: one plain matmul with Rw^T.
    g2 = jnp.dot(g1.reshape(C2 * Hy, Wx), rwt_ref[...],
                 preferred_element_type=jnp.float32)                    # (2C*Hy, Wy)
    up = g2.reshape(C2, Hy, Wy)
    up_sa, up_b = up[:C], up[C:]                 # up(seg1*a), up(1-a)

    # out = up(seg1*a) + seg2 * up(1-a), written row-by-row directly in NCHW.
    for ho in range(Hy):
        s2row = seg2t[:, ho * Wy:(ho + 1) * Wy][:, None, :]             # (C,1,Wy)
        o_ref[:, ho:ho + 1, :] = (up_sa[:, ho:ho + 1, :]
                                  + s2row * up_b[:, ho:ho + 1, :]
                                  ).astype(o_ref.dtype)


# ---------------------------------------------------------------------------
# Module forward (single pallas_call, grid over batch)
# ---------------------------------------------------------------------------
def branch_attention_fwd(x_nchw, y_nchw, params, compute_dtype=jnp.float32):
    # NOTE: the PyTorch module requires in_channels == out_channels for
    # attention_layer1(x) to be well typed; same assumption here.
    cdt = compute_dtype
    x = jnp.transpose(x_nchw, (0, 2, 3, 1)).astype(cdt)     # NCHW -> NHWC
    y = jnp.transpose(y_nchw, (0, 2, 3, 1)).astype(cdt)
    B, Hx, Wx, C = x.shape
    _, Hy, Wy, _ = y.shape
    Ch = C // 2
    Cx = C + Ch

    xpad = jnp.pad(x, ((0, 0), (1, 1), (1, 1), (0, 0)))     # zero 1-pixel halo
    ypad = jnp.pad(y, ((0, 0), (1, 1), (1, 1), (0, 0)))

    w = _pack_weights(params, C, Ch, cdt)
    rh = _bilinear_matrix(Hy, Hx)                           # (Hy, Hx) f32
    rwt = _bilinear_matrix(Wy, Wx).T                        # (Wx, Wy) f32

    kern = functools.partial(_branch_attention_kernel,
                             Hx=Hx, Wx=Wx, Hy=Hy, Wy=Wy, C=C, Ch=Ch)

    consts = (w['w1x'], w['sb1x'], w['w2x'], w['sb2x'], w['w3xt'],
              w['w1y'], w['sb1y'], w['w2y'], w['sb2y'], w['w3yt'],
              rh, rwt)

    def const_spec(a):
        nd = a.ndim
        return pl.BlockSpec(a.shape, lambda b, _nd=nd: (0,) * _nd)

    in_specs = ([pl.BlockSpec((None, Hx + 2, Wx + 2, C), lambda b: (b, 0, 0, 0)),
                 pl.BlockSpec((None, Hy + 2, Wy + 2, C), lambda b: (b, 0, 0, 0))]
                + [const_spec(a) for a in consts])
    out_specs = pl.BlockSpec((None, C, Hy, Wy), lambda b: (b, 0, 0, 0))

    # Explicit VMEM budget: double-buffered per-batch blocks + weights + scratch
    # with generous headroom for compiler temporaries.
    isz = jnp.dtype(cdt).itemsize
    blk_bytes = ((Hx + 2) * (Wx + 2) * C + (Hy + 2) * (Wy + 2) * C) * isz \
        + C * Hy * Wy * 4
    const_bytes = sum(int(np.prod(a.shape)) * np.dtype(a.dtype).itemsize
                      for a in consts)
    scratch_bytes = ((Hx + 2) * (Wx + 2) * Cx + (Hy + 2) * (Wy + 2) * C) * isz \
        + 2 * C * Hx * Wx * 4
    vmem_limit = int(min(4 * (2 * blk_bytes + const_bytes + scratch_bytes)
                         + (32 << 20), 100 << 20))

    out = pl.pallas_call(
        kern,
        grid=(B,),
        in_specs=in_specs,
        out_specs=out_specs,
        out_shape=jax.ShapeDtypeStruct((B, C, Hy, Wy), jnp.float32),
        scratch_shapes=[
            pltpu.VMEM((Hx + 2, Wx + 2, Cx), cdt),   # padded x-branch intermediate
            pltpu.VMEM((Hy + 2, Wy + 2, C), cdt),    # padded y-branch intermediate
            pltpu.VMEM((2 * C, Hx, Wx), jnp.float32),  # channel-major [seg1*a|1-a]
        ],
        compiler_params=pltpu.CompilerParams(
            dimension_semantics=("parallel",),
            vmem_limit_bytes=vmem_limit,
        ),
    )(xpad, ypad, *consts)

    return out                                              # already NCHW


# ---------------------------------------------------------------------------
# Deterministic synthetic parameters (kaiming-like convs, BN folded for inference)
# ---------------------------------------------------------------------------
def init_branch_attention_params(key, in_channels, out_channels):
    keys = iter(jax.random.split(key, 96))

    def conv_w(kh, kw, ci, co):
        fan_out = kh * kw * co
        return jax.random.normal(next(keys), (kh, kw, ci, co), jnp.float32) \
            * np.sqrt(2.0 / fan_out)

    def bn(c):
        # TODO(synk): BatchNorm2d is folded as its inference-mode affine using
        # synthetic (gamma, beta, running_mean, running_var); training-mode batch
        # statistics of the PyTorch module are not reproduced.
        gamma = jax.random.uniform(next(keys), (c,), minval=0.5, maxval=1.5)
        beta = jax.random.normal(next(keys), (c,)) * 0.1
        mean = jax.random.normal(next(keys), (c,)) * 0.1
        var = jax.random.uniform(next(keys), (c,), minval=0.5, maxval=1.5)
        eps = 1e-5
        scale = gamma / jnp.sqrt(var + eps)
        bias = beta - mean * scale
        return scale.astype(jnp.float32), bias.astype(jnp.float32)

    def head(ci, co):
        return dict(w1=conv_w(3, 3, ci, co), bn1=bn(co),
                    w2=conv_w(3, 3, co, co), bn2=bn(co),
                    w3=conv_w(1, 1, co, co))

    def attn(c):
        h = c // 2
        return dict(w1=conv_w(3, 3, c, h), bn1=bn(h),
                    w2=conv_w(3, 3, h, h), bn2=bn(h),
                    w3=conv_w(1, 1, h, c))

    return dict(head1=head(in_channels, out_channels),
                head2=head(in_channels, out_channels),
                attn1=attn(out_channels),
                attn2=attn(out_channels))   # defined but unused, as in PyTorch forward


# ---------------------------------------------------------------------------
# Pure-JAX reference (correctness check)
# ---------------------------------------------------------------------------
def _ref_conv(x, w, pad):
    return lax.conv_general_dilated(x, w, (1, 1), [(pad, pad), (pad, pad)],
                                    dimension_numbers=('NHWC', 'HWIO', 'NHWC'))


def _ref_head(x, p):
    h = jnp.maximum(_ref_conv(x, p['w1'], 1) * p['bn1'][0] + p['bn1'][1], 0.0)
    h = jnp.maximum(_ref_conv(h, p['w2'], 1) * p['bn2'][0] + p['bn2'][1], 0.0)
    return _ref_conv(h, p['w3'], 0)


def branch_attention_ref(x_nchw, y_nchw, params):
    x = jnp.transpose(x_nchw, (0, 2, 3, 1))
    y = jnp.transpose(y_nchw, (0, 2, 3, 1))
    _, Hx, Wx, _ = x.shape
    _, Hy, Wy, _ = y.shape
    seg1 = _ref_head(x, params['head1'])
    seg2 = _ref_head(y, params['head2'])
    a = jax.nn.sigmoid(_ref_head(x, params['attn1']))
    Rh = _bilinear_matrix(Hy, Hx)
    Rw = _bilinear_matrix(Wy, Wx)

    def interp(z):
        return jnp.einsum('oh,pw,bhwc->bopc', Rh, Rw, z)

    out = interp(seg1 * a) + seg2 * interp(1.0 - a)
    return jnp.transpose(out, (0, 3, 1, 2))


if __name__ == "__main__":
    key = jax.random.PRNGKey(0)
    kx, ky, kp = jax.random.split(key, 3)

    # in_channels == out_channels == 8 (required by attention_layer1(x), as in PyTorch).
    # x is the deeper / smaller feature map, y the shallower / larger one.
    B, C, Hx, Wx, Hy, Wy = 2, 8, 8, 8, 16, 16
    x = jax.random.normal(kx, (B, C, Hx, Wx), jnp.float32)   # NCHW
    y = jax.random.normal(ky, (B, C, Hy, Wy), jnp.float32)   # NCHW
    params = init_branch_attention_params(kp, C, C)

    ref = branch_attention_ref(x, y, params)

    # f32 path: closely comparable with the pure-JAX reference.
    fwd_f32 = jax.jit(functools.partial(branch_attention_fwd, compute_dtype=jnp.float32))
    out_f32 = jax.block_until_ready(fwd_f32(x, y, params))
    np.testing.assert_allclose(np.asarray(out_f32), np.asarray(ref),
                               rtol=1e-4, atol=1e-4)

    # bf16 MXU-operand path (conv matmuls only; BN/sigmoid/upsample stay f32).
    fwd_bf16 = jax.jit(functools.partial(branch_attention_fwd, compute_dtype=jnp.bfloat16))
    out_bf16 = jax.block_until_ready(fwd_bf16(x, y, params))
    np.testing.assert_allclose(np.asarray(out_bf16), np.asarray(ref),
                               rtol=1e-1, atol=1e-1)

    print("KERNEL_OK")
</pallas_src>

<mosaic_0001>
module attributes {stable_mosaic.version = 11 : i64} {
  func.func @_branch_attention_kernel(%arg0: i32, %arg1: memref<1x10x10x8xf32, #tpu.memory_space<vmem>>, %arg2: memref<1x18x18x8xf32, #tpu.memory_space<vmem>>, %arg3: memref<9x8x12xf32, #tpu.memory_space<vmem>>, %arg4: memref<2x12xf32, #tpu.memory_space<vmem>>, %arg5: memref<9x12x12xf32, #tpu.memory_space<vmem>>, %arg6: memref<2x12xf32, #tpu.memory_space<vmem>>, %arg7: memref<16x12xf32, #tpu.memory_space<vmem>>, %arg8: memref<9x8x8xf32, #tpu.memory_space<vmem>>, %arg9: memref<2x8xf32, #tpu.memory_space<vmem>>, %arg10: memref<9x8x8xf32, #tpu.memory_space<vmem>>, %arg11: memref<2x8xf32, #tpu.memory_space<vmem>>, %arg12: memref<8x8xf32, #tpu.memory_space<vmem>>, %arg13: memref<16x8xf32, #tpu.memory_space<vmem>>, %arg14: memref<8x16xf32, #tpu.memory_space<vmem>>, %arg15: memref<1x8x16x16xf32, #tpu.memory_space<vmem>>, %arg16: memref<10x10x12xf32, #tpu.memory_space<vmem>>, %arg17: memref<18x18x8xf32, #tpu.memory_space<vmem>>, %arg18: memref<16x8x8xf32, #tpu.memory_space<vmem>>) attributes {dimension_semantics = [#tpu.dimension_semantics<parallel>], iteration_bounds = array<i64: 2>, scalar_prefetch = 0 : i64, scratch_operands = 3 : i64, tpu.core_type = #tpu.core_type<tc>, window_params = [{transform_indices = @transform_0, window_bounds = array<i64: 1, 10, 10, 8>}, {transform_indices = @transform_1, window_bounds = array<i64: 1, 18, 18, 8>}, {pipeline_mode = #tpu.pipeline_mode<synchronous>, transform_indices = @transform_2, window_bounds = array<i64: 9, 8, 12>}, {pipeline_mode = #tpu.pipeline_mode<synchronous>, transform_indices = @transform_3, window_bounds = array<i64: 2, 12>}, {pipeline_mode = #tpu.pipeline_mode<synchronous>, transform_indices = @transform_4, window_bounds = array<i64: 9, 12, 12>}, {pipeline_mode = #tpu.pipeline_mode<synchronous>, transform_indices = @transform_5, window_bounds = array<i64: 2, 12>}, {pipeline_mode = #tpu.pipeline_mode<synchronous>, transform_indices = @transform_6, window_bounds = array<i64: 16, 12>}, {pipeline_mode = #tpu.pipeline_mode<synchronous>, transform_indices = @transform_7, window_bounds = array<i64: 9, 8, 8>}, {pipeline_mode = #tpu.pipeline_mode<synchronous>, transform_indices = @transform_8, window_bounds = array<i64: 2, 8>}, {pipeline_mode = #tpu.pipeline_mode<synchronous>, transform_indices = @transform_9, window_bounds = array<i64: 9, 8, 8>}, {pipeline_mode = #tpu.pipeline_mode<synchronous>, transform_indices = @transform_10, window_bounds = array<i64: 2, 8>}, {pipeline_mode = #tpu.pipeline_mode<synchronous>, transform_indices = @transform_11, window_bounds = array<i64: 8, 8>}, {pipeline_mode = #tpu.pipeline_mode<synchronous>, transform_indices = @transform_12, window_bounds = array<i64: 16, 8>}, {pipeline_mode = #tpu.pipeline_mode<synchronous>, transform_indices = @transform_13, window_bounds = array<i64: 8, 16>}, {transform_indices = @transform_14, window_bounds = array<i64: 1, 8, 16, 16>}]} {
    %cst = arith.constant 0.000000e+00 : f32
    %0 = vector.broadcast %cst : f32 to vector<1x10x12xf32>
    %cst_0 = arith.constant 0.000000e+00 : f32
    %1 = vector.broadcast %cst_0 : f32 to vector<10x1x12xf32>
    %c0 = arith.constant 0 : index
    %c0_1 = arith.constant 0 : index
    %c0_2 = arith.constant 0 : index
    %2 = vector.load %arg16[%c0, %c0_1, %c0_2] : memref<10x10x12xf32, #tpu.memory_space<vmem>>, vector<1x10x12xf32>
    tpu.vector_store %arg16[%c0, %c0_1, %c0_2], %0 {strides = array<i32>} : memref<10x10x12xf32, #tpu.memory_space<vmem>>, vector<1x10x12xf32>,
    %c9 = arith.constant 9 : index
    %c0_3 = arith.constant 0 : index
    %c0_4 = arith.constant 0 : index
    %3 = vector.load %arg16[%c9, %c0_3, %c0_4] : memref<10x10x12xf32, #tpu.memory_space<vmem>>, vector<1x10x12xf32>
    tpu.vector_store %arg16[%c9, %c0_3, %c0_4], %0 {strides = array<i32>} : memref<10x10x12xf32, #tpu.memory_space<vmem>>, vector<1x10x12xf32>,
    %c0_5 = arith.constant 0 : index
    %c0_6 = arith.constant 0 : index
    %c0_7 = arith.constant 0 : index
    %4 = vector.load %arg16[%c0_5, %c0_6, %c0_7] : memref<10x10x12xf32, #tpu.memory_space<vmem>>, vector<10x1x12xf32>
    tpu.vector_store %arg16[%c0_5, %c0_6, %c0_7], %1 {strides = array<i32>} : memref<10x10x12xf32, #tpu.memory_space<vmem>>, vector<10x1x12xf32>,
    %c0_8 = arith.constant 0 : index
    %c9_9 = arith.constant 9 : index
    %c0_10 = arith.constant 0 : index
    %5 = vector.load %arg16[%c0_8, %c9_9, %c0_10] : memref<10x10x12xf32, #tpu.memory_space<vmem>>, vector<10x1x12xf32>
    tpu.vector_store %arg16[%c0_8, %c9_9, %c0_10], %1 {strides = array<i32>} : memref<10x10x12xf32, #tpu.memory_space<vmem>>, vector<10x1x12xf32>,
    %cst_11 = arith.constant 0.000000e+00 : f32
    %6 = vector.broadcast %cst_11 : f32 to vector<1x18x8xf32>
    %cst_12 = arith.constant 0.000000e+00 : f32
    %7 = vector.broadcast %cst_12 : f32 to vector<18x1x8xf32>
    %c0_13 = arith.constant 0 : index
    %c0_14 = arith.constant 0 : index
    %c0_15 = arith.constant 0 : index
    %8 = vector.load %arg17[%c0_13, %c0_14, %c0_15] : memref<18x18x8xf32, #tpu.memory_space<vmem>>, vector<1x18x8xf32>
    tpu.vector_store %arg17[%c0_13, %c0_14, %c0_15], %6 {strides = array<i32>} : memref<18x18x8xf32, #tpu.memory_space<vmem>>, vector<1x18x8xf32>,
    %c17 = arith.constant 17 : index
    %c0_16 = arith.constant 0 : index
    %c0_17 = arith.constant 0 : index
    %9 = vector.load %arg17[%c17, %c0_16, %c0_17] : memref<18x18x8xf32, #tpu.memory_space<vmem>>, vector<1x18x8xf32>
    tpu.vector_store %arg17[%c17, %c0_16, %c0_17], %6 {strides = array<i32>} : memref<18x18x8xf32, #tpu.memory_space<vmem>>, vector<1x18x8xf32>,
    %c0_18 = arith.constant 0 : index
    %c0_19 = arith.constant 0 : index
    %c0_20 = arith.constant 0 : index
    %10 = vector.load %arg17[%c0_18, %c0_19, %c0_20] : memref<18x18x8xf32, #tpu.memory_space<vmem>>, vector<18x1x8xf32>
    tpu.vector_store %arg17[%c0_18, %c0_19, %c0_20], %7 {strides = array<i32>} : memref<18x18x8xf32, #tpu.memory_space<vmem>>, vector<18x1x8xf32>,
    %c0_21 = arith.constant 0 : index
    %c17_22 = arith.constant 17 : index
    %c0_23 = arith.constant 0 : index
    %11 = vector.load %arg17[%c0_21, %c17_22, %c0_23] : memref<18x18x8xf32, #tpu.memory_space<vmem>>, vector<18x1x8xf32>
    tpu.vector_store %arg17[%c0_21, %c17_22, %c0_23], %7 {strides = array<i32>} : memref<18x18x8xf32, #tpu.memory_space<vmem>>, vector<18x1x8xf32>,
    %c0_24 = arith.constant 0 : index
    %c0_25 = arith.constant 0 : index
    %c0_26 = arith.constant 0 : index
    %c0_27 = arith.constant 0 : index
    %12 = vector.load %arg1[%c0_24, %c0_25, %c0_26, %c0_27] : memref<1x10x10x8xf32, #tpu.memory_space<vmem>>, vector<1x8x8x8xf32>
    %13 = vector.shape_cast %12 : vector<1x8x8x8xf32> to vector<8x8x8xf32>
    %14 = vector.shape_cast %13 : vector<8x8x8xf32> to vector<64x8xf32>
    %c0_28 = arith.constant 0 : index
    %c0_29 = arith.constant 0 : index
    %c0_30 = arith.constant 0 : index
    %15 = vector.load %arg3[%c0_28, %c0_29, %c0_30] : memref<9x8x12xf32, #tpu.memory_space<vmem>>, vector<1x8x12xf32>
    %16 = vector.shape_cast %15 : vector<1x8x12xf32> to vector<8x12xf32>
    %cst_31 = arith.constant dense<0.000000e+00> : vector<64x12xf32>
    %17 = tpu.matmul %14, %16, %cst_31 {dimension_numbers = #tpu.dot_dimension_numbers<[1], [0], [0], [1], [0, 0, 1, 1], [], []>} : vector<64x8xf32>, vector<8x12xf32>, vector<64x12xf32> -> vector<64x12xf32>
    %c0_32 = arith.constant 0 : index
    %c0_33 = arith.constant 0 : index
    %c1 = arith.constant 1 : index
    %c0_34 = arith.constant 0 : index
    %18 = vector.load %arg1[%c0_32, %c0_33, %c1, %c0_34] : memref<1x10x10x8xf32, #tpu.memory_space<vmem>>, vector<1x8x8x8xf32>
    %19 = vector.shape_cast %18 : vector<1x8x8x8xf32> to vector<8x8x8xf32>
    %20 = vector.shape_cast %19 : vector<8x8x8xf32> to vector<64x8xf32>
    %c1_35 = arith.constant 1 : index
    %c0_36 = arith.constant 0 : index
    %c0_37 = arith.constant 0 : index
    %21 = vector.load %arg3[%c1_35, %c0_36, %c0_37] : memref<9x8x12xf32, #tpu.memory_space<vmem>>, vector<1x8x12xf32>
    %22 = vector.shape_cast %21 : vector<1x8x12xf32> to vector<8x12xf32>
    %cst_38 = arith.constant dense<0.000000e+00> : vector<64x12xf32>
    %23 = tpu.matmul %20, %22, %cst_38 {dimension_numbers = #tpu.dot_dimension_numbers<[1], [0], [0], [1], [0, 0, 1, 1], [], []>} : vector<64x8xf32>, vector<8x12xf32>, vector<64x12xf32> -> vector<64x12xf32>
    %24 = arith.addf %17, %23 : vector<64x12xf32>
    %c0_39 = arith.constant 0 : index
    %c0_40 = arith.constant 0 : index
    %c2 = arith.constant 2 : index
    %c0_41 = arith.constant 0 : index
    %25 = vector.load %arg1[%c0_39, %c0_40, %c2, %c0_41] : memref<1x10x10x8xf32, #tpu.memory_space<vmem>>, vector<1x8x8x8xf32>
    %26 = vector.shape_cast %25 : vector<1x8x8x8xf32> to vector<8x8x8xf32>
    %27 = vector.shape_cast %26 : vector<8x8x8xf32> to vector<64x8xf32>
    %c2_42 = arith.constant 2 : index
    %c0_43 = arith.constant 0 : index
    %c0_44 = arith.constant 0 : index
    %28 = vector.load %arg3[%c2_42, %c0_43, %c0_44] : memref<9x8x12xf32, #tpu.memory_space<vmem>>, vector<1x8x12xf32>
    %29 = vector.shape_cast %28 : vector<1x8x12xf32> to vector<8x12xf32>
    %cst_45 = arith.constant dense<0.000000e+00> : vector<64x12xf32>
    %30 = tpu.matmul %27, %29, %cst_45 {dimension_numbers = #tpu.dot_dimension_numbers<[1], [0], [0], [1], [0, 0, 1, 1], [], []>} : vector<64x8xf32>, vector<8x12xf32>, vector<64x12xf32> -> vector<64x12xf32>
    %31 = arith.addf %24, %30 : vector<64x12xf32>
    %c0_46 = arith.constant 0 : index
    %c1_47 = arith.constant 1 : index
    %c0_48 = arith.constant 0 : index
    %c0_49 = arith.constant 0 : index
    %32 = vector.load %arg1[%c0_46, %c1_47, %c0_48, %c0_49] : memref<1x10x10x8xf32, #tpu.memory_space<vmem>>, vector<1x8x8x8xf32>
    %33 = vector.shape_cast %32 : vector<1x8x8x8xf32> to vector<8x8x8xf32>
    %34 = vector.shape_cast %33 : vector<8x8x8xf32> to vector<64x8xf32>
    %c3 = arith.constant 3 : index
    %c0_50 = arith.constant 0 : index
    %c0_51 = arith.constant 0 : index
    %35 = vector.load %arg3[%c3, %c0_50, %c0_51] : memref<9x8x12xf32, #tpu.memory_space<vmem>>, vector<1x8x12xf32>
    %36 = vector.shape_cast %35 : vector<1x8x12xf32> to vector<8x12xf32>
    %cst_52 = arith.constant dense<0.000000e+00> : vector<64x12xf32>
    %37 = tpu.matmul %34, %36, %cst_52 {dimension_numbers = #tpu.dot_dimension_numbers<[1], [0], [0], [1], [0, 0, 1, 1], [], []>} : vector<64x8xf32>, vector<8x12xf32>, vector<64x12xf32> -> vector<64x12xf32>
    %38 = arith.addf %31, %37 : vector<64x12xf32>
    %c0_53 = arith.constant 0 : index
    %c1_54 = arith.constant 1 : index
    %c1_55 = arith.constant 1 : index
    %c0_56 = arith.constant 0 : index
    %39 = vector.load %arg1[%c0_53, %c1_54, %c1_55, %c0_56] : memref<1x10x10x8xf32, #tpu.memory_space<vmem>>, vector<1x8x8x8xf32>
    %40 = vector.shape_cast %39 : vector<1x8x8x8xf32> to vector<8x8x8xf32>
    %41 = vector.shape_cast %40 : vector<8x8x8xf32> to vector<64x8xf32>
    %c4 = arith.constant 4 : index
    %c0_57 = arith.constant 0 : index
    %c0_58 = arith.constant 0 : index
    %42 = vector.load %arg3[%c4, %c0_57, %c0_58] : memref<9x8x12xf32, #tpu.memory_space<vmem>>, vector<1x8x12xf32>
    %43 = vector.shape_cast %42 : vector<1x8x12xf32> to vector<8x12xf32>
    %cst_59 = arith.constant dense<0.000000e+00> : vector<64x12xf32>
    %44 = tpu.matmul %41, %43, %cst_59 {dimension_numbers = #tpu.dot_dimension_numbers<[1], [0], [0], [1], [0, 0, 1, 1], [], []>} : vector<64x8xf32>, vector<8x12xf32>, vector<64x12xf32> -> vector<64x12xf32>
    %45 = arith.addf %38, %44 : vector<64x12xf32>
    %c0_60 = arith.constant 0 : index
    %c1_61 = arith.constant 1 : index
    %c2_62 = arith.constant 2 : index
    %c0_63 = arith.constant 0 : index
    %46 = vector.load %arg1[%c0_60, %c1_61, %c2_62, %c0_63] : memref<1x10x10x8xf32, #tpu.memory_space<vmem>>, vector<1x8x8x8xf32>
    %47 = vector.shape_cast %46 : vector<1x8x8x8xf32> to vector<8x8x8xf32>
    %48 = vector.shape_cast %47 : vector<8x8x8xf32> to vector<64x8xf32>
    %c5 = arith.constant 5 : index
    %c0_64 = arith.constant 0 : index
    %c0_65 = arith.constant 0 : index
    %49 = vector.load %arg3[%c5, %c0_64, %c0_65] : memref<9x8x12xf32, #tpu.memory_space<vmem>>, vector<1x8x12xf32>
    %50 = vector.shape_cast %49 : vector<1x8x12xf32> to vector<8x12xf32>
    %cst_66 = arith.constant dense<0.000000e+00> : vector<64x12xf32>
    %51 = tpu.matmul %48, %50, %cst_66 {dimension_numbers = #tpu.dot_dimension_numbers<[1], [0], [0], [1], [0, 0, 1, 1], [], []>} : vector<64x8xf32>, vector<8x12xf32>, vector<64x12xf32> -> vector<64x12xf32>
    %52 = arith.addf %45, %51 : vector<64x12xf32>
    %c0_67 = arith.constant 0 : index
    %c2_68 = arith.constant 2 : index
    %c0_69 = arith.constant 0 : index
    %c0_70 = arith.constant 0 : index
    %53 = vector.load %arg1[%c0_67, %c2_68, %c0_69, %c0_70] : memref<1x10x10x8xf32, #tpu.memory_space<vmem>>, vector<1x8x8x8xf32>
    %54 = vector.shape_cast %53 : vector<1x8x8x8xf32> to vector<8x8x8xf32>
    %55 = vector.shape_cast %54 : vector<8x8x8xf32> to vector<64x8xf32>
    %c6 = arith.constant 6 : index
    %c0_71 = arith.constant 0 : index
    %c0_72 = arith.constant 0 : index
    %56 = vector.load %arg3[%c6, %c0_71, %c0_72] : memref<9x8x12xf32, #tpu.memory_space<vmem>>, vector<1x8x12xf32>
    %57 = vector.shape_cast %56 : vector<1x8x12xf32> to vector<8x12xf32>
    %cst_73 = arith.constant dense<0.000000e+00> : vector<64x12xf32>
    %58 = tpu.matmul %55, %57, %cst_73 {dimension_numbers = #tpu.dot_dimension_numbers<[1], [0], [0], [1], [0, 0, 1, 1], [], []>} : vector<64x8xf32>, vector<8x12xf32>, vector<64x12xf32> -> vector<64x12xf32>
    %59 = arith.addf %52, %58 : vector<64x12xf32>
    %c0_74 = arith.constant 0 : index
    %c2_75 = arith.constant 2 : index
    %c1_76 = arith.constant 1 : index
    %c0_77 = arith.constant 0 : index
    %60 = vector.load %arg1[%c0_74, %c2_75, %c1_76, %c0_77] : memref<1x10x10x8xf32, #tpu.memory_space<vmem>>, vector<1x8x8x8xf32>
    %61 = vector.shape_cast %60 : vector<1x8x8x8xf32> to vector<8x8x8xf32>
    %62 = vector.shape_cast %61 : vector<8x8x8xf32> to vector<64x8xf32>
    %c7 = arith.constant 7 : index
    %c0_78 = arith.constant 0 : index
    %c0_79 = arith.constant 0 : index
    %63 = vector.load %arg3[%c7, %c0_78, %c0_79] : memref<9x8x12xf32, #tpu.memory_space<vmem>>, vector<1x8x12xf32>
    %64 = vector.shape_cast %63 : vector<1x8x12xf32> to vector<8x12xf32>
    %cst_80 = arith.constant dense<0.000000e+00> : vector<64x12xf32>
    %65 = tpu.matmul %62, %64, %cst_80 {dimension_numbers = #tpu.dot_dimension_numbers<[1], [0], [0], [1], [0, 0, 1, 1], [], []>} : vector<64x8xf32>, vector<8x12xf32>, vector<64x12xf32> -> vector<64x12xf32>
    %66 = arith.addf %59, %65 : vector<64x12xf32>
    %c0_81 = arith.constant 0 : index
    %c2_82 = arith.constant 2 : index
    %c2_83 = arith.constant 2 : index
    %c0_84 = arith.constant 0 : index
    %67 = vector.load %arg1[%c0_81, %c2_82, %c2_83, %c0_84] : memref<1x10x10x8xf32, #tpu.memory_space<vmem>>, vector<1x8x8x8xf32>
    %68 = vector.shape_cast %67 : vector<1x8x8x8xf32> to vector<8x8x8xf32>
    %69 = vector.shape_cast %68 : vector<8x8x8xf32> to vector<64x8xf32>
    %c8 = arith.constant 8 : index
    %c0_85 = arith.constant 0 : index
    %c0_86 = arith.constant 0 : index
    %70 = vector.load %arg3[%c8, %c0_85, %c0_86] : memref<9x8x12xf32, #tpu.memory_space<vmem>>, vector<1x8x12xf32>
    %71 = vector.shape_cast %70 : vector<1x8x12xf32> to vector<8x12xf32>
    %cst_87 = arith.constant dense<0.000000e+00> : vector<64x12xf32>
    %72 = tpu.matmul %69, %71, %cst_87 {dimension_numbers = #tpu.dot_dimension_numbers<[1], [0], [0], [1], [0, 0, 1, 1], [], []>} : vector<64x8xf32>, vector<8x12xf32>, vector<64x12xf32> -> vector<64x12xf32>
    %73 = arith.addf %66, %72 : vector<64x12xf32>
    %c0_88 = arith.constant 0 : index
    %c0_89 = arith.constant 0 : index
    %74 = vector.load %arg4[%c0_88, %c0_89] : memref<2x12xf32, #tpu.memory_space<vmem>>, vector<1x12xf32>
    %75 = vector.broadcast %74 : vector<1x12xf32> to vector<64x12xf32>
    %76 = arith.mulf %73, %75 : vector<64x12xf32>
    %c1_90 = arith.constant 1 : index
    %c0_91 = arith.constant 0 : index
    %77 = vector.load %arg4[%c1_90, %c0_91] : memref<2x12xf32, #tpu.memory_space<vmem>>, vector<1x12xf32>
    %78 = vector.broadcast %77 : vector<1x12xf32> to vector<64x12xf32>
    %79 = arith.addf %76, %78 : vector<64x12xf32>
    %cst_92 = arith.constant 0.000000e+00 : f32
    %80 = vector.broadcast %cst_92 : f32 to vector<64x12xf32>
    %81 = arith.maximumf %79, %80 : vector<64x12xf32>
    %82 = vector.shape_cast %81 : vector<64x12xf32> to vector<8x8x12xf32>
    %c1_93 = arith.constant 1 : index
    %c1_94 = arith.constant 1 : index
    %c0_95 = arith.constant 0 : index
    %83 = vector.load %arg16[%c1_93, %c1_94, %c0_95] : memref<10x10x12xf32, #tpu.memory_space<vmem>>, vector<8x8x12xf32>
    tpu.vector_store %arg16[%c1_93, %c1_94, %c0_95], %82 {strides = array<i32>} : memref<10x10x12xf32, #tpu.memory_space<vmem>>, vector<8x8x12xf32>,
    %c0_96 = arith.constant 0 : index
    %c0_97 = arith.constant 0 : index
    %c0_98 = arith.constant 0 : index
    %84 = vector.load %arg16[%c0_96, %c0_97, %c0_98] : memref<10x10x12xf32, #tpu.memory_space<vmem>>, vector<8x8x12xf32>
    %85 = vector.shape_cast %84 : vector<8x8x12xf32> to vector<64x12xf32>
    %c0_99 = arith.constant 0 : index
    %c0_100 = arith.constant 0 : index
    %c0_101 = arith.constant 0 : index
    %86 = vector.load %arg5[%c0_99, %c0_100, %c0_101] : memref<9x12x12xf32, #tpu.memory_space<vmem>>, vector<1x12x12xf32>
    %87 = vector.shape_cast %86 : vector<1x12x12xf32> to vector<12x12xf32>
    %cst_102 = arith.constant dense<0.000000e+00> : vector<64x12xf32>
    %88 = tpu.matmul %85, %87, %cst_102 {dimension_numbers = #tpu.dot_dimension_numbers<[1], [0], [0], [1], [0, 0, 1, 1], [], []>} : vector<64x12xf32>, vector<12x12xf32>, vector<64x12xf32> -> vector<64x12xf32>
    %c0_103 = arith.constant 0 : index
    %c1_104 = arith.constant 1 : index
    %c0_105 = arith.constant 0 : index
    %89 = vector.load %arg16[%c0_103, %c1_104, %c0_105] : memref<10x10x12xf32, #tpu.memory_space<vmem>>, vector<8x8x12xf32>
    %90 = vector.shape_cast %89 : vector<8x8x12xf32> to vector<64x12xf32>
    %c1_106 = arith.constant 1 : index
    %c0_107 = arith.constant 0 : index
    %c0_108 = arith.constant 0 : index
    %91 = vector.load %arg5[%c1_106, %c0_107, %c0_108] : memref<9x12x12xf32, #tpu.memory_space<vmem>>, vector<1x12x12xf32>
    %92 = vector.shape_cast %91 : vector<1x12x12xf32> to vector<12x12xf32>
    %cst_109 = arith.constant dense<0.000000e+00> : vector<64x12xf32>
    %93 = tpu.matmul %90, %92, %cst_109 {dimension_numbers = #tpu.dot_dimension_numbers<[1], [0], [0], [1], [0, 0, 1, 1], [], []>} : vector<64x12xf32>, vector<12x12xf32>, vector<64x12xf32> -> vector<64x12xf32>
    %94 = arith.addf %88, %93 : vector<64x12xf32>
    %c0_110 = arith.constant 0 : index
    %c2_111 = arith.constant 2 : index
    %c0_112 = arith.constant 0 : index
    %95 = vector.load %arg16[%c0_110, %c2_111, %c0_112] : memref<10x10x12xf32, #tpu.memory_space<vmem>>, vector<8x8x12xf32>
    %96 = vector.shape_cast %95 : vector<8x8x12xf32> to vector<64x12xf32>
    %c2_113 = arith.constant 2 : index
    %c0_114 = arith.constant 0 : index
    %c0_115 = arith.constant 0 : index
    %97 = vector.load %arg5[%c2_113, %c0_114, %c0_115] : memref<9x12x12xf32, #tpu.memory_space<vmem>>, vector<1x12x12xf32>
    %98 = vector.shape_cast %97 : vector<1x12x12xf32> to vector<12x12xf32>
    %cst_116 = arith.constant dense<0.000000e+00> : vector<64x12xf32>
    %99 = tpu.matmul %96, %98, %cst_116 {dimension_numbers = #tpu.dot_dimension_numbers<[1], [0], [0], [1], [0, 0, 1, 1], [], []>} : vector<64x12xf32>, vector<12x12xf32>, vector<64x12xf32> -> vector<64x12xf32>
    %100 = arith.addf %94, %99 : vector<64x12xf32>
    %c1_117 = arith.constant 1 : index
    %c0_118 = arith.constant 0 : index
    %c0_119 = arith.constant 0 : index
    %101 = vector.load %arg16[%c1_117, %c0_118, %c0_119] : memref<10x10x12xf32, #tpu.memory_space<vmem>>, vector<8x8x12xf32>
    %102 = vector.shape_cast %101 : vector<8x8x12xf32> to vector<64x12xf32>
    %c3_120 = arith.constant 3 : index
    %c0_121 = arith.constant 0 : index
    %c0_122 = arith.constant 0 : index
    %103 = vector.load %arg5[%c3_120, %c0_121, %c0_122] : memref<9x12x12xf32, #tpu.memory_space<vmem>>, vector<1x12x12xf32>
    %104 = vector.shape_cast %103 : vector<1x12x12xf32> to vector<12x12xf32>
    %cst_123 = arith.constant dense<0.000000e+00> : vector<64x12xf32>
    %105 = tpu.matmul %102, %104, %cst_123 {dimension_numbers = #tpu.dot_dimension_numbers<[1], [0], [0], [1], [0, 0, 1, 1], [], []>} : vector<64x12xf32>, vector<12x12xf32>, vector<64x12xf32> -> vector<64x12xf32>
    %106 = arith.addf %100, %105 : vector<64x12xf32>
    %c1_124 = arith.constant 1 : index
    %c1_125 = arith.constant 1 : index
    %c0_126 = arith.constant 0 : index
    %107 = vector.load %arg16[%c1_124, %c1_125, %c0_126] : memref<10x10x12xf32, #tpu.memory_space<vmem>>, vector<8x8x12xf32>
    %108 = vector.shape_cast %107 : vector<8x8x12xf32> to vector<64x12xf32>
    %c4_127 = arith.constant 4 : index
    %c0_128 = arith.constant 0 : index
    %c0_129 = arith.constant 0 : index
    %109 = vector.load %arg5[%c4_127, %c0_128, %c0_129] : memref<9x12x12xf32, #tpu.memory_space<vmem>>, vector<1x12x12xf32>
    %110 = vector.shape_cast %109 : vector<1x12x12xf32> to vector<12x12xf32>
    %cst_130 = arith.constant dense<0.000000e+00> : vector<64x12xf32>
    %111 = tpu.matmul %108, %110, %cst_130 {dimension_numbers = #tpu.dot_dimension_numbers<[1], [0], [0], [1], [0, 0, 1, 1], [], []>} : vector<64x12xf32>, vector<12x12xf32>, vector<64x12xf32> -> vector<64x12xf32>
    %112 = arith.addf %106, %111 : vector<64x12xf32>
    %c1_131 = arith.constant 1 : index
    %c2_132 = arith.constant 2 : index
    %c0_133 = arith.constant 0 : index
    %113 = vector.load %arg16[%c1_131, %c2_132, %c0_133] : memref<10x10x12xf32, #tpu.memory_space<vmem>>, vector<8x8x12xf32>
    %114 = vector.shape_cast %113 : vector<8x8x12xf32> to vector<64x12xf32>
    %c5_134 = arith.constant 5 : index
    %c0_135 = arith.constant 0 : index
    %c0_136 = arith.constant 0 : index
    %115 = vector.load %arg5[%c5_134, %c0_135, %c0_136] : memref<9x12x12xf32, #tpu.memory_space<vmem>>, vector<1x12x12xf32>
    %116 = vector.shape_cast %115 : vector<1x12x12xf32> to vector<12x12xf32>
    %cst_137 = arith.constant dense<0.000000e+00> : vector<64x12xf32>
    %117 = tpu.matmul %114, %116, %cst_137 {dimension_numbers = #tpu.dot_dimension_numbers<[1], [0], [0], [1], [0, 0, 1, 1], [], []>} : vector<64x12xf32>, vector<12x12xf32>, vector<64x12xf32> -> vector<64x12xf32>
    %118 = arith.addf %112, %117 : vector<64x12xf32>
    %c2_138 = arith.constant 2 : index
    %c0_139 = arith.constant 0 : index
    %c0_140 = arith.constant 0 : index
    %119 = vector.load %arg16[%c2_138, %c0_139, %c0_140] : memref<10x10x12xf32, #tpu.memory_space<vmem>>, vector<8x8x12xf32>
    %120 = vector.shape_cast %119 : vector<8x8x12xf32> to vector<64x12xf32>
    %c6_141 = arith.constant 6 : index
    %c0_142 = arith.constant 0 : index
    %c0_143 = arith.constant 0 : index
    %121 = vector.load %arg5[%c6_141, %c0_142, %c0_143] : memref<9x12x12xf32, #tpu.memory_space<vmem>>, vector<1x12x12xf32>
    %122 = vector.shape_cast %121 : vector<1x12x12xf32> to vector<12x12xf32>
    %cst_144 = arith.constant dense<0.000000e+00> : vector<64x12xf32>
    %123 = tpu.matmul %120, %122, %cst_144 {dimension_numbers = #tpu.dot_dimension_numbers<[1], [0], [0], [1], [0, 0, 1, 1], [], []>} : vector<64x12xf32>, vector<12x12xf32>, vector<64x12xf32> -> vector<64x12xf32>
    %124 = arith.addf %118, %123 : vector<64x12xf32>
    %c2_145 = arith.constant 2 : index
    %c1_146 = arith.constant 1 : index
    %c0_147 = arith.constant 0 : index
    %125 = vector.load %arg16[%c2_145, %c1_146, %c0_147] : memref<10x10x12xf32, #tpu.memory_space<vmem>>, vector<8x8x12xf32>
    %126 = vector.shape_cast %125 : vector<8x8x12xf32> to vector<64x12xf32>
    %c7_148 = arith.constant 7 : index
    %c0_149 = arith.constant 0 : index
    %c0_150 = arith.constant 0 : index
    %127 = vector.load %arg5[%c7_148, %c0_149, %c0_150] : memref<9x12x12xf32, #tpu.memory_space<vmem>>, vector<1x12x12xf32>
    %128 = vector.shape_cast %127 : vector<1x12x12xf32> to vector<12x12xf32>
    %cst_151 = arith.constant dense<0.000000e+00> : vector<64x12xf32>
    %129 = tpu.matmul %126, %128, %cst_151 {dimension_numbers = #tpu.dot_dimension_numbers<[1], [0], [0], [1], [0, 0, 1, 1], [], []>} : vector<64x12xf32>, vector<12x12xf32>, vector<64x12xf32> -> vector<64x12xf32>
    %130 = arith.addf %124, %129 : vector<64x12xf32>
    %c2_152 = arith.constant 2 : index
    %c2_153 = arith.constant 2 : index
    %c0_154 = arith.constant 0 : index
    %131 = vector.load %arg16[%c2_152, %c2_153, %c0_154] : memref<10x10x12xf32, #tpu.memory_space<vmem>>, vector<8x8x12xf32>
    %132 = vector.shape_cast %131 : vector<8x8x12xf32> to vector<64x12xf32>
    %c8_155 = arith.constant 8 : index
    %c0_156 = arith.constant 0 : index
    %c0_157 = arith.constant 0 : index
    %133 = vector.load %arg5[%c8_155, %c0_156, %c0_157] : memref<9x12x12xf32, #tpu.memory_space<vmem>>, vector<1x12x12xf32>
    %134 = vector.shape_cast %133 : vector<1x12x12xf32> to vector<12x12xf32>
    %cst_158 = arith.constant dense<0.000000e+00> : vector<64x12xf32>
    %135 = tpu.matmul %132, %134, %cst_158 {dimension_numbers = #tpu.dot_dimension_numbers<[1], [0], [0], [1], [0, 0, 1, 1], [], []>} : vector<64x12xf32>, vector<12x12xf32>, vector<64x12xf32> -> vector<64x12xf32>
    %136 = arith.addf %130, %135 : vector<64x12xf32>
    %c0_159 = arith.constant 0 : index
    %c0_160 = arith.constant 0 : index
    %137 = vector.load %arg6[%c0_159, %c0_160] : memref<2x12xf32, #tpu.memory_space<vmem>>, vector<1x12xf32>
    %138 = vector.broadcast %137 : vector<1x12xf32> to vector<64x12xf32>
    %139 = arith.mulf %136, %138 : vector<64x12xf32>
    %c1_161 = arith.constant 1 : index
    %c0_162 = arith.constant 0 : index
    %140 = vector.load %arg6[%c1_161, %c0_162] : memref<2x12xf32, #tpu.memory_space<vmem>>, vector<1x12xf32>
    %141 = vector.broadcast %140 : vector<1x12xf32> to vector<64x12xf32>
    %142 = arith.addf %139, %141 : vector<64x12xf32>
    %cst_163 = arith.constant 0.000000e+00 : f32
    %143 = vector.broadcast %cst_163 : f32 to vector<64x12xf32>
    %144 = arith.maximumf %142, %143 : vector<64x12xf32>
    %c0_164 = arith.constant 0 : index
    %c0_165 = arith.constant 0 : index
    %145 = vector.load %arg7[%c0_164, %c0_165] : memref<16x12xf32, #tpu.memory_space<vmem>>, vector<16x12xf32>
    %146 = tpu.transpose %144, [1, 0] : vector<64x12xf32> -> vector<12x64xf32>
    %cst_166 = arith.constant dense<0.000000e+00> : vector<16x64xf32>
    %147 = tpu.matmul %145, %146, %cst_166 {dimension_numbers = #tpu.dot_dimension_numbers<[1], [0], [0], [1], [0, 0, 1, 1], [], []>} : vector<16x12xf32>, vector<12x64xf32>, vector<16x64xf32> -> vector<16x64xf32>
    %148 = vector.extract_strided_slice %147 {offsets = [0, 0], sizes = [8, 64], strides = [1, 1]} : vector<16x64xf32> to vector<8x64xf32>
    %149 = vector.extract_strided_slice %147 {offsets = [8, 0], sizes = [8, 64], strides = [1, 1]} : vector<16x64xf32> to vector<8x64xf32>
    %150 = arith.negf %149 : vector<8x64xf32>
    %151 = math.exp %150 : vector<8x64xf32>
    %cst_167 = arith.constant 1.000000e+00 : f32
    %152 = vector.broadcast %cst_167 : f32 to vector<8x64xf32>
    %153 = arith.addf %152, %151 : vector<8x64xf32>
    %154 = arith.divf %152, %153 : vector<8x64xf32>
    %155 = arith.mulf %148, %154 : vector<8x64xf32>
    %cst_168 = arith.constant 1.000000e+00 : f32
    %156 = vector.broadcast %cst_168 : f32 to vector<8x64xf32>
    %157 = arith.subf %156, %154 : vector<8x64xf32>
    %158 = tpu.concatenate %155, %157 in 0 : vector<8x64xf32>, vector<8x64xf32> -> vector<16x64xf32>
    %c0_169 = arith.constant 0 : index
    %c0_170 = arith.constant 0 : index
    %c0_171 = arith.constant 0 : index
    %c0_172 = arith.constant 0 : index
    %159 = vector.load %arg2[%c0_169, %c0_170, %c0_171, %c0_172] : memref<1x18x18x8xf32, #tpu.memory_space<vmem>>, vector<1x16x16x8xf32>
    %160 = vector.shape_cast %159 : vector<1x16x16x8xf32> to vector<16x16x8xf32>
    %161 = vector.shape_cast %160 : vector<16x16x8xf32> to vector<256x8xf32>
    %c0_173 = arith.constant 0 : index
    %c0_174 = arith.constant 0 : index
    %c0_175 = arith.constant 0 : index
    %162 = vector.load %arg8[%c0_173, %c0_174, %c0_175] : memref<9x8x8xf32, #tpu.memory_space<vmem>>, vector<1x8x8xf32>
    %163 = vector.shape_cast %162 : vector<1x8x8xf32> to vector<8x8xf32>
    %cst_176 = arith.constant dense<0.000000e+00> : vector<256x8xf32>
    %164 = tpu.matmul %161, %163, %cst_176 {dimension_numbers = #tpu.dot_dimension_numbers<[1], [0], [0], [1], [0, 0, 1, 1], [], []>} : vector<256x8xf32>, vector<8x8xf32>, vector<256x8xf32> -> vector<256x8xf32>
    %c0_177 = arith.constant 0 : index
    %c0_178 = arith.constant 0 : index
    %c1_179 = arith.constant 1 : index
    %c0_180 = arith.constant 0 : index
    %165 = vector.load %arg2[%c0_177, %c0_178, %c1_179, %c0_180] : memref<1x18x18x8xf32, #tpu.memory_space<vmem>>, vector<1x16x16x8xf32>
    %166 = vector.shape_cast %165 : vector<1x16x16x8xf32> to vector<16x16x8xf32>
    %167 = vector.shape_cast %166 : vector<16x16x8xf32> to vector<256x8xf32>
    %c1_181 = arith.constant 1 : index
    %c0_182 = arith.constant 0 : index
    %c0_183 = arith.constant 0 : index
    %168 = vector.load %arg8[%c1_181, %c0_182, %c0_183] : memref<9x8x8xf32, #tpu.memory_space<vmem>>, vector<1x8x8xf32>
    %169 = vector.shape_cast %168 : vector<1x8x8xf32> to vector<8x8xf32>
    %cst_184 = arith.constant dense<0.000000e+00> : vector<256x8xf32>
    %170 = tpu.matmul %167, %169, %cst_184 {dimension_numbers = #tpu.dot_dimension_numbers<[1], [0], [0], [1], [0, 0, 1, 1], [], []>} : vector<256x8xf32>, vector<8x8xf32>, vector<256x8xf32> -> vector<256x8xf32>
    %171 = arith.addf %164, %170 : vector<256x8xf32>
    %c0_185 = arith.constant 0 : index
    %c0_186 = arith.constant 0 : index
    %c2_187 = arith.constant 2 : index
    %c0_188 = arith.constant 0 : index
    %172 = vector.load %arg2[%c0_185, %c0_186, %c2_187, %c0_188] : memref<1x18x18x8xf32, #tpu.memory_space<vmem>>, vector<1x16x16x8xf32>
    %173 = vector.shape_cast %172 : vector<1x16x16x8xf32> to vector<16x16x8xf32>
    %174 = vector.shape_cast %173 : vector<16x16x8xf32> to vector<256x8xf32>
    %c2_189 = arith.constant 2 : index
    %c0_190 = arith.constant 0 : index
    %c0_191 = arith.constant 0 : index
    %175 = vector.load %arg8[%c2_189, %c0_190, %c0_191] : memref<9x8x8xf32, #tpu.memory_space<vmem>>, vector<1x8x8xf32>
    %176 = vector.shape_cast %175 : vector<1x8x8xf32> to vector<8x8xf32>
    %cst_192 = arith.constant dense<0.000000e+00> : vector<256x8xf32>
    %177 = tpu.matmul %174, %176, %cst_192 {dimension_numbers = #tpu.dot_dimension_numbers<[1], [0], [0], [1], [0, 0, 1, 1], [], []>} : vector<256x8xf32>, vector<8x8xf32>, vector<256x8xf32> -> vector<256x8xf32>
    %178 = arith.addf %171, %177 : vector<256x8xf32>
    %c0_193 = arith.constant 0 : index
    %c1_194 = arith.constant 1 : index
    %c0_195 = arith.constant 0 : index
    %c0_196 = arith.constant 0 : index
    %179 = vector.load %arg2[%c0_193, %c1_194, %c0_195, %c0_196] : memref<1x18x18x8xf32, #tpu.memory_space<vmem>>, vector<1x16x16x8xf32>
    %180 = vector.shape_cast %179 : vector<1x16x16x8xf32> to vector<16x16x8xf32>
    %181 = vector.shape_cast %180 : vector<16x16x8xf32> to vector<256x8xf32>
    %c3_197 = arith.constant 3 : index
    %c0_198 = arith.constant 0 : index
    %c0_199 = arith.constant 0 : index
    %182 = vector.load %arg8[%c3_197, %c0_198, %c0_199] : memref<9x8x8xf32, #tpu.memory_space<vmem>>, vector<1x8x8xf32>
    %183 = vector.shape_cast %182 : vector<1x8x8xf32> to vector<8x8xf32>
    %cst_200 = arith.constant dense<0.000000e+00> : vector<256x8xf32>
    %184 = tpu.matmul %181, %183, %cst_200 {dimension_numbers = #tpu.dot_dimension_numbers<[1], [0], [0], [1], [0, 0, 1, 1], [], []>} : vector<256x8xf32>, vector<8x8xf32>, vector<256x8xf32> -> vector<256x8xf32>
    %185 = arith.addf %178, %184 : vector<256x8xf32>
    %c0_201 = arith.constant 0 : index
    %c1_202 = arith.constant 1 : index
    %c1_203 = arith.constant 1 : index
    %c0_204 = arith.constant 0 : index
    %186 = vector.load %arg2[%c0_201, %c1_202, %c1_203, %c0_204] : memref<1x18x18x8xf32, #tpu.memory_space<vmem>>, vector<1x16x16x8xf32>
    %187 = vector.shape_cast %186 : vector<1x16x16x8xf32> to vector<16x16x8xf32>
    %188 = vector.shape_cast %187 : vector<16x16x8xf32> to vector<256x8xf32>
    %c4_205 = arith.constant 4 : index
    %c0_206 = arith.constant 0 : index
    %c0_207 = arith.constant 0 : index
    %189 = vector.load %arg8[%c4_205, %c0_206, %c0_207] : memref<9x8x8xf32, #tpu.memory_space<vmem>>, vector<1x8x8xf32>
    %190 = vector.shape_cast %189 : vector<1x8x8xf32> to vector<8x8xf32>
    %cst_208 = arith.constant dense<0.000000e+00> : vector<256x8xf32>
    %191 = tpu.matmul %188, %190, %cst_208 {dimension_numbers = #tpu.dot_dimension_numbers<[1], [0], [0], [1], [0, 0, 1, 1], [], []>} : vector<256x8xf32>, vector<8x8xf32>, vector<256x8xf32> -> vector<256x8xf32>
    %192 = arith.addf %185, %191 : vector<256x8xf32>
    %c0_209 = arith.constant 0 : index
    %c1_210 = arith.constant 1 : index
    %c2_211 = arith.constant 2 : index
    %c0_212 = arith.constant 0 : index
    %193 = vector.load %arg2[%c0_209, %c1_210, %c2_211, %c0_212] : memref<1x18x18x8xf32, #tpu.memory_space<vmem>>, vector<1x16x16x8xf32>
    %194 = vector.shape_cast %193 : vector<1x16x16x8xf32> to vector<16x16x8xf32>
    %195 = vector.shape_cast %194 : vector<16x16x8xf32> to vector<256x8xf32>
    %c5_213 = arith.constant 5 : index
    %c0_214 = arith.constant 0 : index
    %c0_215 = arith.constant 0 : index
    %196 = vector.load %arg8[%c5_213, %c0_214, %c0_215] : memref<9x8x8xf32, #tpu.memory_space<vmem>>, vector<1x8x8xf32>
    %197 = vector.shape_cast %196 : vector<1x8x8xf32> to vector<8x8xf32>
    %cst_216 = arith.constant dense<0.000000e+00> : vector<256x8xf32>
    %198 = tpu.matmul %195, %197, %cst_216 {dimension_numbers = #tpu.dot_dimension_numbers<[1], [0], [0], [1], [0, 0, 1, 1], [], []>} : vector<256x8xf32>, vector<8x8xf32>, vector<256x8xf32> -> vector<256x8xf32>
    %199 = arith.addf %192, %198 : vector<256x8xf32>
    %c0_217 = arith.constant 0 : index
    %c2_218 = arith.constant 2 : index
    %c0_219 = arith.constant 0 : index
    %c0_220 = arith.constant 0 : index
    %200 = vector.load %arg2[%c0_217, %c2_218, %c0_219, %c0_220] : memref<1x18x18x8xf32, #tpu.memory_space<vmem>>, vector<1x16x16x8xf32>
    %201 = vector.shape_cast %200 : vector<1x16x16x8xf32> to vector<16x16x8xf32>
    %202 = vector.shape_cast %201 : vector<16x16x8xf32> to vector<256x8xf32>
    %c6_221 = arith.constant 6 : index
    %c0_222 = arith.constant 0 : index
    %c0_223 = arith.constant 0 : index
    %203 = vector.load %arg8[%c6_221, %c0_222, %c0_223] : memref<9x8x8xf32, #tpu.memory_space<vmem>>, vector<1x8x8xf32>
    %204 = vector.shape_cast %203 : vector<1x8x8xf32> to vector<8x8xf32>
    %cst_224 = arith.constant dense<0.000000e+00> : vector<256x8xf32>
    %205 = tpu.matmul %202, %204, %cst_224 {dimension_numbers = #tpu.dot_dimension_numbers<[1], [0], [0], [1], [0, 0, 1, 1], [], []>} : vector<256x8xf32>, vector<8x8xf32>, vector<256x8xf32> -> vector<256x8xf32>
    %206 = arith.addf %199, %205 : vector<256x8xf32>
    %c0_225 = arith.constant 0 : index
    %c2_226 = arith.constant 2 : index
    %c1_227 = arith.constant 1 : index
    %c0_228 = arith.constant 0 : index
    %207 = vector.load %arg2[%c0_225, %c2_226, %c1_227, %c0_228] : memref<1x18x18x8xf32, #tpu.memory_space<vmem>>, vector<1x16x16x8xf32>
    %208 = vector.shape_cast %207 : vector<1x16x16x8xf32> to vector<16x16x8xf32>
    %209 = vector.shape_cast %208 : vector<16x16x8xf32> to vector<256x8xf32>
    %c7_229 = arith.constant 7 : index
    %c0_230 = arith.constant 0 : index
    %c0_231 = arith.constant 0 : index
    %210 = vector.load %arg8[%c7_229, %c0_230, %c0_231] : memref<9x8x8xf32, #tpu.memory_space<vmem>>, vector<1x8x8xf32>
    %211 = vector.shape_cast %210 : vector<1x8x8xf32> to vector<8x8xf32>
    %cst_232 = arith.constant dense<0.000000e+00> : vector<256x8xf32>
    %212 = tpu.matmul %209, %211, %cst_232 {dimension_numbers = #tpu.dot_dimension_numbers<[1], [0], [0], [1], [0, 0, 1, 1], [], []>} : vector<256x8xf32>, vector<8x8xf32>, vector<256x8xf32> -> vector<256x8xf32>
    %213 = arith.addf %206, %212 : vector<256x8xf32>
    %c0_233 = arith.constant 0 : index
    %c2_234 = arith.constant 2 : index
    %c2_235 = arith.constant 2 : index
    %c0_236 = arith.constant 0 : index
    %214 = vector.load %arg2[%c0_233, %c2_234, %c2_235, %c0_236] : memref<1x18x18x8xf32, #tpu.memory_space<vmem>>, vector<1x16x16x8xf32>
    %215 = vector.shape_cast %214 : vector<1x16x16x8xf32> to vector<16x16x8xf32>
    %216 = vector.shape_cast %215 : vector<16x16x8xf32> to vector<256x8xf32>
    %c8_237 = arith.constant 8 : index
    %c0_238 = arith.constant 0 : index
    %c0_239 = arith.constant 0 : index
    %217 = vector.load %arg8[%c8_237, %c0_238, %c0_239] : memref<9x8x8xf32, #tpu.memory_space<vmem>>, vector<1x8x8xf32>
    %218 = vector.shape_cast %217 : vector<1x8x8xf32> to vector<8x8xf32>
    %cst_240 = arith.constant dense<0.000000e+00> : vector<256x8xf32>
    %219 = tpu.matmul %216, %218, %cst_240 {dimension_numbers = #tpu.dot_dimension_numbers<[1], [0], [0], [1], [0, 0, 1, 1], [], []>} : vector<256x8xf32>, vector<8x8xf32>, vector<256x8xf32> -> vector<256x8xf32>
    %220 = arith.addf %213, %219 : vector<256x8xf32>
    %c0_241 = arith.constant 0 : index
    %c0_242 = arith.constant 0 : index
    %221 = vector.load %arg9[%c0_241, %c0_242] : memref<2x8xf32, #tpu.memory_space<vmem>>, vector<1x8xf32>
    %222 = vector.broadcast %221 : vector<1x8xf32> to vector<256x8xf32>
    %223 = arith.mulf %220, %222 : vector<256x8xf32>
    %c1_243 = arith.constant 1 : index
    %c0_244 = arith.constant 0 : index
    %224 = vector.load %arg9[%c1_243, %c0_244] : memref<2x8xf32, #tpu.memory_space<vmem>>, vector<1x8xf32>
    %225 = vector.broadcast %224 : vector<1x8xf32> to vector<256x8xf32>
    %226 = arith.addf %223, %225 : vector<256x8xf32>
    %cst_245 = arith.constant 0.000000e+00 : f32
    %227 = vector.broadcast %cst_245 : f32 to vector<256x8xf32>
    %228 = arith.maximumf %226, %227 : vector<256x8xf32>
    %229 = vector.shape_cast %228 : vector<256x8xf32> to vector<16x16x8xf32>
    %c1_246 = arith.constant 1 : index
    %c1_247 = arith.constant 1 : index
    %c0_248 = arith.constant 0 : index
    %230 = vector.load %arg17[%c1_246, %c1_247, %c0_248] : memref<18x18x8xf32, #tpu.memory_space<vmem>>, vector<16x16x8xf32>
    tpu.vector_store %arg17[%c1_246, %c1_247, %c0_248], %229 {strides = array<i32>} : memref<18x18x8xf32, #tpu.memory_space<vmem>>, vector<16x16x8xf32>,
    %c0_249 = arith.constant 0 : index
    %c0_250 = arith.constant 0 : index
    %c0_251 = arith.constant 0 : index
    %231 = vector.load %arg17[%c0_249, %c0_250, %c0_251] : memref<18x18x8xf32, #tpu.memory_space<vmem>>, vector<16x16x8xf32>
    %232 = vector.shape_cast %231 : vector<16x16x8xf32> to vector<256x8xf32>
    %c0_252 = arith.constant 0 : index
    %c0_253 = arith.constant 0 : index
    %c0_254 = arith.constant 0 : index
    %233 = vector.load %arg10[%c0_252, %c0_253, %c0_254] : memref<9x8x8xf32, #tpu.memory_space<vmem>>, vector<1x8x8xf32>
    %234 = vector.shape_cast %233 : vector<1x8x8xf32> to vector<8x8xf32>
    %cst_255 = arith.constant dense<0.000000e+00> : vector<256x8xf32>
    %235 = tpu.matmul %232, %234, %cst_255 {dimension_numbers = #tpu.dot_dimension_numbers<[1], [0], [0], [1], [0, 0, 1, 1], [], []>} : vector<256x8xf32>, vector<8x8xf32>, vector<256x8xf32> -> vector<256x8xf32>
    %c0_256 = arith.constant 0 : index
    %c1_257 = arith.constant 1 : index
    %c0_258 = arith.constant 0 : index
    %236 = vector.load %arg17[%c0_256, %c1_257, %c0_258] : memref<18x18x8xf32, #tpu.memory_space<vmem>>, vector<16x16x8xf32>
    %237 = vector.shape_cast %236 : vector<16x16x8xf32> to vector<256x8xf32>
    %c1_259 = arith.constant 1 : index
    %c0_260 = arith.constant 0 : index
    %c0_261 = arith.constant 0 : index
    %238 = vector.load %arg10[%c1_259, %c0_260, %c0_261] : memref<9x8x8xf32, #tpu.memory_space<vmem>>, vector<1x8x8xf32>
    %239 = vector.shape_cast %238 : vector<1x8x8xf32> to vector<8x8xf32>
    %cst_262 = arith.constant dense<0.000000e+00> : vector<256x8xf32>
    %240 = tpu.matmul %237, %239, %cst_262 {dimension_numbers = #tpu.dot_dimension_numbers<[1], [0], [0], [1], [0, 0, 1, 1], [], []>} : vector<256x8xf32>, vector<8x8xf32>, vector<256x8xf32> -> vector<256x8xf32>
    %241 = arith.addf %235, %240 : vector<256x8xf32>
    %c0_263 = arith.constant 0 : index
    %c2_264 = arith.constant 2 : index
    %c0_265 = arith.constant 0 : index
    %242 = vector.load %arg17[%c0_263, %c2_264, %c0_265] : memref<18x18x8xf32, #tpu.memory_space<vmem>>, vector<16x16x8xf32>
    %243 = vector.shape_cast %242 : vector<16x16x8xf32> to vector<256x8xf32>
    %c2_266 = arith.constant 2 : index
    %c0_267 = arith.constant 0 : index
    %c0_268 = arith.constant 0 : index
    %244 = vector.load %arg10[%c2_266, %c0_267, %c0_268] : memref<9x8x8xf32, #tpu.memory_space<vmem>>, vector<1x8x8xf32>
    %245 = vector.shape_cast %244 : vector<1x8x8xf32> to vector<8x8xf32>
    %cst_269 = arith.constant dense<0.000000e+00> : vector<256x8xf32>
    %246 = tpu.matmul %243, %245, %cst_269 {dimension_numbers = #tpu.dot_dimension_numbers<[1], [0], [0], [1], [0, 0, 1, 1], [], []>} : vector<256x8xf32>, vector<8x8xf32>, vector<256x8xf32> -> vector<256x8xf32>
    %247 = arith.addf %241, %246 : vector<256x8xf32>
    %c1_270 = arith.constant 1 : index
    %c0_271 = arith.constant 0 : index
    %c0_272 = arith.constant 0 : index
    %248 = vector.load %arg17[%c1_270, %c0_271, %c0_272] : memref<18x18x8xf32, #tpu.memory_space<vmem>>, vector<16x16x8xf32>
    %249 = vector.shape_cast %248 : vector<16x16x8xf32> to vector<256x8xf32>
    %c3_273 = arith.constant 3 : index
    %c0_274 = arith.constant 0 : index
    %c0_275 = arith.constant 0 : index
    %250 = vector.load %arg10[%c3_273, %c0_274, %c0_275] : memref<9x8x8xf32, #tpu.memory_space<vmem>>, vector<1x8x8xf32>
    %251 = vector.shape_cast %250 : vector<1x8x8xf32> to vector<8x8xf32>
    %cst_276 = arith.constant dense<0.000000e+00> : vector<256x8xf32>
    %252 = tpu.matmul %249, %251, %cst_276 {dimension_numbers = #tpu.dot_dimension_numbers<[1], [0], [0], [1], [0, 0, 1, 1], [], []>} : vector<256x8xf32>, vector<8x8xf32>, vector<256x8xf32> -> vector<256x8xf32>
    %253 = arith.addf %247, %252 : vector<256x8xf32>
    %c1_277 = arith.constant 1 : index
    %c1_278 = arith.constant 1 : index
    %c0_279 = arith.constant 0 : index
    %254 = vector.load %arg17[%c1_277, %c1_278, %c0_279] : memref<18x18x8xf32, #tpu.memory_space<vmem>>, vector<16x16x8xf32>
    %255 = vector.shape_cast %254 : vector<16x16x8xf32> to vector<256x8xf32>
    %c4_280 = arith.constant 4 : index
    %c0_281 = arith.constant 0 : index
    %c0_282 = arith.constant 0 : index
    %256 = vector.load %arg10[%c4_280, %c0_281, %c0_282] : memref<9x8x8xf32, #tpu.memory_space<vmem>>, vector<1x8x8xf32>
    %257 = vector.shape_cast %256 : vector<1x8x8xf32> to vector<8x8xf32>
    %cst_283 = arith.constant dense<0.000000e+00> : vector<256x8xf32>
    %258 = tpu.matmul %255, %257, %cst_283 {dimension_numbers = #tpu.dot_dimension_numbers<[1], [0], [0], [1], [0, 0, 1, 1], [], []>} : vector<256x8xf32>, vector<8x8xf32>, vector<256x8xf32> -> vector<256x8xf32>
    %259 = arith.addf %253, %258 : vector<256x8xf32>
    %c1_284 = arith.constant 1 : index
    %c2_285 = arith.constant 2 : index
    %c0_286 = arith.constant 0 : index
    %260 = vector.load %arg17[%c1_284, %c2_285, %c0_286] : memref<18x18x8xf32, #tpu.memory_space<vmem>>, vector<16x16x8xf32>
    %261 = vector.shape_cast %260 : vector<16x16x8xf32> to vector<256x8xf32>
    %c5_287 = arith.constant 5 : index
    %c0_288 = arith.constant 0 : index
    %c0_289 = arith.constant 0 : index
    %262 = vector.load %arg10[%c5_287, %c0_288, %c0_289] : memref<9x8x8xf32, #tpu.memory_space<vmem>>, vector<1x8x8xf32>
    %263 = vector.shape_cast %262 : vector<1x8x8xf32> to vector<8x8xf32>
    %cst_290 = arith.constant dense<0.000000e+00> : vector<256x8xf32>
    %264 = tpu.matmul %261, %263, %cst_290 {dimension_numbers = #tpu.dot_dimension_numbers<[1], [0], [0], [1], [0, 0, 1, 1], [], []>} : vector<256x8xf32>, vector<8x8xf32>, vector<256x8xf32> -> vector<256x8xf32>
    %265 = arith.addf %259, %264 : vector<256x8xf32>
    %c2_291 = arith.constant 2 : index
    %c0_292 = arith.constant 0 : index
    %c0_293 = arith.constant 0 : index
    %266 = vector.load %arg17[%c2_291, %c0_292, %c0_293] : memref<18x18x8xf32, #tpu.memory_space<vmem>>, vector<16x16x8xf32>
    %267 = vector.shape_cast %266 : vector<16x16x8xf32> to vector<256x8xf32>
    %c6_294 = arith.constant 6 : index
    %c0_295 = arith.constant 0 : index
    %c0_296 = arith.constant 0 : index
    %268 = vector.load %arg10[%c6_294, %c0_295, %c0_296] : memref<9x8x8xf32, #tpu.memory_space<vmem>>, vector<1x8x8xf32>
    %269 = vector.shape_cast %268 : vector<1x8x8xf32> to vector<8x8xf32>
    %cst_297 = arith.constant dense<0.000000e+00> : vector<256x8xf32>
    %270 = tpu.matmul %267, %269, %cst_297 {dimension_numbers = #tpu.dot_dimension_numbers<[1], [0], [0], [1], [0, 0, 1, 1], [], []>} : vector<256x8xf32>, vector<8x8xf32>, vector<256x8xf32> -> vector<256x8xf32>
    %271 = arith.addf %265, %270 : vector<256x8xf32>
    %c2_298 = arith.constant 2 : index
    %c1_299 = arith.constant 1 : index
    %c0_300 = arith.constant 0 : index
    %272 = vector.load %arg17[%c2_298, %c1_299, %c0_300] : memref<18x18x8xf32, #tpu.memory_space<vmem>>, vector<16x16x8xf32>
    %273 = vector.shape_cast %272 : vector<16x16x8xf32> to vector<256x8xf32>
    %c7_301 = arith.constant 7 : index
    %c0_302 = arith.constant 0 : index
    %c0_303 = arith.constant 0 : index
    %274 = vector.load %arg10[%c7_301, %c0_302, %c0_303] : memref<9x8x8xf32, #tpu.memory_space<vmem>>, vector<1x8x8xf32>
    %275 = vector.shape_cast %274 : vector<1x8x8xf32> to vector<8x8xf32>
    %cst_304 = arith.constant dense<0.000000e+00> : vector<256x8xf32>
    %276 = tpu.matmul %273, %275, %cst_304 {dimension_numbers = #tpu.dot_dimension_numbers<[1], [0], [0], [1], [0, 0, 1, 1], [], []>} : vector<256x8xf32>, vector<8x8xf32>, vector<256x8xf32> -> vector<256x8xf32>
    %277 = arith.addf %271, %276 : vector<256x8xf32>
    %c2_305 = arith.constant 2 : index
    %c2_306 = arith.constant 2 : index
    %c0_307 = arith.constant 0 : index
    %278 = vector.load %arg17[%c2_305, %c2_306, %c0_307] : memref<18x18x8xf32, #tpu.memory_space<vmem>>, vector<16x16x8xf32>
    %279 = vector.shape_cast %278 : vector<16x16x8xf32> to vector<256x8xf32>
    %c8_308 = arith.constant 8 : index
    %c0_309 = arith.constant 0 : index
    %c0_310 = arith.constant 0 : index
    %280 = vector.load %arg10[%c8_308, %c0_309, %c0_310] : memref<9x8x8xf32, #tpu.memory_space<vmem>>, vector<1x8x8xf32>
    %281 = vector.shape_cast %280 : vector<1x8x8xf32> to vector<8x8xf32>
    %cst_311 = arith.constant dense<0.000000e+00> : vector<256x8xf32>
    %282 = tpu.matmul %279, %281, %cst_311 {dimension_numbers = #tpu.dot_dimension_numbers<[1], [0], [0], [1], [0, 0, 1, 1], [], []>} : vector<256x8xf32>, vector<8x8xf32>, vector<256x8xf32> -> vector<256x8xf32>
    %283 = arith.addf %277, %282 : vector<256x8xf32>
    %c0_312 = arith.constant 0 : index
    %c0_313 = arith.constant 0 : index
    %284 = vector.load %arg11[%c0_312, %c0_313] : memref<2x8xf32, #tpu.memory_space<vmem>>, vector<1x8xf32>
    %285 = vector.broadcast %284 : vector<1x8xf32> to vector<256x8xf32>
    %286 = arith.mulf %283, %285 : vector<256x8xf32>
    %c1_314 = arith.constant 1 : index
    %c0_315 = arith.constant 0 : index
    %287 = vector.load %arg11[%c1_314, %c0_315] : memref<2x8xf32, #tpu.memory_space<vmem>>, vector<1x8xf32>
    %288 = vector.broadcast %287 : vector<1x8xf32> to vector<256x8xf32>
    %289 = arith.addf %286, %288 : vector<256x8xf32>
    %cst_316 = arith.constant 0.000000e+00 : f32
    %290 = vector.broadcast %cst_316 : f32 to vector<256x8xf32>
    %291 = arith.maximumf %289, %290 : vector<256x8xf32>
    %c0_317 = arith.constant 0 : index
    %c0_318 = arith.constant 0 : index
    %292 = vector.load %arg12[%c0_317, %c0_318] : memref<8x8xf32, #tpu.memory_space<vmem>>, vector<8x8xf32>
    %293 = tpu.transpose %291, [1, 0] : vector<256x8xf32> -> vector<8x256xf32>
    %cst_319 = arith.constant dense<0.000000e+00> : vector<8x256xf32>
    %294 = tpu.matmul %292, %293, %cst_319 {dimension_numbers = #tpu.dot_dimension_numbers<[1], [0], [0], [1], [0, 0, 1, 1], [], []>} : vector<8x8xf32>, vector<8x256xf32>, vector<8x256xf32> -> vector<8x256xf32>
    %295 = vector.extract_strided_slice %158 {offsets = [0, 0], sizes = [16, 8], strides = [1, 1]} : vector<16x64xf32> to vector<16x8xf32>
    %296 = vector.shape_cast %295 : vector<16x8xf32> to vector<16x1x8xf32>
    %c0_320 = arith.constant 0 : index
    %c0_321 = arith.constant 0 : index
    %c0_322 = arith.constant 0 : index
    %297 = vector.load %arg18[%c0_320, %c0_321, %c0_322] : memref<16x8x8xf32, #tpu.memory_space<vmem>>, vector<16x1x8xf32>
    tpu.vector_store %arg18[%c0_320, %c0_321, %c0_322], %296 {strides = array<i32>} : memref<16x8x8xf32, #tpu.memory_space<vmem>>, vector<16x1x8xf32>,
    %298 = vector.extract_strided_slice %158 {offsets = [0, 8], sizes = [16, 8], strides = [1, 1]} : vector<16x64xf32> to vector<16x8xf32>
    %299 = vector.shape_cast %298 : vector<16x8xf32> to vector<16x1x8xf32>
    %c0_323 = arith.constant 0 : index
    %c1_324 = arith.constant 1 : index
    %c0_325 = arith.constant 0 : index
    %300 = vector.load %arg18[%c0_323, %c1_324, %c0_325] : memref<16x8x8xf32, #tpu.memory_space<vmem>>, vector<16x1x8xf32>
    tpu.vector_store %arg18[%c0_323, %c1_324, %c0_325], %299 {strides = array<i32>} : memref<16x8x8xf32, #tpu.memory_space<vmem>>, vector<16x1x8xf32>,
    %301 = vector.extract_strided_slice %158 {offsets = [0, 16], sizes = [16, 8], strides = [1, 1]} : vector<16x64xf32> to vector<16x8xf32>
    %302 = vector.shape_cast %301 : vector<16x8xf32> to vector<16x1x8xf32>
    %c0_326 = arith.constant 0 : index
    %c2_327 = arith.constant 2 : index
    %c0_328 = arith.constant 0 : index
    %303 = vector.load %arg18[%c0_326, %c2_327, %c0_328] : memref<16x8x8xf32, #tpu.memory_space<vmem>>, vector<16x1x8xf32>
    tpu.vector_store %arg18[%c0_326, %c2_327, %c0_328], %302 {strides = array<i32>} : memref<16x8x8xf32, #tpu.memory_space<vmem>>, vector<16x1x8xf32>,
    %304 = vector.extract_strided_slice %158 {offsets = [0, 24], sizes = [16, 8], strides = [1, 1]} : vector<16x64xf32> to vector<16x8xf32>
    %305 = vector.shape_cast %304 : vector<16x8xf32> to vector<16x1x8xf32>
    %c0_329 = arith.constant 0 : index
    %c3_330 = arith.constant 3 : index
    %c0_331 = arith.constant 0 : index
    %306 = vector.load %arg18[%c0_329, %c3_330, %c0_331] : memref<16x8x8xf32, #tpu.memory_space<vmem>>, vector<16x1x8xf32>
    tpu.vector_store %arg18[%c0_329, %c3_330, %c0_331], %305 {strides = array<i32>} : memref<16x8x8xf32, #tpu.memory_space<vmem>>, vector<16x1x8xf32>,
    %307 = vector.extract_strided_slice %158 {offsets = [0, 32], sizes = [16, 8], strides = [1, 1]} : vector<16x64xf32> to vector<16x8xf32>
    %308 = vector.shape_cast %307 : vector<16x8xf32> to vector<16x1x8xf32>
    %c0_332 = arith.constant 0 : index
    %c4_333 = arith.constant 4 : index
    %c0_334 = arith.constant 0 : index
    %309 = vector.load %arg18[%c0_332, %c4_333, %c0_334] : memref<16x8x8xf32, #tpu.memory_space<vmem>>, vector<16x1x8xf32>
    tpu.vector_store %arg18[%c0_332, %c4_333, %c0_334], %308 {strides = array<i32>} : memref<16x8x8xf32, #tpu.memory_space<vmem>>, vector<16x1x8xf32>,
    %310 = vector.extract_strided_slice %158 {offsets = [0, 40], sizes = [16, 8], strides = [1, 1]} : vector<16x64xf32> to vector<16x8xf32>
    %311 = vector.shape_cast %310 : vector<16x8xf32> to vector<16x1x8xf32>
    %c0_335 = arith.constant 0 : index
    %c5_336 = arith.constant 5 : index
    %c0_337 = arith.constant 0 : index
    %312 = vector.load %arg18[%c0_335, %c5_336, %c0_337] : memref<16x8x8xf32, #tpu.memory_space<vmem>>, vector<16x1x8xf32>
    tpu.vector_store %arg18[%c0_335, %c5_336, %c0_337], %311 {strides = array<i32>} : memref<16x8x8xf32, #tpu.memory_space<vmem>>, vector<16x1x8xf32>,
    %313 = vector.extract_strided_slice %158 {offsets = [0, 48], sizes = [16, 8], strides = [1, 1]} : vector<16x64xf32> to vector<16x8xf32>
    %314 = vector.shape_cast %313 : vector<16x8xf32> to vector<16x1x8xf32>
    %c0_338 = arith.constant 0 : index
    %c6_339 = arith.constant 6 : index
    %c0_340 = arith.constant 0 : index
    %315 = vector.load %arg18[%c0_338, %c6_339, %c0_340] : memref<16x8x8xf32, #tpu.memory_space<vmem>>, vector<16x1x8xf32>
    tpu.vector_store %arg18[%c0_338, %c6_339, %c0_340], %314 {strides = array<i32>} : memref<16x8x8xf32, #tpu.memory_space<vmem>>, vector<16x1x8xf32>,
    %316 = vector.extract_strided_slice %158 {offsets = [0, 56], sizes = [16, 8], strides = [1, 1]} : vector<16x64xf32> to vector<16x8xf32>
    %317 = vector.shape_cast %316 : vector<16x8xf32> to vector<16x1x8xf32>
    %c0_341 = arith.constant 0 : index
    %c7_342 = arith.constant 7 : index
    %c0_343 = arith.constant 0 : index
    %318 = vector.load %arg18[%c0_341, %c7_342, %c0_343] : memref<16x8x8xf32, #tpu.memory_space<vmem>>, vector<16x1x8xf32>
    tpu.vector_store %arg18[%c0_341, %c7_342, %c0_343], %317 {strides = array<i32>} : memref<16x8x8xf32, #tpu.memory_space<vmem>>, vector<16x1x8xf32>,
    %c0_344 = arith.constant 0 : index
    %c0_345 = arith.constant 0 : index
    %319 = vector.load %arg13[%c0_344, %c0_345] : memref<16x8xf32, #tpu.memory_space<vmem>>, vector<16x8xf32>
    %320 = vector.shape_cast %319 : vector<16x8xf32> to vector<1x16x8xf32>
    %321 = vector.broadcast %320 : vector<1x16x8xf32> to vector<16x16x8xf32>
    %c0_346 = arith.constant 0 : index
    %c0_347 = arith.constant 0 : index
    %c0_348 = arith.constant 0 : index
    %322 = vector.load %arg18[%c0_346, %c0_347, %c0_348] : memref<16x8x8xf32, #tpu.memory_space<vmem>>, vector<16x8x8xf32>
    %cst_349 = arith.constant dense<0.000000e+00> : vector<16x16x8xf32>
    %323 = tpu.matmul %321, %322, %cst_349 {dimension_numbers = #tpu.dot_dimension_numbers<[2], [1], [1], [2], [0, 0, 0, 1, 1, 2], [0], [0]>} : vector<16x16x8xf32>, vector<16x8x8xf32>, vector<16x16x8xf32> -> vector<16x16x8xf32>
    %324 = vector.shape_cast %323 : vector<16x16x8xf32> to vector<256x8xf32>
    %c0_350 = arith.constant 0 : index
    %c0_351 = arith.constant 0 : index
    %325 = vector.load %arg14[%c0_350, %c0_351] : memref<8x16xf32, #tpu.memory_space<vmem>>, vector<8x16xf32>
    %cst_352 = arith.constant dense<0.000000e+00> : vector<256x16xf32>
    %326 = tpu.matmul %324, %325, %cst_352 {dimension_numbers = #tpu.dot_dimension_numbers<[1], [0], [0], [1], [0, 0, 1, 1], [], []>} : vector<256x8xf32>, vector<8x16xf32>, vector<256x16xf32> -> vector<256x16xf32>
    %327 = vector.shape_cast %326 : vector<256x16xf32> to vector<16x16x16xf32>
    %328 = vector.extract_strided_slice %327 {offsets = [0, 0, 0], sizes = [8, 16, 16], strides = [1, 1, 1]} : vector<16x16x16xf32> to vector<8x16x16xf32>
    %329 = vector.extract_strided_slice %327 {offsets = [8, 0, 0], sizes = [8, 16, 16], strides = [1, 1, 1]} : vector<16x16x16xf32> to vector<8x16x16xf32>
    %330 = vector.extract_strided_slice %294 {offsets = [0, 0], sizes = [8, 16], strides = [1, 1]} : vector<8x256xf32> to vector<8x16xf32>
    %331 = vector.shape_cast %330 : vector<8x16xf32> to vector<8x1x16xf32>
    %332 = vector.extract_strided_slice %328 {offsets = [0, 0, 0], sizes = [8, 1, 16], strides = [1, 1, 1]} : vector<8x16x16xf32> to vector<8x1x16xf32>
    %333 = vector.extract_strided_slice %329 {offsets = [0, 0, 0], sizes = [8, 1, 16], strides = [1, 1, 1]} : vector<8x16x16xf32> to vector<8x1x16xf32>
    %334 = arith.mulf %331, %333 : vector<8x1x16xf32>
    %335 = arith.addf %332, %334 : vector<8x1x16xf32>
    %c0_353 = arith.constant 0 : index
    %c0_354 = arith.constant 0 : index
    %c0_355 = arith.constant 0 : index
    %c0_356 = arith.constant 0 : index
    %336 = vector.load %arg15[%c0_353, %c0_354, %c0_355, %c0_356] : memref<1x8x16x16xf32, #tpu.memory_space<vmem>>, vector<1x8x1x16xf32>
    %337 = vector.shape_cast %336 : vector<1x8x1x16xf32> to vector<8x1x16xf32>
    %338 = vector.shape_cast %335 : vector<8x1x16xf32> to vector<1x8x1x16xf32>
    tpu.vector_store %arg15[%c0_353, %c0_354, %c0_355, %c0_356], %338 {strides = array<i32>} : memref<1x8x16x16xf32, #tpu.memory_space<vmem>>, vector<1x8x1x16xf32>,
    %339 = vector.extract_strided_slice %294 {offsets = [0, 16], sizes = [8, 16], strides = [1, 1]} : vector<8x256xf32> to vector<8x16xf32>
    %340 = vector.shape_cast %339 : vector<8x16xf32> to vector<8x1x16xf32>
    %341 = vector.extract_strided_slice %328 {offsets = [0, 1, 0], sizes = [8, 1, 16], strides = [1, 1, 1]} : vector<8x16x16xf32> to vector<8x1x16xf32>
    %342 = vector.extract_strided_slice %329 {offsets = [0, 1, 0], sizes = [8, 1, 16], strides = [1, 1, 1]} : vector<8x16x16xf32> to vector<8x1x16xf32>
    %343 = arith.mulf %340, %342 : vector<8x1x16xf32>
    %344 = arith.addf %341, %343 : vector<8x1x16xf32>
    %c0_357 = arith.constant 0 : index
    %c0_358 = arith.constant 0 : index
    %c1_359 = arith.constant 1 : index
    %c0_360 = arith.constant 0 : index
    %345 = vector.load %arg15[%c0_357, %c0_358, %c1_359, %c0_360] : memref<1x8x16x16xf32, #tpu.memory_space<vmem>>, vector<1x8x1x16xf32>
    %346 = vector.shape_cast %345 : vector<1x8x1x16xf32> to vector<8x1x16xf32>
    %347 = vector.shape_cast %344 : vector<8x1x16xf32> to vector<1x8x1x16xf32>
    tpu.vector_store %arg15[%c0_357, %c0_358, %c1_359, %c0_360], %347 {strides = array<i32>} : memref<1x8x16x16xf32, #tpu.memory_space<vmem>>, vector<1x8x1x16xf32>,
    %348 = vector.extract_strided_slice %294 {offsets = [0, 32], sizes = [8, 16], strides = [1, 1]} : vector<8x256xf32> to vector<8x16xf32>
    %349 = vector.shape_cast %348 : vector<8x16xf32> to vector<8x1x16xf32>
    %350 = vector.extract_strided_slice %328 {offsets = [0, 2, 0], sizes = [8, 1, 16], strides = [1, 1, 1]} : vector<8x16x16xf32> to vector<8x1x16xf32>
    %351 = vector.extract_strided_slice %329 {offsets = [0, 2, 0], sizes = [8, 1, 16], strides = [1, 1, 1]} : vector<8x16x16xf32> to vector<8x1x16xf32>
    %352 = arith.mulf %349, %351 : vector<8x1x16xf32>
    %353 = arith.addf %350, %352 : vector<8x1x16xf32>
    %c0_361 = arith.constant 0 : index
    %c0_362 = arith.constant 0 : index
    %c2_363 = arith.constant 2 : index
    %c0_364 = arith.constant 0 : index
    %354 = vector.load %arg15[%c0_361, %c0_362, %c2_363, %c0_364] : memref<1x8x16x16xf32, #tpu.memory_space<vmem>>, vector<1x8x1x16xf32>
    %355 = vector.shape_cast %354 : vector<1x8x1x16xf32> to vector<8x1x16xf32>
    %356 = vector.shape_cast %353 : vector<8x1x16xf32> to vector<1x8x1x16xf32>
    tpu.vector_store %arg15[%c0_361, %c0_362, %c2_363, %c0_364], %356 {strides = array<i32>} : memref<1x8x16x16xf32, #tpu.memory_space<vmem>>, vector<1x8x1x16xf32>,
    %357 = vector.extract_strided_slice %294 {offsets = [0, 48], sizes = [8, 16], strides = [1, 1]} : vector<8x256xf32> to vector<8x16xf32>
    %358 = vector.shape_cast %357 : vector<8x16xf32> to vector<8x1x16xf32>
    %359 = vector.extract_strided_slice %328 {offsets = [0, 3, 0], sizes = [8, 1, 16], strides = [1, 1, 1]} : vector<8x16x16xf32> to vector<8x1x16xf32>
    %360 = vector.extract_strided_slice %329 {offsets = [0, 3, 0], sizes = [8, 1, 16], strides = [1, 1, 1]} : vector<8x16x16xf32> to vector<8x1x16xf32>
    %361 = arith.mulf %358, %360 : vector<8x1x16xf32>
    %362 = arith.addf %359, %361 : vector<8x1x16xf32>
    %c0_365 = arith.constant 0 : index
    %c0_366 = arith.constant 0 : index
    %c3_367 = arith.constant 3 : index
    %c0_368 = arith.constant 0 : index
    %363 = vector.load %arg15[%c0_365, %c0_366, %c3_367, %c0_368] : memref<1x8x16x16xf32, #tpu.memory_space<vmem>>, vector<1x8x1x16xf32>
    %364 = vector.shape_cast %363 : vector<1x8x1x16xf32> to vector<8x1x16xf32>
    %365 = vector.shape_cast %362 : vector<8x1x16xf32> to vector<1x8x1x16xf32>
    tpu.vector_store %arg15[%c0_365, %c0_366, %c3_367, %c0_368], %365 {strides = array<i32>} : memref<1x8x16x16xf32, #tpu.memory_space<vmem>>, vector<1x8x1x16xf32>,
    %366 = vector.extract_strided_slice %294 {offsets = [0, 64], sizes = [8, 16], strides = [1, 1]} : vector<8x256xf32> to vector<8x16xf32>
    %367 = vector.shape_cast %366 : vector<8x16xf32> to vector<8x1x16xf32>
    %368 = vector.extract_strided_slice %328 {offsets = [0, 4, 0], sizes = [8, 1, 16], strides = [1, 1, 1]} : vector<8x16x16xf32> to vector<8x1x16xf32>
    %369 = vector.extract_strided_slice %329 {offsets = [0, 4, 0], sizes = [8, 1, 16], strides = [1, 1, 1]} : vector<8x16x16xf32> to vector<8x1x16xf32>
    %370 = arith.mulf %367, %369 : vector<8x1x16xf32>
    %371 = arith.addf %368, %370 : vector<8x1x16xf32>
    %c0_369 = arith.constant 0 : index
    %c0_370 = arith.constant 0 : index
    %c4_371 = arith.constant 4 : index
    %c0_372 = arith.constant 0 : index
    %372 = vector.load %arg15[%c0_369, %c0_370, %c4_371, %c0_372] : memref<1x8x16x16xf32, #tpu.memory_space<vmem>>, vector<1x8x1x16xf32>
    %373 = vector.shape_cast %372 : vector<1x8x1x16xf32> to vector<8x1x16xf32>
    %374 = vector.shape_cast %371 : vector<8x1x16xf32> to vector<1x8x1x16xf32>
    tpu.vector_store %arg15[%c0_369, %c0_370, %c4_371, %c0_372], %374 {strides = array<i32>} : memref<1x8x16x16xf32, #tpu.memory_space<vmem>>, vector<1x8x1x16xf32>,
    %375 = vector.extract_strided_slice %294 {offsets = [0, 80], sizes = [8, 16], strides = [1, 1]} : vector<8x256xf32> to vector<8x16xf32>
    %376 = vector.shape_cast %375 : vector<8x16xf32> to vector<8x1x16xf32>
    %377 = vector.extract_strided_slice %328 {offsets = [0, 5, 0], sizes = [8, 1, 16], strides = [1, 1, 1]} : vector<8x16x16xf32> to vector<8x1x16xf32>
    %378 = vector.extract_strided_slice %329 {offsets = [0, 5, 0], sizes = [8, 1, 16], strides = [1, 1, 1]} : vector<8x16x16xf32> to vector<8x1x16xf32>
    %379 = arith.mulf %376, %378 : vector<8x1x16xf32>
    %380 = arith.addf %377, %379 : vector<8x1x16xf32>
    %c0_373 = arith.constant 0 : index
    %c0_374 = arith.constant 0 : index
    %c5_375 = arith.constant 5 : index
    %c0_376 = arith.constant 0 : index
    %381 = vector.load %arg15[%c0_373, %c0_374, %c5_375, %c0_376] : memref<1x8x16x16xf32, #tpu.memory_space<vmem>>, vector<1x8x1x16xf32>
    %382 = vector.shape_cast %381 : vector<1x8x1x16xf32> to vector<8x1x16xf32>
    %383 = vector.shape_cast %380 : vector<8x1x16xf32> to vector<1x8x1x16xf32>
    tpu.vector_store %arg15[%c0_373, %c0_374, %c5_375, %c0_376], %383 {strides = array<i32>} : memref<1x8x16x16xf32, #tpu.memory_space<vmem>>, vector<1x8x1x16xf32>,
    %384 = vector.extract_strided_slice %294 {offsets = [0, 96], sizes = [8, 16], strides = [1, 1]} : vector<8x256xf32> to vector<8x16xf32>
    %385 = vector.shape_cast %384 : vector<8x16xf32> to vector<8x1x16xf32>
    %386 = vector.extract_strided_slice %328 {offsets = [0, 6, 0], sizes = [8, 1, 16], strides = [1, 1, 1]} : vector<8x16x16xf32> to vector<8x1x16xf32>
    %387 = vector.extract_strided_slice %329 {offsets = [0, 6, 0], sizes = [8, 1, 16], strides = [1, 1, 1]} : vector<8x16x16xf32> to vector<8x1x16xf32>
    %388 = arith.mulf %385, %387 : vector<8x1x16xf32>
    %389 = arith.addf %386, %388 : vector<8x1x16xf32>
    %c0_377 = arith.constant 0 : index
    %c0_378 = arith.constant 0 : index
    %c6_379 = arith.constant 6 : index
    %c0_380 = arith.constant 0 : index
    %390 = vector.load %arg15[%c0_377, %c0_378, %c6_379, %c0_380] : memref<1x8x16x16xf32, #tpu.memory_space<vmem>>, vector<1x8x1x16xf32>
    %391 = vector.shape_cast %390 : vector<1x8x1x16xf32> to vector<8x1x16xf32>
    %392 = vector.shape_cast %389 : vector<8x1x16xf32> to vector<1x8x1x16xf32>
    tpu.vector_store %arg15[%c0_377, %c0_378, %c6_379, %c0_380], %392 {strides = array<i32>} : memref<1x8x16x16xf32, #tpu.memory_space<vmem>>, vector<1x8x1x16xf32>,
    %393 = vector.extract_strided_slice %294 {offsets = [0, 112], sizes = [8, 16], strides = [1, 1]} : vector<8x256xf32> to vector<8x16xf32>
    %394 = vector.shape_cast %393 : vector<8x16xf32> to vector<8x1x16xf32>
    %395 = vector.extract_strided_slice %328 {offsets = [0, 7, 0], sizes = [8, 1, 16], strides = [1, 1, 1]} : vector<8x16x16xf32> to vector<8x1x16xf32>
    %396 = vector.extract_strided_slice %329 {offsets = [0, 7, 0], sizes = [8, 1, 16], strides = [1, 1, 1]} : vector<8x16x16xf32> to vector<8x1x16xf32>
    %397 = arith.mulf %394, %396 : vector<8x1x16xf32>
    %398 = arith.addf %395, %397 : vector<8x1x16xf32>
    %c0_381 = arith.constant 0 : index
    %c0_382 = arith.constant 0 : index
    %c7_383 = arith.constant 7 : index
    %c0_384 = arith.constant 0 : index
    %399 = vector.load %arg15[%c0_381, %c0_382, %c7_383, %c0_384] : memref<1x8x16x16xf32, #tpu.memory_space<vmem>>, vector<1x8x1x16xf32>
    %400 = vector.shape_cast %399 : vector<1x8x1x16xf32> to vector<8x1x16xf32>
    %401 = vector.shape_cast %398 : vector<8x1x16xf32> to vector<1x8x1x16xf32>
    tpu.vector_store %arg15[%c0_381, %c0_382, %c7_383, %c0_384], %401 {strides = array<i32>} : memref<1x8x16x16xf32, #tpu.memory_space<vmem>>, vector<1x8x1x16xf32>,
    %402 = vector.extract_strided_slice %294 {offsets = [0, 128], sizes = [8, 16], strides = [1, 1]} : vector<8x256xf32> to vector<8x16xf32>
    %403 = vector.shape_cast %402 : vector<8x16xf32> to vector<8x1x16xf32>
    %404 = vector.extract_strided_slice %328 {offsets = [0, 8, 0], sizes = [8, 1, 16], strides = [1, 1, 1]} : vector<8x16x16xf32> to vector<8x1x16xf32>
    %405 = vector.extract_strided_slice %329 {offsets = [0, 8, 0], sizes = [8, 1, 16], strides = [1, 1, 1]} : vector<8x16x16xf32> to vector<8x1x16xf32>
    %406 = arith.mulf %403, %405 : vector<8x1x16xf32>
    %407 = arith.addf %404, %406 : vector<8x1x16xf32>
    %c0_385 = arith.constant 0 : index
    %c0_386 = arith.constant 0 : index
    %c8_387 = arith.constant 8 : index
    %c0_388 = arith.constant 0 : index
    %408 = vector.load %arg15[%c0_385, %c0_386, %c8_387, %c0_388] : memref<1x8x16x16xf32, #tpu.memory_space<vmem>>, vector<1x8x1x16xf32>
    %409 = vector.shape_cast %408 : vector<1x8x1x16xf32> to vector<8x1x16xf32>
    %410 = vector.shape_cast %407 : vector<8x1x16xf32> to vector<1x8x1x16xf32>
    tpu.vector_store %arg15[%c0_385, %c0_386, %c8_387, %c0_388], %410 {strides = array<i32>} : memref<1x8x16x16xf32, #tpu.memory_space<vmem>>, vector<1x8x1x16xf32>,
    %411 = vector.extract_strided_slice %294 {offsets = [0, 144], sizes = [8, 16], strides = [1, 1]} : vector<8x256xf32> to vector<8x16xf32>
    %412 = vector.shape_cast %411 : vector<8x16xf32> to vector<8x1x16xf32>
    %413 = vector.extract_strided_slice %328 {offsets = [0, 9, 0], sizes = [8, 1, 16], strides = [1, 1, 1]} : vector<8x16x16xf32> to vector<8x1x16xf32>
    %414 = vector.extract_strided_slice %329 {offsets = [0, 9, 0], sizes = [8, 1, 16], strides = [1, 1, 1]} : vector<8x16x16xf32> to vector<8x1x16xf32>
    %415 = arith.mulf %412, %414 : vector<8x1x16xf32>
    %416 = arith.addf %413, %415 : vector<8x1x16xf32>
    %c0_389 = arith.constant 0 : index
    %c0_390 = arith.constant 0 : index
    %c9_391 = arith.constant 9 : index
    %c0_392 = arith.constant 0 : index
    %417 = vector.load %arg15[%c0_389, %c0_390, %c9_391, %c0_392] : memref<1x8x16x16xf32, #tpu.memory_space<vmem>>, vector<1x8x1x16xf32>
    %418 = vector.shape_cast %417 : vector<1x8x1x16xf32> to vector<8x1x16xf32>
    %419 = vector.shape_cast %416 : vector<8x1x16xf32> to vector<1x8x1x16xf32>
    tpu.vector_store %arg15[%c0_389, %c0_390, %c9_391, %c0_392], %419 {strides = array<i32>} : memref<1x8x16x16xf32, #tpu.memory_space<vmem>>, vector<1x8x1x16xf32>,
    %420 = vector.extract_strided_slice %294 {offsets = [0, 160], sizes = [8, 16], strides = [1, 1]} : vector<8x256xf32> to vector<8x16xf32>
    %421 = vector.shape_cast %420 : vector<8x16xf32> to vector<8x1x16xf32>
    %422 = vector.extract_strided_slice %328 {offsets = [0, 10, 0], sizes = [8, 1, 16], strides = [1, 1, 1]} : vector<8x16x16xf32> to vector<8x1x16xf32>
    %423 = vector.extract_strided_slice %329 {offsets = [0, 10, 0], sizes = [8, 1, 16], strides = [1, 1, 1]} : vector<8x16x16xf32> to vector<8x1x16xf32>
    %424 = arith.mulf %421, %423 : vector<8x1x16xf32>
    %425 = arith.addf %422, %424 : vector<8x1x16xf32>
    %c0_393 = arith.constant 0 : index
    %c0_394 = arith.constant 0 : index
    %c10 = arith.constant 10 : index
    %c0_395 = arith.constant 0 : index
    %426 = vector.load %arg15[%c0_393, %c0_394, %c10, %c0_395] : memref<1x8x16x16xf32, #tpu.memory_space<vmem>>, vector<1x8x1x16xf32>
    %427 = vector.shape_cast %426 : vector<1x8x1x16xf32> to vector<8x1x16xf32>
    %428 = vector.shape_cast %425 : vector<8x1x16xf32> to vector<1x8x1x16xf32>
    tpu.vector_store %arg15[%c0_393, %c0_394, %c10, %c0_395], %428 {strides = array<i32>} : memref<1x8x16x16xf32, #tpu.memory_space<vmem>>, vector<1x8x1x16xf32>,
    %429 = vector.extract_strided_slice %294 {offsets = [0, 176], sizes = [8, 16], strides = [1, 1]} : vector<8x256xf32> to vector<8x16xf32>
    %430 = vector.shape_cast %429 : vector<8x16xf32> to vector<8x1x16xf32>
    %431 = vector.extract_strided_slice %328 {offsets = [0, 11, 0], sizes = [8, 1, 16], strides = [1, 1, 1]} : vector<8x16x16xf32> to vector<8x1x16xf32>
    %432 = vector.extract_strided_slice %329 {offsets = [0, 11, 0], sizes = [8, 1, 16], strides = [1, 1, 1]} : vector<8x16x16xf32> to vector<8x1x16xf32>
    %433 = arith.mulf %430, %432 : vector<8x1x16xf32>
    %434 = arith.addf %431, %433 : vector<8x1x16xf32>
    %c0_396 = arith.constant 0 : index
    %c0_397 = arith.constant 0 : index
    %c11 = arith.constant 11 : index
    %c0_398 = arith.constant 0 : index
    %435 = vector.load %arg15[%c0_396, %c0_397, %c11, %c0_398] : memref<1x8x16x16xf32, #tpu.memory_space<vmem>>, vector<1x8x1x16xf32>
    %436 = vector.shape_cast %435 : vector<1x8x1x16xf32> to vector<8x1x16xf32>
    %437 = vector.shape_cast %434 : vector<8x1x16xf32> to vector<1x8x1x16xf32>
    tpu.vector_store %arg15[%c0_396, %c0_397, %c11, %c0_398], %437 {strides = array<i32>} : memref<1x8x16x16xf32, #tpu.memory_space<vmem>>, vector<1x8x1x16xf32>,
    %438 = vector.extract_strided_slice %294 {offsets = [0, 192], sizes = [8, 16], strides = [1, 1]} : vector<8x256xf32> to vector<8x16xf32>
    %439 = vector.shape_cast %438 : vector<8x16xf32> to vector<8x1x16xf32>
    %440 = vector.extract_strided_slice %328 {offsets = [0, 12, 0], sizes = [8, 1, 16], strides = [1, 1, 1]} : vector<8x16x16xf32> to vector<8x1x16xf32>
    %441 = vector.extract_strided_slice %329 {offsets = [0, 12, 0], sizes = [8, 1, 16], strides = [1, 1, 1]} : vector<8x16x16xf32> to vector<8x1x16xf32>
    %442 = arith.mulf %439, %441 : vector<8x1x16xf32>
    %443 = arith.addf %440, %442 : vector<8x1x16xf32>
    %c0_399 = arith.constant 0 : index
    %c0_400 = arith.constant 0 : index
    %c12 = arith.constant 12 : index
    %c0_401 = arith.constant 0 : index
    %444 = vector.load %arg15[%c0_399, %c0_400, %c12, %c0_401] : memref<1x8x16x16xf32, #tpu.memory_space<vmem>>, vector<1x8x1x16xf32>
    %445 = vector.shape_cast %444 : vector<1x8x1x16xf32> to vector<8x1x16xf32>
    %446 = vector.shape_cast %443 : vector<8x1x16xf32> to vector<1x8x1x16xf32>
    tpu.vector_store %arg15[%c0_399, %c0_400, %c12, %c0_401], %446 {strides = array<i32>} : memref<1x8x16x16xf32, #tpu.memory_space<vmem>>, vector<1x8x1x16xf32>,
    %447 = vector.extract_strided_slice %294 {offsets = [0, 208], sizes = [8, 16], strides = [1, 1]} : vector<8x256xf32> to vector<8x16xf32>
    %448 = vector.shape_cast %447 : vector<8x16xf32> to vector<8x1x16xf32>
    %449 = vector.extract_strided_slice %328 {offsets = [0, 13, 0], sizes = [8, 1, 16], strides = [1, 1, 1]} : vector<8x16x16xf32> to vector<8x1x16xf32>
    %450 = vector.extract_strided_slice %329 {offsets = [0, 13, 0], sizes = [8, 1, 16], strides = [1, 1, 1]} : vector<8x16x16xf32> to vector<8x1x16xf32>
    %451 = arith.mulf %448, %450 : vector<8x1x16xf32>
    %452 = arith.addf %449, %451 : vector<8x1x16xf32>
    %c0_402 = arith.constant 0 : index
    %c0_403 = arith.constant 0 : index
    %c13 = arith.constant 13 : index
    %c0_404 = arith.constant 0 : index
    %453 = vector.load %arg15[%c0_402, %c0_403, %c13, %c0_404] : memref<1x8x16x16xf32, #tpu.memory_space<vmem>>, vector<1x8x1x16xf32>
    %454 = vector.shape_cast %453 : vector<1x8x1x16xf32> to vector<8x1x16xf32>
    %455 = vector.shape_cast %452 : vector<8x1x16xf32> to vector<1x8x1x16xf32>
    tpu.vector_store %arg15[%c0_402, %c0_403, %c13, %c0_404], %455 {strides = array<i32>} : memref<1x8x16x16xf32, #tpu.memory_space<vmem>>, vector<1x8x1x16xf32>,
    %456 = vector.extract_strided_slice %294 {offsets = [0, 224], sizes = [8, 16], strides = [1, 1]} : vector<8x256xf32> to vector<8x16xf32>
    %457 = vector.shape_cast %456 : vector<8x16xf32> to vector<8x1x16xf32>
    %458 = vector.extract_strided_slice %328 {offsets = [0, 14, 0], sizes = [8, 1, 16], strides = [1, 1, 1]} : vector<8x16x16xf32> to vector<8x1x16xf32>
    %459 = vector.extract_strided_slice %329 {offsets = [0, 14, 0], sizes = [8, 1, 16], strides = [1, 1, 1]} : vector<8x16x16xf32> to vector<8x1x16xf32>
    %460 = arith.mulf %457, %459 : vector<8x1x16xf32>
    %461 = arith.addf %458, %460 : vector<8x1x16xf32>
    %c0_405 = arith.constant 0 : index
    %c0_406 = arith.constant 0 : index
    %c14 = arith.constant 14 : index
    %c0_407 = arith.constant 0 : index
    %462 = vector.load %arg15[%c0_405, %c0_406, %c14, %c0_407] : memref<1x8x16x16xf32, #tpu.memory_space<vmem>>, vector<1x8x1x16xf32>
    %463 = vector.shape_cast %462 : vector<1x8x1x16xf32> to vector<8x1x16xf32>
    %464 = vector.shape_cast %461 : vector<8x1x16xf32> to vector<1x8x1x16xf32>
    tpu.vector_store %arg15[%c0_405, %c0_406, %c14, %c0_407], %464 {strides = array<i32>} : memref<1x8x16x16xf32, #tpu.memory_space<vmem>>, vector<1x8x1x16xf32>,
    %465 = vector.extract_strided_slice %294 {offsets = [0, 240], sizes = [8, 16], strides = [1, 1]} : vector<8x256xf32> to vector<8x16xf32>
    %466 = vector.shape_cast %465 : vector<8x16xf32> to vector<8x1x16xf32>
    %467 = vector.extract_strided_slice %328 {offsets = [0, 15, 0], sizes = [8, 1, 16], strides = [1, 1, 1]} : vector<8x16x16xf32> to vector<8x1x16xf32>
    %468 = vector.extract_strided_slice %329 {offsets = [0, 15, 0], sizes = [8, 1, 16], strides = [1, 1, 1]} : vector<8x16x16xf32> to vector<8x1x16xf32>
    %469 = arith.mulf %466, %468 : vector<8x1x16xf32>
    %470 = arith.addf %467, %469 : vector<8x1x16xf32>
    %c0_408 = arith.constant 0 : index
    %c0_409 = arith.constant 0 : index
    %c15 = arith.constant 15 : index
    %c0_410 = arith.constant 0 : index
    %471 = vector.load %arg15[%c0_408, %c0_409, %c15, %c0_410] : memref<1x8x16x16xf32, #tpu.memory_space<vmem>>, vector<1x8x1x16xf32>
    %472 = vector.shape_cast %471 : vector<1x8x1x16xf32> to vector<8x1x16xf32>
    %473 = vector.shape_cast %470 : vector<8x1x16xf32> to vector<1x8x1x16xf32>
    tpu.vector_store %arg15[%c0_408, %c0_409, %c15, %c0_410], %473 {strides = array<i32>} : memref<1x8x16x16xf32, #tpu.memory_space<vmem>>, vector<1x8x1x16xf32>,
    return
  }
  func.func @transform_0(%arg0: i32) -> (i32, i32, i32, i32) {
    %c0_i32 = arith.constant 0 : i32
    %c0_i32_0 = arith.constant 0 : i32
    %c0_i32_1 = arith.constant 0 : i32
    %c0_i32_2 = arith.constant 0 : i32
    return %arg0, %c0_i32, %c0_i32_0, %c0_i32_1 : i32, i32, i32, i32
  }
  func.func @transform_1(%arg0: i32) -> (i32, i32, i32, i32) {
    %c0_i32 = arith.constant 0 : i32
    %c0_i32_0 = arith.constant 0 : i32
    %c0_i32_1 = arith.constant 0 : i32
    %c0_i32_2 = arith.constant 0 : i32
    return %arg0, %c0_i32, %c0_i32_0, %c0_i32_1 : i32, i32, i32, i32
  }
  func.func @transform_2(%arg0: i32) -> (i32, i32, i32) {
    %c0_i32 = arith.constant 0 : i32
    %c0_i32_0 = arith.constant 0 : i32
    %c0_i32_1 = arith.constant 0 : i32
    %c0_i32_2 = arith.constant 0 : i32
    return %c0_i32, %c0_i32_0, %c0_i32_1 : i32, i32, i32
  }
  func.func @transform_3(%arg0: i32) -> (i32, i32) {
    %c0_i32 = arith.constant 0 : i32
    %c0_i32_0 = arith.constant 0 : i32
    %c0_i32_1 = arith.constant 0 : i32
    return %c0_i32, %c0_i32_0 : i32, i32
  }
  func.func @transform_4(%arg0: i32) -> (i32, i32, i32) {
    %c0_i32 = arith.constant 0 : i32
    %c0_i32_0 = arith.constant 0 : i32
    %c0_i32_1 = arith.constant 0 : i32
    %c0_i32_2 = arith.constant 0 : i32
    return %c0_i32, %c0_i32_0, %c0_i32_1 : i32, i32, i32
  }
  func.func @transform_5(%arg0: i32) -> (i32, i32) {
    %c0_i32 = arith.constant 0 : i32
    %c0_i32_0 = arith.constant 0 : i32
    %c0_i32_1 = arith.constant 0 : i32
    return %c0_i32, %c0_i32_0 : i32, i32
  }
  func.func @transform_6(%arg0: i32) -> (i32, i32) {
    %c0_i32 = arith.constant 0 : i32
    %c0_i32_0 = arith.constant 0 : i32
    %c0_i32_1 = arith.constant 0 : i32
    return %c0_i32, %c0_i32_0 : i32, i32
  }
  func.func @transform_7(%arg0: i32) -> (i32, i32, i32) {
    %c0_i32 = arith.constant 0 : i32
    %c0_i32_0 = arith.constant 0 : i32
    %c0_i32_1 = arith.constant 0 : i32
    %c0_i32_2 = arith.constant 0 : i32
    return %c0_i32, %c0_i32_0, %c0_i32_1 : i32, i32, i32
  }
  func.func @transform_8(%arg0: i32) -> (i32, i32) {
    %c0_i32 = arith.constant 0 : i32
    %c0_i32_0 = arith.constant 0 : i32
    %c0_i32_1 = arith.constant 0 : i32
    return %c0_i32, %c0_i32_0 : i32, i32
  }
  func.func @transform_9(%arg0: i32) -> (i32, i32, i32) {
    %c0_i32 = arith.constant 0 : i32
    %c0_i32_0 = arith.constant 0 : i32
    %c0_i32_1 = arith.constant 0 : i32
    %c0_i32_2 = arith.constant 0 : i32
    return %c0_i32, %c0_i32_0, %c0_i32_1 : i32, i32, i32
  }
  func.func @transform_10(%arg0: i32) -> (i32, i32) {
    %c0_i32 = arith.constant 0 : i32
    %c0_i32_0 = arith.constant 0 : i32
    %c0_i32_1 = arith.constant 0 : i32
    return %c0_i32, %c0_i32_0 : i32, i32
  }
  func.func @transform_11(%arg0: i32) -> (i32, i32) {
    %c0_i32 = arith.constant 0 : i32
    %c0_i32_0 = arith.constant 0 : i32
    %c0_i32_1 = arith.constant 0 : i32
    return %c0_i32, %c0_i32_0 : i32, i32
  }
  func.func @transform_12(%arg0: i32) -> (i32, i32) {
    %c0_i32 = arith.constant 0 : i32
    %c0_i32_0 = arith.constant 0 : i32
    %c0_i32_1 = arith.constant 0 : i32
    return %c0_i32, %c0_i32_0 : i32, i32
  }
  func.func @transform_13(%arg0: i32) -> (i32, i32) {
    %c0_i32 = arith.constant 0 : i32
    %c0_i32_0 = arith.constant 0 : i32
    %c0_i32_1 = arith.constant 0 : i32
    return %c0_i32, %c0_i32_0 : i32, i32
  }
  func.func @transform_14(%arg0: i32) -> (i32, i32, i32, i32) {
    %c0_i32 = arith.constant 0 : i32
    %c0_i32_0 = arith.constant 0 : i32
    %c0_i32_1 = arith.constant 0 : i32
    %c0_i32_2 = arith.constant 0 : i32
    return %arg0, %c0_i32, %c0_i32_0, %c0_i32_1 : i32, i32, i32, i32
  }
}

</mosaic_0001>

<bundles_post_ra>
// kernel: branch_attention_fwd.1
= control target key start
LH: loop header
LB: loop body
LE: loop exit
PB: predicated region body
PF: predicated region fallthrough
CT: control target
= control target key end

     0   :  { %s25131_s0 = inlined_call_operand.vmem [shape: f32[2,10,10,8], index: 0, kind: input, shape index: {}]   ;;  %s25132_s1 = inlined_call_operand.vmem [shape: f32[2,18,18,8], index: 1, kind: input, shape index: {}]   ;;  %s25133_s2 = inlined_call_operand.vmem [shape: f32[9,8,12], index: 2, kind: input, shape index: {}]   ;;  %s25134_s3 = inlined_call_operand.vmem [shape: f32[2,12], index: 3, kind: input, shape index: {}]   ;;  %s25135_s4 = inlined_call_operand.vmem [shape: f32[9,12,12], index: 4, kind: input, shape index: {}]   ;;  %s25136_s5 = inlined_call_operand.vmem [shape: f32[2,12], index: 5, kind: input, shape index: {}]   ;;  %s25137_s6 = inlined_call_operand.vmem [shape: f32[16,12], index: 6, kind: input, shape index: {}]   ;;  %s25138_s7 = inlined_call_operand.vmem [shape: f32[9,8,8], index: 7, kind: input, shape index: {}]   ;;  %s25139_s8 = inlined_call_operand.vmem [shape: f32[2,8], index: 8, kind: input, shape index: {}]   ;;  %s25140_s9 = inlined_call_operand.vmem [shape: f32[9,8,8], index: 9, kind: input, shape index: {}]   ;;  %s25141_s10 = inlined_call_operand.vmem [shape: f32[2,8], index: 10, kind: input, shape index: {}]   ;;  %s25142_s11 = inlined_call_operand.vmem [shape: f32[8,8], index: 11, kind: input, shape index: {}]   ;;  %s25143_s12 = inlined_call_operand.vmem [shape: f32[16,8], index: 12, kind: input, shape index: {}]   ;;  %s25144_s13 = inlined_call_operand.vmem [shape: f32[8,16], index: 13, kind: input, shape index: {}]   ;;  %s25145_s14 = inlined_call_operand.hbm [shape: f32[2,8,16,16], index: 14, kind: output, shape index: {}]  }
   0x1   :  { %25234 = sst [smem:[#allocation145_spill]] %s25131_s0 }
   0x2   :  { %25235 = sst [smem:[#allocation146_spill]] %s25132_s1 }
   0x3   :  { %25236 = sst [smem:[#allocation147_spill]] %s25133_s2 }
   0x4   :  { %25237 = sst [smem:[#allocation148_spill]] %s25134_s3 }
   0x5   :  { %19 = vsyncpa [#allocation6], 0 }
   0x6   :  { %21 = vsyncpa [#allocation6 + $0x1], 0  ;;  %s19087_s29 = smov 0   ;;  %s19089_s30 = smov 0  }
   0x7   :  { %s19091_s15 = smov 0   ;;  %s19093_s16 = smov 0  }
   0x8 LB: > { %s19108_s17 = sadd.s32 4294967295, %s18994_s16   ;;  %s15477_s18 = sadd.s32 4294967294, %s18994_s16   ;;  %s18994_s16 = sphi %s19093_s16, %s25697_s16   ;;  %s18990_s15 = sphi %s19091_s15, %s25696_s15   ;;  %s18986_s30 = sphi %s19089_s30, %s25695_s30   ;;  %s18982_s29 = sphi %s19087_s29, %s25694_s29  }
   0x9   : > { %s19112_s19 = sadd.s32 1, %s18994_s16   ;;  %s338_s20 = sadd.s32 1, %s18990_s15 }
   0xa   : > { %s335_s21 = ssub.s32 %s18994_s16, %s19112_s19  ;;  %p348_p0 = scmp.ne.s32.totalorder %s18990_s15, %s18986_s30 }
   0xb   : > { %p336_p1 = scmp.eq.s32.totalorder %s335_s21, 0  ;;  %p349_p2 = scmp.eq.s32.totalorder %s19108_s17, 1 }
   0xc   : > { %p354_p3 = scmp.ne.s32.totalorder %s18986_s30, %s18982_s29  ;;  %p355_p4 = scmp.eq.s32.totalorder %s15477_s18, 1 }
   0xd   : > { %s19123_s22 = scalar_select %p336_p1, %s18990_s15, %s338_s20  }
   0xe   : > { %p19125_p5 = por %p349_p2, %p348_p0  ;;  %p19129_p6 = por %p355_p4, %p354_p3 }
   0xf   : > { %25238 = sst [smem:[#allocation8_spill]] %s19123_s22  ;;  %p15480_p7 = scmp.ge.s32.totalorder %s18994_s16, 1 }
  0x10   : > { %p425_p8 = scmp.lt.s32.totalorder %s18994_s16, 3 }
  0x12   : > { %p426_p9 = pnand %p15480_p7, %p425_p8 }
  0x14   : > { %429 = sbr.rel (%p426_p9) target bundleno = 2595 (0xa23), region = 76 }
  0x19   : > { %s25241_s2 = sld [smem:[#allocation147_spill]]  ;;  %p476_p10 = scmp.lt.s32.totalorder %s19108_s17, 1  ;;  %vm514_vm0 = vcmask 64512   ;;  %vm486_vm1 = vcmask 97280   ;;  %vm493_vm2 = vcmask 90112   ;;  %v25146_v39 = vmov 0.0  }
  0x1a   : > { %s25242_s0 = sld [smem:[#allocation145_spill]]  ;;  %487 = vst.msk [vmem:[#allocation2] sm:$0xff] %vm486_vm1, %v25146_v39  ;;  %vm488_vm3 = vcmask 91136   ;;  %491 = vst.msk [vmem:[#allocation2 + $0x90] sm:$0xff] %vm486_vm1, %v25146_v39  ;;  %v15615_v40 = vld [vmem:[%s25135_s4 + $0x18] sm:$0xf] }
  0x1b   : > { %s19149_s25 = scalar_select %p476_p10, %s19108_s17, 1  ;;  %515 = vst.msk [vmem:[#allocation3] sm:$0xff] %vm514_vm0, %v25146_v39  ;;  %516 = vst.msk [vmem:[#allocation3 + $0x8] sm:$0xff] %vm514_vm0, %v25146_v39  ;;  %vm1956_vm4 = vcmask 1043456   ;;  %v1920_v41 = vld [vmem:[%s25135_s4 + $0x8] sm:$0xf] }
  0x1c   : > { %520 = vst.msk [vmem:[#allocation3 + $0x198] sm:$0xff] %vm514_vm0, %v25146_v39  ;;  %521 = vst.msk [vmem:[#allocation3 + $0x1a0] sm:$0xff] %vm514_vm0, %v25146_v39  ;;  %v15614_v42 = vld [vmem:[%s25135_s4 + $0x10] sm:$0xff]  ;;  %v1919_v43 = vld [vmem:[%s25135_s4] sm:$0xff]  ;;  %s25248_s3 = sld [smem:[#allocation148_spill]]  ;;  %vm523_vm5 = vcmask 57344  }
  0x1d   : > { %s18826_s26 = smul.u32 160, %s19149_s25  ;;  %495 = vst.msk [vmem:[#allocation2 + $0x10] sm:$0x1] %vm493_vm2, %v25146_v39  ;;  %496 = vst.msk [vmem:[#allocation2 + $0x20] sm:$0x1] %vm493_vm2, %v25146_v39  ;;  %s25255_s1 = sld [smem:[#allocation146_spill]] }
  0x1e   : > { %497 = vst.msk [vmem:[#allocation2 + $0x30] sm:$0x1] %vm493_vm2, %v25146_v39  ;;  %498 = vst.msk [vmem:[#allocation2 + $0x40] sm:$0x1] %vm493_vm2, %v25146_v39  ;;  %v19420_v46 = vld [vmem:[%s25135_s4 + $0x28] sm:$0xf] }
  0x1f   : > { %v15484_v0 = vld [vmem:[%s25241_s2 + $0x8] sm:$0xff]  ;;  %v568_v1 = vld [vmem:[%s25241_s2] sm:$0xff]  ;;  %v15501_v2 = vld [vmem:[%s25241_s2 + $0x10] sm:$0xff]  ;;  %499 = vst.msk [vmem:[#allocation2 + $0x50] sm:$0x1] %vm493_vm2, %v25146_v39  ;;  %s18827_s28 = smul.u32 432, %s19149_s25 }
  0x20   : > { %17505 = vmatprep.subr.mxu0 %v15484_v0  ;;  %17519 = vmatprep.subr.mxu1 %v568_v1  ;;  %v15518_v3 = vld [vmem:[%s25241_s2 + $0x18] sm:$0xff]  ;;  %s19155_s18 = scalar_lea.vmem %s25242_s0, %s18826_s26  ;;  %v15535_v10 = vld [vmem:[%s25241_s2 + $0x20] sm:$0xff]  ;;  %v15552_v11 = vld [vmem:[%s25241_s2 + $0x28] sm:$0xff]  ;;  %500 = vst.msk [vmem:[#allocation2 + $0x60] sm:$0x1] %vm493_vm2, %v25146_v39  ;;  %s25165_s27 = smov 120  }
  0x21   : > { %17506 = vmatpush3.msra.mxu0 %v15484_v0  ;;  %17520 = vmatpush3.msra.mxu1 %v568_v1  ;;  %v569_v4 = vld [vmem:[%s19155_s18 + $0x1] sm:$0xff]  ;;  %v19160_v6 = vld [vmem:[%s19155_s18 + $0x11] sm:$0xff]  ;;  %501 = vst.msk [vmem:[#allocation2 + $0x70] sm:$0x1] %vm493_vm2, %v25146_v39  ;;  %502 = vst.msk [vmem:[#allocation2 + $0x80] sm:$0x1] %vm493_vm2, %v25146_v39 }
  0x22   : > { %17533 = vmatprep.subr.mxu0 %v15501_v2  ;;  %17547 = vmatprep.subr.mxu1 %v15518_v3  ;;  %v560_v5 = vld [vmem:[%s19155_s18] sm:$0xff]  ;;  %v561_v7 = vld [vmem:[%s19155_s18 + $0x10] sm:$0xff]  ;;  %v15586_v26 = vld [vmem:[%s25241_s2 + $0x38] sm:$0xff]  ;;  %505 = vst.msk [vmem:[#allocation2 + $0x19] sm:$0x1] %vm493_vm2, %v25146_v39  ;;  %s25169_s22 = smov 72  }
  0x23   : > { %17507 = vmatprep.mubr.msk.f32.mxu0 %vm514_vm0, %v569_v4  ;;  %17521 = vmatprep.mubr.msk.f32.mxu1 %vm514_vm0, %v560_v5  ;;  %v19166_v8 = vld [vmem:[%s19155_s18 + $0x21] sm:$0xff]  ;;  %v19183_v12 = vld [vmem:[%s19155_s18 + $0x31] sm:$0xff]  ;;  %506 = vst.msk [vmem:[#allocation2 + $0x29] sm:$0x1] %vm493_vm2, %v25146_v39  ;;  %507 = vst.msk [vmem:[#allocation2 + $0x39] sm:$0x1] %vm493_vm2, %v25146_v39  ;;  %s19689_s21 = scalar_lea.vmem %s25255_s1, %s18827_s28 }
  0x24   : > { %v19169_v9 = vld [vmem:[%s19155_s18 + $0x20] sm:$0xff]  ;;  %17508 = vmatmul.mubr.msk.f32.vlgmr.msra.gmra.mxu0 %vm514_vm0, %v19160_v6  ;;  %17522 = vmatmul.mubr.msk.f32.vlgmr.msra.gmra.mxu1 %vm514_vm0, %v561_v7  ;;  %v19186_v13 = vld [vmem:[%s19155_s18 + $0x30] sm:$0xff]  ;;  %508 = vst.msk [vmem:[#allocation2 + $0x49] sm:$0x1] %vm493_vm2, %v25146_v39  ;;  %509 = vst.msk [vmem:[#allocation2 + $0x59] sm:$0x1] %vm493_vm2, %v25146_v39 }
  0x25   : > { %17534 = vmatpush3.msra.mxu0 %v15501_v2  ;;  %17510 = vmatprep.mubr.msk.f32.mxu0 %vm514_vm0, %v19166_v8  ;;  %v19191_v14 = vld [vmem:[%s19155_s18 + $0x41] sm:$0xff]  ;;  %v19205_v16 = vld [vmem:[%s19155_s18 + $0x51] sm:$0xff]  ;;  %510 = vst.msk [vmem:[#allocation2 + $0x69] sm:$0x1] %vm493_vm2, %v25146_v39  ;;  %511 = vst.msk [vmem:[#allocation2 + $0x79] sm:$0x1] %vm493_vm2, %v25146_v39 }
  0x26   : > { %17524 = vmatprep.mubr.msk.f32.mxu1 %vm514_vm0, %v19169_v9  ;;  %v19194_v15 = vld [vmem:[%s19155_s18 + $0x40] sm:$0xff]  ;;  %17548 = vmatpush3.msra.mxu1 %v15518_v3  ;;  %v19208_v17 = vld [vmem:[%s19155_s18 + $0x50] sm:$0xff]  ;;  %512 = vst.msk [vmem:[#allocation2 + $0x89] sm:$0x1] %vm493_vm2, %v25146_v39  ;;  %494 = vst.msk [vmem:[#allocation2] sm:$0x1] %vm493_vm2, %v25146_v39 }
  0x27   : > { %17561 = vmatprep.subr.mxu0 %v15535_v10  ;;  %17575 = vmatprep.subr.mxu1 %v15552_v11  ;;  %v19211_v18 = vld [vmem:[%s19155_s18 + $0x61] sm:$0xff]  ;;  %v19225_v20 = vld [vmem:[%s19155_s18 + $0x71] sm:$0xff]  ;;  %489 = vst.msk [vmem:[#allocation2 + $0x8] sm:$0x3] %vm488_vm3, %v25146_v39  ;;  %492 = vst.msk [vmem:[#allocation2 + $0x98] sm:$0x3] %vm488_vm3, %v25146_v39 }
  0x28   : > { %17511 = vmatmul.mubr.msk.f32.gmra.mxu0 %vm514_vm0, %v19183_v12  ;;  %17525 = vmatmul.mubr.msk.f32.gmra.mxu1 %vm514_vm0, %v19186_v13  ;;  %v19214_v19 = vld [vmem:[%s19155_s18 + $0x60] sm:$0xff]  ;;  %v19228_v21 = vld [vmem:[%s19155_s18 + $0x70] sm:$0xff]  ;;  %503 = vst.msk [vmem:[#allocation2 + $0x90] sm:$0x1] %vm493_vm2, %v25146_v39  ;;  %504 = vst.msk [vmem:[#allocation2 + $0x9] sm:$0x1] %vm493_vm2, %v25146_v39 }
  0x29   : > { %17513 = vmatprep.mubr.msk.f32.mxu0 %vm514_vm0, %v19191_v14  ;;  %17527 = vmatprep.mubr.msk.f32.mxu1 %vm514_vm0, %v19194_v15  ;;  %v837_v22 = vld [vmem:[%s19155_s18 + $0x2] sm:$0xff]  ;;  %v838_v23 = vld [vmem:[%s19155_s18 + $0x12] sm:$0xff]  ;;  %513 = vst.msk [vmem:[#allocation2 + $0x99] sm:$0x1] %vm493_vm2, %v25146_v39  ;;  %25243 = vst [vmem:[#allocation9_spill] sm:$0xff] %v19420_v46  ;;  %s25167_s28 = smov 88  }
  0x2a   : > { %v19239_v24 = vld [vmem:[%s19155_s18 + $0x22] sm:$0xff]  ;;  %v15569_v25 = vld [vmem:[%s25241_s2 + $0x30] sm:$0xff]  ;;  %v19427_v47 = vld [vmem:[%s25135_s4 + $0x38] sm:$0xf]  ;;  %vm517_vm6 = vcmask 58368   ;;  %s25173_s20 = smov 112  }
  0x2b   : > { %v840_v27 = vld [vmem:[%s19155_s18 + $0x32] sm:$0xff]  ;;  %v841_v28 = vld [vmem:[%s19155_s18 + $0x42] sm:$0xff]  ;;  %25244 = vst [vmem:[#allocation10_spill] sm:$0xff] %v19427_v47  ;;  %s25175_s25 = smov 96   ;;  %s25379_s26 = smov 104   ;;  %vm12923_vm7 = vcmask 122880  }
  0x2c   : > { %17514 = vmatmul.mubr.msk.f32.gmra.mxu0 %vm514_vm0, %v19205_v16  ;;  %17528 = vmatmul.mubr.msk.f32.gmra.mxu1 %vm514_vm0, %v19208_v17  ;;  %v842_v29 = vld [vmem:[%s19155_s18 + $0x52] sm:$0xff]  ;;  %v843_v30 = vld [vmem:[%s19155_s18 + $0x62] sm:$0xff]  ;;  %s25584_s0 = smov 96   ;;  %s473_s1 = sand.u32 1, %s18986_s30   ;;  %vm13220_vm8 = vcmask 123905   ;;  %vm13341_vm9 = vcmask 124930  }
  0x2d   : > { %17516 = vmatprep.mubr.msk.f32.mxu0 %vm514_vm0, %v19211_v18  ;;  %17530 = vmatprep.mubr.msk.f32.mxu1 %vm514_vm0, %v19214_v19  ;;  %v844_v31 = vld [vmem:[%s19155_s18 + $0x72] sm:$0xff]  ;;  %v15517_v32 = vld [vmem:[%s19155_s18 + $0x80] sm:$0xff]  ;;  %vm13695_vm10 = vcmask 126980   ;;  %vm13462_vm11 = vcmask 125955   ;;  %vm13872_vm12 = vcmask 128005   ;;  %vm13993_vm13 = vcmask 129030  }
  0x2e   : > { %v15603_v33 = vld [vmem:[%s25241_s2 + $0x40] sm:$0xff]  ;;  %v15568_v36 = vld [vmem:[%s19155_s18 + $0x90] sm:$0xff]  ;;  %s15481_s2 = sshll.u32 %s473_s1, 7  ;;  %vm14114_vm14 = vcmask 130055  }
  0x2f   : > { %v15534_v34 = vld [vmem:[%s19155_s18 + $0x81] sm:$0xff]  ;;  %v15585_v37 = vld [vmem:[%s19155_s18 + $0x91] sm:$0xff] }
  0x30   : > { %17517 = vmatmul.mubr.msk.f32.gmra.mxu0 %vm514_vm0, %v19225_v20  ;;  %17531 = vmatmul.mubr.msk.f32.gmra.mxu1 %vm514_vm0, %v19228_v21  ;;  %v15551_v35 = vld [vmem:[%s19155_s18 + $0x82] sm:$0xff]  ;;  %v15602_v38 = vld [vmem:[%s19155_s18 + $0x92] sm:$0xff] }
  0x31   : > { %17535 = vmatprep.mubr.msk.f32.mxu0 %vm514_vm0, %v837_v22  ;;  %17549 = vmatprep.mubr.msk.f32.mxu1 %vm514_vm0, %v561_v7  ;;  %v1921_v44 = vld [vmem:[#allocation2 + $0x1] sm:$0xff] }
  0x32   : > { %v1911_v45 = vld [vmem:[#allocation2] sm:$0xff] }
  0x34   : > { %17536 = vmatmul.mubr.msk.f32.vlgmr.msra.gmra.mxu0 %vm514_vm0, %v838_v23  ;;  %17550 = vmatmul.mubr.msk.f32.vlgmr.msra.gmra.mxu1 %vm514_vm0, %v19169_v9 }
  0x35   : > { %17562 = vmatpush3.msra.mxu0 %v15535_v10  ;;  %17538 = vmatprep.mubr.msk.f32.mxu0 %vm514_vm0, %v19239_v24 }
  0x36   : > { %17552 = vmatprep.mubr.msk.f32.mxu1 %vm514_vm0, %v19186_v13  ;;  %17576 = vmatpush3.msra.mxu1 %v15552_v11 }
  0x37   : > { %17589 = vmatprep.subr.mxu0 %v15569_v25  ;;  %17603 = vmatprep.subr.mxu1 %v15586_v26 }
  0x38   : > { %17539 = vmatmul.mubr.msk.f32.gmra.mxu0 %vm514_vm0, %v840_v27  ;;  %17553 = vmatmul.mubr.msk.f32.gmra.mxu1 %vm514_vm0, %v19194_v15 }
  0x39   : > { %17541 = vmatprep.mubr.msk.f32.mxu0 %vm514_vm0, %v841_v28  ;;  %17555 = vmatprep.mubr.msk.f32.mxu1 %vm514_vm0, %v19208_v17 }
  0x3c   : > { %17542 = vmatmul.mubr.msk.f32.gmra.mxu0 %vm514_vm0, %v842_v29  ;;  %17556 = vmatmul.mubr.msk.f32.gmra.mxu1 %vm514_vm0, %v19214_v19 }
  0x3d   : > { %17544 = vmatprep.mubr.msk.f32.mxu0 %vm514_vm0, %v843_v30  ;;  %17558 = vmatprep.mubr.msk.f32.mxu1 %vm514_vm0, %v19228_v21 }
  0x40   : > { %17545 = vmatmul.mubr.msk.f32.gmra.mxu0 %vm514_vm0, %v844_v31  ;;  %17559 = vmatmul.mubr.msk.f32.gmra.mxu1 %vm514_vm0, %v15517_v32 }
  0x41   : > { %17563 = vmatprep.mubr.msk.f32.mxu0 %vm514_vm0, %v19160_v6  ;;  %17577 = vmatprep.mubr.msk.f32.mxu1 %vm514_vm0, %v838_v23 }
  0x44   : > { %17564 = vmatmul.mubr.msk.f32.vlgmr.msra.gmra.mxu0 %vm514_vm0, %v19166_v8  ;;  %17578 = vmatmul.mubr.msk.f32.vlgmr.msra.gmra.mxu1 %vm514_vm0, %v19239_v24 }
  0x45   : > { %17590 = vmatpush3.msra.mxu0 %v15569_v25  ;;  %17566 = vmatprep.mubr.msk.f32.mxu0 %vm514_vm0, %v19183_v12 }
  0x46   : > { %17580 = vmatprep.mubr.msk.f32.mxu1 %vm514_vm0, %v840_v27  ;;  %17604 = vmatpush3.msra.mxu1 %v15586_v26 }
  0x47   : > { %17617 = vmatprep.subr.mxu0 %v15603_v33  ;;  %17631 = vmatprep.subr.msk.mxu1 %vm1956_vm4, %v15615_v40 }
  0x48   : > { %17567 = vmatmul.mubr.msk.f32.gmra.mxu0 %vm514_vm0, %v19191_v14  ;;  %17581 = vmatmul.mubr.msk.f32.gmra.mxu1 %vm514_vm0, %v841_v28 }
  0x49   : > { %17569 = vmatprep.mubr.msk.f32.mxu0 %vm514_vm0, %v19205_v16  ;;  %17583 = vmatprep.mubr.msk.f32.mxu1 %vm514_vm0, %v842_v29 }
  0x4c   : > { %17570 = vmatmul.mubr.msk.f32.gmra.mxu0 %vm514_vm0, %v19211_v18  ;;  %17584 = vmatmul.mubr.msk.f32.gmra.mxu1 %vm514_vm0, %v843_v30 }
  0x4d   : > { %17572 = vmatprep.mubr.msk.f32.mxu0 %vm514_vm0, %v19225_v20  ;;  %17586 = vmatprep.mubr.msk.f32.mxu1 %vm514_vm0, %v844_v31 }
  0x50   : > { %17573 = vmatmul.mubr.msk.f32.gmra.mxu0 %vm514_vm0, %v15534_v34  ;;  %17587 = vmatmul.mubr.msk.f32.gmra.mxu1 %vm514_vm0, %v15551_v35 }
  0x51   : > { %17591 = vmatprep.mubr.msk.f32.mxu0 %vm514_vm0, %v19169_v9  ;;  %17605 = vmatprep.mubr.msk.f32.mxu1 %vm514_vm0, %v19166_v8 }
  0x54   : > { %17592 = vmatmul.mubr.msk.f32.vlgmr.msra.gmra.mxu0 %vm514_vm0, %v19186_v13  ;;  %17606 = vmatmul.mubr.msk.f32.vlgmr.msra.gmra.mxu1 %vm514_vm0, %v19183_v12 }
  0x55   : > { %17618 = vmatpush3.msra.mxu0 %v15603_v33  ;;  %17594 = vmatprep.mubr.msk.f32.mxu0 %vm514_vm0, %v19194_v15 }
  0x56   : > { %17608 = vmatprep.mubr.msk.f32.mxu1 %vm514_vm0, %v19191_v14  ;;  %17632 = vmatpush3.msk.msra.mxu1 %vm1956_vm4, %v15615_v40 }
  0x57   : > { %17647 = vmatprep.subr.msk.mxu0 %vm1956_vm4, %v1920_v41  ;;  %17633 = vmatprep.subr.mxu1 %v15614_v42 }
  0x58   : > { %17595 = vmatmul.mubr.msk.f32.gmra.mxu0 %vm514_vm0, %v19208_v17  ;;  %17609 = vmatmul.mubr.msk.f32.gmra.mxu1 %vm514_vm0, %v19205_v16 }
  0x59   : > { %17597 = vmatprep.mubr.msk.f32.mxu0 %vm514_vm0, %v19214_v19  ;;  %17611 = vmatprep.mubr.msk.f32.mxu1 %vm514_vm0, %v19211_v18 }
  0x5a   : > { %17634 = vmatpush3.msra.mxu1 %v15614_v42 }
  0x5b   : > { %17663 = vmatprep.subr.msk.mxu1 %vm1956_vm4, %v19420_v46 }
  0x5c   : > { %17598 = vmatmul.mubr.msk.f32.gmra.mxu0 %vm514_vm0, %v19228_v21  ;;  %17612 = vmatmul.mubr.msk.f32.gmra.mxu1 %vm514_vm0, %v19225_v20 }
  0x5d   : > { %17600 = vmatprep.mubr.msk.f32.mxu0 %vm514_vm0, %v15517_v32  ;;  %17614 = vmatprep.mubr.msk.f32.mxu1 %vm514_vm0, %v15534_v34 }
  0x60   : > { %17601 = vmatmul.mubr.msk.f32.gmra.mxu0 %vm514_vm0, %v15568_v36  ;;  %17615 = vmatmul.mubr.msk.f32.gmra.mxu1 %vm514_vm0, %v15585_v37 }
  0x61   : > { %17619 = vmatprep.mubr.msk.f32.mxu0 %vm514_vm0, %v19239_v24  ;;  %17635 = vmatprep.mubr.msk.f32.mxu1 %vm486_vm1, %v1921_v44 }
  0x64   : > { %17620 = vmatmul.mubr.msk.f32.vlgmr.msra.gmra.mxu0 %vm514_vm0, %v840_v27 }
  0x65   : > { %17622 = vmatprep.mubr.msk.f32.mxu0 %vm514_vm0, %v841_v28  ;;  %17648 = vmatpush3.msk.msra.mxu0 %vm1956_vm4, %v1920_v41 }
  0x66   : > { %17649 = vmatprep.subr.mxu0 %v1919_v43 }
  0x67   : > { %17650 = vmatpush3.msra.mxu0 %v1919_v43 }
  0x68   : > { %17623 = vmatmul.mubr.msk.f32.gmra.mxu0 %vm514_vm0, %v842_v29  ;;  %17679 = vmatprep.subr.msk.mxu0 %vm1956_vm4, %v19427_v47 }
  0x69   : > { %17625 = vmatprep.mubr.msk.f32.mxu0 %vm514_vm0, %v843_v30 }
  0x6c   : > { %17626 = vmatmul.mubr.msk.f32.gmra.mxu0 %vm514_vm0, %v844_v31 }
  0x6d   : > { %17628 = vmatprep.mubr.msk.f32.mxu0 %vm514_vm0, %v15551_v35 }
  0x70   : > { %17629 = vmatmul.mubr.msk.f32.gmra.mxu0 %vm514_vm0, %v15602_v38 }
  0x71   : > { %17651 = vmatprep.mubr.msk.f32.mxu0 %vm486_vm1, %v1911_v45 }
  0xe4   : > { %v17509_v48 = vpop.f32.mrf.mxu0  ;;  %v17523_v49 = vpop.f32.mrf.mxu1 }
  0xe5   : > { %v804_v30 = vadd.f32 %v17523_v49, %v17509_v48 }
  0xe6   : > { %v669_v50 = vpop.f32.mrf.mxu0  ;;  %v798_v51 = vpop.f32.mrf.mxu1 }
  0xe7   : > { %v799_v33 = vadd.f32 %v798_v51, %v669_v50 }
  0xe8   : > { %v17512_v52 = vpop.f32.mrf.mxu0  ;;  %v17526_v53 = vpop.f32.mrf.mxu1 }
  0xe9   : > { %v814_v37 = vadd.f32 %v17526_v53, %v17512_v52 }
  0xea   : > { %v679_v54 = vpop.f32.mrf.mxu0  ;;  %v808_v55 = vpop.f32.mrf.mxu1 }
  0xeb   : > { %v809_v42 = vadd.f32 %v808_v55, %v679_v54 }
  0xec   : > { %v17515_v56 = vpop.f32.mrf.mxu0  ;;  %v17529_v57 = vpop.f32.mrf.mxu1 }
  0xed   : > { %v824_v45 = vadd.f32 %v17529_v57, %v17515_v56 }
  0xee   : > { %v689_v58 = vpop.f32.mrf.mxu0  ;;  %v818_v59 = vpop.f32.mrf.mxu1 }
  0xef   : > { %v819_v49 = vadd.f32 %v818_v59, %v689_v58 }
  0xf0   : > { %v17518_v60 = vpop.f32.mrf.mxu0  ;;  %v17532_v61 = vpop.f32.mrf.mxu1 }
  0xf2   : > { %v19431_v62 = vpop.f32.mrf.mxu0  ;;  %v19433_v63 = vpop.f32.mrf.mxu1 }
  0xf3   : > { %v829_v55 = vadd.f32 %v19433_v63, %v19431_v62 }
  0xf4   : > { %v17537_v0 = vpop.f32.mrf.mxu0  ;;  %v17551_v1 = vpop.f32.mrf.mxu1 }
  0xf5   : > { %v977_v34 = vadd.f32 %v17537_v0, %v804_v30  ;;  %v834_v0 = vadd.f32 %v17532_v61, %v17518_v60 }
  0xf6   : > { %v937_v2 = vpop.f32.mrf.mxu0  ;;  %v1085_v3 = vpop.f32.mrf.mxu1 }
  0xf7   : > { %v976_v38 = vadd.f32 %v937_v2, %v799_v33  ;;  %v1125_v43 = vadd.f32 %v17551_v1, %v977_v34 }
  0xf8   : > { %v17540_v4 = vpop.f32.mrf.mxu0  ;;  %v17554_v5 = vpop.f32.mrf.mxu1 }
  0xf9   : > { %v979_v44 = vadd.f32 %v17540_v4, %v814_v37  ;;  %v1124_v47 = vadd.f32 %v1085_v3, %v976_v38 }
  0xfa   : > { %v947_v6 = vpop.f32.mrf.mxu0  ;;  %v1095_v7 = vpop.f32.mrf.mxu1 }
  0xfb   : > { %v978_v46 = vadd.f32 %v947_v6, %v809_v42  ;;  %v1127_v50 = vadd.f32 %v17554_v5, %v979_v44 }
  0xfc   : > { %v17543_v8 = vpop.f32.mrf.mxu0  ;;  %v17557_v9 = vpop.f32.mrf.mxu1 }
  0xfd   : > { %v1126_v53 = vadd.f32 %v1095_v7, %v978_v46 }
  0xfe   : > { %v957_v10 = vpop.f32.mrf.mxu0  ;;  %v1105_v11 = vpop.f32.mrf.mxu1 }
  0xff   : > { %v980_v30 = vadd.f32 %v957_v10, %v819_v49 }
 0x100   : > { %v17546_v12 = vpop.f32.mrf.mxu0  ;;  %v19435_v13 = vpop.f32.mrf.mxu1 }
 0x101   : > { %v983_v57 = vadd.f32 %v17546_v12, %v834_v0  ;;  %v1128_v59 = vadd.f32 %v1105_v11, %v980_v30  ;;  %v15612_v11 = vld [vmem:[%s25248_s3] ss:$0 sm:$0xff] }
 0x102   : > { %v967_v14 = vpop.f32.mrf.mxu0  ;;  %v19437_v15 = vpop.f32.mrf.mxu1 }
 0x103   : > { %v982_v6 = vadd.f32 %v967_v14, %v829_v55  ;;  %v1131_v46 = vadd.f32 %v19435_v13, %v983_v57 }
 0x104   : > { %v17565_v16 = vpop.f32.mrf.mxu0  ;;  %v17579_v17 = vpop.f32.mrf.mxu1 }
 0x105   : > { %v1130_v63 = vadd.f32 %v19437_v15, %v982_v6 }
 0x106   : > { %v1232_v18 = vpop.f32.mrf.mxu0  ;;  %v1379_v19 = vpop.f32.mrf.mxu1 }
 0x107   : > { %v1271_v51 = vadd.f32 %v1232_v18, %v1124_v47 }
 0x108   : > { %v17568_v20 = vpop.f32.mrf.mxu0  ;;  %v17582_v21 = vpop.f32.mrf.mxu1 }
 0x109   : > { %v1274_v33 = vadd.f32 %v17568_v20, %v1127_v50  ;;  %v1418_v3 = vadd.f32 %v1379_v19, %v1271_v51 }
 0x10a   : > { %v1242_v22 = vpop.f32.mrf.mxu0  ;;  %v1389_v23 = vpop.f32.mrf.mxu1 }
 0x10b   : > { %v1273_v4 = vadd.f32 %v1242_v22, %v1126_v53  ;;  %v1421_v60 = vadd.f32 %v17582_v21, %v1274_v33 }
 0x10c   : > { %v17571_v24 = vpop.f32.mrf.mxu0  ;;  %v17585_v25 = vpop.f32.mrf.mxu1 }
 0x10e   : > { %v1252_v26 = vpop.f32.mrf.mxu0  ;;  %v19439_v27 = vpop.f32.mrf.mxu1 }
 0x10f   : > { %25245 = vst [vmem:[#allocation11_spill] sm:$0xff] %v19439_v27  ;;  %v981_v27 = vadd.f32 %v17543_v8, %v824_v45  ;;  %v1275_v7 = vadd.f32 %v1252_v26, %v1128_v59 }
 0x110   : > { %v17574_v28 = vpop.f32.mrf.mxu0  ;;  %v19441_v29 = vpop.f32.mrf.mxu1 }
 0x111   : > { %25246 = vst [vmem:[#allocation12_spill] sm:$0xff] %v19441_v29  ;;  %v1272_v29 = vadd.f32 %v17565_v16, %v1125_v43  ;;  %v1129_v56 = vadd.f32 %v17557_v9, %v981_v27  ;;  %v1420_v16 = vadd.f32 %v1389_v23, %v1273_v4  ;;  %v1278_v12 = vadd.f32 %v17574_v28, %v1131_v46 }
 0x112   : > { %v1262_v31 = vpop.f32.mrf.mxu0  ;;  %v19443_v32 = vpop.f32.mrf.mxu1 }
 0x113   : > { %25247 = vst [vmem:[#allocation13_spill] sm:$0xff] %v19443_v32  ;;  %v1419_v2 = vadd.f32 %v17579_v17, %v1272_v29  ;;  %v1276_v5 = vadd.f32 %v17571_v24, %v1129_v56  ;;  %v1277_v24 = vadd.f32 %v1262_v31, %v1130_v63 }
 0x114   : > { %v17593_v35 = vpop.f32.mrf.mxu0  ;;  %v17607_v36 = vpop.f32.mrf.mxu1 }
 0x115   : > { %v1567_v58 = vadd.f32 %v17593_v35, %v1419_v2  ;;  %v1423_v9 = vadd.f32 %v17585_v25, %v1276_v5 }
 0x116   : > { %v1527_v40 = vpop.f32.mrf.mxu0  ;;  %v1674_v41 = vpop.f32.mrf.mxu1  ;;  %v25249_v22 = vld [vmem:[#allocation11_spill] sm:$0xff] }
 0x117   : > { %v1566_v61 = vadd.f32 %v1527_v40, %v1418_v3  ;;  %v1714_v17 = vadd.f32 %v17607_v36, %v1567_v58  ;;  %v1422_v13 = vadd.f32 %v25249_v22, %v1275_v7  ;;  %v25252_v22 = vld [vmem:[#allocation9_spill] sm:$0xff] }
 0x118   : > { %v17596_v39 = vpop.f32.mrf.mxu0  ;;  %v17610_v48 = vpop.f32.mrf.mxu1  ;;  %v25250_v28 = vld [vmem:[#allocation12_spill] sm:$0xff] }
 0x119   : > { %v1569_v62 = vadd.f32 %v17596_v39, %v1421_v60  ;;  %v1713_v14 = vadd.f32 %v1674_v41, %v1566_v61  ;;  %v15613_v39 = vld [vmem:[%s25248_s3 + $0x1] ss:$0 sm:$0xff]  ;;  %v1425_v29 = vadd.f32 %v25250_v28, %v1278_v12  ;;  %s23634_s3 = scalar_lea.vmem [#allocation5], %s15481_s2 }
 0x11a   : > { %v1537_v32 = vpop.f32.mrf.mxu0  ;;  %v1684_v54 = vpop.f32.mrf.mxu1  ;;  %v25251_v41 = vld [vmem:[#allocation13_spill] sm:$0xff]  ;;  %v15634_v12 = vld [vmem:[%s25135_s4 + $0x20] sm:$0xff] }
 0x11b   : > { %v1568_v19 = vadd.f32 %v1537_v32, %v1420_v16  ;;  %v1716_v23 = vadd.f32 %v17610_v48, %v1569_v62  ;;  %v1424_v31 = vadd.f32 %v25251_v41, %v1277_v24  ;;  %v15667_v41 = vld [vmem:[%s25135_s4 + $0x50] sm:$0xff] }
 0x11c   : > { %v17599_v52 = vpop.f32.mrf.mxu0  ;;  %v17613_v8 = vpop.f32.mrf.mxu1 }
 0x11d   : > { %v1571_v26 = vadd.f32 %v17599_v52, %v1423_v9  ;;  %v1715_v36 = vadd.f32 %v1684_v54, %v1568_v19 }
 0x11e   : > { %v1547_v1 = vpop.f32.mrf.mxu0  ;;  %v1694_v20 = vpop.f32.mrf.mxu1 }
 0x11f   : > { %v1570_v34 = vadd.f32 %v1547_v1, %v1422_v13  ;;  %v1718_v42 = vadd.f32 %v17613_v8, %v1571_v26  ;;  %v25253_v13 = vld [vmem:[#allocation10_spill] sm:$0xff] }
 0x120   : > { %v17602_v47 = vpop.f32.mrf.mxu0  ;;  %v17616_v32 = vpop.f32.mrf.mxu1 }
 0x121   : > { %v1573_v43 = vadd.f32 %v17602_v47, %v1425_v29  ;;  %v1717_v51 = vadd.f32 %v1694_v20, %v1570_v34 }
 0x122   : > { %v1557_v10 = vpop.f32.mrf.mxu0  ;;  %v1704_v52 = vpop.f32.mrf.mxu1 }
 0x123   : > { %v1572_v0 = vadd.f32 %v1557_v10, %v1424_v31  ;;  %v1720_v55 = vadd.f32 %v17616_v32, %v1573_v43  ;;  %v15679_v43 = vld [vmem:[%s25135_s4 + $0x68] sm:$0xf] }
 0x124   : > { %v17621_v18 = vpop.f32.mrf.mxu0 }
 0x125   : > { %v1861_v21 = vadd.f32 %v17621_v18, %v1714_v17  ;;  %v1719_v58 = vadd.f32 %v1704_v52, %v1572_v0  ;;  %v15689_v0 = vld [vmem:[%s25135_s4 + $0x70] sm:$0xff] }
 0x126   : > { %v1821_v15 = vpop.f32.mrf.mxu0 }
 0x127   : > { %v1874_v25 = vmul.f32 %v15612_v11, %v1861_v21  ;;  %v1860_v27 = vadd.f32 %v1821_v15, %v1713_v14 }
 0x128   : > { %v17624_v35 = vpop.f32.mrf.mxu0 }
 0x129   : > { %v1887_v37 = vadd.f32 %v15613_v39, %v1874_v25  ;;  %v1873_v38 = vmul.f32 %v15612_v11, %v1860_v27  ;;  %v1863_v40 = vadd.f32 %v17624_v35, %v1716_v23  ;;  %v15668_v25 = vld [vmem:[%s25135_s4 + $0x58] sm:$0xf]  ;;  %v2197_v35 = vld [vmem:[#allocation2 + $0x2] sm:$0xff] }
 0x12a   : > { %v1831_v44 = vpop.f32.mrf.mxu0 }
 0x12b   : > { %v1895_v45 = vmax.f32 %v1887_v37, 0.0  ;;  %v1886_v49 = vadd.f32 %v15613_v39, %v1873_v38  ;;  %v1876_v50 = vmul.f32 %v15612_v11, %v1863_v40  ;;  %v1862_v48 = vadd.f32 %v1831_v44, %v1715_v36  ;;  %v15656_v40 = vld [vmem:[%s25135_s4 + $0x40] sm:$0xff]  ;;  %v15690_v44 = vld [vmem:[%s25135_s4 + $0x78] sm:$0xf] }
 0x12c   : > { %v17627_v30 = vpop.f32.mrf.mxu0 }
 0x12d   : > { %1904 = vst.msk [vmem:[#allocation2 + $0x21] sm:$0xff] %vm486_vm1, %v1895_v45  ;;  %v1894_v53 = vmax.f32 %v1886_v49, 0.0  ;;  %v1889_v2 = vadd.f32 %v15613_v39, %v1876_v50  ;;  %v1875_v33 = vmul.f32 %v15612_v11, %v1862_v48  ;;  %v1865_v54 = vadd.f32 %v17627_v30, %v1718_v42  ;;  %v15701_v30 = vld [vmem:[%s25135_s4 + $0x88] sm:$0xf] }
 0x12e   : > { %v1841_v56 = vpop.f32.mrf.mxu0 }
 0x12f   : > { %1903 = vst.msk [vmem:[#allocation2 + $0x11] sm:$0xff] %vm486_vm1, %v1894_v53  ;;  %v1897_v57 = vmax.f32 %v1889_v2, 0.0  ;;  %v1888_v1 = vadd.f32 %v15613_v39, %v1875_v33  ;;  %v1878_v3 = vmul.f32 %v15612_v11, %v1865_v54  ;;  %v1864_v4 = vadd.f32 %v1841_v56, %v1717_v51  ;;  %v15678_v51 = vld [vmem:[%s25135_s4 + $0x60] sm:$0xff]  ;;  %v15724_v33 = vld [vmem:[%s25138_s7 + $0x8] sm:$0xff]  ;;  %v2809_v54 = vld [vmem:[#allocation2 + $0x90] sm:$0xff] }
 0x130   : > { %v17630_v59 = vpop.f32.mrf.mxu0  ;;  %v15700_v2 = vld [vmem:[%s25135_s4 + $0x80] sm:$0xff] }
 0x131   : > { %1906 = vst.msk [vmem:[#allocation2 + $0x41] sm:$0xff] %vm486_vm1, %v1897_v57  ;;  %v1896_v6 = vmax.f32 %v1888_v1, 0.0  ;;  %v1891_v5 = vadd.f32 %v15613_v39, %v1878_v3  ;;  %v1877_v47 = vmul.f32 %v15612_v11, %v1864_v4  ;;  %v1867_v60 = vadd.f32 %v17630_v59, %v1720_v55  ;;  %v2960_v55 = vld [vmem:[#allocation2 + $0x91] sm:$0xff]  ;;  %v19674_v56 = vld [vmem:[%s25138_s7] sm:$0xff]  ;;  %v3438_v3 = vld [vmem:[%s19689_s21 + $0x9] sm:$0xff] }
 0x132   : > { %v1851_v61 = vpop.f32.mrf.mxu0  ;;  %25254 = vst [vmem:[#allocation11_spill] sm:$0xff] %v19674_v56  ;;  %v3111_v57 = vld [vmem:[#allocation2 + $0x92] sm:$0xff]  ;;  %v3437_v1 = vld [vmem:[%s19689_s21 + $0x1] sm:$0xff] }
 0x133   : > { %1905 = vst.msk [vmem:[#allocation2 + $0x31] sm:$0xff] %vm486_vm1, %v1896_v6  ;;  %v1899_v8 = vmax.f32 %v1891_v5, 0.0  ;;  %v1890_v46 = vadd.f32 %v15613_v39, %v1877_v47  ;;  %v1880_v7 = vmul.f32 %v15612_v11, %v1867_v60  ;;  %v1866_v10 = vadd.f32 %v1851_v61, %v1719_v58  ;;  %v19699_v4 = vld [vmem:[%s19689_s21 + $0x19] sm:$0xff]  ;;  %v19704_v58 = vld [vmem:[%s25138_s7 + $0x10] sm:$0xff]  ;;  %v19710_v59 = vld [vmem:[%s19689_s21 + $0x21] sm:$0xff] }
 0x134   : > { %v19472_v19 = vld [vmem:[#allocation2 + $0x21] sm:$0xff]  ;;  %v19714_v6 = vld [vmem:[%s19689_s21 + $0x31] sm:$0xff]  ;;  %v19722_v5 = vld [vmem:[%s19689_s21 + $0x39] sm:$0xff] }
 0x135   : > { %1908 = vst.msk [vmem:[#allocation2 + $0x61] sm:$0xff] %vm486_vm1, %v1899_v8  ;;  %v1898_v16 = vmax.f32 %v1890_v46, 0.0  ;;  %v1893_v17 = vadd.f32 %v15613_v39, %v1880_v7  ;;  %v1879_v62 = vmul.f32 %v15612_v11, %v1866_v10  ;;  %v19474_v20 = vld [vmem:[#allocation2 + $0x20] sm:$0xff]  ;;  %v15645_v11 = vld [vmem:[%s25135_s4 + $0x30] sm:$0xff] }
 0x136   : > { %v19463_v63 = vld [vmem:[#allocation2 + $0x11] sm:$0xff]  ;;  %v19542_v38 = vld [vmem:[#allocation2 + $0x22] sm:$0xff]  ;;  %v19745_v46 = vld [vmem:[%s19689_s21 + $0x79] sm:$0xff] }
 0x137   : > { %v1912_v9 = vld [vmem:[#allocation2 + $0x10] sm:$0xff]  ;;  %1907 = vst.msk [vmem:[#allocation2 + $0x51] sm:$0xff] %vm486_vm1, %v1898_v16  ;;  %v1901_v18 = vmax.f32 %v1893_v17, 0.0  ;;  %v1892_v14 = vadd.f32 %v15613_v39, %v1879_v62  ;;  %17636 = vmatmul.mubr.msk.f32.vlgmr.msra.gmra.mxu1 %vm486_vm1, %v19463_v63  ;;  %v15657_v39 = vld [vmem:[%s25135_s4 + $0x48] sm:$0xf]  ;;  %v19762_v16 = vld [vmem:[%s19689_s21 + $0x99] sm:$0xff] }
 0x138   : > { %17652 = vmatmul.mubr.msk.f32.vlgmr.msra.gmra.mxu0 %vm486_vm1, %v1912_v9  ;;  %17638 = vmatprep.mubr.msk.f32.mxu1 %vm486_vm1, %v19472_v19  ;;  %v19500_v15 = vld [vmem:[#allocation2 + $0x41] sm:$0xff]  ;;  %v2198_v37 = vld [vmem:[#allocation2 + $0x12] sm:$0xff]  ;;  %v19725_v47 = vld [vmem:[%s19689_s21 + $0x49] sm:$0xff] }
 0x139   : > { %17654 = vmatprep.mubr.msk.f32.mxu0 %vm486_vm1, %v19474_v20  ;;  %1910 = vst.msk [vmem:[#allocation2 + $0x81] sm:$0xff] %vm486_vm1, %v1901_v18  ;;  %v1900_v21 = vmax.f32 %v1892_v14, 0.0  ;;  %17664 = vmatpush3.msk.msra.mxu1 %vm1956_vm4, %v25252_v22  ;;  %v19502_v23 = vld [vmem:[#allocation2 + $0x40] sm:$0xff]  ;;  %v19732_v60 = vld [vmem:[%s19689_s21 + $0x51] sm:$0xff]  ;;  %v19742_v8 = vld [vmem:[%s19689_s21 + $0x69] sm:$0xff] }
 0x13a   : > { %17680 = vmatpush3.msk.msra.mxu0 %vm1956_vm4, %v25253_v13  ;;  %v19488_v24 = vld [vmem:[#allocation2 + $0x31] sm:$0xff]  ;;  %17665 = vmatprep.subr.mxu1 %v15634_v12  ;;  %v19562_v42 = vld [vmem:[#allocation2 + $0x42] sm:$0xff]  ;;  %v19825_v13 = vld [vmem:[%s19689_s21 + $0x139] sm:$0xff] }
 0x13b   : > { %v19490_v26 = vld [vmem:[#allocation2 + $0x30] sm:$0xff]  ;;  %17681 = vmatprep.subr.mxu0 %v15645_v11  ;;  %1909 = vst.msk [vmem:[#allocation2 + $0x71] sm:$0xff] %vm486_vm1, %v1900_v21  ;;  %17639 = vmatmul.mubr.msk.f32.gmra.mxu1 %vm486_vm1, %v19488_v24  ;;  %v19735_v61 = vld [vmem:[%s19689_s21 + $0x61] sm:$0xff]  ;;  %25261 = vst [vmem:[#allocation15_spill] sm:$0xff] %v19825_v13 }
 0x13c   : > { %17655 = vmatmul.mubr.msk.f32.gmra.mxu0 %vm486_vm1, %v19490_v26  ;;  %17641 = vmatprep.mubr.msk.f32.mxu1 %vm486_vm1, %v19500_v15  ;;  %v19521_v29 = vld [vmem:[#allocation2 + $0x61] sm:$0xff]  ;;  %v19556_v31 = vld [vmem:[#allocation2 + $0x32] sm:$0xff]  ;;  %v19765_v17 = vld [vmem:[%s19689_s21 + $0xa9] sm:$0xff] }
 0x13d   : > { %17657 = vmatprep.mubr.msk.f32.mxu0 %vm486_vm1, %v19502_v23  ;;  %17666 = vmatpush3.msra.mxu1 %v15634_v12  ;;  %v19523_v34 = vld [vmem:[#allocation2 + $0x60] sm:$0xff]  ;;  %v19755_v10 = vld [vmem:[%s19689_s21 + $0x91] sm:$0xff]  ;;  %v19822_v22 = vld [vmem:[%s19689_s21 + $0x129] sm:$0xff] }
 0x13e   : > { %17682 = vmatpush3.msra.mxu0 %v15645_v11  ;;  %v19511_v27 = vld [vmem:[#allocation2 + $0x51] sm:$0xff]  ;;  %17695 = vmatprep.subr.msk.mxu1 %vm1956_vm4, %v15657_v39  ;;  %v19582_v49 = vld [vmem:[#allocation2 + $0x62] sm:$0xff]  ;;  %v19785_v12 = vld [vmem:[%s19689_s21 + $0xd9] sm:$0xff]  ;;  %25260 = vst [vmem:[#allocation14_spill] sm:$0xff] %v19822_v22 }
 0x13f   : > { %v19513_v28 = vld [vmem:[#allocation2 + $0x50] sm:$0xff]  ;;  %17711 = vmatprep.subr.msk.mxu0 %vm1956_vm4, %v15668_v25  ;;  %17642 = vmatmul.mubr.msk.f32.gmra.mxu1 %vm486_vm1, %v19511_v27  ;;  %v19752_v7 = vld [vmem:[%s19689_s21 + $0x81] sm:$0xff] }
 0x140   : > { %17658 = vmatmul.mubr.msk.f32.gmra.mxu0 %vm486_vm1, %v19513_v28  ;;  %17644 = vmatprep.mubr.msk.f32.mxu1 %vm486_vm1, %v19521_v29  ;;  %v19574_v45 = vld [vmem:[#allocation2 + $0x52] sm:$0xff]  ;;  %v2355_v48 = vld [vmem:[#allocation2 + $0x80] sm:$0xff] }
 0x141   : > { %17660 = vmatprep.mubr.msk.f32.mxu0 %vm486_vm1, %v19523_v34  ;;  %v2506_v52 = vld [vmem:[#allocation2 + $0x81] sm:$0xff]  ;;  %v19772_v62 = vld [vmem:[%s19689_s21 + $0xb1] sm:$0xff] }
 0x142   : > { %v19529_v36 = vld [vmem:[#allocation2 + $0x71] sm:$0xff]  ;;  %v2657_v53 = vld [vmem:[#allocation2 + $0x82] sm:$0xff] }
 0x143   : > { %v19531_v32 = vld [vmem:[#allocation2 + $0x70] sm:$0xff]  ;;  %17645 = vmatmul.mubr.msk.f32.gmra.mxu1 %vm486_vm1, %v19529_v36  ;;  %v19792_v18 = vld [vmem:[%s19689_s21 + $0xe1] sm:$0xff] }
 0x144   : > { %17661 = vmatmul.mubr.msk.f32.gmra.mxu0 %vm486_vm1, %v19531_v32  ;;  %17667 = vmatprep.mubr.msk.f32.mxu1 %vm486_vm1, %v2197_v35  ;;  %v19588_v50 = vld [vmem:[#allocation2 + $0x72] sm:$0xff]  ;;  %v19815_v21 = vld [vmem:[%s19689_s21 + $0x121] sm:$0xff] }
 0x145   : > { %17683 = vmatprep.mubr.msk.f32.mxu0 %vm486_vm1, %v1912_v9  ;;  %v19782_v9 = vld [vmem:[%s19689_s21 + $0xc9] sm:$0xff]  ;;  %v19795_v14 = vld [vmem:[%s19689_s21 + $0xf1] sm:$0xff]  ;;  %25259 = vst [vmem:[#allocation10_spill] sm:$0xff] %v19815_v21 }
 0x146   : > { %v19812_v11 = vld [vmem:[%s19689_s21 + $0x111] sm:$0xff] }
 0x147   : > { %17668 = vmatmul.mubr.msk.f32.vlgmr.msra.gmra.mxu1 %vm486_vm1, %v2198_v37  ;;  %25258 = vst [vmem:[#allocation9_spill] sm:$0xff] %v19812_v11  ;;  %v3425_v35 = vld [vmem:[%s19689_s21 + $0xf8] sm:$0xff] }
 0x148   : > { %17684 = vmatmul.mubr.msk.f32.vlgmr.msra.gmra.mxu0 %vm486_vm1, %v19474_v20  ;;  %17670 = vmatprep.mubr.msk.f32.mxu1 %vm486_vm1, %v19542_v38 }
 0x149   : > { %17686 = vmatprep.mubr.msk.f32.mxu0 %vm486_vm1, %v19490_v26  ;;  %17696 = vmatpush3.msk.msra.mxu1 %vm1956_vm4, %v15657_v39  ;;  %v3466_v39 = vld [vmem:[%s19689_s21 + $0x159] sm:$0xff] }
 0x14a   : > { %17712 = vmatpush3.msk.msra.mxu0 %vm1956_vm4, %v15668_v25  ;;  %17697 = vmatprep.subr.mxu1 %v15656_v40  ;;  %v19841_v25 = vld [vmem:[%s19689_s21 + $0xc0] sm:$0xff] }
 0x14b   : > { %17713 = vmatprep.subr.mxu0 %v15667_v41  ;;  %17671 = vmatmul.mubr.msk.f32.gmra.mxu1 %vm486_vm1, %v19556_v31  ;;  %25262 = vst [vmem:[#allocation16_spill] sm:$0xff] %v19841_v25 }
 0x14c   : > { %17687 = vmatmul.mubr.msk.f32.gmra.mxu0 %vm486_vm1, %v19502_v23  ;;  %17673 = vmatprep.mubr.msk.f32.mxu1 %vm486_vm1, %v19562_v42 }
 0x14d   : > { %17689 = vmatprep.mubr.msk.f32.mxu0 %vm486_vm1, %v19513_v28  ;;  %17698 = vmatpush3.msra.mxu1 %v15656_v40  ;;  %v3429_v40 = vld [vmem:[%s19689_s21 + $0x128] sm:$0xff] }
 0x14e   : > { %17714 = vmatpush3.msra.mxu0 %v15667_v41  ;;  %17727 = vmatprep.subr.msk.mxu1 %vm1956_vm4, %v15679_v43  ;;  %v3430_v41 = vld [vmem:[%s19689_s21 + $0x138] sm:$0xff] }
 0x14f   : > { %17743 = vmatprep.subr.msk.mxu0 %vm1956_vm4, %v15690_v44  ;;  %17674 = vmatmul.mubr.msk.f32.gmra.mxu1 %vm486_vm1, %v19574_v45 }
 0x150   : > { %17690 = vmatmul.mubr.msk.f32.gmra.mxu0 %vm486_vm1, %v19523_v34  ;;  %17676 = vmatprep.mubr.msk.f32.mxu1 %vm486_vm1, %v19582_v49 }
 0x151   : > { %17692 = vmatprep.mubr.msk.f32.mxu0 %vm486_vm1, %v19531_v32 }
 0x153   : > { %17677 = vmatmul.mubr.msk.f32.gmra.mxu1 %vm486_vm1, %v19588_v50 }
 0x154   : > { %17693 = vmatmul.mubr.msk.f32.gmra.mxu0 %vm486_vm1, %v2355_v48  ;;  %17699 = vmatprep.mubr.msk.f32.mxu1 %vm486_vm1, %v19463_v63  ;;  %v19775_v63 = vld [vmem:[%s19689_s21 + $0xc1] sm:$0xff] }
 0x155   : > { %17715 = vmatprep.mubr.msk.f32.mxu0 %vm486_vm1, %v2198_v37  ;;  %v3428_v37 = vld [vmem:[%s19689_s21 + $0x120] sm:$0xff] }
 0x157   : > { %17700 = vmatmul.mubr.msk.f32.vlgmr.msra.gmra.mxu1 %vm486_vm1, %v19472_v19 }
 0x158   : > { %17716 = vmatmul.mubr.msk.f32.vlgmr.msra.gmra.mxu0 %vm486_vm1, %v19542_v38  ;;  %17702 = vmatprep.mubr.msk.f32.mxu1 %vm486_vm1, %v19488_v24 }
 0x159   : > { %17718 = vmatprep.mubr.msk.f32.mxu0 %vm486_vm1, %v19556_v31  ;;  %17728 = vmatpush3.msk.msra.mxu1 %vm1956_vm4, %v15679_v43  ;;  %v3433_v43 = vld [vmem:[%s19689_s21 + $0x158] sm:$0xff] }
 0x15a   : > { %17744 = vmatpush3.msk.msra.mxu0 %vm1956_vm4, %v15690_v44  ;;  %17729 = vmatprep.subr.mxu1 %v15678_v51  ;;  %v3434_v44 = vld [vmem:[%s19689_s21 + $0x168] sm:$0xff] }
 0x15b   : > { %17745 = vmatprep.subr.mxu0 %v15689_v0  ;;  %17703 = vmatmul.mubr.msk.f32.gmra.mxu1 %vm486_vm1, %v19500_v15 }
 0x15c   : > { %17719 = vmatmul.mubr.msk.f32.gmra.mxu0 %vm486_vm1, %v19562_v42  ;;  %17705 = vmatprep.mubr.msk.f32.mxu1 %vm486_vm1, %v19511_v27 }
 0x15d   : > { %17721 = vmatprep.mubr.msk.f32.mxu0 %vm486_vm1, %v19574_v45  ;;  %17730 = vmatpush3.msra.mxu1 %v15678_v51  ;;  %v4116_v51 = vld [vmem:[%s19689_s21 + $0x22] sm:$0xff] }
 0x15e   : > { %17746 = vmatpush3.msra.mxu0 %v15689_v0  ;;  %17759 = vmatprep.subr.msk.mxu1 %vm1956_vm4, %v15701_v30  ;;  %v4117_v0 = vld [vmem:[%s19689_s21 + $0x32] sm:$0xff] }
 0x15f   : > { %17706 = vmatmul.mubr.msk.f32.gmra.mxu1 %vm486_vm1, %v19521_v29 }
 0x160   : > { %17722 = vmatmul.mubr.msk.f32.gmra.mxu0 %vm486_vm1, %v19582_v49  ;;  %17708 = vmatprep.mubr.msk.f32.mxu1 %vm486_vm1, %v19529_v36 }
 0x161   : > { %17724 = vmatprep.mubr.msk.f32.mxu0 %vm486_vm1, %v19588_v50 }
 0x163   : > { %17709 = vmatmul.mubr.msk.f32.gmra.mxu1 %vm486_vm1, %v2506_v52 }
 0x164   : > { %17725 = vmatmul.mubr.msk.f32.gmra.mxu0 %vm486_vm1, %v2657_v53  ;;  %17731 = vmatprep.mubr.msk.f32.mxu1 %vm486_vm1, %v19474_v20  ;;  %v19805_v20 = vld [vmem:[%s19689_s21 + $0x109] sm:$0xff] }
 0x165   : > { %17747 = vmatprep.mubr.msk.f32.mxu0 %vm486_vm1, %v19472_v19  ;;  %v19802_v19 = vld [vmem:[%s19689_s21 + $0xf9] sm:$0xff]  ;;  %25257 = vst [vmem:[#allocation13_spill] sm:$0xff] %v19805_v20 }
 0x166   : > { %25256 = vst [vmem:[#allocation12_spill] sm:$0xff] %v19802_v19 }
 0x167   : > { %17732 = vmatmul.mubr.msk.f32.vlgmr.msra.gmra.mxu1 %vm486_vm1, %v19490_v26  ;;  %v3465_v26 = vld [vmem:[%s19689_s21 + $0x151] sm:$0xff] }
 0x168   : > { %17748 = vmatmul.mubr.msk.f32.vlgmr.msra.gmra.mxu0 %vm486_vm1, %v19488_v24  ;;  %17734 = vmatprep.mubr.msk.f32.mxu1 %vm486_vm1, %v19502_v23  ;;  %v3464_v24 = vld [vmem:[%s19689_s21 + $0x141] sm:$0xff]  ;;  %v3468_v23 = vld [vmem:[%s19689_s21 + $0x171] sm:$0xff] }
 0x169   : > { %17750 = vmatprep.mubr.msk.f32.mxu0 %vm486_vm1, %v19500_v15  ;;  %17760 = vmatpush3.msk.msra.mxu1 %vm1956_vm4, %v15701_v30  ;;  %v3467_v15 = vld [vmem:[%s19689_s21 + $0x169] sm:$0xff]  ;;  %v3289_v30 = vld [vmem:[%s25137_s6] sm:$0xff] }
 0x16a   : > { %17761 = vmatprep.subr.mxu1 %v15700_v2 }
 0x16b   : > { %17735 = vmatmul.mubr.msk.f32.gmra.mxu1 %vm486_vm1, %v19513_v28  ;;  %v3422_v28 = vld [vmem:[%s19689_s21 + $0xd8] sm:$0xff] }
 0x16c   : > { %17751 = vmatmul.mubr.msk.f32.gmra.mxu0 %vm486_vm1, %v19511_v27  ;;  %17737 = vmatprep.mubr.msk.f32.mxu1 %vm486_vm1, %v19523_v34  ;;  %v3421_v27 = vld [vmem:[%s19689_s21 + $0xc8] sm:$0xff]  ;;  %v3424_v34 = vld [vmem:[%s19689_s21 + $0xf0] sm:$0xff] }
 0x16d   : > { %17753 = vmatprep.mubr.msk.f32.mxu0 %vm486_vm1, %v19521_v29  ;;  %17762 = vmatpush3.msra.mxu1 %v15700_v2  ;;  %v3423_v29 = vld [vmem:[%s19689_s21 + $0xe0] sm:$0xff]  ;;  %v4120_v2 = vld [vmem:[%s19689_s21 + $0x52] sm:$0xff] }
 0x16e   : > { %17794 = vmatprep.subr.mxu1 %v15724_v33 }
 0x16f   : > { %17738 = vmatmul.mubr.msk.f32.gmra.mxu1 %vm486_vm1, %v19531_v32  ;;  %v3427_v32 = vld [vmem:[%s19689_s21 + $0x110] sm:$0xff] }
 0x170   : > { %17754 = vmatmul.mubr.msk.f32.gmra.mxu0 %vm486_vm1, %v19529_v36  ;;  %17740 = vmatprep.mubr.msk.f32.mxu1 %vm486_vm1, %v2355_v48  ;;  %v3426_v36 = vld [vmem:[%s19689_s21 + $0x108] sm:$0xff]  ;;  %v4115_v48 = vld [vmem:[%s19689_s21 + $0x1a] sm:$0xff] }
 0x171   : > { %17756 = vmatprep.mubr.msk.f32.mxu0 %vm486_vm1, %v2506_v52  ;;  %v4118_v52 = vld [vmem:[%s19689_s21 + $0x3a] sm:$0xff] }
 0x173   : > { %17741 = vmatmul.mubr.msk.f32.gmra.mxu1 %vm486_vm1, %v2809_v54  ;;  %v4122_v54 = vld [vmem:[%s19689_s21 + $0x6a] sm:$0xff] }
 0x174   : > { %17757 = vmatmul.mubr.msk.f32.gmra.mxu0 %vm486_vm1, %v2960_v55  ;;  %17763 = vmatprep.mubr.msk.f32.mxu1 %vm486_vm1, %v19542_v38  ;;  %v15919_v38 = vld [vmem:[%s25138_s7 + $0x20] sm:$0xff] }
 0x175   : > { %17791 = vmatprep.mubr.msk.f32.mxu0 %vm486_vm1, %v3289_v30  ;;  %v4123_v55 = vld [vmem:[%s19689_s21 + $0x7a] sm:$0xff] }
 0x177   : > { %17764 = vmatmul.mubr.msk.f32.vlgmr.msra.gmra.mxu1 %vm486_vm1, %v19556_v31  ;;  %v3431_v31 = vld [vmem:[%s19689_s21 + $0x140] sm:$0xff] }
 0x178   : > { %17766 = vmatprep.mubr.msk.f32.mxu1 %vm486_vm1, %v19562_v42  ;;  %17795 = vmatpush3.msra.mxu1 %v15724_v33  ;;  %v3432_v42 = vld [vmem:[%s19689_s21 + $0x150] sm:$0xff]  ;;  %v4121_v33 = vld [vmem:[%s19689_s21 + $0x62] sm:$0xff] }
 0x179   : > { %18824 = vmatprep.subr.mxu1 %v19674_v56 }
 0x17b   : > { %17767 = vmatmul.mubr.msk.f32.gmra.mxu1 %vm486_vm1, %v19574_v45  ;;  %v3435_v45 = vld [vmem:[%s19689_s21 + $0x170] sm:$0xff] }
 0x17c   : > { %17769 = vmatprep.mubr.msk.f32.mxu1 %vm486_vm1, %v19582_v49  ;;  %v4113_v49 = vld [vmem:[%s19689_s21 + $0x2] sm:$0xff] }
 0x17f   : > { %17770 = vmatmul.mubr.msk.f32.gmra.mxu1 %vm486_vm1, %v19588_v50  ;;  %v4114_v50 = vld [vmem:[%s19689_s21 + $0xa] sm:$0xff] }
 0x180   : > { %17772 = vmatprep.mubr.msk.f32.mxu1 %vm486_vm1, %v2657_v53  ;;  %v4119_v53 = vld [vmem:[%s19689_s21 + $0x4a] sm:$0xff] }
 0x183   : > { %17773 = vmatmul.mubr.msk.f32.gmra.mxu1 %vm486_vm1, %v3111_v57 }
 0x184   : > { %17796 = vmatprep.mubr.msk.f32.mxu1 %vm514_vm0, %v3437_v1 }
 0x187   : > { %17797 = vmatmul.mubr.msk.f32.vlgmr.msra.gmra.mxu1 %vm514_vm0, %v3438_v3 }
 0x188   : > { %17799 = vmatprep.mubr.msk.f32.mxu1 %vm514_vm0, %v19699_v4  ;;  %18825 = vmatpush3.msra.mxu1 %v19674_v56 }
 0x189   : > { %17894 = vmatprep.subr.mxu1 %v19704_v58 }
 0x18b   : > { %17800 = vmatmul.mubr.msk.f32.gmra.mxu1 %vm514_vm0, %v19710_v59 }
 0x18c   : > { %17802 = vmatprep.mubr.msk.f32.mxu1 %vm514_vm0, %v19714_v6 }
 0x18f   : > { %17803 = vmatmul.mubr.msk.f32.gmra.mxu1 %vm514_vm0, %v19722_v5 }
 0x190   : > { %17805 = vmatprep.mubr.msk.f32.mxu1 %vm514_vm0, %v19725_v47 }
 0x193   : > { %17806 = vmatmul.mubr.msk.f32.gmra.mxu1 %vm514_vm0, %v19732_v60 }
 0x194   : > { %17808 = vmatprep.mubr.msk.f32.mxu1 %vm514_vm0, %v19735_v61 }
 0x197   : > { %17809 = vmatmul.mubr.msk.f32.gmra.mxu1 %vm514_vm0, %v19742_v8 }
 0x198   : > { %17811 = vmatprep.mubr.msk.f32.mxu1 %vm514_vm0, %v19745_v46 }
 0x19b   : > { %17812 = vmatmul.mubr.msk.f32.gmra.mxu1 %vm514_vm0, %v19752_v7 }
 0x19c   : > { %17814 = vmatprep.mubr.msk.f32.mxu1 %vm514_vm0, %v19755_v10 }
 0x19f   : > { %17815 = vmatmul.mubr.msk.f32.gmra.mxu1 %vm514_vm0, %v19762_v16 }
 0x1a0   : > { %17817 = vmatprep.mubr.msk.f32.mxu1 %vm514_vm0, %v19765_v17 }
 0x1a3   : > { %17818 = vmatmul.mubr.msk.f32.gmra.mxu1 %vm514_vm0, %v19772_v62 }
 0x1a4   : > { %17820 = vmatprep.mubr.msk.f32.mxu1 %vm514_vm0, %v19775_v63 }
 0x1a7   : > { %17821 = vmatmul.mubr.msk.f32.gmra.mxu1 %vm514_vm0, %v19782_v9 }
 0x1a8   : > { %17823 = vmatprep.mubr.msk.f32.mxu1 %vm514_vm0, %v19785_v12 }
 0x1ab   : > { %17824 = vmatmul.mubr.msk.f32.gmra.mxu1 %vm514_vm0, %v19792_v18 }
 0x1ac   : > { %17826 = vmatprep.mubr.msk.f32.mxu1 %vm514_vm0, %v19795_v14 }
 0x1af   : > { %17827 = vmatmul.mubr.msk.f32.gmra.mxu1 %vm514_vm0, %v19802_v19 }
 0x1b0   : > { %17829 = vmatprep.mubr.msk.f32.mxu1 %vm514_vm0, %v19805_v20 }
 0x1b3   : > { %17830 = vmatmul.mubr.msk.f32.gmra.mxu1 %vm514_vm0, %v19812_v11 }
 0x1b4   : > { %17832 = vmatprep.mubr.msk.f32.mxu1 %vm514_vm0, %v19815_v21 }
 0x1b7   : > { %17833 = vmatmul.mubr.msk.f32.gmra.mxu1 %vm514_vm0, %v19822_v22 }
 0x1b8   : > { %17835 = vmatprep.mubr.msk.f32.mxu1 %vm514_vm0, %v19825_v13  ;;  %v4142_v13 = vld [vmem:[%s19689_s21 + $0x15a] sm:$0xff] }
 0x1bb   : > { %17836 = vmatmul.mubr.msk.f32.gmra.mxu1 %vm514_vm0, %v3464_v24 }
 0x1bc   : > { %17838 = vmatprep.mubr.msk.f32.mxu1 %vm514_vm0, %v3465_v26 }
 0x1bf   : > { %17839 = vmatmul.mubr.msk.f32.gmra.mxu1 %vm514_vm0, %v3466_v39  ;;  %v4125_v39 = vld [vmem:[%s19689_s21 + $0x92] sm:$0xff] }
 0x1c0   : > { %17841 = vmatprep.mubr.msk.f32.mxu1 %vm514_vm0, %v3467_v15 }
 0x1c3   : > { %17842 = vmatmul.mubr.msk.f32.gmra.mxu1 %vm514_vm0, %v3468_v23 }
 0x1c4   : > { %17870 = vmatprep.mubr.msk.f32.mxu1 %vm514_vm0, %v19841_v25 }
 0x1c7   : > { %17871 = vmatmul.mubr.msk.f32.vlgmr.msra.gmra.mxu1 %vm514_vm0, %v3421_v27  ;;  %v4126_v27 = vld [vmem:[%s19689_s21 + $0x9a] sm:$0xff] }
 0x1c8   : > { %17873 = vmatprep.mubr.msk.f32.mxu1 %vm514_vm0, %v3422_v28  ;;  %17895 = vmatpush3.msra.mxu1 %v19704_v58  ;;  %v4124_v58 = vld [vmem:[%s19689_s21 + $0x82] sm:$0xff] }
 0x1c9   : > { %17994 = vmatprep.subr.mxu1 %v15919_v38 }
 0x1cb   : > { %17874 = vmatmul.mubr.msk.f32.gmra.mxu1 %vm514_vm0, %v3423_v29 }
 0x1cc   : > { %17876 = vmatprep.mubr.msk.f32.mxu1 %vm514_vm0, %v3424_v34  ;;  %v4127_v34 = vld [vmem:[%s19689_s21 + $0xaa] sm:$0xff] }
 0x1cf   : > { %17877 = vmatmul.mubr.msk.f32.gmra.mxu1 %vm514_vm0, %v3425_v35 }
 0x1d0   : > { %17879 = vmatprep.mubr.msk.f32.mxu1 %vm514_vm0, %v3426_v36 }
 0x1d3   : > { %17880 = vmatmul.mubr.msk.f32.gmra.mxu1 %vm514_vm0, %v3427_v32  ;;  %v4128_v32 = vld [vmem:[%s19689_s21 + $0xb2] sm:$0xff] }
 0x1d4   : > { %17882 = vmatprep.mubr.msk.f32.mxu1 %vm514_vm0, %v3428_v37 }
 0x1d7   : > { %17883 = vmatmul.mubr.msk.f32.gmra.mxu1 %vm514_vm0, %v3429_v40  ;;  %v4129_v40 = vld [vmem:[%s19689_s21 + $0xc2] sm:$0xff] }
 0x1d8   : > { %17885 = vmatprep.mubr.msk.f32.mxu1 %vm514_vm0, %v3430_v41 }
 0x1db   : > { %17886 = vmatmul.mubr.msk.f32.gmra.mxu1 %vm514_vm0, %v3431_v31 }
 0x1dc   : > { %17888 = vmatprep.mubr.msk.f32.mxu1 %vm514_vm0, %v3432_v42  ;;  %v4130_v42 = vld [vmem:[%s19689_s21 + $0xca] sm:$0xff] }
 0x1df   : > { %17889 = vmatmul.mubr.msk.f32.gmra.mxu1 %vm514_vm0, %v3433_v43 }
 0x1e0   : > { %17891 = vmatprep.mubr.msk.f32.mxu1 %vm514_vm0, %v3434_v44 }
 0x1e3   : > { %17892 = vmatmul.mubr.msk.f32.gmra.mxu1 %vm514_vm0, %v3435_v45  ;;  %v4131_v45 = vld [vmem:[%s19689_s21 + $0xda] sm:$0xff] }
 0x1e4   : > { %17896 = vmatprep.mubr.msk.f32.mxu1 %vm514_vm0, %v4113_v49 }
 0x1e7   : > { %17897 = vmatmul.mubr.msk.f32.vlgmr.msra.gmra.mxu1 %vm514_vm0, %v4114_v50 }
 0x1e8   : > { %17899 = vmatprep.mubr.msk.f32.mxu1 %vm514_vm0, %v4115_v48  ;;  %17995 = vmatpush3.msra.mxu1 %v15919_v38 }
 0x1eb   : > { %17900 = vmatmul.mubr.msk.f32.gmra.mxu1 %vm514_vm0, %v4116_v51 }
 0x1ec   : > { %17902 = vmatprep.mubr.msk.f32.mxu1 %vm514_vm0, %v4117_v0  ;;  %v4132_v0 = vld [vmem:[%s19689_s21 + $0xe2] sm:$0xff] }
 0x1ef   : > { %17903 = vmatmul.mubr.msk.f32.gmra.mxu1 %vm514_vm0, %v4118_v52 }
 0x1f0   : > { %17905 = vmatprep.mubr.msk.f32.mxu1 %vm514_vm0, %v4119_v53  ;;  %v4133_v53 = vld [vmem:[%s19689_s21 + $0xf2] sm:$0xff] }
 0x1f3   : > { %17906 = vmatmul.mubr.msk.f32.gmra.mxu1 %vm514_vm0, %v4120_v2 }
 0x1f4   : > { %17908 = vmatprep.mubr.msk.f32.mxu1 %vm514_vm0, %v4121_v33 }
 0x1f7   : > { %v17637_v57 = vpop.f32.mrf.mxu1  ;;  %17909 = vmatmul.mubr.msk.f32.gmra.mxu1 %vm514_vm0, %v4122_v54 }
 0x1f8   : > { %v17653_v1 = vpop.f32.mrf.mxu0  ;;  %17911 = vmatprep.mubr.msk.f32.mxu1 %vm514_vm0, %v4123_v55  ;;  %v4134_v55 = vld [vmem:[%s19689_s21 + $0xfa] sm:$0xff] }
 0x1f9   : > { %v2164_v3 = vadd.f32 %v17653_v1, %v17637_v57  ;;  %v2026_v24 = vpop.f32.mrf.mxu1 }
 0x1fa   : > { %v2158_v26 = vpop.f32.mrf.mxu0 }
 0x1fb   : > { %v19908_v15 = vpop.f32.mrf.mxu1  ;;  %17912 = vmatmul.mubr.msk.f32.gmra.mxu1 %vm514_vm0, %v4124_v58  ;;  %v2159_v48 = vadd.f32 %v2158_v26, %v2026_v24  ;;  %v4136_v26 = vld [vmem:[%s19689_s21 + $0x112] sm:$0xff] }
 0x1fc   : > { %v19910_v23 = vpop.f32.mrf.mxu0  ;;  %17914 = vmatprep.mubr.msk.f32.mxu1 %vm514_vm0, %v4125_v39 }
 0x1fd   : > { %v19915_v28 = vpop.f32.mrf.mxu1 }
 0x1fe   : > { %v19917_v29 = vpop.f32.mrf.mxu0 }
 0x1ff   : > { %v19920_v35 = vpop.f32.mrf.mxu1  ;;  %17915 = vmatmul.mubr.msk.f32.gmra.mxu1 %vm514_vm0, %v4126_v27 }
 0x200   : > { %v19922_v36 = vpop.f32.mrf.mxu0  ;;  %17917 = vmatprep.mubr.msk.f32.mxu1 %vm514_vm0, %v4127_v34  ;;  %v4137_v34 = vld [vmem:[%s19689_s21 + $0x122] sm:$0xff] }
 0x201   : > { %v19927_v37 = vpop.f32.mrf.mxu1 }
 0x202   : > { %v19929_v38 = vpop.f32.mrf.mxu0 }
 0x203   : > { %v19932_v41 = vpop.f32.mrf.mxu1  ;;  %17918 = vmatmul.mubr.msk.f32.gmra.mxu1 %vm514_vm0, %v4128_v32  ;;  %v16049_v32 = vld [vmem:[%s25138_s7 + $0x30] sm:$0xff] }
 0x204   : > { %v19934_v31 = vpop.f32.mrf.mxu0  ;;  %17920 = vmatprep.mubr.msk.f32.mxu1 %vm514_vm0, %v4129_v40  ;;  %18094 = vmatprep.subr.mxu1 %v16049_v32 }
 0x205   : > { %v19939_v43 = vpop.f32.mrf.mxu1 }
 0x206   : > { %v19941_v44 = vpop.f32.mrf.mxu0 }
 0x207   : > { %v17669_v49 = vpop.f32.mrf.mxu1  ;;  %17921 = vmatmul.mubr.msk.f32.gmra.mxu1 %vm514_vm0, %v4130_v42 }
 0x208   : > { %v19944_v50 = vpop.f32.mrf.mxu0  ;;  %v19947_v51 = vadd.f32 %v17669_v49, %v2164_v3  ;;  %17923 = vmatprep.mubr.msk.f32.mxu1 %vm514_vm0, %v4131_v45  ;;  %v4135_v3 = vld [vmem:[%s19689_s21 + $0x10a] sm:$0xff] }
 0x209   : > { %v2301_v30 = vpop.f32.mrf.mxu1  ;;  %v4138_v45 = vld [vmem:[%s19689_s21 + $0x12a] sm:$0xff] }
 0x20a   : > { %v19951_v52 = vpop.f32.mrf.mxu0  ;;  %v19954_v2 = vadd.f32 %v2301_v30, %v2159_v48 }
 0x20b   : > { %25263 = vst [vmem:[#allocation17_spill] sm:$0xff] %v19951_v52  ;;  %v19956_v33 = vpop.f32.mrf.mxu1  ;;  %17924 = vmatmul.mubr.msk.f32.gmra.mxu1 %vm514_vm0, %v4132_v0  ;;  %v4139_v0 = vld [vmem:[%s19689_s21 + $0x13a] sm:$0xff] }
 0x20c   : > { %25264 = vst [vmem:[#allocation18_spill] sm:$0xff] %v19954_v2  ;;  %v19958_v54 = vpop.f32.mrf.mxu0  ;;  %17926 = vmatprep.mubr.msk.f32.mxu1 %vm514_vm0, %v4133_v53 }
 0x20d   : > { %v19963_v57 = vpop.f32.mrf.mxu1 }
 0x20e   : > { %v19965_v1 = vpop.f32.mrf.mxu0 }
 0x20f   : > { %v19968_v58 = vpop.f32.mrf.mxu1  ;;  %17927 = vmatmul.mubr.msk.f32.gmra.mxu1 %vm514_vm0, %v4134_v55  ;;  %v4140_v55 = vld [vmem:[%s19689_s21 + $0x142] sm:$0xff] }
 0x210   : > { %v19970_v24 = vpop.f32.mrf.mxu0  ;;  %17929 = vmatprep.mubr.msk.f32.mxu1 %vm514_vm0, %v4135_v3 }
 0x211   : > { %v19975_v39 = vpop.f32.mrf.mxu1 }
 0x212   : > { %v19977_v27 = vpop.f32.mrf.mxu0 }
 0x213   : > { %v17678_v40 = vpop.f32.mrf.mxu1  ;;  %17930 = vmatmul.mubr.msk.f32.gmra.mxu1 %vm514_vm0, %v4136_v26 }
 0x214   : > { %v19983_v42 = vpop.f32.mrf.mxu0  ;;  %17932 = vmatprep.mubr.msk.f32.mxu1 %vm514_vm0, %v4137_v34  ;;  %v4141_v34 = vld [vmem:[%s19689_s21 + $0x152] sm:$0xff] }
 0x215   : > { %v2331_v49 = vpop.f32.mrf.mxu1 }
 0x216   : > { %v19988_v48 = vpop.f32.mrf.mxu0 }
 0x217   : > { %v19991_v30 = vpop.f32.mrf.mxu1  ;;  %17933 = vmatmul.mubr.msk.f32.gmra.mxu1 %vm514_vm0, %v4138_v45 }
 0x218   : > { %v19993_v53 = vpop.f32.mrf.mxu0  ;;  %17935 = vmatprep.mubr.msk.f32.mxu1 %vm514_vm0, %v4139_v0  ;;  %v4143_v0 = vld [vmem:[%s19689_s21 + $0x16a] sm:$0xff] }
 0x219   : > { %25265 = vst [vmem:[#allocation19_spill] sm:$0xff] %v19993_v53  ;;  %v19998_v3 = vpop.f32.mrf.mxu1 }
 0x21a   : > { %25266 = vst [vmem:[#allocation20_spill] sm:$0xff] %v19998_v3  ;;  %v20000_v26 = vpop.f32.mrf.mxu0 }
 0x21b   : > { %25267 = vst [vmem:[#allocation21_spill] sm:$0xff] %v20000_v26  ;;  %v20003_v25 = vpop.f32.mrf.mxu1  ;;  %17936 = vmatmul.mubr.msk.f32.gmra.mxu1 %vm514_vm0, %v4140_v55  ;;  %v4144_v26 = vld [vmem:[%s19689_s21 + $0x172] sm:$0xff] }
 0x21c   : > { %v20005_v56 = vpop.f32.mrf.mxu0  ;;  %17938 = vmatprep.mubr.msk.f32.mxu1 %vm514_vm0, %v4141_v34 }
 0x21d   : > { %v20010_v22 = vpop.f32.mrf.mxu1 }
 0x21e   : > { %v20012_v45 = vpop.f32.mrf.mxu0 }
 0x21f   : > { %v17707_v21 = vpop.f32.mrf.mxu1  ;;  %17939 = vmatmul.mubr.msk.f32.gmra.mxu1 %vm514_vm0, %v4142_v13 }
 0x220   : > { %v17723_v11 = vpop.f32.mrf.mxu0  ;;  %17941 = vmatprep.mubr.msk.f32.mxu1 %vm514_vm0, %v4143_v0 }
 0x221   : > { %v2623_v20 = vpop.f32.mrf.mxu1 }
 0x222   : > { %v20018_v19 = vpop.f32.mrf.mxu0 }
 0x223   : > { %v17710_v3 = vpop.f32.mrf.mxu1  ;;  %17942 = vmatmul.mubr.msk.f32.gmra.mxu1 %vm514_vm0, %v4144_v26 }
 0x224   : > { %v17726_v55 = vpop.f32.mrf.mxu0  ;;  %17996 = vmatprep.mubr.msk.f32.mxu1 %vm514_vm0, %v19699_v4 }
 0x225   : > { %v2633_v34 = vpop.f32.mrf.mxu1 }
 0x226   : > { %v2784_v53 = vpop.f32.mrf.mxu0 }
 0x227   : > { %v20023_v52 = vpop.f32.mrf.mxu1  ;;  %17997 = vmatmul.mubr.msk.f32.vlgmr.msra.gmra.mxu1 %vm514_vm0, %v19710_v59 }
 0x228   : > { %25268 = vst [vmem:[#allocation22_spill] sm:$0xff] %v20023_v52  ;;  %v20025_v2 = vpop.f32.mrf.mxu0  ;;  %17999 = vmatprep.mubr.msk.f32.mxu1 %vm514_vm0, %v19714_v6  ;;  %18095 = vmatpush3.msra.mxu1 %v16049_v32  ;;  %v2184_v6 = vadd.f32 %v19922_v36, %v19920_v35  ;;  %v2194_v32 = vadd.f32 %v19934_v31, %v19932_v41 }
 0x229   : > { %25269 = vst [vmem:[#allocation23_spill] sm:$0xff] %v20025_v2  ;;  %v20031_v13 = vpop.f32.mrf.mxu1 }
 0x22a   : > { %25270 = vst [vmem:[#allocation24_spill] sm:$0xff] %v20031_v13  ;;  %v20033_v0 = vpop.f32.mrf.mxu0  ;;  %v2347_v13 = vadd.f32 %v17678_v40, %v2194_v32 }
 0x22b   : > { %25271 = vst [vmem:[#allocation25_spill] sm:$0xff] %v20033_v0  ;;  %v20035_v26 = vpop.f32.mrf.mxu1  ;;  %18000 = vmatmul.mubr.msk.f32.gmra.mxu1 %vm514_vm0, %v19722_v5  ;;  %v2345_v0 = vadd.f32 %v19968_v58, %v2184_v6 }
 0x22c   : > { %18002 = vmatprep.mubr.msk.f32.mxu1 %vm514_vm0, %v19725_v47  ;;  %v20043_v2 = vpop.f32.mrf.mxu0  ;;  %v2189_v47 = vadd.f32 %v19941_v44, %v19939_v43  ;;  %v2498_v31 = vadd.f32 %v19983_v42, %v2347_v13 }
 0x22d   : > { %v20041_v4 = vpop.f32.mrf.mxu1  ;;  %v2496_v36 = vadd.f32 %v19970_v24, %v2345_v0 }
 0x22e   : > { %25272 = vst [vmem:[#allocation26_spill] sm:$0xff] %v20041_v4  ;;  %v20056_v52 = vpop.f32.mrf.mxu0  ;;  %v2346_v35 = vadd.f32 %v2331_v49, %v2189_v47 }
 0x22f   : > { %v17739_v59 = vpop.f32.mrf.mxu1  ;;  %18003 = vmatmul.mubr.msk.f32.gmra.mxu1 %vm514_vm0, %v19732_v60  ;;  %v2179_v60 = vadd.f32 %v19929_v38, %v19927_v37  ;;  %v2647_v38 = vadd.f32 %v17707_v21, %v2496_v36 }
 0x230   : > { %18005 = vmatprep.mubr.msk.f32.mxu1 %vm514_vm0, %v19735_v61  ;;  %v17755_v43 = vpop.f32.mrf.mxu0  ;;  %v2497_v37 = vadd.f32 %v19988_v48, %v2346_v35 }
 0x231   : > { %v2926_v5 = vpop.f32.mrf.mxu1  ;;  %v2344_v41 = vadd.f32 %v19975_v39, %v2179_v60  ;;  %v2798_v21 = vadd.f32 %v17723_v11, %v2647_v38 }
 0x232   : > { %v2648_v40 = vadd.f32 %v2633_v34, %v2497_v37  ;;  %v3077_v42 = vpop.f32.mrf.mxu0  ;;  %v25276_v37 = vld [vmem:[#allocation19_spill] sm:$0xff] }
 0x233   : > { %v17742_v4 = vpop.f32.mrf.mxu1  ;;  %18006 = vmatmul.mubr.msk.f32.gmra.mxu1 %vm514_vm0, %v19742_v8  ;;  %v2174_v8 = vadd.f32 %v19910_v23, %v19908_v15  ;;  %v2495_v39 = vadd.f32 %v19977_v27, %v2344_v41 }
 0x234   : > { %18008 = vmatprep.mubr.msk.f32.mxu1 %vm514_vm0, %v19745_v46  ;;  %v2649_v46 = vadd.f32 %v17710_v3, %v2498_v31  ;;  %v2799_v3 = vadd.f32 %v2784_v53, %v2648_v40  ;;  %v25278_v40 = vld [vmem:[#allocation12_spill] sm:$0xff] }
 0x235   : > { %v2936_v61 = vpop.f32.mrf.mxu1  ;;  %v2343_v24 = vadd.f32 %v19956_v33, %v2174_v8  ;;  %v2646_v15 = vadd.f32 %v2623_v20, %v2495_v39  ;;  %v17758_v33 = vpop.f32.mrf.mxu0  ;;  %v25275_v31 = vld [vmem:[#allocation26_spill] sm:$0xff] }
 0x236   : > { %v2800_v23 = vadd.f32 %v17726_v55, %v2649_v46  ;;  %v2951_v11 = vadd.f32 %v2936_v61, %v2799_v3  ;;  %v25277_v46 = vld [vmem:[#allocation20_spill] sm:$0xff] }
 0x237   : > { %v20067_v44 = vpop.f32.mrf.mxu1  ;;  %18009 = vmatmul.mubr.msk.f32.gmra.mxu1 %vm514_vm0, %v19752_v7  ;;  %v2169_v7 = vadd.f32 %v19917_v29, %v19915_v28  ;;  %v2494_v27 = vadd.f32 %v19958_v54, %v2343_v24  ;;  %v2950_v28 = vadd.f32 %v17739_v59, %v2798_v21  ;;  %v2797_v20 = vadd.f32 %v20018_v19, %v2646_v15  ;;  %v25279_v21 = vld [vmem:[#allocation13_spill] sm:$0xff] }
 0x238   : > { %18011 = vmatprep.mubr.msk.f32.mxu1 %vm514_vm0, %v19755_v10  ;;  %v2952_v29 = vadd.f32 %v17742_v4, %v2800_v23  ;;  %v25280_v23 = vld [vmem:[#allocation22_spill] sm:$0xff] }
 0x239   : > { %v20076_v58 = vpop.f32.mrf.mxu1  ;;  %v2342_v10 = vadd.f32 %v19963_v57, %v2169_v7  ;;  %v3087_v57 = vpop.f32.mrf.mxu0  ;;  %v3101_v54 = vadd.f32 %v17755_v43, %v2950_v28  ;;  %v2949_v53 = vadd.f32 %v2926_v5, %v2797_v20  ;;  %v25282_v28 = vld [vmem:[#allocation9_spill] sm:$0xff] }
 0x23a   : > { %v3103_v13 = vadd.f32 %v17758_v33, %v2952_v29  ;;  %v3102_v19 = vadd.f32 %v3087_v57, %v2951_v11  ;;  %v25283_v11 = vld [vmem:[#allocation10_spill] sm:$0xff]  ;;  %v25284_v57 = vld [vmem:[#allocation23_spill] sm:$0xff] }
 0x23b   : > { %v17768_v49 = vpop.f32.mrf.mxu1  ;;  %18012 = vmatmul.mubr.msk.f32.gmra.mxu1 %vm514_vm0, %v19762_v16  ;;  %v2645_v16 = vadd.f32 %v20003_v25, %v2494_v27 }
 0x23c   : > { %18014 = vmatprep.mubr.msk.f32.mxu1 %vm514_vm0, %v19765_v17  ;;  %v2493_v17 = vadd.f32 %v19965_v1, %v2342_v10  ;;  %v20108_v1 = vld [vmem:[%s25136_s5] ss:$0 sm:$0xff] }
 0x23d   : > { %v20087_v48 = vpop.f32.mrf.mxu1 }
 0x23e   : > { %v2644_v0 = vadd.f32 %v20010_v22, %v2493_v17  ;;  %v20168_v17 = vld [vmem:[%s25138_s7 + $0x40] sm:$0xff] }
 0x23f   : > { %v17771_v34 = vpop.f32.mrf.mxu1  ;;  %18015 = vmatmul.mubr.msk.f32.gmra.mxu1 %vm514_vm0, %v19772_v62  ;;  %v2796_v62 = vadd.f32 %v20005_v56, %v2645_v16  ;;  %18194 = vmatprep.subr.mxu1 %v20168_v17 }
 0x240   : > { %18017 = vmatprep.mubr.msk.f32.mxu1 %vm514_vm0, %v19775_v63  ;;  %v3252_v25 = vadd.f32 %v17771_v34, %v3101_v54  ;;  %v2492_v63 = vadd.f32 %v19944_v50, %v19947_v51  ;;  %v2795_v47 = vadd.f32 %v20012_v45, %v2644_v0  ;;  %v25274_v45 = vld [vmem:[#allocation17_spill] sm:$0xff] }
 0x241   : > { %v3228_v55 = vpop.f32.mrf.mxu1  ;;  %v2948_v6 = vadd.f32 %v20035_v26, %v2796_v62 }
 0x242   : > { %v2643_v5 = vadd.f32 %v19991_v30, %v2492_v63  ;;  %v3265_v51 = vmul.f32 %v20108_v1, %v3252_v25  ;;  %v25273_v30 = vld [vmem:[#allocation18_spill] sm:$0xff]  ;;  %v2947_v43 = vadd.f32 %v25275_v31, %v2795_v47  ;;  %v25287_v25 = vld [vmem:[#allocation15_spill] sm:$0xff] }
 0x243   : > { %v17774_v4 = vpop.f32.mrf.mxu1  ;;  %18018 = vmatmul.mubr.msk.f32.gmra.mxu1 %vm514_vm0, %v19782_v9  ;;  %v3100_v9 = vadd.f32 %v3077_v42, %v2949_v53  ;;  %v2491_v61 = vadd.f32 %v25274_v45, %v25273_v30  ;;  %v3099_v41 = vadd.f32 %v20043_v2, %v2948_v6  ;;  %v25288_v6 = vld [vmem:[#allocation25_spill] sm:$0xff]  ;;  %v20228_v31 = vld [vmem:[%s19689_s21 + $0x181] sm:$0xff] }
 0x244   : > { %v3254_v59 = vadd.f32 %v17774_v4, %v3103_v13  ;;  %18020 = vmatprep.mubr.msk.f32.mxu1 %vm514_vm0, %v19785_v12  ;;  %v20117_v12 = vld [vmem:[%s25136_s5 + $0x1] ss:$0 sm:$0xff]  ;;  %v2794_v38 = vadd.f32 %v25276_v37, %v2643_v5  ;;  %v3098_v33 = vadd.f32 %v20056_v52, %v2947_v43  ;;  %v25286_v13 = vld [vmem:[#allocation14_spill] sm:$0xff] }
 0x245   : > { %v3238_v22 = vpop.f32.mrf.mxu1  ;;  %v3251_v26 = vadd.f32 %v3228_v55, %v3100_v9  ;;  %v2642_v24 = vadd.f32 %v25277_v46, %v2491_v61  ;;  %v3278_v7 = vadd.f32 %v20117_v12, %v3265_v51  ;;  %v20204_v51 = vld [vmem:[%s19689_s21 + $0x159] sm:$0xff]  ;;  %v20222_v61 = vld [vmem:[%s19689_s21 + $0x171] sm:$0xff] }
 0x246   : > { %v3267_v56 = vmul.f32 %v20108_v1, %v3254_v59  ;;  %v3253_v32 = vadd.f32 %v3238_v22, %v3102_v19  ;;  %v2946_v10 = vadd.f32 %v25280_v23, %v2794_v38  ;;  %v3249_v34 = vadd.f32 %v20087_v48, %v3098_v33  ;;  %v25285_v48 = vld [vmem:[#allocation24_spill] sm:$0xff]  ;;  %v20190_v22 = vld [vmem:[%s19689_s21 + $0x151] sm:$0xff]  ;;  %v3404_v23 = vld [vmem:[%s19689_s21] sm:$0xff] }
 0x247   : > { %v20119_v50 = vpop.f32.mrf.mxu1  ;;  %18021 = vmatmul.mubr.msk.f32.gmra.mxu1 %vm514_vm0, %v19792_v18  ;;  %v3264_v42 = vmul.f32 %v20108_v1, %v3251_v26  ;;  %v3286_v16 = vmax.f32 %v3278_v7, 0.0  ;;  %v20184_v59 = vld [vmem:[%s19689_s21 + $0x141] sm:$0xff]  ;;  %v20248_v46 = vld [vmem:[%s19689_s21 + $0x30] sm:$0xff]  ;;  %v15854_v33 = vld [vmem:[%s25138_s7 + $0x18] sm:$0xff] }
 0x248   : > { %v3280_v60 = vadd.f32 %v20117_v12, %v3267_v56  ;;  %v3266_v35 = vmul.f32 %v20108_v1, %v3253_v32  ;;  %18023 = vmatprep.mubr.msk.f32.mxu1 %vm514_vm0, %v19795_v14  ;;  %v3250_v14 = vadd.f32 %v17768_v49, %v3099_v41  ;;  %v25281_v49 = vld [vmem:[#allocation21_spill] sm:$0xff]  ;;  %v3097_v55 = vadd.f32 %v25284_v57, %v2946_v10  ;;  %v20264_v7 = vld [vmem:[%s19689_s21 + $0x48] sm:$0xff]  ;;  %v20324_v57 = vld [vmem:[%s19689_s21 + $0x20] sm:$0xff] }
 0x249   : > { %v20130_v36 = vpop.f32.mrf.mxu1  ;;  %v2793_v27 = vadd.f32 %v25281_v49, %v2642_v24  ;;  %v3277_v20 = vadd.f32 %v20117_v12, %v3264_v42  ;;  %v3262_v62 = vmul.f32 %v20108_v1, %v3249_v34  ;;  %v3290_v42 = vld [vmem:[%s25137_s6 + $0x8] sm:$0xff]  ;;  %v20280_v10 = vld [vmem:[%s19689_s21 + $0x50] sm:$0xff]  ;;  %v20301_v34 = vld [vmem:[%s19689_s21 + $0x18] sm:$0xff] }
 0x24a   : > { %v3288_v18 = vmax.f32 %v3280_v60, 0.0  ;;  %v3279_v8 = vadd.f32 %v20117_v12, %v3266_v35  ;;  %v3263_v29 = vmul.f32 %v20108_v1, %v3250_v14  ;;  %v3248_v0 = vadd.f32 %v20067_v44, %v3097_v55  ;;  %v20210_v60 = vld [vmem:[%s19689_s21 + $0x169] sm:$0xff] }
 0x24b   : > { %v20137_v39 = vpop.f32.mrf.mxu1  ;;  %18024 = vmatmul.mubr.msk.f32.gmra.mxu1 %vm514_vm0, %v25278_v40  ;;  %v2945_v54 = vadd.f32 %v25285_v48, %v2793_v27  ;;  %v3285_v19 = vmax.f32 %v3277_v20, 0.0  ;;  %v3275_v47 = vadd.f32 %v20117_v12, %v3262_v62  ;;  %v20259_v40 = vld [vmem:[%s19689_s21 + $0x38] sm:$0xff]  ;;  %v20288_v27 = vld [vmem:[%s19689_s21 + $0x60] sm:$0xff] }
 0x24c   : > { %v3287_v2 = vmax.f32 %v3279_v8, 0.0  ;;  %17775 = vmatprep.subr.msk.mxu0 %vm486_vm1, %v3288_v18  ;;  %18026 = vmatprep.mubr.msk.f32.mxu1 %vm514_vm0, %v25279_v21  ;;  %v3276_v4 = vadd.f32 %v20117_v12, %v3263_v29  ;;  %v3261_v56 = vmul.f32 %v20108_v1, %v3248_v0  ;;  %v20239_v8 = vld [vmem:[%s19689_s21 + $0x189] sm:$0xff]  ;;  %v25292_v21 = vld [vmem:[#allocation11_spill] sm:$0xff] }
 0x24d   : > { %17776 = vmatpush3.xpose.msk.msra.mxu0 %vm486_vm1, %v3288_v18  ;;  %v20147_v15 = vpop.f32.mrf.mxu1  ;;  %v3096_v44 = vadd.f32 %v25288_v6, %v2945_v54  ;;  %v3283_v45 = vmax.f32 %v3275_v47, 0.0  ;;  %v20329_v48 = vld [vmem:[%s19689_s21 + $0x80] sm:$0xff]  ;;  %v16031_v47 = vld [vmem:[%s19689_s21 + $0xd8] sm:$0xff] }
 0x24e   : > { %17777 = vmatprep.subr.msk.mxu0 %vm486_vm1, %v3287_v2  ;;  %v3284_v5 = vmax.f32 %v3276_v4, 0.0  ;;  %v20348_v4 = vld [vmem:[%s19689_s21 + $0x98] sm:$0xff]  ;;  %v16029_v6 = vld [vmem:[%s19689_s21 + $0xc0] sm:$0xff] }
 0x24f   : > { %v20153_v3 = vpop.f32.mrf.mxu1  ;;  %18027 = vmatmul.mubr.msk.f32.gmra.mxu1 %vm514_vm0, %v25282_v28  ;;  %v3247_v32 = vadd.f32 %v20076_v58, %v3096_v44  ;;  %v3274_v58 = vadd.f32 %v20117_v12, %v3261_v56  ;;  %v3405_v28 = vld [vmem:[%s19689_s21 + $0x8] sm:$0xff]  ;;  %v20367_v44 = vld [vmem:[%s19689_s21 + $0xb0] sm:$0xff] }
 0x250   : > { %18029 = vmatprep.mubr.msk.f32.mxu1 %vm514_vm0, %v25283_v11  ;;  %v20309_v11 = vld [vmem:[%s19689_s21 + $0x78] sm:$0xff] }
 0x251   : > { %17778 = vmatpush3.xpose.msk.msra.mxu0 %vm486_vm1, %v3287_v2  ;;  %v20163_v52 = vpop.f32.mrf.mxu1  ;;  %v3260_v30 = vmul.f32 %v20108_v1, %v3247_v32  ;;  %v3282_v1 = vmax.f32 %v3274_v58, 0.0  ;;  %v16030_v32 = vld [vmem:[%s19689_s21 + $0xc8] sm:$0xff] }
 0x252   : > { %17779 = vmatprep.subr.msk.mxu0 %vm486_vm1, %v3286_v16 }
 0x253   : > { %v20174_v53 = vpop.f32.mrf.mxu1  ;;  %18030 = vmatmul.mubr.msk.f32.gmra.mxu1 %vm514_vm0, %v25286_v13  ;;  %v3273_v18 = vadd.f32 %v20117_v12, %v3260_v30  ;;  %v20335_v13 = vld [vmem:[%s19689_s21 + $0x90] sm:$0xff]  ;;  %v16032_v30 = vld [vmem:[%s19689_s21 + $0xe0] sm:$0xff] }
 0x254   : > { %18032 = vmatprep.mubr.msk.f32.mxu1 %vm514_vm0, %v25287_v25 }
 0x255   : > { %17780 = vmatpush3.xpose.msk.msra.mxu0 %vm486_vm1, %v3286_v16  ;;  %v20187_v63 = vpop.f32.mrf.mxu1  ;;  %v3281_v12 = vmax.f32 %v3273_v18, 0.0  ;;  %v20304_v16 = vld [vmem:[%s19689_s21 + $0x68] sm:$0xff] }
 0x256   : > { %17781 = vmatprep.subr.msk.mxu0 %vm486_vm1, %v3285_v19 }
 0x257   : > { %v20194_v9 = vpop.f32.mrf.mxu1  ;;  %18033 = vmatmul.mubr.msk.f32.gmra.mxu1 %vm514_vm0, %v20184_v59 }
 0x258   : > { %18035 = vmatprep.mubr.msk.f32.mxu1 %vm514_vm0, %v20190_v22 }
 0x259   : > { %17782 = vmatpush3.xpose.msk.msra.mxu0 %vm486_vm1, %v3285_v19  ;;  %v20207_v26 = vpop.f32.mrf.mxu1  ;;  %v20353_v19 = vld [vmem:[%s19689_s21 + $0xa8] sm:$0xff] }
 0x25a   : > { %17783 = vmatprep.subr.msk.mxu0 %vm486_vm1, %v3284_v5 }
 0x25b   : > { %v20213_v35 = vpop.f32.mrf.mxu1  ;;  %18036 = vmatmul.mubr.msk.f32.gmra.mxu1 %vm514_vm0, %v20204_v51 }
 0x25c   : > { %18038 = vmatprep.mubr.msk.f32.mxu1 %vm514_vm0, %v20210_v60 }
 0x25d   : > { %17784 = vmatpush3.xpose.msk.msra.mxu0 %vm486_vm1, %v3284_v5  ;;  %v20225_v41 = vpop.f32.mrf.mxu1 }
 0x25e   : > { %25289 = vst [vmem:[#allocation18_spill] sm:$0xff] %v20225_v41  ;;  %17785 = vmatprep.subr.msk.mxu0 %vm486_vm1, %v3283_v45 }
 0x25f   : > { %v20231_v43 = vpop.f32.mrf.mxu1  ;;  %18039 = vmatmul.mubr.msk.f32.gmra.mxu1 %vm514_vm0, %v20222_v61 }
 0x260   : > { %18041 = vmatprep.mubr.msk.f32.mxu1 %vm514_vm0, %v20228_v31 }
 0x261   : > { %17786 = vmatpush3.xpose.msk.msra.mxu0 %vm486_vm1, %v3283_v45  ;;  %v20242_v37 = vpop.f32.mrf.mxu1 }
 0x262   : > { %25290 = vst [vmem:[#allocation17_spill] sm:$0xff] %v20242_v37  ;;  %17787 = vmatprep.subr.msk.mxu0 %vm486_vm1, %v3282_v1 }
 0x263   : > { %v20245_v38 = vpop.f32.mrf.mxu1  ;;  %18042 = vmatmul.mubr.msk.f32.gmra.mxu1 %vm514_vm0, %v20239_v8 }
 0x264   : > { %18096 = vmatprep.mubr.msk.f32.mxu1 %vm514_vm0, %v20248_v46 }
 0x265   : > { %17788 = vmatpush3.xpose.msk.msra.mxu0 %vm486_vm1, %v3282_v1  ;;  %v20255_v24 = vpop.f32.mrf.mxu1  ;;  %v16033_v1 = vld [vmem:[%s19689_s21 + $0xf0] sm:$0xff] }
 0x266   : > { %25291 = vst [vmem:[#allocation26_spill] sm:$0xff] %v20255_v24  ;;  %17789 = vmatprep.subr.msk.mxu0 %vm486_vm1, %v3281_v12 }
 0x267   : > { %v20261_v14 = vpop.f32.mrf.mxu1  ;;  %18097 = vmatmul.mubr.msk.f32.vlgmr.msra.gmra.mxu1 %vm514_vm0, %v20259_v40 }
 0x268   : > { %18099 = vmatprep.mubr.msk.f32.mxu1 %vm514_vm0, %v20264_v7  ;;  %18195 = vmatpush3.msra.mxu1 %v20168_v17  ;;  %v20314_v17 = vld [vmem:[%s25138_s7 + $0x28] sm:$0xff] }
 0x269   : > { %17790 = vmatpush3.xpose.msk.msra.mxu0 %vm486_vm1, %v3281_v12  ;;  %v20275_v2 = vpop.f32.mrf.mxu1  ;;  %v16034_v12 = vld [vmem:[%s19689_s21 + $0xf8] sm:$0xff] }
 0x26a   : > { %17844 = vmatprep.subr.mxu0 %v25292_v21 }
 0x26b   : > { %v20285_v49 = vpop.f32.mrf.mxu1  ;;  %18100 = vmatmul.mubr.msk.f32.gmra.mxu1 %vm514_vm0, %v20280_v10 }
 0x26c   : > { %17792 = vmatmul.mubr.msk.f32.vlgmr.msra.gmra.mxu0 %vm486_vm1, %v3290_v42  ;;  %18102 = vmatprep.mubr.msk.f32.mxu1 %vm514_vm0, %v20288_v27 }
 0x26d   : > { %17845 = vmatpush3.msra.mxu0 %v25292_v21  ;;  %17846 = vmatprep.mubr.msk.f32.mxu0 %vm514_vm0, %v3404_v23  ;;  %v20298_v29 = vpop.f32.mrf.mxu1  ;;  %v16035_v21 = vld [vmem:[%s19689_s21 + $0x108] sm:$0xff] }
 0x26e   : > { %17944 = vmatprep.subr.mxu0 %v15854_v33 }
 0x26f   : > { %v20306_v20 = vpop.f32.mrf.mxu1  ;;  %18103 = vmatmul.mubr.msk.f32.gmra.mxu1 %vm514_vm0, %v20304_v16 }
 0x270   : > { %17847 = vmatmul.mubr.msk.f32.vlgmr.msra.gmra.mxu0 %vm514_vm0, %v3405_v28  ;;  %18105 = vmatprep.mubr.msk.f32.mxu1 %vm514_vm0, %v20309_v11  ;;  %v16036_v28 = vld [vmem:[%s19689_s21 + $0x110] sm:$0xff] }
 0x271   : > { %17945 = vmatpush3.msra.mxu0 %v15854_v33  ;;  %17849 = vmatprep.mubr.msk.f32.mxu0 %vm514_vm0, %v20301_v34  ;;  %v20326_v55 = vpop.f32.mrf.mxu1 }
 0x272   : > { %18044 = vmatprep.subr.mxu0 %v20314_v17 }
 0x273   : > { %v20332_v54 = vpop.f32.mrf.mxu1  ;;  %18106 = vmatmul.mubr.msk.f32.gmra.mxu1 %vm514_vm0, %v20329_v48 }
 0x274   : > { %17850 = vmatmul.mubr.msk.f32.gmra.mxu0 %vm514_vm0, %v20324_v57  ;;  %18108 = vmatprep.mubr.msk.f32.mxu1 %vm514_vm0, %v20335_v13 }
 0x275   : > { %17852 = vmatprep.mubr.msk.f32.mxu0 %vm514_vm0, %v20248_v46  ;;  %v20345_v0 = vpop.f32.mrf.mxu1 }
 0x277   : > { %v20350_v62 = vpop.f32.mrf.mxu1  ;;  %18109 = vmatmul.mubr.msk.f32.gmra.mxu1 %vm514_vm0, %v20348_v4 }
 0x278   : > { %17853 = vmatmul.mubr.msk.f32.gmra.mxu0 %vm514_vm0, %v20259_v40  ;;  %18111 = vmatprep.mubr.msk.f32.mxu1 %vm514_vm0, %v20353_v19 }
 0x279   : > { %17855 = vmatprep.mubr.msk.f32.mxu0 %vm514_vm0, %v20264_v7  ;;  %v20363_v25 = vpop.f32.mrf.mxu1 }
 0x27b   : > { %v20369_v56 = vpop.f32.mrf.mxu1  ;;  %18112 = vmatmul.mubr.msk.f32.gmra.mxu1 %vm514_vm0, %v20367_v44 }
 0x27c   : > { %17856 = vmatmul.mubr.msk.f32.gmra.mxu0 %vm514_vm0, %v20280_v10  ;;  %18114 = vmatprep.mubr.msk.f32.mxu1 %vm514_vm0, %v16029_v6 }
 0x27d   : > { %17858 = vmatprep.mubr.msk.f32.mxu0 %vm514_vm0, %v20288_v27  ;;  %v20379_v5 = vpop.f32.mrf.mxu1 }
 0x27f   : > { %v20382_v58 = vpop.f32.mrf.mxu1  ;;  %18115 = vmatmul.mubr.msk.f32.gmra.mxu1 %vm514_vm0, %v16030_v32  ;;  %v16037_v32 = vld [vmem:[%s19689_s21 + $0x120] sm:$0xff] }
 0x280   : > { %17859 = vmatmul.mubr.msk.f32.gmra.mxu0 %vm514_vm0, %v20304_v16  ;;  %18117 = vmatprep.mubr.msk.f32.mxu1 %vm514_vm0, %v16031_v47 }
 0x281   : > { %17861 = vmatprep.mubr.msk.f32.mxu0 %vm514_vm0, %v20309_v11  ;;  %v20391_v45 = vpop.f32.mrf.mxu1 }
 0x283   : > { %v20394_v18 = vpop.f32.mrf.mxu1  ;;  %18118 = vmatmul.mubr.msk.f32.gmra.mxu1 %vm514_vm0, %v16032_v30 }
 0x284   : > { %17862 = vmatmul.mubr.msk.f32.gmra.mxu0 %vm514_vm0, %v20329_v48  ;;  %18120 = vmatprep.mubr.msk.f32.mxu1 %vm514_vm0, %v16033_v1  ;;  %v16038_v1 = vld [vmem:[%s19689_s21 + $0x128] sm:$0xff] }
 0x285   : > { %17864 = vmatprep.mubr.msk.f32.mxu0 %vm514_vm0, %v20335_v13  ;;  %v20403_v42 = vpop.f32.mrf.mxu1 }
 0x287   : > { %v17872_v23 = vpop.f32.mrf.mxu1  ;;  %18121 = vmatmul.mubr.msk.f32.gmra.mxu1 %vm514_vm0, %v16034_v12 }
 0x288   : > { %17865 = vmatmul.mubr.msk.f32.gmra.mxu0 %vm514_vm0, %v20348_v4  ;;  %v20410_v33 = vadd.f32 %v17872_v23, %v20261_v14  ;;  %18123 = vmatprep.mubr.msk.f32.mxu1 %vm514_vm0, %v16035_v21 }
 0x289   : > { %17867 = vmatprep.mubr.msk.f32.mxu0 %vm514_vm0, %v20353_v19  ;;  %v4034_v6 = vpop.f32.mrf.mxu1 }
 0x28a   : > { %v20418_v47 = vadd.f32 %v4034_v6, %v20275_v2  ;;  %v16039_v2 = vld [vmem:[%s19689_s21 + $0x138] sm:$0xff]  ;;  %v16041_v6 = vld [vmem:[%s19689_s21 + $0x150] sm:$0xff] }
 0x28b   : > { %v17875_v30 = vpop.f32.mrf.mxu1  ;;  %18124 = vmatmul.mubr.msk.f32.gmra.mxu1 %vm514_vm0, %v16036_v28  ;;  %v20437_v28 = vld [vmem:[%s25138_s7 + $0x38] sm:$0xff] }
 0x28c   : > { %17868 = vmatmul.mubr.msk.f32.gmra.mxu0 %vm514_vm0, %v20367_v44  ;;  %v20424_v14 = vadd.f32 %v17875_v30, %v20285_v49  ;;  %18126 = vmatprep.mubr.msk.f32.mxu1 %vm514_vm0, %v16037_v32 }
 0x28d   : > { %17946 = vmatprep.mubr.msk.f32.mxu0 %vm514_vm0, %v20301_v34  ;;  %v4044_v12 = vpop.f32.mrf.mxu1 }
 0x28e   : > { %v20432_v21 = vadd.f32 %v4044_v12, %v20298_v29  ;;  %v16040_v29 = vld [vmem:[%s19689_s21 + $0x140] sm:$0xff] }
 0x28f   : > { %v17878_v23 = vpop.f32.mrf.mxu1  ;;  %18127 = vmatmul.mubr.msk.f32.gmra.mxu1 %vm514_vm0, %v16038_v1 }
 0x290   : > { %17947 = vmatmul.mubr.msk.f32.vlgmr.msra.gmra.mxu0 %vm514_vm0, %v20324_v57  ;;  %v20443_v49 = vadd.f32 %v17878_v23, %v20306_v20  ;;  %18129 = vmatprep.mubr.msk.f32.mxu1 %vm514_vm0, %v16039_v2  ;;  %v20483_v2 = vld [vmem:[%s19689_s21 + $0x180] sm:$0xff]  ;;  %v20500_v23 = vld [vmem:[%s19689_s21 + $0x188] sm:$0xff] }
 0x291   : > { %18045 = vmatpush3.msra.mxu0 %v20314_v17  ;;  %17949 = vmatprep.mubr.msk.f32.mxu0 %vm514_vm0, %v20248_v46  ;;  %v4054_v34 = vpop.f32.mrf.mxu1  ;;  %v16042_v46 = vld [vmem:[%s19689_s21 + $0x158] sm:$0xff] }
 0x292   : > { %v20452_v32 = vadd.f32 %v4054_v34, %v20326_v55  ;;  %18144 = vmatprep.subr.mxu0 %v20437_v28  ;;  %v16043_v55 = vld [vmem:[%s19689_s21 + $0x168] sm:$0xff] }
 0x293   : > { %v17881_v57 = vpop.f32.mrf.mxu1  ;;  %18130 = vmatmul.mubr.msk.f32.gmra.mxu1 %vm514_vm0, %v16040_v29 }
 0x294   : > { %25293 = vst [vmem:[#allocation19_spill] sm:$0xff] %v20452_v32  ;;  %17950 = vmatmul.mubr.msk.f32.gmra.mxu0 %vm514_vm0, %v20259_v40  ;;  %v20459_v20 = vadd.f32 %v17881_v57, %v20332_v54  ;;  %18132 = vmatprep.mubr.msk.f32.mxu1 %vm514_vm0, %v16041_v6  ;;  %v16044_v54 = vld [vmem:[%s19689_s21 + $0x170] sm:$0xff] }
 0x295   : > { %17952 = vmatprep.mubr.msk.f32.mxu0 %vm514_vm0, %v20264_v7  ;;  %v4064_v17 = vpop.f32.mrf.mxu1  ;;  %v16149_v57 = vld [vmem:[%s19689_s21 + $0x4a] sm:$0xff] }
 0x296   : > { %v20467_v30 = vadd.f32 %v4064_v17, %v20345_v0 }
 0x297   : > { %v17884_v1 = vpop.f32.mrf.mxu1  ;;  %18133 = vmatmul.mubr.msk.f32.gmra.mxu1 %vm514_vm0, %v16042_v46 }
 0x298   : > { %25294 = vst [vmem:[#allocation20_spill] sm:$0xff] %v20467_v30  ;;  %17953 = vmatmul.mubr.msk.f32.gmra.mxu0 %vm514_vm0, %v20280_v10  ;;  %v20473_v40 = vadd.f32 %v17884_v1, %v20350_v62  ;;  %18135 = vmatprep.mubr.msk.f32.mxu1 %vm514_vm0, %v16043_v55  ;;  %v16047_v62 = vld [vmem:[%s19689_s21 + $0x198] sm:$0xff]  ;;  %v25300_v55 = vmov 0.0   ;;  %v16152_v1 = vld [vmem:[%s19689_s21 + $0x6a] sm:$0xff] }
 0x299   : > { %17955 = vmatprep.mubr.msk.f32.mxu0 %vm514_vm0, %v20288_v27  ;;  %v4074_v7 = vpop.f32.mrf.mxu1  ;;  %524 = vst.msk [vmem:[#allocation3] sm:$0x1] %vm523_vm5, %v25300_v55  ;;  %525 = vst.msk [vmem:[#allocation3 + $0x18] sm:$0x1] %vm523_vm5, %v25300_v55 }
 0x29a   : > { %v20480_v0 = vadd.f32 %v4074_v7, %v20363_v25  ;;  %526 = vst.msk [vmem:[#allocation3 + $0x30] sm:$0x1] %vm523_vm5, %v25300_v55  ;;  %527 = vst.msk [vmem:[#allocation3 + $0x48] sm:$0x1] %vm523_vm5, %v25300_v55 }
 0x29b   : > { %v17887_v12 = vpop.f32.mrf.mxu1  ;;  %18136 = vmatmul.mubr.msk.f32.gmra.mxu1 %vm514_vm0, %v16044_v54  ;;  %528 = vst.msk [vmem:[#allocation3 + $0x60] sm:$0x1] %vm523_vm5, %v25300_v55  ;;  %529 = vst.msk [vmem:[#allocation3 + $0x78] sm:$0x1] %vm523_vm5, %v25300_v55  ;;  %v18887_v54 = vld [vmem:[%s19689_s21 + $0xd8] sm:$0xff] }
 0x29c   : > { %25295 = vst [vmem:[#allocation12_spill] sm:$0xff] %v20480_v0  ;;  %17956 = vmatmul.mubr.msk.f32.gmra.mxu0 %vm514_vm0, %v20304_v16  ;;  %v20489_v10 = vadd.f32 %v17887_v12, %v20369_v56  ;;  %18138 = vmatprep.mubr.msk.f32.mxu1 %vm514_vm0, %v20483_v2  ;;  %530 = vst.msk [vmem:[#allocation3 + $0x90] sm:$0x1] %vm523_vm5, %v25300_v55  ;;  %v16153_v12 = vld [vmem:[%s19689_s21 + $0x7a] sm:$0xff] }
 0x29d   : > { %17958 = vmatprep.mubr.msk.f32.mxu0 %vm514_vm0, %v20309_v11  ;;  %v4084_v27 = vpop.f32.mrf.mxu1  ;;  %v16048_v11 = vld [vmem:[%s19689_s21 + $0x1a0] sm:$0xff]  ;;  %531 = vst.msk [vmem:[#allocation3 + $0xa8] sm:$0x1] %vm523_vm5, %v25300_v55  ;;  %532 = vst.msk [vmem:[#allocation3 + $0xc0] sm:$0x1] %vm523_vm5, %v25300_v55 }
 0x29e   : > { %v20497_v25 = vadd.f32 %v4084_v27, %v20379_v5  ;;  %v16147_v5 = vld [vmem:[%s19689_s21 + $0x32] sm:$0xff]  ;;  %533 = vst.msk [vmem:[#allocation3 + $0xd8] sm:$0x1] %vm523_vm5, %v25300_v55  ;;  %534 = vst.msk [vmem:[#allocation3 + $0xf0] sm:$0x1] %vm523_vm5, %v25300_v55 }
 0x29f   : > { %v17890_v29 = vpop.f32.mrf.mxu1  ;;  %18139 = vmatmul.mubr.msk.f32.gmra.mxu1 %vm514_vm0, %v20500_v23  ;;  %535 = vst.msk [vmem:[#allocation3 + $0x108] sm:$0x1] %vm523_vm5, %v25300_v55  ;;  %536 = vst.msk [vmem:[#allocation3 + $0x120] sm:$0x1] %vm523_vm5, %v25300_v55 }
 0x2a0   : > { %25296 = vst [vmem:[#allocation13_spill] sm:$0xff] %v20497_v25  ;;  %17959 = vmatmul.mubr.msk.f32.gmra.mxu0 %vm514_vm0, %v20329_v48  ;;  %v20507_v16 = vadd.f32 %v17890_v29, %v20382_v58  ;;  %18141 = vmatprep.mubr.msk.f32.mxu1 %vm514_vm0, %v16047_v62  ;;  %v16148_v58 = vld [vmem:[%s19689_s21 + $0x3a] sm:$0xff]  ;;  %537 = vst.msk [vmem:[#allocation3 + $0x138] sm:$0x1] %vm523_vm5, %v25300_v55  ;;  %v16154_v29 = vld [vmem:[%s19689_s21 + $0x82] sm:$0xff] }
 0x2a1   : > { %17961 = vmatprep.mubr.msk.f32.mxu0 %vm514_vm0, %v20335_v13  ;;  %v4094_v56 = vpop.f32.mrf.mxu1  ;;  %538 = vst.msk [vmem:[#allocation3 + $0x150] sm:$0x1] %vm523_vm5, %v25300_v55  ;;  %539 = vst.msk [vmem:[#allocation3 + $0x168] sm:$0x1] %vm523_vm5, %v25300_v55  ;;  %v18888_v62 = vld [vmem:[%s19689_s21 + $0xe0] sm:$0xff] }
 0x2a2   : > { %v20515_v34 = vadd.f32 %v4094_v56, %v20391_v45  ;;  %540 = vst.msk [vmem:[#allocation3 + $0x180] sm:$0x1] %vm523_vm5, %v25300_v55  ;;  %541 = vst.msk [vmem:[#allocation3 + $0x198] sm:$0x1] %vm523_vm5, %v25300_v55  ;;  %v18912_v25 = vld [vmem:[%s19689_s21 + $0x9a] sm:$0xff] }
 0x2a3   : > { %v17893_v6 = vpop.f32.mrf.mxu1  ;;  %18142 = vmatmul.mubr.msk.f32.gmra.mxu1 %vm514_vm0, %v16048_v11  ;;  %543 = vst.msk [vmem:[#allocation3 + $0x29] sm:$0x1] %vm523_vm5, %v25300_v55  ;;  %544 = vst.msk [vmem:[#allocation3 + $0x41] sm:$0x1] %vm523_vm5, %v25300_v55  ;;  %v18889_v11 = vld [vmem:[%s19689_s21 + $0xf0] sm:$0xff] }
 0x2a4   : > { %25297 = vst [vmem:[#allocation22_spill] sm:$0xff] %v20515_v34  ;;  %17962 = vmatmul.mubr.msk.f32.gmra.mxu0 %vm514_vm0, %v20348_v4  ;;  %v20521_v48 = vadd.f32 %v17893_v6, %v20394_v18  ;;  %18196 = vmatprep.mubr.msk.f32.mxu1 %vm514_vm0, %v16147_v5  ;;  %v16150_v4 = vld [vmem:[%s19689_s21 + $0x52] sm:$0xff]  ;;  %v25299_v18 = vld [vmem:[#allocation16_spill] sm:$0xff]  ;;  %545 = vst.msk [vmem:[#allocation3 + $0x59] sm:$0x1] %vm523_vm5, %v25300_v55 }
 0x2a5   : > { %17964 = vmatprep.mubr.msk.f32.mxu0 %vm514_vm0, %v20353_v19  ;;  %v4104_v13 = vpop.f32.mrf.mxu1  ;;  %v16151_v19 = vld [vmem:[%s19689_s21 + $0x62] sm:$0xff]  ;;  %546 = vst.msk [vmem:[#allocation3 + $0x71] sm:$0x1] %vm523_vm5, %v25300_v55  ;;  %547 = vst.msk [vmem:[#allocation3 + $0x89] sm:$0x1] %vm523_vm5, %v25300_v55  ;;  %v16155_v5 = vld [vmem:[%s19689_s21 + $0x92] sm:$0xff] }
 0x2a6   : > { %v20529_v45 = vadd.f32 %v4104_v13, %v20403_v42  ;;  %548 = vst.msk [vmem:[#allocation3 + $0xa1] sm:$0x1] %vm523_vm5, %v25300_v55  ;;  %549 = vst.msk [vmem:[#allocation3 + $0xb9] sm:$0x1] %vm523_vm5, %v25300_v55  ;;  %v18886_v42 = vld [vmem:[%s19689_s21 + $0xc8] sm:$0xff]  ;;  %v16156_v13 = vld [vmem:[%s19689_s21 + $0x9a] sm:$0xff] }
 0x2a7   : > { %v20531_v46 = vpop.f32.mrf.mxu1  ;;  %18197 = vmatmul.mubr.msk.f32.vlgmr.msra.gmra.mxu1 %vm514_vm0, %v16148_v58  ;;  %550 = vst.msk [vmem:[#allocation3 + $0xd1] sm:$0x1] %vm523_vm5, %v25300_v55  ;;  %551 = vst.msk [vmem:[#allocation3 + $0xe9] sm:$0x1] %vm523_vm5, %v25300_v55  ;;  %v18890_v58 = vld [vmem:[%s19689_s21 + $0xf8] sm:$0xff] }
 0x2a8   : > { %25298 = vst [vmem:[#allocation21_spill] sm:$0xff] %v20529_v45  ;;  %17965 = vmatmul.mubr.msk.f32.gmra.mxu0 %vm514_vm0, %v20367_v44  ;;  %18199 = vmatprep.mubr.msk.f32.mxu1 %vm514_vm0, %v16149_v57  ;;  %552 = vst.msk [vmem:[#allocation3 + $0x101] sm:$0x1] %vm523_vm5, %v25300_v55  ;;  %v18891_v57 = vld [vmem:[%s19689_s21 + $0x108] sm:$0xff] }
 0x2a9   : > { %17967 = vmatprep.mubr.msk.f32.mxu0 %vm514_vm0, %v25299_v18  ;;  %v20540_v17 = vpop.f32.mrf.mxu1  ;;  %553 = vst.msk [vmem:[#allocation3 + $0x119] sm:$0x1] %vm523_vm5, %v25300_v55  ;;  %554 = vst.msk [vmem:[#allocation3 + $0x131] sm:$0x1] %vm523_vm5, %v25300_v55  ;;  %v16157_v18 = vld [vmem:[%s19689_s21 + $0xaa] sm:$0xff] }
 0x2aa   : > { %555 = vst.msk [vmem:[#allocation3 + $0x149] sm:$0x1] %vm523_vm5, %v25300_v55  ;;  %556 = vst.msk [vmem:[#allocation3 + $0x161] sm:$0x1] %vm523_vm5, %v25300_v55  ;;  %v20777_v45 = vld [vmem:[%s19689_s21 + $0x18a] sm:$0xff] }
 0x2ab   : > { %557 = vst.msk [vmem:[#allocation3 + $0x179] sm:$0x1] %vm523_vm5, %v25300_v55  ;;  %558 = vst.msk [vmem:[#allocation3 + $0x191] sm:$0x1] %vm523_vm5, %v25300_v55  ;;  %v20611_v44 = vpop.f32.mrf.mxu1  ;;  %18200 = vmatmul.mubr.msk.f32.gmra.mxu1 %vm514_vm0, %v16150_v4 }
 0x2ac   : > { %17968 = vmatmul.mubr.msk.f32.gmra.mxu0 %vm514_vm0, %v18886_v42  ;;  %18202 = vmatprep.mubr.msk.f32.mxu1 %vm514_vm0, %v16151_v19  ;;  %v18892_v42 = vld [vmem:[%s19689_s21 + $0x110] sm:$0xff]  ;;  %518 = vst.msk [vmem:[#allocation3 + $0x10] sm:$0x3] %vm517_vm6, %v25300_v55  ;;  %522 = vst.msk [vmem:[#allocation3 + $0x1a8] sm:$0x3] %vm517_vm6, %v25300_v55 }
 0x2ad   : > { %17970 = vmatprep.mubr.msk.f32.mxu0 %vm514_vm0, %v18887_v54  ;;  %v20620_v7 = vpop.f32.mrf.mxu1  ;;  %v18893_v54 = vld [vmem:[%s19689_s21 + $0x120] sm:$0xff]  ;;  %542 = vst.msk [vmem:[#allocation3 + $0x11] sm:$0x1] %vm523_vm5, %v25300_v55  ;;  %559 = vst.msk [vmem:[#allocation3 + $0x1a9] sm:$0x1] %vm523_vm5, %v25300_v55 }
 0x2ae   : > { %25301 = vst [vmem:[#allocation9_spill] sm:$0xff] %v20620_v7  ;;  %v6995_v55 = vld [vmem:[%s25140_s9] sm:$0xff] }
 0x2af   : > { %v20623_v27 = vpop.f32.mrf.mxu1  ;;  %18203 = vmatmul.mubr.msk.f32.gmra.mxu1 %vm514_vm0, %v16152_v1  ;;  %v16158_v1 = vld [vmem:[%s19689_s21 + $0xb2] sm:$0xff]  ;;  %18294 = vmatprep.subr.mxu1 %v6995_v55 }
 0x2b0   : > { %17971 = vmatmul.mubr.msk.f32.gmra.mxu0 %vm514_vm0, %v18888_v62  ;;  %18205 = vmatprep.mubr.msk.f32.mxu1 %vm514_vm0, %v16153_v12  ;;  %v16159_v62 = vld [vmem:[%s19689_s21 + $0xc2] sm:$0xff] }
 0x2b1   : > { %17973 = vmatprep.mubr.msk.f32.mxu0 %vm514_vm0, %v18889_v11  ;;  %v20632_v56 = vpop.f32.mrf.mxu1  ;;  %v18894_v11 = vld [vmem:[%s19689_s21 + $0x128] sm:$0xff]  ;;  %18295 = vmatpush3.msra.mxu1 %v6995_v55  ;;  %v16279_v55 = vld [vmem:[%s25140_s9 + $0x10] sm:$0xff] }
 0x2b2   : > { %25302 = vst [vmem:[#allocation10_spill] sm:$0xff] %v20632_v56 }
 0x2b3   : > { %v20635_v6 = vpop.f32.mrf.mxu1  ;;  %18206 = vmatmul.mubr.msk.f32.gmra.mxu1 %vm514_vm0, %v16154_v29 }
 0x2b4   : > { %17974 = vmatmul.mubr.msk.f32.gmra.mxu0 %vm514_vm0, %v18890_v58  ;;  %18208 = vmatprep.mubr.msk.f32.mxu1 %vm514_vm0, %v16155_v5  ;;  %v16160_v5 = vld [vmem:[%s19689_s21 + $0xca] sm:$0xff]  ;;  %v18895_v58 = vld [vmem:[%s19689_s21 + $0x138] sm:$0xff] }
 0x2b5   : > { %17976 = vmatprep.mubr.msk.f32.mxu0 %vm514_vm0, %v18891_v57  ;;  %v20644_v4 = vpop.f32.mrf.mxu1  ;;  %v16161_v57 = vld [vmem:[%s19689_s21 + $0xda] sm:$0xff] }
 0x2b6   : > { %25303 = vst [vmem:[#allocation23_spill] sm:$0xff] %v20644_v4  ;;  %v18906_v4 = vld [vmem:[%s19689_s21 + $0x52] sm:$0xff] }
 0x2b7   : > { %v20647_v19 = vpop.f32.mrf.mxu1  ;;  %18209 = vmatmul.mubr.msk.f32.gmra.mxu1 %vm514_vm0, %v16156_v13 }
 0x2b8   : > { %17977 = vmatmul.mubr.msk.f32.gmra.mxu0 %vm514_vm0, %v18892_v42  ;;  %18211 = vmatprep.mubr.msk.f32.mxu1 %vm514_vm0, %v16157_v18  ;;  %v18896_v42 = vld [vmem:[%s19689_s21 + $0x140] sm:$0xff] }
 0x2b9   : > { %17979 = vmatprep.mubr.msk.f32.mxu0 %vm514_vm0, %v18893_v54  ;;  %v20656_v12 = vpop.f32.mrf.mxu1  ;;  %v18897_v54 = vld [vmem:[%s19689_s21 + $0x150] sm:$0xff] }
 0x2ba   : > { %25304 = vst [vmem:[#allocation24_spill] sm:$0xff] %v20656_v12  ;;  %v18900_v12 = vld [vmem:[%s19689_s21 + $0x170] sm:$0xff] }
 0x2bb   : > { %v20659_v29 = vpop.f32.mrf.mxu1  ;;  %18212 = vmatmul.mubr.msk.f32.gmra.mxu1 %vm514_vm0, %v16158_v1  ;;  %v16162_v1 = vld [vmem:[%s19689_s21 + $0xe2] sm:$0xff] }
 0x2bc   : > { %17980 = vmatmul.mubr.msk.f32.gmra.mxu0 %vm514_vm0, %v18894_v11  ;;  %18214 = vmatprep.mubr.msk.f32.mxu1 %vm514_vm0, %v16159_v62  ;;  %v16163_v11 = vld [vmem:[%s19689_s21 + $0xf2] sm:$0xff] }
 0x2bd   : > { %17982 = vmatprep.mubr.msk.f32.mxu0 %vm514_vm0, %v18895_v58  ;;  %v20668_v13 = vpop.f32.mrf.mxu1 }
 0x2be   : > { %25305 = vst [vmem:[#allocation14_spill] sm:$0xff] %v20668_v13 }
 0x2bf   : > { %v20671_v18 = vpop.f32.mrf.mxu1  ;;  %18215 = vmatmul.mubr.msk.f32.gmra.mxu1 %vm514_vm0, %v16160_v5  ;;  %v18898_v5 = vld [vmem:[%s19689_s21 + $0x158] sm:$0xff] }
 0x2c0   : > { %17983 = vmatmul.mubr.msk.f32.gmra.mxu0 %vm514_vm0, %v18896_v42  ;;  %18217 = vmatprep.mubr.msk.f32.mxu1 %vm514_vm0, %v16161_v57  ;;  %v16164_v57 = vld [vmem:[%s19689_s21 + $0xfa] sm:$0xff]  ;;  %v18899_v42 = vld [vmem:[%s19689_s21 + $0x168] sm:$0xff] }
 0x2c1   : > { %17985 = vmatprep.mubr.msk.f32.mxu0 %vm514_vm0, %v18897_v54  ;;  %v20680_v62 = vpop.f32.mrf.mxu1  ;;  %v16165_v54 = vld [vmem:[%s19689_s21 + $0x10a] sm:$0xff] }
 0x2c2   : > { %25306 = vst [vmem:[#allocation15_spill] sm:$0xff] %v20680_v62 }
 0x2c3   : > { %v20683_v58 = vpop.f32.mrf.mxu1  ;;  %18218 = vmatmul.mubr.msk.f32.gmra.mxu1 %vm514_vm0, %v16162_v1 }
 0x2c4   : > { %17986 = vmatmul.mubr.msk.f32.gmra.mxu0 %vm514_vm0, %v18898_v5  ;;  %18220 = vmatprep.mubr.msk.f32.mxu1 %vm514_vm0, %v16163_v11  ;;  %v16166_v11 = vld [vmem:[%s19689_s21 + $0x112] sm:$0xff] }
 0x2c5   : > { %17988 = vmatprep.mubr.msk.f32.mxu0 %vm514_vm0, %v18899_v42  ;;  %v20692_v13 = vpop.f32.mrf.mxu1  ;;  %v16167_v42 = vld [vmem:[%s19689_s21 + $0x122] sm:$0xff] }
 0x2c6   : > { %25307 = vst [vmem:[#allocation25_spill] sm:$0xff] %v20692_v13 }
 0x2c7   : > { %v17922_v62 = vpop.f32.mrf.mxu1  ;;  %18221 = vmatmul.mubr.msk.f32.gmra.mxu1 %vm514_vm0, %v16164_v57  ;;  %v16169_v57 = vld [vmem:[%s19689_s21 + $0x13a] sm:$0xff] }
 0x2c8   : > { %17989 = vmatmul.mubr.msk.f32.gmra.mxu0 %vm514_vm0, %v18900_v12  ;;  %v20699_v1 = vadd.f32 %v17922_v62, %v20410_v33  ;;  %18223 = vmatprep.mubr.msk.f32.mxu1 %vm514_vm0, %v16165_v54  ;;  %v16168_v12 = vld [vmem:[%s19689_s21 + $0x12a] sm:$0xff]  ;;  %v18901_v62 = vld [vmem:[%s19689_s21 + $0x1a] sm:$0xff] }
 0x2c9   : > { %17991 = vmatprep.mubr.msk.f32.mxu0 %vm514_vm0, %v20483_v2  ;;  %v20705_v5 = vpop.f32.mrf.mxu1 }
 0x2cb   : > { %v17925_v13 = vpop.f32.mrf.mxu1  ;;  %18224 = vmatmul.mubr.msk.f32.gmra.mxu1 %vm514_vm0, %v16166_v11  ;;  %v18902_v11 = vld [vmem:[%s19689_s21 + $0x22] sm:$0xff] }
 0x2cc   : > { %17992 = vmatmul.mubr.msk.f32.gmra.mxu0 %vm514_vm0, %v20500_v23  ;;  %v20712_v33 = vadd.f32 %v17925_v13, %v20424_v14  ;;  %18226 = vmatprep.mubr.msk.f32.mxu1 %vm514_vm0, %v16167_v42  ;;  %v16170_v23 = vld [vmem:[%s19689_s21 + $0x142] sm:$0xff]  ;;  %v18903_v13 = vld [vmem:[%s19689_s21 + $0x32] sm:$0xff] }
 0x2cd   : > { %18046 = vmatprep.mubr.msk.f32.mxu0 %vm514_vm0, %v18901_v62  ;;  %v20718_v2 = vpop.f32.mrf.mxu1 }
 0x2cf   : > { %v17928_v54 = vpop.f32.mrf.mxu1  ;;  %18227 = vmatmul.mubr.msk.f32.gmra.mxu1 %vm514_vm0, %v16168_v12  ;;  %v16171_v12 = vld [vmem:[%s19689_s21 + $0x152] sm:$0xff] }
 0x2d0   : > { %18047 = vmatmul.mubr.msk.f32.vlgmr.msra.gmra.mxu0 %vm514_vm0, %v18902_v11  ;;  %v20725_v14 = vadd.f32 %v17928_v54, %v20443_v49  ;;  %18229 = vmatprep.mubr.msk.f32.mxu1 %vm514_vm0, %v16169_v57  ;;  %v18904_v11 = vld [vmem:[%s19689_s21 + $0x3a] sm:$0xff]  ;;  %v18905_v57 = vld [vmem:[%s19689_s21 + $0x4a] sm:$0xff] }
 0x2d1   : > { %18145 = vmatpush3.msra.mxu0 %v20437_v28  ;;  %18049 = vmatprep.mubr.msk.f32.mxu0 %vm514_vm0, %v18903_v13  ;;  %v20732_v42 = vpop.f32.mrf.mxu1  ;;  %v16172_v28 = vld [vmem:[%s19689_s21 + $0x15a] sm:$0xff]  ;;  %v16173_v13 = vld [vmem:[%s19689_s21 + $0x16a] sm:$0xff] }
 0x2d2   : > { %25308 = vst [vmem:[#allocation11_spill] sm:$0xff] %v20732_v42 }
 0x2d3   : > { %v17931_v62 = vpop.f32.mrf.mxu1  ;;  %18230 = vmatmul.mubr.msk.f32.gmra.mxu1 %vm514_vm0, %v16170_v23 }
 0x2d4   : > { %18050 = vmatmul.mubr.msk.f32.gmra.mxu0 %vm514_vm0, %v18904_v11  ;;  %v20739_v49 = vadd.f32 %v17931_v62, %v20459_v20  ;;  %18232 = vmatprep.mubr.msk.f32.mxu1 %vm514_vm0, %v16171_v12  ;;  %v16174_v12 = vld [vmem:[%s19689_s21 + $0x172] sm:$0xff]  ;;  %v18907_v62 = vld [vmem:[%s19689_s21 + $0x62] sm:$0xff] }
 0x2d5   : > { %18052 = vmatprep.mubr.msk.f32.mxu0 %vm514_vm0, %v18905_v57  ;;  %v20745_v54 = vpop.f32.mrf.mxu1 }
 0x2d6   : > { %25309 = vst [vmem:[#allocation16_spill] sm:$0xff] %v20745_v54 }
 0x2d7   : > { %v17934_v23 = vpop.f32.mrf.mxu1  ;;  %18233 = vmatmul.mubr.msk.f32.gmra.mxu1 %vm514_vm0, %v16172_v28  ;;  %v20761_v28 = vld [vmem:[%s19689_s21 + $0x182] sm:$0xff] }
 0x2d8   : > { %18053 = vmatmul.mubr.msk.f32.gmra.mxu0 %vm514_vm0, %v18906_v4  ;;  %v20752_v20 = vadd.f32 %v17934_v23, %v20473_v40  ;;  %18235 = vmatprep.mubr.msk.f32.mxu1 %vm514_vm0, %v16173_v13  ;;  %v18908_v4 = vld [vmem:[%s19689_s21 + $0x6a] sm:$0xff]  ;;  %v18909_v13 = vld [vmem:[%s19689_s21 + $0x7a] sm:$0xff] }
 0x2d9   : > { %18055 = vmatprep.mubr.msk.f32.mxu0 %vm514_vm0, %v18907_v62  ;;  %v20758_v11 = vpop.f32.mrf.mxu1  ;;  %v16177_v62 = vld [vmem:[%s19689_s21 + $0x19a] sm:$0xff] }
 0x2da   : > { %25310 = vst [vmem:[#allocation27_spill] sm:$0xff] %v20758_v11 }
 0x2db   : > { %v17937_v57 = vpop.f32.mrf.mxu1  ;;  %18236 = vmatmul.mubr.msk.f32.gmra.mxu1 %vm514_vm0, %v16174_v12 }
 0x2dc   : > { %18056 = vmatmul.mubr.msk.f32.gmra.mxu0 %vm514_vm0, %v18908_v4  ;;  %v20767_v40 = vadd.f32 %v17937_v57, %v20489_v10  ;;  %18238 = vmatprep.mubr.msk.f32.mxu1 %vm514_vm0, %v20761_v28  ;;  %v18910_v4 = vld [vmem:[%s19689_s21 + $0x82] sm:$0xff] }
 0x2dd   : > { %18058 = vmatprep.mubr.msk.f32.mxu0 %vm514_vm0, %v18909_v13  ;;  %v20773_v23 = vpop.f32.mrf.mxu1  ;;  %v16178_v57 = vld [vmem:[%s19689_s21 + $0x1a2] sm:$0xff]  ;;  %v18911_v13 = vld [vmem:[%s19689_s21 + $0x92] sm:$0xff] }
 0x2de   : > { %25311 = vst [vmem:[#allocation28_spill] sm:$0xff] %v20773_v23 }
 0x2df   : > { %v17940_v12 = vpop.f32.mrf.mxu1  ;;  %18239 = vmatmul.mubr.msk.f32.gmra.mxu1 %vm514_vm0, %v20777_v45 }
 0x2e0   : > { %18059 = vmatmul.mubr.msk.f32.gmra.mxu0 %vm514_vm0, %v18910_v4  ;;  %v20784_v10 = vadd.f32 %v17940_v12, %v20507_v16  ;;  %18241 = vmatprep.mubr.msk.f32.mxu1 %vm514_vm0, %v16177_v62  ;;  %v18913_v12 = vld [vmem:[%s19689_s21 + $0xaa] sm:$0xff] }
 0x2e1   : > { %18061 = vmatprep.mubr.msk.f32.mxu0 %vm514_vm0, %v18911_v13  ;;  %v20790_v34 = vpop.f32.mrf.mxu1  ;;  %v18914_v13 = vld [vmem:[%s19689_s21 + $0xb2] sm:$0xff] }
 0x2e2   : > { %25312 = vst [vmem:[#allocation29_spill] sm:$0xff] %v20790_v34 }
 0x2e3   : > { %v17943_v23 = vpop.f32.mrf.mxu1  ;;  %18242 = vmatmul.mubr.msk.f32.gmra.mxu1 %vm514_vm0, %v16178_v57  ;;  %v18915_v57 = vld [vmem:[%s19689_s21 + $0xc2] sm:$0xff] }
 0x2e4   : > { %18062 = vmatmul.mubr.msk.f32.gmra.mxu0 %vm514_vm0, %v18912_v25  ;;  %v20796_v16 = vadd.f32 %v17943_v23, %v20521_v48  ;;  %v18916_v23 = vld [vmem:[%s19689_s21 + $0xca] sm:$0xff] }
 0x2e5   : > { %18064 = vmatprep.mubr.msk.f32.mxu0 %vm514_vm0, %v18913_v12  ;;  %v20800_v62 = vpop.f32.mrf.mxu1  ;;  %v18917_v12 = vld [vmem:[%s19689_s21 + $0xda] sm:$0xff] }
 0x2e6   : > { %25313 = vst [vmem:[#allocation30_spill] sm:$0xff] %v20800_v62  ;;  %v18918_v62 = vld [vmem:[%s19689_s21 + $0xe2] sm:$0xff] }
 0x2e7   : > { %v20802_v4 = vpop.f32.mrf.mxu1 }
 0x2e8   : > { %25314 = vst [vmem:[#allocation31_spill] sm:$0xff] %v20802_v4  ;;  %18065 = vmatmul.mubr.msk.f32.gmra.mxu0 %vm514_vm0, %v18914_v13 }
 0x2e9   : > { %18067 = vmatprep.mubr.msk.f32.mxu0 %vm514_vm0, %v18915_v57  ;;  %v20808_v25 = vpop.f32.mrf.mxu1  ;;  %v18919_v57 = vld [vmem:[%s19689_s21 + $0xf2] sm:$0xff] }
 0x2ea   : > { %25315 = vst [vmem:[#allocation32_spill] sm:$0xff] %v20808_v25  ;;  %v18920_v25 = vld [vmem:[%s19689_s21 + $0xfa] sm:$0xff] }
 0x2eb   : > { %v20810_v48 = vpop.f32.mrf.mxu1 }
 0x2ec   : > { %25316 = vst [vmem:[#allocation33_spill] sm:$0xff] %v20810_v48  ;;  %18068 = vmatmul.mubr.msk.f32.gmra.mxu0 %vm514_vm0, %v18916_v23 }
 0x2ed   : > { %18070 = vmatprep.mubr.msk.f32.mxu0 %vm514_vm0, %v18917_v12  ;;  %v20816_v4 = vpop.f32.mrf.mxu1  ;;  %v18921_v12 = vld [vmem:[%s19689_s21 + $0x10a] sm:$0xff] }
 0x2ee   : > { %25317 = vst [vmem:[#allocation34_spill] sm:$0xff] %v20816_v4  ;;  %v18922_v4 = vld [vmem:[%s19689_s21 + $0x112] sm:$0xff] }
 0x2ef   : > { %v20818_v13 = vpop.f32.mrf.mxu1 }
 0x2f0   : > { %25318 = vst [vmem:[#allocation35_spill] sm:$0xff] %v20818_v13  ;;  %18071 = vmatmul.mubr.msk.f32.gmra.mxu0 %vm514_vm0, %v18918_v62 }
 0x2f1   : > { %18073 = vmatprep.mubr.msk.f32.mxu0 %vm514_vm0, %v18919_v57  ;;  %v20824_v48 = vpop.f32.mrf.mxu1  ;;  %v18923_v57 = vld [vmem:[%s19689_s21 + $0x122] sm:$0xff] }
 0x2f2   : > { %25319 = vst [vmem:[#allocation36_spill] sm:$0xff] %v20824_v48  ;;  %v18924_v48 = vld [vmem:[%s19689_s21 + $0x12a] sm:$0xff] }
 0x2f3   : > { %v20826_v23 = vpop.f32.mrf.mxu1 }
 0x2f4   : > { %25320 = vst [vmem:[#allocation37_spill] sm:$0xff] %v20826_v23  ;;  %18074 = vmatmul.mubr.msk.f32.gmra.mxu0 %vm514_vm0, %v18920_v25 }
 0x2f5   : > { %18076 = vmatprep.mubr.msk.f32.mxu0 %vm514_vm0, %v18921_v12  ;;  %v20832_v13 = vpop.f32.mrf.mxu1  ;;  %v18925_v12 = vld [vmem:[%s19689_s21 + $0x13a] sm:$0xff] }
 0x2f6   : > { %25321 = vst [vmem:[#allocation38_spill] sm:$0xff] %v20832_v13 }
 0x2f7   : > { %v20834_v62 = vpop.f32.mrf.mxu1 }
 0x2f8   : > { %25322 = vst [vmem:[#allocation39_spill] sm:$0xff] %v20834_v62  ;;  %18077 = vmatmul.mubr.msk.f32.gmra.mxu0 %vm514_vm0, %v18922_v4  ;;  %v18926_v4 = vld [vmem:[%s19689_s21 + $0x142] sm:$0xff] }
 0x2f9   : > { %18079 = vmatprep.mubr.msk.f32.mxu0 %vm514_vm0, %v18923_v57  ;;  %v20840_v23 = vpop.f32.mrf.mxu1  ;;  %v18927_v57 = vld [vmem:[%s19689_s21 + $0x152] sm:$0xff] }
 0x2fa   : > { %25323 = vst [vmem:[#allocation40_spill] sm:$0xff] %v20840_v23 }
 0x2fb   : > { %v20842_v25 = vpop.f32.mrf.mxu1 }
 0x2fc   : > { %25324 = vst [vmem:[#allocation41_spill] sm:$0xff] %v20842_v25  ;;  %18080 = vmatmul.mubr.msk.f32.gmra.mxu0 %vm514_vm0, %v18924_v48  ;;  %v18928_v48 = vld [vmem:[%s19689_s21 + $0x15a] sm:$0xff] }
 0x2fd   : > { %18082 = vmatprep.mubr.msk.f32.mxu0 %vm514_vm0, %v18925_v12  ;;  %v20848_v62 = vpop.f32.mrf.mxu1  ;;  %v18929_v12 = vld [vmem:[%s19689_s21 + $0x16a] sm:$0xff] }
 0x2fe   : > { %25325 = vst [vmem:[#allocation42_spill] sm:$0xff] %v20848_v62 }
 0x2ff   : > { %v20850_v13 = vpop.f32.mrf.mxu1 }
 0x300   : > { %25326 = vst [vmem:[#allocation43_spill] sm:$0xff] %v20850_v13  ;;  %18083 = vmatmul.mubr.msk.f32.gmra.mxu0 %vm514_vm0, %v18926_v4  ;;  %v18930_v4 = vld [vmem:[%s19689_s21 + $0x172] sm:$0xff] }
 0x301   : > { %18085 = vmatprep.mubr.msk.f32.mxu0 %vm514_vm0, %v18927_v57  ;;  %v20856_v23 = vpop.f32.mrf.mxu1 }
 0x302   : > { %25327 = vst [vmem:[#allocation44_spill] sm:$0xff] %v20856_v23 }
 0x303   : > { %v20858_v25 = vpop.f32.mrf.mxu1 }
 0x304   : > { %25328 = vst [vmem:[#allocation45_spill] sm:$0xff] %v20858_v25  ;;  %18086 = vmatmul.mubr.msk.f32.gmra.mxu0 %vm514_vm0, %v18928_v48  ;;  %v16082_v25 = vld [vmem:[%s19689_s21 + $0x31] sm:$0xff] }
 0x305   : > { %18088 = vmatprep.mubr.msk.f32.mxu0 %vm514_vm0, %v18929_v12  ;;  %v20864_v13 = vpop.f32.mrf.mxu1  ;;  %v16083_v12 = vld [vmem:[%s19689_s21 + $0x39] sm:$0xff] }
 0x306   : > { %25329 = vst [vmem:[#allocation46_spill] sm:$0xff] %v20864_v13  ;;  %v16084_v13 = vld [vmem:[%s19689_s21 + $0x49] sm:$0xff] }
 0x307   : > { %v20866_v62 = vpop.f32.mrf.mxu1 }
 0x308   : > { %25330 = vst [vmem:[#allocation47_spill] sm:$0xff] %v20866_v62  ;;  %18089 = vmatmul.mubr.msk.f32.gmra.mxu0 %vm514_vm0, %v18930_v4 }
 0x309   : > { %18091 = vmatprep.mubr.msk.f32.mxu0 %vm514_vm0, %v20761_v28  ;;  %v20872_v57 = vpop.f32.mrf.mxu1  ;;  %v16085_v28 = vld [vmem:[%s19689_s21 + $0x51] sm:$0xff] }
 0x30a   : > { %25331 = vst [vmem:[#allocation48_spill] sm:$0xff] %v20872_v57  ;;  %v16086_v57 = vld [vmem:[%s19689_s21 + $0x61] sm:$0xff] }
 0x30b   : > { %v20875_v48 = vpop.f32.mrf.mxu1 }
 0x30c   : > { %25332 = vst [vmem:[#allocation49_spill] sm:$0xff] %v20875_v48  ;;  %18092 = vmatmul.mubr.msk.f32.gmra.mxu0 %vm514_vm0, %v20777_v45 }
 0x30d   : > { %18146 = vmatprep.mubr.msk.f32.mxu0 %vm514_vm0, %v16082_v25  ;;  %v20881_v62 = vpop.f32.mrf.mxu1  ;;  %v16087_v25 = vld [vmem:[%s19689_s21 + $0x69] sm:$0xff] }
 0x30e   : > { %25333 = vst [vmem:[#allocation50_spill] sm:$0xff] %v20881_v62 }
 0x30f   : > { %v20884_v4 = vpop.f32.mrf.mxu1 }
 0x310   : > { %25334 = vst [vmem:[#allocation51_spill] sm:$0xff] %v20884_v4  ;;  %18147 = vmatmul.mubr.msk.f32.vlgmr.msra.gmra.mxu0 %vm514_vm0, %v16083_v12  ;;  %v16088_v4 = vld [vmem:[%s19689_s21 + $0x79] sm:$0xff] }
 0x311   : > { %18149 = vmatprep.mubr.msk.f32.mxu0 %vm514_vm0, %v16084_v13  ;;  %v20889_v48 = vpop.f32.mrf.mxu1  ;;  %v16089_v13 = vld [vmem:[%s19689_s21 + $0x81] sm:$0xff] }
 0x312   : > { %25335 = vst [vmem:[#allocation52_spill] sm:$0xff] %v20889_v48 }
 0x313   : > { %v20892_v45 = vpop.f32.mrf.mxu1 }
 0x314   : > { %25336 = vst [vmem:[#allocation53_spill] sm:$0xff] %v20892_v45  ;;  %18150 = vmatmul.mubr.msk.f32.gmra.mxu0 %vm514_vm0, %v16085_v28  ;;  %v16090_v45 = vld [vmem:[%s19689_s21 + $0x91] sm:$0xff] }
 0x315   : > { %18152 = vmatprep.mubr.msk.f32.mxu0 %vm514_vm0, %v16086_v57  ;;  %v20897_v62 = vpop.f32.mrf.mxu1  ;;  %v16091_v57 = vld [vmem:[%s19689_s21 + $0x99] sm:$0xff] }
 0x316   : > { %25337 = vst [vmem:[#allocation54_spill] sm:$0xff] %v20897_v62 }
 0x317   : > { %v20900_v12 = vpop.f32.mrf.mxu1 }
 0x318   : > { %25338 = vst [vmem:[#allocation55_spill] sm:$0xff] %v20900_v12  ;;  %18153 = vmatmul.mubr.msk.f32.gmra.mxu0 %vm514_vm0, %v16087_v25  ;;  %v16092_v12 = vld [vmem:[%s19689_s21 + $0xa9] sm:$0xff] }
 0x319   : > { %18155 = vmatprep.mubr.msk.f32.mxu0 %vm514_vm0, %v16088_v4  ;;  %v20905_v48 = vpop.f32.mrf.mxu1  ;;  %v16093_v4 = vld [vmem:[%s19689_s21 + $0xb1] sm:$0xff] }
 0x31a   : > { %25339 = vst [vmem:[#allocation56_spill] sm:$0xff] %v20905_v48 }
 0x31b   : > { %v20908_v28 = vpop.f32.mrf.mxu1 }
 0x31c   : > { %25340 = vst [vmem:[#allocation57_spill] sm:$0xff] %v20908_v28  ;;  %18156 = vmatmul.mubr.msk.f32.gmra.mxu0 %vm514_vm0, %v16089_v13  ;;  %v16094_v28 = vld [vmem:[%s19689_s21 + $0xc1] sm:$0xff] }
 0x31d   : > { %18158 = vmatprep.mubr.msk.f32.mxu0 %vm514_vm0, %v16090_v45  ;;  %v20913_v62 = vpop.f32.mrf.mxu1  ;;  %v16095_v45 = vld [vmem:[%s19689_s21 + $0xc9] sm:$0xff] }
 0x31e   : > { %25341 = vst [vmem:[#allocation58_spill] sm:$0xff] %v20913_v62 }
 0x31f   : > { %v20916_v25 = vpop.f32.mrf.mxu1 }
 0x320   : > { %25342 = vst [vmem:[#allocation59_spill] sm:$0xff] %v20916_v25  ;;  %18159 = vmatmul.mubr.msk.f32.gmra.mxu0 %vm514_vm0, %v16091_v57  ;;  %v16096_v57 = vld [vmem:[%s19689_s21 + $0xd9] sm:$0xff] }
 0x321   : > { %18161 = vmatprep.mubr.msk.f32.mxu0 %vm514_vm0, %v16092_v12  ;;  %v20921_v48 = vpop.f32.mrf.mxu1  ;;  %v16214_v12 = vld [vmem:[%s25140_s9 + $0x8] sm:$0xff] }
 0x322   : > { %25343 = vst [vmem:[#allocation60_spill] sm:$0xff] %v20921_v48  ;;  %18244 = vmatprep.subr.mxu0 %v16214_v12 }
 0x323   : > { %v20924_v13 = vpop.f32.mrf.mxu1  ;;  %18245 = vmatpush3.msra.mxu0 %v16214_v12 }
 0x324   : > { %25344 = vst [vmem:[#allocation61_spill] sm:$0xff] %v20924_v13  ;;  %18162 = vmatmul.mubr.msk.f32.gmra.mxu0 %vm514_vm0, %v16093_v4  ;;  %v16097_v4 = vld [vmem:[%s19689_s21 + $0xe1] sm:$0xff]  ;;  %18344 = vmatprep.subr.mxu0 %v16279_v55 }
 0x325   : > { %18164 = vmatprep.mubr.msk.f32.mxu0 %vm514_vm0, %v16094_v28  ;;  %v20929_v62 = vpop.f32.mrf.mxu1 }
 0x326   : > { %25345 = vst [vmem:[#allocation62_spill] sm:$0xff] %v20929_v62  ;;  %v16098_v62 = vld [vmem:[%s19689_s21 + $0xf1] sm:$0xff] }
 0x327   : > { %v20935_v48 = vpop.f32.mrf.mxu1 }
 0x328   : > { %25346 = vst [vmem:[#allocation63_spill] sm:$0xff] %v20935_v48  ;;  %18165 = vmatmul.mubr.msk.f32.gmra.mxu0 %vm514_vm0, %v16095_v45  ;;  %v16099_v48 = vld [vmem:[%s19689_s21 + $0xf9] sm:$0xff] }
 0x329   : > { %18167 = vmatprep.mubr.msk.f32.mxu0 %vm514_vm0, %v16096_v57  ;;  %v20940_v28 = vpop.f32.mrf.mxu1  ;;  %v16100_v57 = vld [vmem:[%s19689_s21 + $0x109] sm:$0xff] }
 0x32a   : > { %25347 = vst [vmem:[#allocation64_spill] sm:$0xff] %v20940_v28 }
 0x32b   : > { %v20943_v13 = vpop.f32.mrf.mxu1 }
 0x32c   : > { %25348 = vst [vmem:[#allocation65_spill] sm:$0xff] %v20943_v13  ;;  %v17793_v25 = vpop.f32.mrf.mxu0  ;;  %18168 = vmatmul.mubr.msk.f32.gmra.mxu0 %vm514_vm0, %v16097_v4  ;;  %v16101_v13 = vld [vmem:[%s19689_s21 + $0x111] sm:$0xff] }
 0x32d   : > { %v15723_v23 = vmul.f32 -1.442695, %v17793_v25  ;;  %18170 = vmatprep.mubr.msk.f32.mxu0 %vm514_vm0, %v16098_v62  ;;  %v20948_v12 = vpop.f32.mrf.mxu1  ;;  %v16102_v62 = vld [vmem:[%s19689_s21 + $0x121] sm:$0xff] }
 0x32e   : > { %25349 = vst [vmem:[#allocation66_spill] sm:$0xff] %v20948_v12  ;;  %v3387_v45 = vpop.f32.mrf.mxu0 }
 0x32f   : > { %18882 = vpow2.f32 %v15723_v23  ;;  %v20951_v28 = vpop.f32.mrf.mxu1  ;;  %v16103_v23 = vld [vmem:[%s19689_s21 + $0x129] sm:$0xff] }
 0x330   : > { %25350 = vst [vmem:[#allocation67_spill] sm:$0xff] %v20951_v28  ;;  %v17848_v34 = vpop.f32.mrf.mxu0  ;;  %18171 = vmatmul.mubr.msk.f32.gmra.mxu0 %vm514_vm0, %v16099_v48  ;;  %v16104_v48 = vld [vmem:[%s19689_s21 + $0x139] sm:$0xff] }
 0x331   : > { %18173 = vmatprep.mubr.msk.f32.mxu0 %vm514_vm0, %v16100_v57  ;;  %v20956_v4 = vpop.f32.mrf.mxu1 }
 0x332   : > { %25351 = vst [vmem:[#allocation68_spill] sm:$0xff] %v20956_v4  ;;  %v20958_v25 = vpop.f32.mrf.mxu0 }
 0x333   : > { %v20961_v56 = vpop.f32.mrf.mxu1 }
 0x334   : > { %25352 = vst [vmem:[#allocation69_spill] sm:$0xff] %v20961_v56  ;;  %v17851_v12 = vpop.f32.mrf.mxu0  ;;  %18174 = vmatmul.mubr.msk.f32.gmra.mxu0 %vm514_vm0, %v16101_v13 }
 0x335   : > { %18176 = vmatprep.mubr.msk.f32.mxu0 %vm514_vm0, %v16102_v62  ;;  %v20966_v28 = vpop.f32.mrf.mxu1 }
 0x336   : > { %25353 = vst [vmem:[#allocation70_spill] sm:$0xff] %v20966_v28  ;;  %v20968_v11 = vpop.f32.mrf.mxu0 }
 0x337   : > { %v20971_v57 = vpop.f32.mrf.mxu1 }
 0x338   : > { %25354 = vst [vmem:[#allocation71_spill] sm:$0xff] %v20971_v57  ;;  %v17854_v0 = vpop.f32.mrf.mxu0  ;;  %18177 = vmatmul.mubr.msk.f32.gmra.mxu0 %vm514_vm0, %v16103_v23 }
 0x339   : > { %18179 = vmatprep.mubr.msk.f32.mxu0 %vm514_vm0, %v16104_v48  ;;  %v20975_v4 = vpop.f32.mrf.mxu1 }
 0x33a   : > { %25355 = vst [vmem:[#allocation72_spill] sm:$0xff] %v20975_v4  ;;  %v20977_v56 = vpop.f32.mrf.mxu0 }
 0x33b   : > { %v20979_v13 = vpop.f32.mrf.mxu1 }
 0x33c   : > { %25356 = vst [vmem:[#allocation73_spill] sm:$0xff] %v20979_v13  ;;  %v18883_v62 = vpop.eup %18882  ;;  %v20981_v54 = vpop.f32.mrf.mxu0  ;;  %18180 = vmatmul.mubr.msk.f32.gmra.mxu0 %vm514_vm0, %v20184_v59  ;;  %v18997_v59 = vmov 1966171168  }
 0x33d   : > { %v3399_v28 = vadd.f32 1.0, %v18883_v62  ;;  %18182 = vmatprep.mubr.msk.f32.mxu0 %vm514_vm0, %v20190_v22  ;;  %v20989_v48 = vpop.f32.mrf.mxu1  ;;  %v10663_v62 = vunpack.c.l.s4 %v18997_v59  ;;  %v10665_v22 = vlaneseq  ;;  %v16113_v59 = vld [vmem:[%s19689_s21 + $0x1a1] sm:$0xff] }
 0x33e   : > { %v20987_v23 = vpop.f32.mrf.mxu0  ;;  %25357 = vst [vmem:[#allocation74_spill] sm:$0xff] %v20989_v48 }
 0x33f   : > { %18884 = vrcp.f32 %v3399_v28  ;;  %v20999_v57 = vpop.f32.mrf.mxu1  ;;  %v16112_v28 = vld [vmem:[%s19689_s21 + $0x199] sm:$0xff]  ;;  %v10666_v48 = vshrl.u32 %v10665_v22, 7  ;;  %s25163_s21 = smov 104  }
 0x340   : > { %v20991_v4 = vpop.f32.mrf.mxu0  ;;  %18183 = vmatmul.mubr.msk.f32.gmra.mxu0 %vm514_vm0, %v20204_v51  ;;  %25359 = vst [vmem:[#allocation76_spill] sm:$0xff] %v20999_v57 }
 0x341   : > { %18185 = vmatprep.mubr.msk.f32.mxu0 %vm514_vm0, %v20210_v60  ;;  %v10664_v60 = vunpack.c.0.s8 %v10663_v62  ;;  %v21010_v42 = vpop.f32.mrf.mxu1  ;;  %v3960_v62 = vadd.f32 %v17848_v34, %v20119_v50  ;;  %v3970_v50 = vadd.f32 %v17851_v12, %v20137_v39 }
 0x342   : > { %v20997_v13 = vpop.f32.mrf.mxu0  ;;  %25361 = vst [vmem:[#allocation78_spill] sm:$0xff] %v21010_v42 }
 0x343   : > { %25358 = vst [vmem:[#allocation75_spill] sm:$0xff] %v20997_v13  ;;  %v4469_v34 = vadd.f32 %v20531_v46, %v3960_v62 }
 0x344   : > { %v21001_v30 = vpop.f32.mrf.mxu0  ;;  %18186 = vmatmul.mubr.msk.f32.gmra.mxu0 %vm514_vm0, %v20222_v61  ;;  %v21020_v61 = vsub.s32 %v10664_v60, %v10666_v48 }
 0x345   : > { %18188 = vmatprep.mubr.msk.f32.mxu0 %vm514_vm0, %v20228_v31  ;;  %v21022_v31 = vpop.f32.mrf.mxu1 }
 0x346   : > { %v21007_v51 = vpop.f32.mrf.mxu0  ;;  %25363 = vst [vmem:[#allocation80_spill] sm:$0xff] %v21020_v61  ;;  %25364 = vst [vmem:[#allocation81_spill] sm:$0xff] %v21022_v31  ;;  %v21034_v31 = vsub.s32 0, %v10666_v48 }
 0x347   : > { %25360 = vst [vmem:[#allocation77_spill] sm:$0xff] %v21007_v51 }
 0x348   : > { %v21012_v32 = vpop.f32.mrf.mxu0  ;;  %18189 = vmatmul.mubr.msk.f32.gmra.mxu0 %vm514_vm0, %v20239_v8  ;;  %25367 = vst [vmem:[#allocation84_spill] sm:$0xff] %v21034_v31 }
 0x349   : > { %18191 = vmatprep.mubr.msk.f32.mxu0 %vm514_vm0, %v16112_v28 }
 0x34a   : > { %v21018_v57 = vpop.f32.mrf.mxu0 }
 0x34b   : > { %25362 = vst [vmem:[#allocation79_spill] sm:$0xff] %v21018_v57  ;;  %v21032_v57 = vpop.f32.mrf.mxu1 }
 0x34c   : > { %v18885_v24 = vpop.eup %18884  ;;  %v21025_v22 = vpop.f32.mrf.mxu0  ;;  %18192 = vmatmul.mubr.msk.f32.gmra.mxu0 %vm514_vm0, %v16113_v59  ;;  %25366 = vst [vmem:[#allocation83_spill] sm:$0xff] %v21032_v57 }
 0x34d   : > { %v3403_v42 = vsub.f32 1.0, %v18885_v24  ;;  %v3402_v37 = vmul.f32 %v18885_v24, %v3387_v45 }
 0x34e   : > { %v21028_v51 = vpop.f32.mrf.mxu0 }
 0x34f   : > { %25365 = vst [vmem:[#allocation82_spill] sm:$0xff] %v21028_v51  ;;  %v10710_v8 = vcombine.high %v3403_v42, %v3403_v42  ;;  %v10717_v28 = vrot.slane %v3403_v42, %v21020_v61  ;;  %v10661_v41 = vcombine.high %v3402_v37, %v3402_v37  ;;  %v10668_v60 = vrot.slane %v3402_v37, %v21020_v61 }
 0x350   : > { %v17948_v7 = vpop.f32.mrf.mxu0  ;;  %v3980_v37 = vadd.f32 %v17854_v0, %v20153_v3 }
 0x351   : > { %v10724_v59 = vrot.slane %v10710_v8, %v21020_v61  ;;  %v10725_v24 = vcombine.high %v10717_v28, %v10717_v28  ;;  %v10733_v45 = vrot.slane %v10717_v28, %v21020_v61  ;;  %v10675_v51 = vrot.slane %v10661_v41, %v21020_v61  ;;  %v21054_v41 = vpop.f32.mrf.mxu1 }
 0x352   : > { %v10676_v42 = vcombine.high %v10668_v60, %v10668_v60  ;;  %v10684_v13 = vrot.slane %v10668_v60, %v21020_v61  ;;  %v21043_v57 = vadd.f32 %v17948_v7, %v4469_v34  ;;  %v21045_v48 = vpop.f32.mrf.mxu0  ;;  %25368 = vst [vmem:[#allocation85_spill] sm:$0xff] %v21054_v41 }
 0x353   : > { %v10726_v39 = vcombine.high %v10724_v59, %v10724_v59  ;;  %v21048_v46 = vrot.slane %v10724_v59, %v21020_v61  ;;  %v21051_v12 = vrot.slane %v10725_v24, %v21020_v61  ;;  %10783 = vst.msk [vmem:[#allocation4 + $0x40] sm:$0x1] %vm523_vm5, %v10733_v45  ;;  %v10677_v62 = vcombine.high %v10675_v51, %v10675_v51 }
 0x354   : > { %v21057_v8 = vrot.slane %v10675_v51, %v21020_v61  ;;  %v21060_v3 = vrot.slane %v10676_v42, %v21020_v61  ;;  %v21062_v0 = vcombine.high %v10684_v13, %v10684_v13  ;;  %10775 = vst.msk [vmem:[#allocation4] sm:$0x1] %vm523_vm5, %v10684_v13  ;;  %v21066_v7 = vrot.slane %v10684_v13, %v21034_v31  ;;  %v17951_v28 = vpop.f32.mrf.mxu0 }
 0x355   : > { %v21069_v60 = vrot.slane %v10726_v39, %v21020_v61  ;;  %10784 = vst.msk [vmem:[#allocation4 + $0x48] sm:$0x1] %vm523_vm5, %v21051_v12  ;;  %10787 = vst.msk [vmem:[#allocation4 + $0x60] sm:$0x1] %vm523_vm5, %v21048_v46  ;;  %v21076_v51 = vrot.slane %v10677_v62, %v21020_v61  ;;  %v4471_v59 = vadd.f32 %v20611_v44, %v3970_v50  ;;  %v21110_v50 = vpop.f32.mrf.mxu1 }
 0x356   : > { %v21080_v34 = vcombine.high %v21057_v8, %v21057_v8  ;;  %v21084_v13 = vcombine.high %v21060_v3, %v21060_v3  ;;  %10776 = vst.msk [vmem:[#allocation4 + $0x8] sm:$0x1] %vm523_vm5, %v21060_v3  ;;  %10777 = vst.msk [vmem:[#allocation4 + $0x10] sm:$0x1] %vm523_vm5, %v21062_v0  ;;  %10983 = vrot.lane.b32.xlu1 %v21066_v7, %s25163_s21  ;;  %v21095_v24 = vpop.f32.mrf.mxu0  ;;  %v3990_v39 = vadd.f32 %v20981_v54, %v20174_v53 }
 0x357   : > { %10779 = vst.msk [vmem:[#allocation4 + $0x20] sm:$0x1] %vm523_vm5, %v21057_v8  ;;  %10788 = vst.msk [vmem:[#allocation4 + $0x68] sm:$0x1] %vm523_vm5, %v21069_v60  ;;  %v21101_v42 = vcombine.high %v21076_v51, %v21076_v51  ;;  %10855 = vrot.lane.b32.xlu0 %v21066_v7, %s25165_s27  ;;  %v4473_v44 = vadd.f32 %v20623_v27, %v3980_v37  ;;  %v21116_v62 = vadd.f32 %v17951_v28, %v4471_v59  ;;  %v21136_v59 = vpop.f32.mrf.mxu1 }
 0x358   : > { %10780 = vst.msk [vmem:[#allocation4 + $0x28] sm:$0x1] %vm523_vm5, %v21076_v51  ;;  %25369 = vst [vmem:[#allocation86_spill] sm:$0xff] %v21110_v50  ;;  %v17954_v61 = vpop.f32.mrf.mxu0  ;;  %v21123_v54 = vrot.slane %v10733_v45, %v21034_v31  ;;  %v21129_v37 = vcombine.high %v10733_v45, %v10733_v45  ;;  %v4000_v28 = vadd.f32 %v20991_v4, %v20194_v9 }
 0x359   : > { %10778 = vst.msk [vmem:[#allocation4 + $0x18] sm:$0x1] %vm523_vm5, %v21084_v13  ;;  %10781 = vst.msk [vmem:[#allocation4 + $0x30] sm:$0x1] %vm523_vm5, %v21080_v34  ;;  %v21120_v53 = vadd.f32 %v17954_v61, %v4473_v44  ;;  %v4475_v61 = vadd.f32 %v20635_v6, %v3990_v39  ;;  %v21140_v44 = vcombine.high %v21051_v12, %v21051_v12 }
 0x35a   : > { %10782 = vst.msk [vmem:[#allocation4 + $0x38] sm:$0x1] %vm523_vm5, %v21101_v42  ;;  %11111 = vrot.lane.b32.xlu1 %v21066_v7, %s25167_s28  ;;  %v21127_v27 = vpop.f32.mrf.mxu0  ;;  %25370 = vst [vmem:[#allocation87_spill] sm:$0xff] %v21136_v59  ;;  %v21146_v45 = vcombine.high %v21048_v46, %v21048_v46  ;;  %v21150_v9 = vcombine.high %v21069_v60, %v21069_v60  ;;  %v4010_v39 = vadd.f32 %v21001_v30, %v20213_v35 }
 0x35b   : > { %10871 = vrot.lane.b32.xlu0 %v21123_v54, %s25165_s27  ;;  %10785 = vst.msk [vmem:[#allocation4 + $0x50] sm:$0x1] %vm523_vm5, %v21129_v37  ;;  %10786 = vst.msk [vmem:[#allocation4 + $0x58] sm:$0x1] %vm523_vm5, %v21140_v44 }
 0x35c   : > { %v17957_v50 = vpop.f32.mrf.mxu0  ;;  %25371 = vst [vmem:[#allocation88_spill] sm:$0xff] %v21146_v45  ;;  %25372 = vst [vmem:[#allocation89_spill] sm:$0xff] %v21150_v9 }
 0x35d   : > { %v21152_v4 = vadd.f32 %v17957_v50, %v4475_v61  ;;  %10789 = vst.msk [vmem:[#allocation4 + $0x70] sm:$0x1] %vm523_vm5, %v21146_v45  ;;  %10790 = vst.msk [vmem:[#allocation4 + $0x78] sm:$0x1] %vm523_vm5, %v21150_v9  ;;  %v4477_v50 = vadd.f32 %v20647_v19, %v4000_v28  ;;  %v21169_v61 = vpop.f32.mrf.mxu1  ;;  %v4020_v19 = vadd.f32 %v21012_v32, %v20231_v43  ;;  %v6997_v32 = vld [vmem:[#allocation3 + $0x9] sm:$0xff] }
 0x35e   : > { %11239 = vrot.lane.b32.xlu1 %v21066_v7, %s25169_s22  ;;  %v21158_v6 = vpop.f32.mrf.mxu0  ;;  %25373 = vst [vmem:[#allocation90_spill] sm:$0xff] %v21169_v61  ;;  %v4479_v28 = vadd.f32 %v20659_v29, %v4010_v39  ;;  %v6963_v61 = vld [vmem:[#allocation3] sm:$0xff]  ;;  %v6964_v29 = vld [vmem:[#allocation3 + $0x8] sm:$0xff]  ;;  %v4030_v39 = vadd.f32 %v21025_v22, %v20245_v38 }
 0x35f   : > { %10919 = vrot.lane.b32.xlu0 %v21066_v7, %s25173_s20  ;;  %v21188_v9 = vpop.f32.mrf.mxu1  ;;  %18296 = vmatprep.mubr.msk.f32.mxu1 %vm514_vm0, %v6963_v61 }
 0x360   : > { %v17960_v59 = vpop.f32.mrf.mxu0  ;;  %25374 = vst [vmem:[#allocation91_spill] sm:$0xff] %v21188_v9  ;;  %18297 = vmatmul.mubr.msk.f32.vlgmr.msra.gmra.mxu1 %vm514_vm0, %v6964_v29 }
 0x361   : > { %v21177_v35 = vadd.f32 %v17960_v59, %v4477_v50  ;;  %v6996_v50 = vld [vmem:[#allocation3 + $0x1] sm:$0xff] }
 0x362   : > { %10999 = vrot.lane.b32.xlu1 %v21123_v54, %s25163_s21  ;;  %v21181_v30 = vpop.f32.mrf.mxu0  ;;  %18246 = vmatprep.mubr.msk.f32.mxu0 %vm514_vm0, %v6996_v50  ;;  %s25171_s21 = smov 80  }
 0x363   : > { %11047 = vrot.lane.b32.xlu0 %v21066_v7, %s25175_s25  ;;  %18247 = vmatmul.mubr.msk.f32.vlgmr.msra.gmra.mxu0 %vm514_vm0, %v6997_v32  ;;  %v21240_v32 = vrot.slane %v21051_v12, %v21034_v31 }
 0x364   : > { %v17963_v45 = vpop.f32.mrf.mxu0  ;;  %18345 = vmatpush3.msra.mxu0 %v16279_v55 }
 0x365   : > { %v21193_v59 = vadd.f32 %v17963_v45, %v4479_v28  ;;  %v4481_v45 = vadd.f32 %v20671_v18, %v4020_v19  ;;  %v21205_v28 = vpop.f32.mrf.mxu1  ;;  %v4483_v18 = vadd.f32 %v20683_v58, %v4030_v39 }
 0x366   : > { %11127 = vrot.lane.b32.xlu1 %v21123_v54, %s25167_s28  ;;  %v21197_v43 = vpop.f32.mrf.mxu0  ;;  %25375 = vst [vmem:[#allocation92_spill] sm:$0xff] %v21205_v28 }
 0x367   : > { %11175 = vrot.lane.b32.xlu0 %v21066_v7, %s25171_s21  ;;  %v21219_v22 = vpop.f32.mrf.mxu1  ;;  %v21223_v7 = vrot.slane %v21062_v0, %v21034_v31 }
 0x368   : > { %v17966_v9 = vpop.f32.mrf.mxu0  ;;  %25376 = vst [vmem:[#allocation93_spill] sm:$0xff] %v21219_v22 }
 0x369   : > { %v21209_v50 = vadd.f32 %v17966_v9, %v4481_v45  ;;  %v21236_v58 = vpop.f32.mrf.mxu1 }
 0x36a   : > { %11255 = vrot.lane.b32.xlu1 %v21123_v54, %s25169_s22  ;;  %v21214_v38 = vpop.f32.mrf.mxu0  ;;  %25377 = vst [vmem:[#allocation94_spill] sm:$0xff] %v21236_v58 }
 0x36b   : > { %10935 = vrot.lane.b32.xlu0 %v21123_v54, %s25173_s20  ;;  %v21251_v45 = vpop.f32.mrf.mxu1 }
 0x36c   : > { %v17969_v9 = vpop.f32.mrf.mxu0  ;;  %25378 = vst [vmem:[#allocation95_spill] sm:$0xff] %v21251_v45 }
 0x36d   : > { %v21225_v61 = vadd.f32 %v17969_v9, %v4483_v18  ;;  %v10798_v18 = vrot.slane %v21060_v3, %v21034_v31  ;;  %v21262_v55 = vpop.f32.mrf.mxu1 }
 0x36e   : > { %10859 = vrot.lane.b32.xlu1 %v21223_v7, %s25165_s27  ;;  %v21229_v19 = vpop.f32.mrf.mxu0  ;;  %25380 = vst [vmem:[#allocation96_spill] sm:$0xff] %v21262_v55 }
 0x36f   : > { %11063 = vrot.lane.b32.xlu0 %v21123_v54, %s25175_s25 }
 0x370   : > { %v17972_v0 = vpop.f32.mrf.mxu0 }
 0x371   : > { %v21243_v29 = vadd.f32 %v17972_v0, %v20699_v1 }
 0x372   : > { %10873 = vrot.lane.b32.xlu1 %v21240_v32, %s25165_s27  ;;  %v21247_v39 = vpop.f32.mrf.mxu0 }
 0x373   : > { %11191 = vrot.lane.b32.xlu0 %v21123_v54, %s25171_s21  ;;  %v10810_v54 = vrot.slane %v21057_v8, %v21034_v31 }
 0x374   : > { %v17975_v9 = vpop.f32.mrf.mxu0 }
 0x375   : > { %v21256_v12 = vadd.f32 %v17975_v9, %v20712_v33  ;;  %v21273_v33 = vpop.f32.mrf.mxu1 }
 0x376   : > { %10985 = vrot.lane.b32.xlu1 %v10798_v18, %s25379_s26  ;;  %v21259_v1 = vpop.f32.mrf.mxu0  ;;  %25381 = vst [vmem:[#allocation97_spill] sm:$0xff] %v21273_v33 }
 0x377   : > { %10857 = vrot.lane.b32.xlu0 %v10798_v18, %s25165_s27 }
 0x378   : > { %v17978_v0 = vpop.f32.mrf.mxu0 }
 0x379   : > { %v21267_v45 = vadd.f32 %v17978_v0, %v20725_v14  ;;  %v21282_v14 = vpop.f32.mrf.mxu1 }
 0x37a   : > { %11113 = vrot.lane.b32.xlu1 %v10798_v18, %s25167_s28  ;;  %v21270_v3 = vpop.f32.mrf.mxu0  ;;  %25384 = vst [vmem:[#allocation100_spill] sm:$0xff] %v21282_v14 }
 0x37b   : > { %10863 = vrot.lane.b32.xlu0 %v10810_v54, %s25165_s27  ;;  %s25412_s27 = smov 120  }
 0x37c   : > { %v17981_v9 = vpop.f32.mrf.mxu0 }
 0x37d   : > { %v21276_v58 = vadd.f32 %v17981_v9, %v20739_v49  ;;  %v21292_v49 = vpop.f32.mrf.mxu1 }
 0x37e   : > { %11241 = vrot.lane.b32.xlu1 %v10798_v18, %s25169_s22  ;;  %v21279_v55 = vpop.f32.mrf.mxu0  ;;  %25387 = vst [vmem:[#allocation103_spill] sm:$0xff] %v21292_v49 }
 0x37f   : > { %25382 = vst [vmem:[#allocation98_spill] sm:$0xff] %v21276_v58  ;;  %25383 = vst [vmem:[#allocation99_spill] sm:$0xff] %v21279_v55  ;;  %10921 = vrot.lane.b32.xlu0 %v10798_v18, %s25173_s20 }
 0x380   : > { %v17984_v8 = vpop.f32.mrf.mxu0 }
 0x381   : > { %v21285_v0 = vadd.f32 %v17984_v8, %v20752_v20  ;;  %v21302_v20 = vpop.f32.mrf.mxu1 }
 0x382   : > { %10987 = vrot.lane.b32.xlu1 %v21223_v7, %s25379_s26  ;;  %v21289_v33 = vpop.f32.mrf.mxu0  ;;  %25390 = vst [vmem:[#allocation106_spill] sm:$0xff] %v21302_v20 }
 0x383   : > { %25385 = vst [vmem:[#allocation101_spill] sm:$0xff] %v21285_v0  ;;  %25386 = vst [vmem:[#allocation102_spill] sm:$0xff] %v21289_v33  ;;  %11049 = vrot.lane.b32.xlu0 %v10798_v18, %s25175_s25  ;;  %v16312_v0 = vld [vmem:[%s25140_s9 + $0x18] sm:$0xff] }
 0x384   : > { %v17987_v9 = vpop.f32.mrf.mxu0  ;;  %18394 = vmatprep.subr.mxu1 %v16312_v0 }
 0x385   : > { %v21295_v22 = vadd.f32 %v17987_v9, %v20767_v40  ;;  %v21313_v40 = vpop.f32.mrf.mxu1  ;;  %18395 = vmatpush3.msra.mxu1 %v16312_v0 }
 0x386   : > { %11115 = vrot.lane.b32.xlu1 %v21223_v7, %s25167_s28  ;;  %v21299_v14 = vpop.f32.mrf.mxu0  ;;  %25393 = vst [vmem:[#allocation109_spill] sm:$0xff] %v21313_v40 }
 0x387   : > { %25388 = vst [vmem:[#allocation104_spill] sm:$0xff] %v21295_v22  ;;  %25389 = vst [vmem:[#allocation105_spill] sm:$0xff] %v21299_v14  ;;  %11177 = vrot.lane.b32.xlu0 %v10798_v18, %s25171_s21 }
 0x388   : > { %v17990_v8 = vpop.f32.mrf.mxu0 }
 0x389   : > { %v21305_v28 = vadd.f32 %v17990_v8, %v20784_v10  ;;  %v21323_v10 = vpop.f32.mrf.mxu1 }
 0x38a   : > { %11243 = vrot.lane.b32.xlu1 %v21223_v7, %s25169_s22  ;;  %v21309_v49 = vpop.f32.mrf.mxu0  ;;  %25396 = vst [vmem:[#allocation112_spill] sm:$0xff] %v21323_v10 }
 0x38b   : > { %25391 = vst [vmem:[#allocation107_spill] sm:$0xff] %v21305_v28  ;;  %25392 = vst [vmem:[#allocation108_spill] sm:$0xff] %v21309_v49  ;;  %10923 = vrot.lane.b32.xlu0 %v21223_v7, %s25173_s20 }
 0x38c   : > { %v17993_v9 = vpop.f32.mrf.mxu0 }
 0x38d   : > { %v21316_v41 = vadd.f32 %v17993_v9, %v20796_v16  ;;  %v21332_v16 = vpop.f32.mrf.mxu1 }
 0x38e   : > { %10991 = vrot.lane.b32.xlu1 %v10810_v54, %s25379_s26  ;;  %v21319_v18 = vpop.f32.mrf.mxu0 }
 0x38f   : > { %25394 = vst [vmem:[#allocation110_spill] sm:$0xff] %v21316_v41  ;;  %25395 = vst [vmem:[#allocation111_spill] sm:$0xff] %v21319_v18  ;;  %11051 = vrot.lane.b32.xlu0 %v21223_v7, %s25175_s25  ;;  %v21340_v10 = vpop.f32.mrf.mxu1 }
 0x390   : > { %v21325_v8 = vpop.f32.mrf.mxu0 }
 0x392   : > { %11119 = vrot.lane.b32.xlu1 %v10810_v54, %s25167_s28  ;;  %v21328_v20 = vpop.f32.mrf.mxu0 }
 0x393   : > { %11179 = vrot.lane.b32.xlu0 %v21223_v7, %s25171_s21  ;;  %v21349_v7 = vpop.f32.mrf.mxu1 }
 0x394   : > { %v21334_v9 = vpop.f32.mrf.mxu0  ;;  %25397 = vst [vmem:[#allocation113_spill] sm:$0xff] %v21349_v7 }
 0x395   : > { %v21358_v22 = vpop.f32.mrf.mxu1 }
 0x396   : > { %11247 = vrot.lane.b32.xlu1 %v10810_v54, %s25169_s22  ;;  %v21337_v40 = vpop.f32.mrf.mxu0  ;;  %25400 = vst [vmem:[#allocation116_spill] sm:$0xff] %v21358_v22 }
 0x397   : > { %10927 = vrot.lane.b32.xlu0 %v10810_v54, %s25173_s20  ;;  %v21371_v58 = vpop.f32.mrf.mxu1 }
 0x398   : > { %v21342_v18 = vpop.f32.mrf.mxu0  ;;  %25403 = vst [vmem:[#allocation119_spill] sm:$0xff] %v21371_v58 }
 0x399   : > { %v21385_v58 = vpop.f32.mrf.mxu1 }
 0x39a   : > { %11001 = vrot.lane.b32.xlu1 %v21240_v32, %s25379_s26  ;;  %v21346_v41 = vpop.f32.mrf.mxu0  ;;  %25406 = vst [vmem:[#allocation122_spill] sm:$0xff] %v21385_v58  ;;  %v25437_v58 = vld [vmem:[#allocation79_spill] sm:$0xff] }
 0x39b   : > { %11055 = vrot.lane.b32.xlu0 %v10810_v54, %s25175_s25  ;;  %v21394_v0 = vpop.f32.mrf.mxu1 }
 0x39c   : > { %v21351_v49 = vpop.f32.mrf.mxu0  ;;  %25409 = vst [vmem:[#allocation125_spill] sm:$0xff] %v21394_v0  ;;  %v25435_v0 = vld [vmem:[#allocation77_spill] sm:$0xff] }
 0x39d   : > { %25398 = vst [vmem:[#allocation114_spill] sm:$0xff] %v21351_v49 }
 0x39e   : > { %11129 = vrot.lane.b32.xlu1 %v21240_v32, %s25167_s28  ;;  %v21355_v28 = vpop.f32.mrf.mxu0  ;;  %s25419_s28 = smov 88  }
 0x39f   : > { %25399 = vst [vmem:[#allocation115_spill] sm:$0xff] %v21355_v28  ;;  %11183 = vrot.lane.b32.xlu0 %v10810_v54, %s25171_s21 }
 0x3a0   : > { %v21360_v14 = vpop.f32.mrf.mxu0 }
 0x3a1   : > { %25401 = vst [vmem:[#allocation117_spill] sm:$0xff] %v21360_v14  ;;  %v10834_v14 = vrot.slane %v21129_v37, %v21034_v31 }
 0x3a2   : > { %11257 = vrot.lane.b32.xlu1 %v21240_v32, %s25169_s22  ;;  %v21364_v33 = vpop.f32.mrf.mxu0  ;;  %s25423_s22 = smov 72  }
 0x3a3   : > { %25402 = vst [vmem:[#allocation118_spill] sm:$0xff] %v21364_v33  ;;  %10937 = vrot.lane.b32.xlu0 %v21240_v32, %s25173_s20  ;;  %v16345_v33 = vld [vmem:[%s25140_s9 + $0x20] sm:$0xff] }
 0x3a4   : > { %v21373_v54 = vpop.f32.mrf.mxu0  ;;  %18444 = vmatprep.subr.mxu0 %v16345_v33 }
 0x3a5   : > { %25404 = vst [vmem:[#allocation120_spill] sm:$0xff] %v21373_v54  ;;  %v21402_v54 = vpop.f32.mrf.mxu1 }
 0x3a6   : > { %10939 = vrot.lane.b32.xlu1 %v10834_v14, %s25173_s20  ;;  %v21381_v22 = vpop.f32.mrf.mxu0  ;;  %25413 = vst [vmem:[#allocation128_spill] sm:$0xff] %v21402_v54 }
 0x3a7   : > { %25405 = vst [vmem:[#allocation121_spill] sm:$0xff] %v21381_v22  ;;  %11065 = vrot.lane.b32.xlu0 %v21240_v32, %s25175_s25 }
 0x3a8   : > { %v21387_v28 = vpop.f32.mrf.mxu0 }
 0x3a9   : > { %25407 = vst [vmem:[#allocation123_spill] sm:$0xff] %v21387_v28 }
 0x3aa   : > { %11067 = vrot.lane.b32.xlu1 %v10834_v14, %s25175_s25  ;;  %v21390_v37 = vpop.f32.mrf.mxu0 }
 0x3ab   : > { %25408 = vst [vmem:[#allocation124_spill] sm:$0xff] %v21390_v37  ;;  %11193 = vrot.lane.b32.xlu0 %v21240_v32, %s25171_s21  ;;  %v21408_v37 = vrot.slane %v21048_v46, %v21034_v31 }
 0x3ac   : > { %v21396_v33 = vpop.f32.mrf.mxu0 }
 0x3ad   : > { %25410 = vst [vmem:[#allocation126_spill] sm:$0xff] %v21396_v33  ;;  %v21415_v33 = vpop.f32.mrf.mxu1 }
 0x3ae   : > { %11195 = vrot.lane.b32.xlu1 %v10834_v14, %s25171_s21  ;;  %v21399_v22 = vpop.f32.mrf.mxu0  ;;  %25416 = vst [vmem:[#allocation131_spill] sm:$0xff] %v21415_v33 }
 0x3af   : > { %25411 = vst [vmem:[#allocation127_spill] sm:$0xff] %v21399_v22  ;;  %10875 = vrot.lane.b32.xlu0 %v10834_v14, %s25412_s27  ;;  %v21424_v46 = vpop.f32.mrf.mxu1 }
 0x3b0   : > { %v21404_v28 = vpop.f32.mrf.mxu0  ;;  %25420 = vst [vmem:[#allocation134_spill] sm:$0xff] %v21424_v46 }
 0x3b1   : > { %25414 = vst [vmem:[#allocation129_spill] sm:$0xff] %v21404_v28  ;;  %v21433_v33 = vpop.f32.mrf.mxu1 }
 0x3b2   : > { %10943 = vrot.lane.b32.xlu1 %v21408_v37, %s25173_s20  ;;  %v21412_v32 = vpop.f32.mrf.mxu0  ;;  %25424 = vst [vmem:[#allocation137_spill] sm:$0xff] %v21433_v33  ;;  %v25434_v33 = vld [vmem:[#allocation18_spill] sm:$0xff] }
 0x3b3   : > { %25415 = vst [vmem:[#allocation130_spill] sm:$0xff] %v21412_v32  ;;  %11003 = vrot.lane.b32.xlu0 %v10834_v14, %s25379_s26 }
 0x3b4   : > { %v21417_v22 = vpop.f32.mrf.mxu0 }
 0x3b5   : > { %25417 = vst [vmem:[#allocation132_spill] sm:$0xff] %v21417_v22  ;;  %v21437_v22 = vrot.slane %v21084_v13, %v21034_v31  ;;  %v3955_v13 = vadd.f32 %v20958_v25, %v20130_v36  ;;  %v21471_v36 = vadd.f32 %v20705_v5, %v20418_v47  ;;  %v4005_v47 = vadd.f32 %v25435_v0, %v25434_v33  ;;  %v25436_v5 = vld [vmem:[#allocation17_spill] sm:$0xff]  ;;  %v25446_v33 = vld [vmem:[#allocation12_spill] sm:$0xff] }
 0x3b6   : > { %11071 = vrot.lane.b32.xlu1 %v21408_v37, %s25175_s25  ;;  %v21421_v54 = vpop.f32.mrf.mxu0 }
 0x3b7   : > { %25418 = vst [vmem:[#allocation133_spill] sm:$0xff] %v21421_v54  ;;  %11131 = vrot.lane.b32.xlu0 %v10834_v14, %s25419_s28  ;;  %v4468_v25 = vadd.f32 %v20540_v17, %v3955_v13  ;;  %v4015_v17 = vadd.f32 %v25437_v58, %v25436_v5  ;;  %v25438_v13 = vld [vmem:[#allocation26_spill] sm:$0xff]  ;;  %v25447_v58 = vld [vmem:[#allocation27_spill] sm:$0xff] }
 0x3b8   : > { %v21426_v28 = vpop.f32.mrf.mxu0 }
 0x3b9   : > { %25421 = vst [vmem:[#allocation135_spill] sm:$0xff] %v21426_v28  ;;  %v21447_v28 = vpop.f32.mrf.mxu1 }
 0x3ba   : > { %11199 = vrot.lane.b32.xlu1 %v21408_v37, %s25171_s21  ;;  %v21430_v32 = vpop.f32.mrf.mxu0  ;;  %25427 = vst [vmem:[#allocation140_spill] sm:$0xff] %v21447_v28  ;;  %v3975_v28 = vadd.f32 %v20977_v56, %v20163_v52  ;;  %v3985_v52 = vadd.f32 %v20987_v23, %v20187_v63  ;;  %v25432_v56 = vld [vmem:[#allocation75_spill] sm:$0xff]  ;;  %s25502_s21 = smov 80  }
 0x3bb   : > { %25422 = vst [vmem:[#allocation136_spill] sm:$0xff] %v21430_v32  ;;  %11259 = vrot.lane.b32.xlu0 %v10834_v14, %s25423_s22  ;;  %v21451_v14 = vrot.slane %v21076_v51, %v21034_v31  ;;  %v21467_v51 = vpop.f32.mrf.mxu1 }
 0x3bc   : > { %v21439_v54 = vpop.f32.mrf.mxu0  ;;  %25430 = vst [vmem:[#allocation143_spill] sm:$0xff] %v21467_v51 }
 0x3bd   : > { %25425 = vst [vmem:[#allocation138_spill] sm:$0xff] %v21439_v54  ;;  %v3965_v54 = vadd.f32 %v20968_v11, %v20147_v15  ;;  %v21478_v11 = vadd.f32 %v20718_v2, %v20432_v21  ;;  %v4856_v21 = vadd.f32 %v21045_v48, %v4468_v25  ;;  %v25441_v2 = vld [vmem:[#allocation19_spill] sm:$0xff]  ;;  %v21511_v48 = vpop.f32.mrf.mxu1  ;;  %v25451_v25 = vld [vmem:[#allocation13_spill] sm:$0xff] }
 0x3be   : > { %10861 = vrot.lane.b32.xlu1 %v21437_v22, %s25412_s27  ;;  %v21443_v46 = vpop.f32.mrf.mxu0  ;;  %25450 = vst [vmem:[#allocation77_spill] sm:$0xff] %v21511_v48 }
 0x3bf   : > { %25426 = vst [vmem:[#allocation139_spill] sm:$0xff] %v21443_v46  ;;  %10879 = vrot.lane.b32.xlu0 %v21408_v37, %s25412_s27 }
 0x3c0   : > { %v21455_v32 = vpop.f32.mrf.mxu0 }
 0x3c1   : > { %25428 = vst [vmem:[#allocation141_spill] sm:$0xff] %v21455_v32  ;;  %v25433_v32 = vld [vmem:[#allocation9_spill] sm:$0xff] }
 0x3c2   : > { %10865 = vrot.lane.b32.xlu1 %v21451_v14, %s25412_s27  ;;  %v21461_v46 = vpop.f32.mrf.mxu0  ;;  %v4470_v51 = vadd.f32 %v25433_v32, %v3965_v54  ;;  %v25443_v54 = vld [vmem:[#allocation20_spill] sm:$0xff] }
 0x3c3   : > { %25429 = vst [vmem:[#allocation142_spill] sm:$0xff] %v21461_v46  ;;  %11007 = vrot.lane.b32.xlu0 %v21408_v37, %s25379_s26  ;;  %v3995_v46 = vadd.f32 %v25432_v56, %v20207_v26  ;;  %v25442_v26 = vld [vmem:[#allocation11_spill] sm:$0xff]  ;;  %v25444_v32 = vld [vmem:[#allocation16_spill] sm:$0xff]  ;;  %v21506_v56 = vadd.f32 %v25447_v58, %v25446_v33 }
 0x3c4   : > { %v21474_v15 = vpop.f32.mrf.mxu0  ;;  %v21498_v23 = vadd.f32 %v25442_v26, %v25441_v2  ;;  %v21502_v0 = vadd.f32 %v25444_v32, %v25443_v54  ;;  %v25454_v2 = vld [vmem:[#allocation22_spill] sm:$0xff]  ;;  %v25455_v26 = vld [vmem:[#allocation29_spill] sm:$0xff]  ;;  %v4858_v33 = vadd.f32 %v21095_v24, %v4470_v51  ;;  %v25466_v24 = vld [vmem:[#allocation15_spill] sm:$0xff] }
 0x3c5   : > { %25431 = vst [vmem:[#allocation144_spill] sm:$0xff] %v21474_v15  ;;  %v25439_v15 = vld [vmem:[#allocation82_spill] sm:$0xff]  ;;  %25448 = vst [vmem:[#allocation18_spill] sm:$0xff] %v21506_v56  ;;  %v21519_v7 = vadd.f32 %v25455_v26, %v25454_v2  ;;  %v25457_v54 = vld [vmem:[#allocation21_spill] sm:$0xff]  ;;  %v4480_v51 = vadd.f32 %v25466_v24, %v4015_v17 }
 0x3c6   : > { %v4025_v55 = vadd.f32 %v25439_v15, %v25438_v13  ;;  %10989 = vrot.lane.b32.xlu1 %v21437_v22, %s25379_s26  ;;  %v21494_v63 = vpop.f32.mrf.mxu0  ;;  %25445 = vst [vmem:[#allocation9_spill] sm:$0xff] %v21502_v0  ;;  %v25449_v15 = vld [vmem:[#allocation10_spill] sm:$0xff]  ;;  %v25452_v13 = vld [vmem:[#allocation28_spill] sm:$0xff] }
 0x3c7   : > { %25440 = vst [vmem:[#allocation75_spill] sm:$0xff] %v21494_v63  ;;  %v4472_v5 = vadd.f32 %v25449_v15, %v3975_v28  ;;  %11135 = vrot.lane.b32.xlu0 %v21408_v37, %s25419_s28  ;;  %v21515_v63 = vadd.f32 %v25452_v13, %v25451_v25  ;;  %25456 = vst [vmem:[#allocation79_spill] sm:$0xff] %v21519_v7  ;;  %v25458_v32 = vld [vmem:[#allocation30_spill] sm:$0xff]  ;;  %v25461_v15 = vld [vmem:[#allocation31_spill] sm:$0xff] }
 0x3c8   : > { %v21523_v0 = vadd.f32 %v25458_v32, %v25457_v54  ;;  %v10984_v28 = vpop.permute.xlu1 %10983  ;;  %v21526_v58 = vpop.f32.mrf.mxu0  ;;  %v5244_v48 = vadd.f32 %v25461_v15, %v21043_v57  ;;  %v25462_v25 = vld [vmem:[#allocation23_spill] sm:$0xff]  ;;  %v25464_v26 = vld [vmem:[#allocation32_spill] sm:$0xff]  ;;  %v25465_v32 = vld [vmem:[#allocation14_spill] sm:$0xff] }
 0x3c9   : > { %25453 = vst [vmem:[#allocation17_spill] sm:$0xff] %v21515_v63  ;;  %25460 = vst [vmem:[#allocation82_spill] sm:$0xff] %v21526_v58  ;;  %v4860_v56 = vadd.f32 %v21127_v27, %v4472_v5  ;;  %v4474_v13 = vadd.f32 %v25462_v25, %v3985_v52  ;;  %v25463_v63 = vld [vmem:[#allocation24_spill] sm:$0xff]  ;;  %v10856_v2 = vpop.permute.xlu0 %10855  ;;  %v5243_v54 = vadd.f32 %v25464_v26, %v4856_v21  ;;  %v25467_v7 = vld [vmem:[#allocation25_spill] sm:$0xff] }
 0x3ca   : > { %25459 = vst [vmem:[#allocation26_spill] sm:$0xff] %v21523_v0  ;;  %v4476_v49 = vadd.f32 %v25463_v63, %v3995_v46  ;;  %11031 = vst.msk [vmem:[#allocation4 + $0x3] sm:$0x1] %vm523_vm5, %v10984_v28  ;;  %v4478_v0 = vadd.f32 %v25465_v32, %v4005_v47  ;;  %v4482_v58 = vadd.f32 %v25467_v7, %v4025_v55  ;;  %11117 = vrot.lane.b32.xlu1 %v21437_v22, %s25419_s28  ;;  %v21541_v57 = vpop.f32.mrf.mxu0  ;;  %v21555_v55 = vpop.f32.mrf.mxu1  ;;  %v25468_v7 = vld [vmem:[#allocation33_spill] sm:$0xff]  ;;  %v25469_v21 = vld [vmem:[#allocation34_spill] sm:$0xff] }
 0x3cb   : > { %10903 = vst.msk [vmem:[#allocation4 + $0x1] sm:$0x1] %vm523_vm5, %v10856_v2  ;;  %v21545_v27 = vrot.slane %v21080_v34, %v21034_v31  ;;  %v21549_v46 = vrot.slane %v21101_v42, %v21034_v31  ;;  %v4862_v52 = vadd.f32 %v21158_v6, %v4474_v13  ;;  %v5631_v47 = vadd.f32 %v21325_v8, %v5244_v48  ;;  %v25470_v6 = vld [vmem:[#allocation35_spill] sm:$0xff]  ;;  %v25471_v48 = vld [vmem:[#allocation36_spill] sm:$0xff]  ;;  %v25478_v32 = vld [vmem:[#allocation42_spill] sm:$0xff] }
 0x3cc   : > { %11263 = vrot.lane.b32.xlu0 %v21408_v37, %s25423_s22  ;;  %v5246_v17 = vadd.f32 %v25468_v7, %v21116_v62  ;;  %v5245_v63 = vadd.f32 %v25469_v21, %v4858_v33  ;;  %v4864_v34 = vadd.f32 %v21181_v30, %v4476_v49  ;;  %v4866_v5 = vadd.f32 %v21197_v43, %v4478_v0  ;;  %v11112_v42 = vpop.permute.xlu1 %11111  ;;  %v21562_v28 = vpop.f32.mrf.mxu0  ;;  %v25472_v30 = vld [vmem:[#allocation37_spill] sm:$0xff]  ;;  %v25474_v33 = vld [vmem:[#allocation39_spill] sm:$0xff]  ;;  %v25476_v2 = vld [vmem:[#allocation40_spill] sm:$0xff] }
 0x3cd   : > { %v5248_v8 = vadd.f32 %v25470_v6, %v21120_v53  ;;  %v5247_v15 = vadd.f32 %v25471_v48, %v4860_v56  ;;  %v5630_v37 = vadd.f32 %v21328_v20, %v5243_v54  ;;  %11159 = vst.msk [vmem:[#allocation4 + $0x5] sm:$0x1] %vm523_vm5, %v11112_v42  ;;  %v10872_v25 = vpop.permute.xlu0 %10871  ;;  %v21571_v62 = vrot.slane %v21069_v60, %v21034_v31  ;;  %v25473_v60 = vld [vmem:[#allocation38_spill] sm:$0xff]  ;;  %v25480_v7 = vld [vmem:[#allocation64_spill] sm:$0xff]  ;;  %v25482_v6 = vld [vmem:[#allocation45_spill] sm:$0xff] }
 0x3ce   : > { %v5250_v43 = vadd.f32 %v25472_v30, %v21152_v4  ;;  %v4868_v49 = vadd.f32 %v21214_v38, %v4480_v51  ;;  %v4870_v0 = vadd.f32 %v21229_v19, %v4482_v58  ;;  %10911 = vst.msk [vmem:[#allocation4 + $0x41] sm:$0x1] %vm523_vm5, %v10872_v25  ;;  %11245 = vrot.lane.b32.xlu1 %v21437_v22, %s25423_s22  ;;  %v21580_v53 = vpop.f32.mrf.mxu0  ;;  %v25475_v38 = vld [vmem:[#allocation63_spill] sm:$0xff]  ;;  %v21595_v58 = vpop.f32.mrf.mxu1  ;;  %v25481_v42 = vld [vmem:[#allocation44_spill] sm:$0xff]  ;;  %v25485_v25 = vld [vmem:[#allocation65_spill] sm:$0xff] }
 0x3cf   : > { %v21584_v20 = vrot.slane %v21140_v44, %v21034_v31  ;;  %v5249_v56 = vadd.f32 %v25473_v60, %v4862_v52  ;;  %v21589_v4 = vadd.f32 %v25474_v33, %v21177_v35  ;;  %v6019_v13 = vadd.f32 %v25475_v38, %v5631_v47  ;;  %v25477_v44 = vld [vmem:[#allocation41_spill] sm:$0xff]  ;;  %v25479_v52 = vld [vmem:[#allocation43_spill] sm:$0xff] }
 0x3d0   : > { %v5633_v19 = vadd.f32 %v21334_v9, %v5246_v17  ;;  %10867 = vrot.lane.b32.xlu0 %v21545_v27, %s25412_s27  ;;  %v21598_v26 = vadd.f32 %v25476_v2, %v4864_v34  ;;  %v21602_v54 = vadd.f32 %v25477_v44, %v21193_v59  ;;  %v21605_v24 = vadd.f32 %v25478_v32, %v4866_v5  ;;  %v11240_v51 = vpop.permute.xlu1 %11239  ;;  %v18148_v9 = vpop.f32.mrf.mxu0  ;;  %v25487_v33 = vld [vmem:[#allocation49_spill] sm:$0xff]  ;;  %v25488_v44 = vld [vmem:[#allocation66_spill] sm:$0xff] }
 0x3d1   : > { %v4872_v35 = vadd.f32 %v21247_v39, %v21471_v36  ;;  %v21611_v47 = vadd.f32 %v25479_v52, %v21209_v50  ;;  %v6018_v17 = vadd.f32 %v25480_v7, %v5630_v37  ;;  %v5632_v21 = vadd.f32 %v21337_v40, %v5245_v63  ;;  %11287 = vst.msk [vmem:[#allocation4 + $0x7] sm:$0x1] %vm523_vm5, %v11240_v51  ;;  %v10920_v59 = vpop.permute.xlu0 %10919  ;;  %v25483_v36 = vld [vmem:[#allocation46_spill] sm:$0xff]  ;;  %v21632_v40 = vld [vmem:[%s25139_s8] ss:$0 sm:$0xff] }
 0x3d2   : > { %v6406_v34 = vadd.f32 %v18148_v9, %v6019_v13  ;;  %v21617_v5 = vadd.f32 %v25481_v42, %v4868_v49  ;;  %v21621_v39 = vadd.f32 %v25482_v6, %v21225_v61  ;;  %v21624_v48 = vadd.f32 %v25483_v36, %v4870_v0  ;;  %10967 = vst.msk [vmem:[#allocation4 + $0x2] sm:$0x1] %vm523_vm5, %v10920_v59  ;;  %v6246_v63 = vpop.f32.mrf.mxu0  ;;  %v25484_v61 = vld [vmem:[#allocation47_spill] sm:$0xff]  ;;  %v25486_v0 = vld [vmem:[#allocation48_spill] sm:$0xff]  ;;  %v25491_v7 = vld [vmem:[#allocation114_spill] sm:$0xff] }
 0x3d3   : > { %v4874_v50 = vadd.f32 %v21259_v1, %v21478_v11  ;;  %10993 = vrot.lane.b32.xlu1 %v21451_v14, %s25379_s26  ;;  %v21638_v37 = vadd.f32 %v25484_v61, %v21243_v29  ;;  %v6021_v30 = vadd.f32 %v25485_v25, %v5633_v19  ;;  %v6405_v1 = vadd.f32 %v6246_v63, %v6018_v17  ;;  %v21644_v11 = vpop.f32.mrf.mxu1  ;;  %v25495_v36 = vld [vmem:[#allocation67_spill] sm:$0xff]  ;;  %v25496_v63 = vld [vmem:[#allocation68_spill] sm:$0xff] }
 0x3d4   : > { %v6793_v49 = vadd.f32 %v21332_v16, %v6406_v34  ;;  %10925 = vrot.lane.b32.xlu0 %v21437_v22, %s25173_s20  ;;  %v21647_v60 = vadd.f32 %v25486_v0, %v4872_v35  ;;  %v21651_v38 = vadd.f32 %v25487_v33, %v21256_v12  ;;  %v5635_v29 = vadd.f32 %v21342_v18, %v5248_v8  ;;  %v21658_v16 = vld [vmem:[%s25139_s8 + $0x1] ss:$0 sm:$0xff]  ;;  %v11000_v19 = vpop.permute.xlu1 %10999  ;;  %v18151_v2 = vpop.f32.mrf.mxu0  ;;  %v25489_v18 = vld [vmem:[#allocation50_spill] sm:$0xff]  ;;  %v25492_v34 = vld [vmem:[#allocation113_spill] sm:$0xff] }
 0x3d5   : > { %v5634_v13 = vadd.f32 %v21346_v41, %v5247_v15  ;;  %v6020_v32 = vadd.f32 %v25488_v44, %v5632_v21  ;;  %v6792_v51 = vadd.f32 %v21340_v10, %v6405_v1  ;;  %11039 = vst.msk [vmem:[#allocation4 + $0x43] sm:$0x1] %vm523_vm5, %v11000_v19  ;;  %v11048_v12 = vpop.permute.xlu0 %11047  ;;  %v6408_v9 = vadd.f32 %v18151_v2, %v6021_v30  ;;  %v25490_v41 = vld [vmem:[#allocation51_spill] sm:$0xff]  ;;  %v21682_v6 = vpop.f32.mrf.mxu1  ;;  %v25498_v2 = vld [vmem:[#allocation116_spill] sm:$0xff] }
 0x3d6   : > { %v6830_v35 = vmul.f32 %v21632_v40, %v6793_v49  ;;  %v21665_v8 = vadd.f32 %v25489_v18, %v4874_v50  ;;  %v21669_v15 = vadd.f32 %v25490_v41, %v21267_v45  ;;  %v4876_v52 = vadd.f32 %v21270_v3, %v21498_v23  ;;  %11095 = vst.msk [vmem:[#allocation4 + $0x4] sm:$0x1] %vm523_vm5, %v11048_v12  ;;  %v6256_v10 = vpop.f32.mrf.mxu0  ;;  %v25493_v3 = vld [vmem:[#allocation9_spill] sm:$0xff]  ;;  %v25494_v23 = vld [vmem:[#allocation99_spill] sm:$0xff] }
 0x3d7   : > { %v5637_v17 = vadd.f32 %v25491_v7, %v5250_v43  ;;  %11121 = vrot.lane.b32.xlu1 %v21451_v14, %s25419_s28  ;;  %v6829_v59 = vmul.f32 %v21632_v40, %v6792_v51  ;;  %v6795_v42 = vadd.f32 %v25492_v34, %v6408_v9  ;;  %v6407_v45 = vadd.f32 %v6256_v10, %v6020_v32  ;;  %v25497_v25 = vld [vmem:[#allocation115_spill] sm:$0xff]  ;;  %v21707_v10 = vpop.f32.mrf.mxu1  ;;  %v25505_v34 = vld [vmem:[#allocation54_spill] sm:$0xff] }
 0x3d8   : > { %v6867_v21 = vadd.f32 %v21658_v16, %v6830_v35  ;;  %11053 = vrot.lane.b32.xlu0 %v21437_v22, %s25175_s25  ;;  %v4878_v43 = vadd.f32 %v25494_v23, %v25493_v3  ;;  %v6023_v50 = vadd.f32 %v25495_v36, %v5635_v29  ;;  %v6022_v61 = vadd.f32 %v25496_v63, %v5634_v13  ;;  %v11128_v49 = vpop.permute.xlu1 %11127  ;;  %v18154_v1 = vpop.f32.mrf.mxu0  ;;  %v25499_v35 = vld [vmem:[#allocation52_spill] sm:$0xff]  ;;  %v25500_v29 = vld [vmem:[#allocation69_spill] sm:$0xff]  ;;  %v25507_v23 = vld [vmem:[#allocation119_spill] sm:$0xff] }
 0x3d9   : > { %v5636_v30 = vadd.f32 %v25497_v25, %v5249_v56  ;;  %v6866_v33 = vadd.f32 %v21658_v16, %v6829_v59  ;;  %v6832_v19 = vmul.f32 %v21632_v40, %v6795_v42  ;;  %v6794_v44 = vadd.f32 %v25498_v2, %v6407_v45  ;;  %11167 = vst.msk [vmem:[#allocation4 + $0x45] sm:$0x1] %vm523_vm5, %v11128_v49  ;;  %v11176_v32 = vpop.permute.xlu0 %11175  ;;  %v25501_v13 = vld [vmem:[#allocation117_spill] sm:$0xff]  ;;  %v25506_v45 = vld [vmem:[#allocation70_spill] sm:$0xff]  ;;  %v25511_v2 = vld [vmem:[#allocation120_spill] sm:$0xff] }
 0x3da   : > { %v6899_v0 = vmax.f32 %v6867_v21, 0.0  ;;  %v21694_v51 = vadd.f32 %v25499_v35, %v4876_v52  ;;  %v6025_v12 = vadd.f32 %v25500_v29, %v5637_v17  ;;  %v5639_v56 = vadd.f32 %v25501_v13, %v21589_v4  ;;  %11223 = vst.msk [vmem:[#allocation4 + $0x6] sm:$0x1] %vm523_vm5, %v11176_v32  ;;  %v6266_v18 = vpop.f32.mrf.mxu0  ;;  %v25503_v4 = vld [vmem:[#allocation98_spill] sm:$0xff]  ;;  %v25504_v21 = vld [vmem:[#allocation53_spill] sm:$0xff] }
 0x3db   : > { %v6410_v9 = vadd.f32 %v18154_v1, %v6023_v50  ;;  %11249 = vrot.lane.b32.xlu1 %v21451_v14, %s25423_s22  ;;  %v6898_v41 = vmax.f32 %v6866_v33, 0.0  ;;  %v6869_v7 = vadd.f32 %v21658_v16, %v6832_v19  ;;  %v6831_v52 = vmul.f32 %v21632_v40, %v6794_v44  ;;  %v25509_v33 = vld [vmem:[#allocation71_spill] sm:$0xff]  ;;  %v25510_v19 = vld [vmem:[#allocation118_spill] sm:$0xff]  ;;  %v25512_v13 = vld [vmem:[#allocation125_spill] sm:$0xff] }
 0x3dc   : > { %6932 = vst.msk [vmem:[#allocation3 + $0x21] sm:$0xff] %vm514_vm0, %v6899_v0  ;;  %11181 = vrot.lane.b32.xlu0 %v21437_v22, %s25502_s21  ;;  %v6409_v17 = vadd.f32 %v6266_v18, %v6022_v61  ;;  %v21711_v59 = vadd.f32 %v25504_v21, %v25503_v4  ;;  %v21714_v42 = vadd.f32 %v25505_v34, %v4878_v43  ;;  %v11256_v50 = vpop.permute.xlu1 %11255  ;;  %v18157_v63 = vpop.f32.mrf.mxu0  ;;  %v25508_v61 = vld [vmem:[#allocation122_spill] sm:$0xff]  ;;  %v25514_v18 = vld [vmem:[#allocation55_spill] sm:$0xff]  ;;  %v25517_v4 = vld [vmem:[#allocation121_spill] sm:$0xff] }
 0x3dd   : > { %v6024_v3 = vadd.f32 %v25506_v45, %v5636_v30  ;;  %v6797_v36 = vadd.f32 %v25507_v23, %v6410_v9  ;;  %6931 = vst.msk [vmem:[#allocation3 + $0x19] sm:$0xff] %vm514_vm0, %v6898_v41  ;;  %v6901_v25 = vmax.f32 %v6869_v7, 0.0  ;;  %v6868_v22 = vadd.f32 %v21658_v16, %v6831_v52  ;;  %v10936_v1 = vpop.permute.xlu0 %10935  ;;  %v25513_v9 = vld [vmem:[#allocation101_spill] sm:$0xff]  ;;  %v25515_v7 = vld [vmem:[#allocation18_spill] sm:$0xff] }
 0x3de   : > { %v6796_v49 = vadd.f32 %v25508_v61, %v6409_v17  ;;  %11295 = vst.msk [vmem:[#allocation4 + $0x47] sm:$0x1] %vm523_vm5, %v11256_v50  ;;  %v6412_v0 = vadd.f32 %v18157_v63, %v6025_v12  ;;  %v6027_v43 = vadd.f32 %v25509_v33, %v5639_v56  ;;  %v5638_v30 = vadd.f32 %v25510_v19, %v21598_v26  ;;  %v6276_v35 = vpop.f32.mrf.mxu0  ;;  %v25516_v52 = vld [vmem:[#allocation102_spill] sm:$0xff]  ;;  %v25518_v50 = vld [vmem:[#allocation128_spill] sm:$0xff] }
 0x3df   : > { %v5641_v44 = vadd.f32 %v25511_v2, %v21602_v54  ;;  %v6834_v32 = vmul.f32 %v21632_v40, %v6797_v36  ;;  %10975 = vst.msk [vmem:[#allocation4 + $0x42] sm:$0x1] %vm523_vm5, %v10936_v1  ;;  %10995 = vrot.lane.b32.xlu1 %v21545_v27, %s25379_s26  ;;  %v6900_v29 = vmax.f32 %v6868_v22, 0.0  ;;  %v6411_v26 = vadd.f32 %v6276_v35, %v6024_v3  ;;  %v21736_v54 = vpop.f32.mrf.mxu1  ;;  %v25519_v61 = vld [vmem:[#allocation72_spill] sm:$0xff]  ;;  %v25520_v1 = vld [vmem:[#allocation73_spill] sm:$0xff]  ;;  %v25522_v35 = vld [vmem:[#allocation131_spill] sm:$0xff] }
 0x3e0   : > { %6934 = vst.msk [vmem:[#allocation3 + $0x39] sm:$0xff] %vm514_vm0, %v6901_v25  ;;  %v6833_v12 = vmul.f32 %v21632_v40, %v6796_v49  ;;  %v6799_v56 = vadd.f32 %v25512_v13, %v6412_v0  ;;  %10929 = vrot.lane.b32.xlu0 %v21451_v14, %s25173_s20  ;;  %v21740_v41 = vadd.f32 %v25514_v18, %v25513_v9  ;;  %v10860_v45 = vpop.permute.xlu1 %10859  ;;  %v18160_v23 = vpop.f32.mrf.mxu0  ;;  %v25521_v0 = vld [vmem:[#allocation123_spill] sm:$0xff]  ;;  %v25525_v9 = vld [vmem:[#allocation124_spill] sm:$0xff]  ;;  %s25538_s20 = smov 112  }
 0x3e1   : > { %v4880_v17 = vadd.f32 %v25516_v52, %v25515_v7  ;;  %v5640_v21 = vadd.f32 %v25517_v4, %v21605_v24  ;;  %v6871_v34 = vadd.f32 %v21658_v16, %v6834_v32  ;;  %6933 = vst.msk [vmem:[#allocation3 + $0x31] sm:$0xff] %vm514_vm0, %v6900_v29  ;;  %v6798_v63 = vadd.f32 %v25518_v50, %v6411_v26  ;;  %v11064_v25 = vpop.permute.xlu0 %11063  ;;  %v21762_v32 = vld [vmem:[%s25140_s9 + $0x28] sm:$0xff] }
 0x3e2   : > { %v6870_v3 = vadd.f32 %v21658_v16, %v6833_v12  ;;  %v6836_v36 = vmul.f32 %v21632_v40, %v6799_v56  ;;  %10905 = vst.msk [vmem:[#allocation4 + $0x11] sm:$0x1] %vm523_vm5, %v10860_v45  ;;  %v6414_v22 = vadd.f32 %v18160_v23, %v6027_v43  ;;  %v6026_v49 = vadd.f32 %v25519_v61, %v5638_v30  ;;  %v6286_v2 = vpop.f32.mrf.mxu0  ;;  %v25523_v12 = vld [vmem:[#allocation56_spill] sm:$0xff]  ;;  %v25524_v56 = vld [vmem:[#allocation74_spill] sm:$0xff] }
 0x3e3   : > { %v6029_v24 = vadd.f32 %v25520_v1, %v5641_v44  ;;  %v5643_v33 = vadd.f32 %v25521_v0, %v21611_v47  ;;  %v6903_v19 = vmax.f32 %v6871_v34, 0.0  ;;  %11103 = vst.msk [vmem:[#allocation4 + $0x44] sm:$0x1] %vm523_vm5, %v11064_v25  ;;  %11123 = vrot.lane.b32.xlu1 %v21545_v27, %s25419_s28  ;;  %v6835_v44 = vmul.f32 %v21632_v40, %v6798_v63  ;;  %v21769_v47 = vpop.f32.mrf.mxu1  ;;  %v6999_v50 = vld [vmem:[#allocation3 + $0x21] sm:$0xff] }
 0x3e4   : > { %v6902_v43 = vmax.f32 %v6870_v3, 0.0  ;;  %v6873_v30 = vadd.f32 %v21658_v16, %v6836_v36  ;;  %v6801_v29 = vadd.f32 %v25522_v35, %v6414_v22  ;;  %11057 = vrot.lane.b32.xlu0 %v21451_v14, %s25175_s25  ;;  %18494 = vmatprep.subr.mxu1 %v21762_v32  ;;  %v21773_v13 = vadd.f32 %v25523_v12, %v4880_v17  ;;  %v10874_v52 = vpop.permute.xlu1 %10873  ;;  %v18163_v4 = vpop.f32.mrf.mxu0  ;;  %v6998_v34 = vld [vmem:[#allocation3 + $0x19] sm:$0xff]  ;;  %v25526_v63 = vld [vmem:[#allocation76_spill] sm:$0xff] }
 0x3e5   : > { %v6028_v26 = vadd.f32 %v25524_v56, %v5640_v21  ;;  %v5642_v18 = vadd.f32 %v25525_v9, %v21617_v5  ;;  %6936 = vst.msk [vmem:[#allocation3 + $0x51] sm:$0xff] %vm514_vm0, %v6903_v19  ;;  %v6413_v7 = vadd.f32 %v6286_v2, %v6026_v49  ;;  %v21779_v45 = vld [vmem:[#allocation3 + $0x18] sm:$0xff]  ;;  %v21781_v23 = vld [vmem:[#allocation3 + $0x20] sm:$0xff]  ;;  %v6872_v17 = vadd.f32 %v21658_v16, %v6835_v44  ;;  %v11192_v36 = vpop.permute.xlu0 %11191  ;;  %v25529_v2 = vld [vmem:[#allocation137_spill] sm:$0xff] }
 0x3e6   : > { %6935 = vst.msk [vmem:[#allocation3 + $0x49] sm:$0xff] %vm514_vm0, %v6902_v43  ;;  %v6905_v3 = vmax.f32 %v6873_v30, 0.0  ;;  %v6838_v21 = vmul.f32 %v21632_v40, %v6801_v29  ;;  %v6416_v5 = vadd.f32 %v18163_v4, %v6029_v24  ;;  %18249 = vmatprep.mubr.msk.f32.mxu0 %vm514_vm0, %v6998_v34  ;;  %18299 = vmatprep.mubr.msk.f32.mxu1 %vm514_vm0, %v21779_v45  ;;  %v25527_v22 = vld [vmem:[#allocation126_spill] sm:$0xff]  ;;  %v6296_v0 = vpop.f32.mrf.mxu0  ;;  %v21805_v43 = vpop.f32.mrf.mxu1  ;;  %v25530_v30 = vld [vmem:[#allocation17_spill] sm:$0xff]  ;;  %v25533_v56 = vld [vmem:[#allocation127_spill] sm:$0xff] }
 0x3e7   : > { %10912 = vst.msk [vmem:[#allocation4 + $0x49] sm:$0x1] %vm523_vm5, %v10874_v52  ;;  %v6031_v25 = vadd.f32 %v25526_v63, %v5643_v33  ;;  %v5645_v61 = vadd.f32 %v25527_v22, %v21621_v39  ;;  %v25528_v49 = vld [vmem:[#allocation134_spill] sm:$0xff]  ;;  %11231 = vst.msk [vmem:[#allocation4 + $0x46] sm:$0x1] %vm523_vm5, %v11192_v36  ;;  %11251 = vrot.lane.b32.xlu1 %v21545_v27, %s25423_s22  ;;  %18250 = vmatmul.mubr.msk.f32.gmra.mxu0 %vm514_vm0, %v6999_v50  ;;  %v6904_v24 = vmax.f32 %v6872_v17, 0.0 }
 0x3e8   : > { %v6800_v1 = vadd.f32 %v25528_v49, %v6413_v7  ;;  %6938 = vst.msk [vmem:[#allocation3 + $0x69] sm:$0xff] %vm514_vm0, %v6905_v3  ;;  %v6875_v19 = vadd.f32 %v21658_v16, %v6838_v21  ;;  %v6803_v33 = vadd.f32 %v25529_v2, %v6416_v5  ;;  %11185 = vrot.lane.b32.xlu0 %v21451_v14, %s25502_s21  ;;  %v25531_v44 = vld [vmem:[#allocation105_spill] sm:$0xff]  ;;  %v25532_v29 = vld [vmem:[#allocation78_spill] sm:$0xff]  ;;  %v10986_v52 = vpop.permute.xlu1 %10985  ;;  %v18166_v4 = vpop.f32.mrf.mxu0  ;;  %v25534_v17 = vld [vmem:[#allocation140_spill] sm:$0xff] }
 0x3e9   : > { %v6415_v39 = vadd.f32 %v6296_v0, %v6028_v26  ;;  %18300 = vmatmul.mubr.msk.f32.gmra.mxu1 %vm514_vm0, %v21781_v23  ;;  %v21809_v35 = vadd.f32 %v25531_v44, %v25530_v30  ;;  %v6030_v12 = vadd.f32 %v25532_v29, %v5642_v18  ;;  %v5644_v9 = vadd.f32 %v25533_v56, %v21624_v48  ;;  %v7000_v14 = vld [vmem:[#allocation3 + $0x31] sm:$0xff]  ;;  %v10858_v18 = vpop.permute.xlu0 %10857  ;;  %v7001_v48 = vld [vmem:[#allocation3 + $0x39] sm:$0xff]  ;;  %v21840_v2 = vpop.f32.mrf.mxu1  ;;  %v25541_v29 = vld [vmem:[#allocation132_spill] sm:$0xff] }
 0x3ea   : > { %v6837_v7 = vmul.f32 %v21632_v40, %v6800_v1  ;;  %v21815_v26 = vld [vmem:[#allocation3 + $0x30] sm:$0xff]  ;;  %6937 = vst.msk [vmem:[#allocation3 + $0x61] sm:$0xff] %vm514_vm0, %v6904_v24  ;;  %v6907_v34 = vmax.f32 %v6875_v19, 0.0  ;;  %v6840_v3 = vmul.f32 %v21632_v40, %v6803_v33  ;;  %v6418_v36 = vadd.f32 %v18166_v4, %v6031_v25  ;;  %18252 = vmatprep.mubr.msk.f32.mxu0 %vm514_vm0, %v7000_v14  ;;  %v21824_v5 = vld [vmem:[#allocation3 + $0x38] sm:$0xff]  ;;  %v6306_v25 = vpop.f32.mrf.mxu0  ;;  %v25539_v33 = vld [vmem:[#allocation83_spill] sm:$0xff] }
 0x3eb   : > { %v6802_v21 = vadd.f32 %v25534_v17, %v6415_v39  ;;  %11032 = vst.msk [vmem:[#allocation4 + $0xb] sm:$0x1] %vm523_vm5, %v10986_v52  ;;  %18302 = vmatprep.mubr.msk.f32.mxu1 %vm514_vm0, %v21815_v26  ;;  %v25535_v50 = vld [vmem:[#allocation81_spill] sm:$0xff]  ;;  %10904 = vst.msk [vmem:[#allocation4 + $0x9] sm:$0x1] %vm523_vm5, %v10858_v18  ;;  %10877 = vrot.lane.b32.xlu1 %v21584_v20, %s25412_s27  ;;  %v6032_v39 = vadd.f32 %v25539_v33, %v5644_v9  ;;  %v25540_v30 = vld [vmem:[#allocation130_spill] sm:$0xff] }
 0x3ec   : > { %v6033_v63 = vadd.f32 %v25535_v50, %v5645_v61  ;;  %v25536_v22 = vld [vmem:[#allocation129_spill] sm:$0xff]  ;;  %v6874_v1 = vadd.f32 %v21658_v16, %v6837_v7  ;;  %18253 = vmatmul.mubr.msk.f32.gmra.mxu0 %vm514_vm0, %v7001_v48  ;;  %6940 = vst.msk [vmem:[#allocation3 + $0x81] sm:$0xff] %vm514_vm0, %v6907_v34  ;;  %v6877_v0 = vadd.f32 %v21658_v16, %v6840_v3  ;;  %v25537_v61 = vld [vmem:[#allocation143_spill] sm:$0xff]  ;;  %v11114_v52 = vpop.permute.xlu1 %11113  ;;  %v18169_v4 = vpop.f32.mrf.mxu0 }
 0x3ed   : > { %v5647_v49 = vadd.f32 %v25536_v22, %v21638_v37  ;;  %v6839_v24 = vmul.f32 %v21632_v40, %v6802_v21  ;;  %v6805_v19 = vadd.f32 %v25537_v61, %v6418_v36  ;;  %10931 = vrot.lane.b32.xlu0 %v21545_v27, %s25538_s20  ;;  %v6417_v37 = vadd.f32 %v6306_v25, %v6030_v12  ;;  %v7002_v14 = vld [vmem:[#allocation3 + $0x49] sm:$0xff] }
 0x3ee   : > { %v5646_v44 = vadd.f32 %v25540_v30, %v21647_v60  ;;  %v5649_v56 = vadd.f32 %v25541_v29, %v21651_v38  ;;  %v6906_v7 = vmax.f32 %v6874_v1, 0.0  ;;  %18303 = vmatmul.mubr.msk.f32.gmra.mxu1 %vm514_vm0, %v21824_v5  ;;  %v21849_v34 = vld [vmem:[#allocation3 + $0x48] sm:$0xff]  ;;  %v6909_v12 = vmax.f32 %v6877_v0, 0.0  ;;  %v25542_v17 = vld [vmem:[#allocation77_spill] sm:$0xff]  ;;  %11160 = vst.msk [vmem:[#allocation4 + $0xd] sm:$0x1] %vm523_vm5, %v11114_v52  ;;  %v10864_v60 = vpop.permute.xlu0 %10863  ;;  %18255 = vmatprep.mubr.msk.f32.mxu0 %vm514_vm0, %v7002_v14  ;;  %v6316_v0 = vpop.f32.mrf.mxu0 }
 0x3ef   : > { %v6876_v3 = vadd.f32 %v21658_v16, %v6839_v24  ;;  %v6842_v9 = vmul.f32 %v21632_v40, %v6805_v19  ;;  %v6804_v21 = vadd.f32 %v25542_v17, %v6417_v37  ;;  %18305 = vmatprep.mubr.msk.f32.mxu1 %vm514_vm0, %v21849_v34  ;;  %v7003_v38 = vld [vmem:[#allocation3 + $0x51] sm:$0xff]  ;;  %v25543_v36 = vld [vmem:[#allocation104_spill] sm:$0xff]  ;;  %10907 = vst.msk [vmem:[#allocation4 + $0x21] sm:$0x1] %vm523_vm5, %v10864_v60  ;;  %v21875_v37 = vpop.f32.mrf.mxu1 }
 0x3f0   : > { %v21858_v18 = vld [vmem:[#allocation3 + $0x50] sm:$0xff]  ;;  %6939 = vst.msk [vmem:[#allocation3 + $0x79] sm:$0xff] %vm514_vm0, %v6906_v7  ;;  %v6420_v25 = vadd.f32 %v18169_v4, %v6033_v63  ;;  %11005 = vrot.lane.b32.xlu1 %v21584_v20, %s25379_s26  ;;  %18256 = vmatmul.mubr.msk.f32.gmra.mxu0 %vm514_vm0, %v7003_v38  ;;  %6942 = vst.msk [vmem:[#allocation3 + $0x99] sm:$0xff] %vm514_vm0, %v6909_v12  ;;  %v25546_v63 = vld [vmem:[#allocation58_spill] sm:$0xff]  ;;  %v11242_v14 = vpop.permute.xlu1 %11241  ;;  %v18172_v12 = vpop.f32.mrf.mxu0 }
 0x3f1   : > { %v25544_v48 = vld [vmem:[#allocation57_spill] sm:$0xff]  ;;  %v6908_v24 = vmax.f32 %v6876_v3, 0.0  ;;  %v6879_v61 = vadd.f32 %v21658_v16, %v6842_v9  ;;  %v6841_v19 = vmul.f32 %v21632_v40, %v6804_v21  ;;  %11059 = vrot.lane.b32.xlu0 %v21545_v27, %s25175_s25  ;;  %v21879_v33 = vadd.f32 %v25546_v63, %v21809_v35  ;;  %v25547_v30 = vld [vmem:[#allocation86_spill] sm:$0xff]  ;;  %v25548_v7 = vld [vmem:[#allocation87_spill] sm:$0xff]  ;;  %11288 = vst.msk [vmem:[#allocation4 + $0xf] sm:$0x1] %vm523_vm5, %v11242_v14 }
 0x3f2   : > { %v21862_v50 = vadd.f32 %v25544_v48, %v25543_v36  ;;  %v25545_v22 = vld [vmem:[#allocation85_spill] sm:$0xff]  ;;  %v6034_v29 = vadd.f32 %v25547_v30, %v5646_v44  ;;  %v6037_v52 = vadd.f32 %v25548_v7, %v5649_v56  ;;  %v6807_v4 = vadd.f32 %v21555_v55, %v6420_v25  ;;  %18306 = vmatmul.mubr.msk.f32.gmra.mxu1 %vm514_vm0, %v21858_v18  ;;  %v7004_v3 = vld [vmem:[#allocation3 + $0x61] sm:$0xff]  ;;  %v10922_v44 = vpop.permute.xlu0 %10921 }
 0x3f3   : > { %v6035_v1 = vadd.f32 %v25545_v22, %v5647_v49  ;;  %v6419_v49 = vadd.f32 %v6316_v0, %v6032_v39  ;;  %v21886_v9 = vld [vmem:[#allocation3 + $0x60] sm:$0xff]  ;;  %6941 = vst.msk [vmem:[#allocation3 + $0x91] sm:$0xff] %vm514_vm0, %v6908_v24  ;;  %v6911_v39 = vmax.f32 %v6879_v61, 0.0  ;;  %v6878_v35 = vadd.f32 %v21658_v16, %v6841_v19  ;;  %18258 = vmatprep.mubr.msk.f32.mxu0 %vm514_vm0, %v7004_v3  ;;  %v7005_v55 = vld [vmem:[#allocation3 + $0x69] sm:$0xff]  ;;  %v6326_v22 = vpop.f32.mrf.mxu0  ;;  %v21911_v0 = vpop.f32.mrf.mxu1 }
 0x3f4   : > { %18308 = vmatprep.mubr.msk.f32.mxu1 %vm514_vm0, %v21886_v9  ;;  %v21895_v21 = vld [vmem:[#allocation3 + $0x68] sm:$0xff]  ;;  %v25549_v60 = vld [vmem:[#allocation133_spill] sm:$0xff]  ;;  %v25550_v36 = vld [vmem:[#allocation135_spill] sm:$0xff]  ;;  %10968 = vst.msk [vmem:[#allocation4 + $0xa] sm:$0x1] %vm523_vm5, %v10922_v44  ;;  %11133 = vrot.lane.b32.xlu1 %v21584_v20, %s25419_s28 }
 0x3f5   : > { %v6806_v17 = vadd.f32 %v21595_v58, %v6419_v49  ;;  %v6422_v56 = vadd.f32 %v18172_v12, %v6035_v1  ;;  %v5648_v38 = vadd.f32 %v25549_v60, %v21665_v8  ;;  %v5651_v48 = vadd.f32 %v25550_v36, %v21669_v15  ;;  %18259 = vmatmul.mubr.msk.f32.gmra.mxu0 %vm514_vm0, %v7005_v55  ;;  %v25551_v24 = vld [vmem:[#allocation107_spill] sm:$0xff]  ;;  %v25554_v63 = vld [vmem:[#allocation108_spill] sm:$0xff] }
 0x3f6   : > { %v6844_v58 = vmul.f32 %v21632_v40, %v6807_v4  ;;  %6944 = vst.msk [vmem:[#allocation3 + $0xb1] sm:$0xff] %vm514_vm0, %v6911_v39  ;;  %v6910_v1 = vmax.f32 %v6878_v35, 0.0  ;;  %11187 = vrot.lane.b32.xlu0 %v21545_v27, %s25502_s21  ;;  %v6421_v15 = vadd.f32 %v6326_v22, %v6034_v29  ;;  %v25552_v61 = vld [vmem:[#allocation59_spill] sm:$0xff]  ;;  %v25555_v7 = vld [vmem:[#allocation136_spill] sm:$0xff]  ;;  %18309 = vmatmul.mubr.msk.f32.gmra.mxu1 %vm514_vm0, %v21895_v21  ;;  %v18175_v27 = vpop.f32.mrf.mxu0  ;;  %v11050_v39 = vpop.permute.xlu0 %11049 }
 0x3f7   : > { %v6843_v25 = vmul.f32 %v21632_v40, %v6806_v17  ;;  %v6809_v8 = vadd.f32 %v21644_v11, %v6422_v56  ;;  %v21915_v19 = vadd.f32 %v25552_v61, %v25551_v24  ;;  %v25553_v49 = vld [vmem:[#allocation79_spill] sm:$0xff]  ;;  %v5650_v4 = vadd.f32 %v25555_v7, %v21694_v51  ;;  %v10988_v11 = vpop.permute.xlu1 %10987  ;;  %v21929_v17 = vld [vmem:[#allocation3 + $0x78] sm:$0xff]  ;;  %11096 = vst.msk [vmem:[#allocation4 + $0xc] sm:$0x1] %vm523_vm5, %v11050_v39  ;;  %v25560_v61 = vld [vmem:[#allocation92_spill] sm:$0xff] }
 0x3f8   : > { %v4884_v30 = vadd.f32 %v25554_v63, %v25553_v49  ;;  %v6881_v14 = vadd.f32 %v21658_v16, %v6844_v58  ;;  %6943 = vst.msk [vmem:[#allocation3 + $0xa9] sm:$0xff] %vm514_vm0, %v6910_v1  ;;  %v6808_v3 = vadd.f32 %v21682_v6, %v6421_v15  ;;  %v6424_v35 = vadd.f32 %v18175_v27, %v6037_v52  ;;  %v7006_v51 = vld [vmem:[#allocation3 + $0x79] sm:$0xff]  ;;  %v6336_v6 = vpop.f32.mrf.mxu0  ;;  %v25559_v15 = vld [vmem:[#allocation60_spill] sm:$0xff]  ;;  %v25561_v39 = vld [vmem:[#allocation93_spill] sm:$0xff] }
 0x3f9   : > { %v6880_v29 = vadd.f32 %v21658_v16, %v6843_v25  ;;  %v6846_v12 = vmul.f32 %v21632_v40, %v6809_v8  ;;  %11033 = vst.msk [vmem:[#allocation4 + $0x13] sm:$0x1] %vm523_vm5, %v10988_v11  ;;  %v21931_v44 = vld [vmem:[#allocation3 + $0x80] sm:$0xff]  ;;  %v25556_v56 = vld [vmem:[#allocation90_spill] sm:$0xff]  ;;  %18261 = vmatprep.mubr.msk.f32.mxu0 %vm514_vm0, %v7006_v51  ;;  %18311 = vmatprep.mubr.msk.f32.mxu1 %vm514_vm0, %v21929_v17 }
 0x3fa   : > { %v6036_v55 = vadd.f32 %v25556_v56, %v5648_v38  ;;  %v25557_v60 = vld [vmem:[#allocation91_spill] sm:$0xff]  ;;  %v25558_v58 = vld [vmem:[#allocation138_spill] sm:$0xff]  ;;  %v6913_v1 = vmax.f32 %v6881_v14, 0.0  ;;  %v6845_v8 = vmul.f32 %v21632_v40, %v6808_v3  ;;  %v6811_v38 = vadd.f32 %v21707_v10, %v6424_v35  ;;  %10941 = vrot.lane.b32.xlu0 %v21584_v20, %s25538_s20  ;;  %11261 = vrot.lane.b32.xlu1 %v21584_v20, %s25423_s22  ;;  %v18178_v7 = vpop.f32.mrf.mxu0  ;;  %v21960_v11 = vld [vmem:[#allocation3 + $0x90] sm:$0xff] }
 0x3fb   : > { %v6039_v36 = vadd.f32 %v25557_v60, %v5651_v48  ;;  %v5653_v22 = vadd.f32 %v25558_v58, %v21711_v59  ;;  %v6912_v52 = vmax.f32 %v6880_v29, 0.0  ;;  %v6883_v25 = vadd.f32 %v21658_v16, %v6846_v12  ;;  %v7007_v59 = vld [vmem:[#allocation3 + $0x81] sm:$0xff]  ;;  %v21948_v48 = vpop.f32.mrf.mxu1  ;;  %18312 = vmatmul.mubr.msk.f32.gmra.mxu1 %vm514_vm0, %v21931_v44  ;;  %v11116_v10 = vpop.permute.xlu1 %11115  ;;  %v21958_v14 = vld [vmem:[#allocation3 + $0x91] sm:$0xff] }
 0x3fc   : > { %v21951_v24 = vadd.f32 %v25559_v15, %v4884_v30  ;;  %v6038_v49 = vadd.f32 %v25560_v61, %v5650_v4  ;;  %6946 = vst.msk [vmem:[#allocation3 + $0xc9] sm:$0xff] %vm514_vm0, %v6913_v1  ;;  %v6423_v63 = vadd.f32 %v6336_v6, %v6036_v55  ;;  %18262 = vmatmul.mubr.msk.f32.gmra.mxu0 %vm514_vm0, %v7007_v59  ;;  %v11178_v29 = vpop.permute.xlu0 %11177  ;;  %v21970_v3 = vld [vmem:[#allocation3 + $0x98] sm:$0xff]  ;;  %v25562_v51 = vld [vmem:[#allocation139_spill] sm:$0xff]  ;;  %v25563_v55 = vld [vmem:[#allocation141_spill] sm:$0xff] }
 0x3fd   : > { %6945 = vst.msk [vmem:[#allocation3 + $0xc1] sm:$0xff] %vm514_vm0, %v6912_v52  ;;  %v6915_v30 = vmax.f32 %v6883_v25, 0.0  ;;  %v6882_v27 = vadd.f32 %v21658_v16, %v6845_v8  ;;  %v6848_v4 = vmul.f32 %v21632_v40, %v6811_v38  ;;  %v6426_v12 = vadd.f32 %v18178_v7, %v6039_v36  ;;  %18264 = vmatprep.mubr.msk.f32.mxu0 %vm514_vm0, %v21958_v14  ;;  %v6346_v36 = vpop.f32.mrf.mxu0  ;;  %v25565_v25 = vld [vmem:[#allocation61_spill] sm:$0xff]  ;;  %v25566_v38 = vld [vmem:[#allocation142_spill] sm:$0xff] }
 0x3fe   : > { %11161 = vst.msk [vmem:[#allocation4 + $0x15] sm:$0x1] %vm523_vm5, %v11116_v10  ;;  %18314 = vmatprep.mubr.msk.f32.mxu1 %vm514_vm0, %v21960_v11  ;;  %v6041_v35 = vadd.f32 %v25561_v39, %v5653_v22  ;;  %v5652_v56 = vadd.f32 %v25562_v51, %v21714_v42  ;;  %v5655_v60 = vadd.f32 %v25563_v55, %v21740_v41  ;;  %11224 = vst.msk [vmem:[#allocation4 + $0xe] sm:$0x1] %vm523_vm5, %v11178_v29  ;;  %v21986_v41 = vld [vmem:[#allocation3 + $0x99] sm:$0xff]  ;;  %v25569_v55 = vld [vmem:[#allocation144_spill] sm:$0xff] }
 0x3ff   : > { %v6810_v58 = vadd.f32 %v21736_v54, %v6423_v63  ;;  %6948 = vst.msk [vmem:[#allocation3 + $0xe1] sm:$0xff] %vm514_vm0, %v6915_v30  ;;  %v6914_v1 = vmax.f32 %v6882_v27, 0.0  ;;  %v6885_v6 = vadd.f32 %v21658_v16, %v6848_v4  ;;  %v6813_v52 = vadd.f32 %v21769_v47, %v6426_v12  ;;  %11069 = vrot.lane.b32.xlu0 %v21584_v20, %s25175_s25  ;;  %v21988_v54 = vpop.f32.mrf.mxu1  ;;  %v25564_v22 = vld [vmem:[#allocation110_spill] sm:$0xff]  ;;  %v11244_v15 = vpop.permute.xlu1 %11243  ;;  %v22003_v63 = vld [vmem:[#allocation3 + $0xa8] sm:$0xff]  ;;  %v22013_v4 = vld [vmem:[#allocation3 + $0xb0] sm:$0xff] }
 0x400   : > { %10881 = vrot.lane.b32.xlu1 %v21571_v62, %s25412_s27  ;;  %v6425_v42 = vadd.f32 %v6346_v36, %v6038_v49  ;;  %v21992_v8 = vadd.f32 %v25565_v25, %v25564_v22  ;;  %v5654_v59 = vadd.f32 %v25566_v38, %v21773_v13  ;;  %18265 = vmatmul.mubr.msk.f32.gmra.mxu0 %vm514_vm0, %v21986_v41  ;;  %v18181_v61 = vpop.f32.mrf.mxu0  ;;  %v22001_v49 = vld [vmem:[#allocation3 + $0xa9] sm:$0xff]  ;;  %v10924_v30 = vpop.permute.xlu0 %10923  ;;  %v25567_v29 = vld [vmem:[#allocation94_spill] sm:$0xff]  ;;  %v25568_v39 = vld [vmem:[#allocation95_spill] sm:$0xff] }
 0x401   : > { %v6847_v47 = vmul.f32 %v21632_v40, %v6810_v58  ;;  %18315 = vmatmul.mubr.msk.f32.gmra.mxu1 %vm514_vm0, %v21970_v3  ;;  %6947 = vst.msk [vmem:[#allocation3 + $0xd9] sm:$0xff] %vm514_vm0, %v6914_v1  ;;  %v6917_v10 = vmax.f32 %v6885_v6, 0.0  ;;  %v6850_v7 = vmul.f32 %v21632_v40, %v6813_v52  ;;  %v6428_v27 = vadd.f32 %v18181_v61, %v6041_v35  ;;  %v25571_v52 = vld [vmem:[#allocation111_spill] sm:$0xff]  ;;  %v25572_v22 = vld [vmem:[#allocation96_spill] sm:$0xff] }
 0x402   : > { %v6812_v13 = vadd.f32 %v21805_v43, %v6425_v42  ;;  %11289 = vst.msk [vmem:[#allocation4 + $0x17] sm:$0x1] %vm523_vm5, %v11244_v15  ;;  %18267 = vmatprep.mubr.msk.f32.mxu0 %vm514_vm0, %v22001_v49  ;;  %18317 = vmatprep.mubr.msk.f32.mxu1 %vm514_vm0, %v22003_v63  ;;  %v6040_v12 = vadd.f32 %v25567_v29, %v5652_v56  ;;  %10969 = vst.msk [vmem:[#allocation4 + $0x12] sm:$0x1] %vm523_vm5, %v10924_v30  ;;  %v6356_v35 = vpop.f32.mrf.mxu0  ;;  %v22031_v56 = vpop.f32.mrf.mxu1  ;;  %v25573_v29 = vld [vmem:[#allocation97_spill] sm:$0xff] }
 0x403   : > { %v6043_v51 = vadd.f32 %v25568_v39, %v5655_v60  ;;  %v5657_v58 = vadd.f32 %v25569_v55, %v21862_v50  ;;  %v6884_v43 = vadd.f32 %v21658_v16, %v6847_v47  ;;  %6950 = vst.msk [vmem:[#allocation3 + $0xf9] sm:$0xff] %vm514_vm0, %v6917_v10  ;;  %v6887_v36 = vadd.f32 %v21658_v16, %v6850_v7  ;;  %v22029_v50 = vld [vmem:[#allocation3 + $0xb1] sm:$0xff]  ;;  %v25574_v39 = vld [vmem:[#allocation75_spill] sm:$0xff] }
 0x404   : > { %v6849_v1 = vmul.f32 %v21632_v40, %v6812_v13  ;;  %v6815_v6 = vadd.f32 %v21840_v2, %v6428_v27  ;;  %11197 = vrot.lane.b32.xlu0 %v21584_v20, %s25502_s21  ;;  %11009 = vrot.lane.b32.xlu1 %v21571_v62, %s25379_s26  ;;  %v25570_v60 = vld [vmem:[#allocation26_spill] sm:$0xff]  ;;  %v6042_v25 = vadd.f32 %v25572_v22, %v5654_v59  ;;  %v10992_v20 = vpop.permute.xlu1 %10991  ;;  %v18184_v2 = vpop.f32.mrf.mxu0  ;;  %v22040_v15 = vld [vmem:[#allocation3 + $0xc1] sm:$0xff] }
 0x405   : > { %v4886_v42 = vadd.f32 %v25571_v52, %v25570_v60  ;;  %v6916_v38 = vmax.f32 %v6884_v43, 0.0  ;;  %v6427_v47 = vadd.f32 %v6356_v35, %v6040_v12  ;;  %18268 = vmatmul.mubr.msk.f32.gmra.mxu0 %vm514_vm0, %v22029_v50  ;;  %18318 = vmatmul.mubr.msk.f32.gmra.mxu1 %vm514_vm0, %v22013_v4  ;;  %v22042_v61 = vld [vmem:[#allocation3 + $0xc0] sm:$0xff]  ;;  %v6919_v10 = vmax.f32 %v6887_v36, 0.0  ;;  %11035 = vst.msk [vmem:[#allocation4 + $0x23] sm:$0x1] %vm523_vm5, %v10992_v20  ;;  %v11052_v59 = vpop.permute.xlu0 %11051  ;;  %v22051_v27 = vld [vmem:[#allocation3 + $0xc8] sm:$0xff] }
 0x406   : > { %v6886_v7 = vadd.f32 %v21658_v16, %v6849_v1  ;;  %v6852_v13 = vmul.f32 %v21632_v40, %v6815_v6  ;;  %v6430_v30 = vadd.f32 %v18184_v2, %v6043_v51  ;;  %18270 = vmatprep.mubr.msk.f32.mxu0 %vm514_vm0, %v22040_v15  ;;  %18320 = vmatprep.mubr.msk.f32.mxu1 %vm514_vm0, %v22042_v61  ;;  %v25575_v43 = vld [vmem:[#allocation82_spill] sm:$0xff]  ;;  %v6366_v36 = vpop.f32.mrf.mxu0 }
 0x407   : > { %v6045_v12 = vadd.f32 %v25573_v29, %v5657_v58  ;;  %v5656_v55 = vadd.f32 %v25574_v39, %v21879_v33  ;;  %v5659_v35 = vadd.f32 %v25575_v43, %v21915_v19  ;;  %6949 = vst.msk [vmem:[#allocation3 + $0xf1] sm:$0xff] %vm514_vm0, %v6916_v38  ;;  %v6814_v51 = vadd.f32 %v21875_v37, %v6427_v47  ;;  %v22068_v19 = vld [vmem:[#allocation3 + $0xc9] sm:$0xff]  ;;  %v18240_v37 = vpop.f32.mrf.mxu1  ;;  %v25576_v60 = vld [vmem:[#allocation62_spill] sm:$0xff] }
 0x408   : > { %11097 = vst.msk [vmem:[#allocation4 + $0x14] sm:$0x1] %vm523_vm5, %v11052_v59  ;;  %v6918_v1 = vmax.f32 %v6886_v7, 0.0  ;;  %v6889_v6 = vadd.f32 %v21658_v16, %v6852_v13  ;;  %v6817_v58 = vadd.f32 %v21911_v0, %v6430_v30  ;;  %10945 = vrot.lane.b32.xlu0 %v21571_v62, %s25538_s20  ;;  %11137 = vrot.lane.b32.xlu1 %v21571_v62, %s25419_s28  ;;  %v11120_v0 = vpop.permute.xlu1 %11119  ;;  %v18187_v47 = vpop.f32.mrf.mxu0  ;;  %v22078_v20 = vld [vmem:[#allocation3 + $0xd9] sm:$0xff]  ;;  %v25577_v13 = vld [vmem:[#allocation100_spill] sm:$0xff] }
 0x409   : > { %6952 = vst.msk [vmem:[#allocation3 + $0x111] sm:$0xff] %vm514_vm0, %v6919_v10  ;;  %v6429_v33 = vadd.f32 %v6366_v36, %v6042_v25  ;;  %v5273_v52 = vadd.f32 %v25576_v60, %v4886_v42  ;;  %v5658_v22 = vadd.f32 %v21541_v57, %v21951_v24  ;;  %v6851_v38 = vmul.f32 %v21632_v40, %v6814_v51  ;;  %v22080_v25 = vld [vmem:[#allocation3 + $0xd8] sm:$0xff]  ;;  %v11180_v24 = vpop.permute.xlu0 %11179  ;;  %v22090_v7 = vld [vmem:[#allocation3 + $0xe0] sm:$0xff] }
 0x40a   : > { %18271 = vmatmul.mubr.msk.f32.gmra.mxu0 %vm514_vm0, %v22068_v19  ;;  %18321 = vmatmul.mubr.msk.f32.gmra.mxu1 %vm514_vm0, %v22051_v27  ;;  %6951 = vst.msk [vmem:[#allocation3 + $0x109] sm:$0xff] %vm514_vm0, %v6918_v1  ;;  %v6921_v42 = vmax.f32 %v6889_v6, 0.0  ;;  %v6854_v2 = vmul.f32 %v21632_v40, %v6817_v58  ;;  %v6432_v10 = vadd.f32 %v18187_v47, %v6045_v12  ;;  %v25578_v30 = vld [vmem:[#allocation103_spill] sm:$0xff]  ;;  %v6376_v12 = vpop.f32.mrf.mxu0 }
 0x40b   : > { %v6816_v57 = vadd.f32 %v21948_v48, %v6429_v33  ;;  %11163 = vst.msk [vmem:[#allocation4 + $0x25] sm:$0x1] %vm523_vm5, %v11120_v0  ;;  %18273 = vmatprep.mubr.msk.f32.mxu0 %vm514_vm0, %v22078_v20  ;;  %18323 = vmatprep.mubr.msk.f32.mxu1 %vm514_vm0, %v22080_v25  ;;  %v6044_v59 = vadd.f32 %v25577_v13, %v5656_v55  ;;  %11225 = vst.msk [vmem:[#allocation4 + $0x16] sm:$0x1] %vm523_vm5, %v11180_v24  ;;  %v25579_v55 = vld [vmem:[#allocation106_spill] sm:$0xff] }
 0x40c   : > { %v6047_v29 = vadd.f32 %v25578_v30, %v5659_v35  ;;  %v5661_v39 = vadd.f32 %v21562_v28, %v21992_v8  ;;  %v6888_v48 = vadd.f32 %v21658_v16, %v6851_v38  ;;  %6954 = vst.msk [vmem:[#allocation3 + $0x129] sm:$0xff] %vm514_vm0, %v6921_v42  ;;  %v6891_v43 = vadd.f32 %v21658_v16, %v6854_v2  ;;  %v22106_v28 = vld [vmem:[#allocation3 + $0xe1] sm:$0xff]  ;;  %v6773_v8 = vpop.f32.mrf.mxu1  ;;  %v18190_v33 = vpop.f32.mrf.mxu0  ;;  %v25580_v2 = vld [vmem:[#allocation109_spill] sm:$0xff] }
 0x40d   : > { %v6853_v51 = vmul.f32 %v21632_v40, %v6816_v57  ;;  %v6819_v36 = vadd.f32 %v21988_v54, %v6432_v10  ;;  %11073 = vrot.lane.b32.xlu0 %v21571_v62, %s25175_s25  ;;  %10869 = vrot.lane.b32.xlu1 %v21549_v46, %s25412_s27  ;;  %v6046_v35 = vadd.f32 %v25579_v55, %v5658_v22  ;;  %v11248_v54 = vpop.permute.xlu1 %11247  ;;  %v10928_v22 = vpop.permute.xlu0 %10927 }
 0x40e   : > { %v5660_v1 = vadd.f32 %v21580_v53, %v5273_v52  ;;  %v6920_v6 = vmax.f32 %v6888_v48, 0.0  ;;  %v6431_v58 = vadd.f32 %v6376_v12, %v6044_v59  ;;  %18274 = vmatmul.mubr.msk.f32.gmra.mxu0 %vm514_vm0, %v22106_v28  ;;  %18324 = vmatmul.mubr.msk.f32.gmra.mxu1 %vm514_vm0, %v22090_v7  ;;  %v6923_v60 = vmax.f32 %v6891_v43, 0.0  ;;  %11291 = vst.msk [vmem:[#allocation4 + $0x27] sm:$0x1] %vm523_vm5, %v11248_v54  ;;  %v22117_v53 = vld [vmem:[#allocation3 + $0xf1] sm:$0xff]  ;;  %v6386_v10 = vpop.f32.mrf.mxu0  ;;  %v18243_v13 = vpop.f32.mrf.mxu1  ;;  %v25581_v48 = vld [vmem:[#allocation112_spill] sm:$0xff] }
 0x40f   : > { %v6890_v38 = vadd.f32 %v21658_v16, %v6853_v51  ;;  %v6856_v0 = vmul.f32 %v21632_v40, %v6819_v36  ;;  %v6434_v47 = vadd.f32 %v18190_v33, %v6047_v29  ;;  %v22119_v52 = vld [vmem:[#allocation3 + $0xf0] sm:$0xff]  ;;  %v22121_v42 = vld [vmem:[#allocation3 + $0xf8] sm:$0xff]  ;;  %v6049_v57 = vadd.f32 %v25580_v2, %v5661_v39  ;;  %10971 = vst.msk [vmem:[#allocation4 + $0x22] sm:$0x1] %vm523_vm5, %v10928_v22 }
 0x410   : > { %6953 = vst.msk [vmem:[#allocation3 + $0x121] sm:$0xff] %vm514_vm0, %v6920_v6  ;;  %v6818_v24 = vadd.f32 %v22031_v56, %v6431_v58  ;;  %18276 = vmatprep.mubr.msk.f32.mxu0 %vm514_vm0, %v22117_v53  ;;  %18326 = vmatprep.mubr.msk.f32.mxu1 %vm514_vm0, %v22119_v52  ;;  %6956 = vst.msk [vmem:[#allocation3 + $0x141] sm:$0xff] %vm514_vm0, %v6923_v60  ;;  %v6433_v56 = vadd.f32 %v6386_v10, %v6046_v35  ;;  %v22137_v39 = vld [vmem:[#allocation3 + $0xf9] sm:$0xff]  ;;  %v18193_v51 = vpop.f32.mrf.mxu0  ;;  %v22167_v2 = vld [vmem:[#allocation3 + $0x111] sm:$0xff] }
 0x411   : > { %v6922_v59 = vmax.f32 %v6890_v38, 0.0  ;;  %v6893_v30 = vadd.f32 %v21658_v16, %v6856_v0  ;;  %v6821_v29 = vadd.f32 %v18240_v37, %v6434_v47  ;;  %10933 = vrot.lane.b32.xlu0 %v21549_v46, %s25538_s20  ;;  %10997 = vrot.lane.b32.xlu1 %v21549_v46, %s25379_s26  ;;  %v6048_v12 = vadd.f32 %v25581_v48, %v5660_v1  ;;  %v11002_v37 = vpop.permute.xlu1 %11001  ;;  %v22145_v36 = vld [vmem:[#allocation3 + $0x109] sm:$0xff]  ;;  %v11056_v58 = vpop.permute.xlu0 %11055 }
 0x412   : > { %v6855_v43 = vmul.f32 %v21632_v40, %v6818_v24  ;;  %18277 = vmatmul.mubr.msk.f32.gmra.mxu0 %vm514_vm0, %v22137_v39  ;;  %18327 = vmatmul.mubr.msk.f32.gmra.mxu1 %vm514_vm0, %v22121_v42  ;;  %v22147_v55 = vld [vmem:[#allocation3 + $0x108] sm:$0xff]  ;;  %v6820_v1 = vadd.f32 %v6773_v8, %v6433_v56  ;;  %11040 = vst.msk [vmem:[#allocation4 + $0x4b] sm:$0x1] %vm523_vm5, %v11002_v37  ;;  %v22156_v33 = vld [vmem:[#allocation3 + $0x110] sm:$0xff]  ;;  %11099 = vst.msk [vmem:[#allocation4 + $0x24] sm:$0x1] %vm523_vm5, %v11056_v58  ;;  %v6396_v38 = vpop.f32.mrf.mxu0  ;;  %v6783_v0 = vpop.f32.mrf.mxu1 }
 0x413   : > { %6955 = vst.msk [vmem:[#allocation3 + $0x139] sm:$0xff] %vm514_vm0, %v6922_v59  ;;  %v6925_v35 = vmax.f32 %v6893_v30, 0.0  ;;  %v6858_v6 = vmul.f32 %v21632_v40, %v6821_v29  ;;  %v6436_v54 = vadd.f32 %v18193_v51, %v6049_v57  ;;  %18279 = vmatprep.mubr.msk.f32.mxu0 %vm514_vm0, %v22145_v36  ;;  %18329 = vmatprep.mubr.msk.f32.mxu1 %vm514_vm0, %v22147_v55 }
 0x414   : > { %v6892_v60 = vadd.f32 %v21658_v16, %v6855_v43  ;;  %v6857_v22 = vmul.f32 %v21632_v40, %v6820_v1  ;;  %v6435_v47 = vadd.f32 %v6396_v38, %v6048_v12 }
 0x415   : > { %6958 = vst.msk [vmem:[#allocation3 + $0x159] sm:$0xff] %vm514_vm0, %v6925_v35  ;;  %v6895_v8 = vadd.f32 %v21658_v16, %v6858_v6  ;;  %11061 = vrot.lane.b32.xlu0 %v21549_v46, %s25175_s25  ;;  %11125 = vrot.lane.b32.xlu1 %v21549_v46, %s25419_s28  ;;  %v6823_v24 = vadd.f32 %v18243_v13, %v6436_v54  ;;  %v11130_v10 = vpop.permute.xlu1 %11129  ;;  %v11184_v29 = vpop.permute.xlu0 %11183  ;;  %v22194_v35 = vld [vmem:[#allocation3 + $0x129] sm:$0xff] }
 0x416   : > { %v6924_v57 = vmax.f32 %v6892_v60, 0.0  ;;  %18280 = vmatmul.mubr.msk.f32.gmra.mxu0 %vm514_vm0, %v22167_v2  ;;  %18330 = vmatmul.mubr.msk.f32.gmra.mxu1 %vm514_vm0, %v22156_v33  ;;  %v6894_v30 = vadd.f32 %v21658_v16, %v6857_v22  ;;  %11168 = vst.msk [vmem:[#allocation4 + $0x4d] sm:$0x1] %vm523_vm5, %v11130_v10  ;;  %v6822_v56 = vadd.f32 %v6783_v0, %v6435_v47  ;;  %11227 = vst.msk [vmem:[#allocation4 + $0x26] sm:$0x1] %vm523_vm5, %v11184_v29 }
 0x417   : > { %v6927_v59 = vmax.f32 %v6895_v8, 0.0  ;;  %v22175_v48 = vld [vmem:[#allocation3 + $0x121] sm:$0xff]  ;;  %v6860_v13 = vmul.f32 %v21632_v40, %v6823_v24 }
 0x418   : > { %v22177_v12 = vld [vmem:[#allocation3 + $0x120] sm:$0xff]  ;;  %v22179_v43 = vld [vmem:[#allocation3 + $0x128] sm:$0xff]  ;;  %6957 = vst.msk [vmem:[#allocation3 + $0x151] sm:$0xff] %vm514_vm0, %v6924_v57  ;;  %18282 = vmatprep.mubr.msk.f32.mxu0 %vm514_vm0, %v22175_v48  ;;  %v6926_v37 = vmax.f32 %v6894_v30, 0.0  ;;  %v6859_v51 = vmul.f32 %v21632_v40, %v6822_v56 }
 0x419   : > { %18332 = vmatprep.mubr.msk.f32.mxu1 %vm514_vm0, %v22177_v12  ;;  %6960 = vst.msk [vmem:[#allocation3 + $0x171] sm:$0xff] %vm514_vm0, %v6927_v59  ;;  %11189 = vrot.lane.b32.xlu0 %v21549_v46, %s25502_s21  ;;  %v6897_v6 = vadd.f32 %v21658_v16, %v6860_v13  ;;  %v11258_v1 = vpop.permute.xlu1 %11257 }
 0x41a   : > { %11253 = vrot.lane.b32.xlu1 %v21549_v46, %s25423_s22  ;;  %18283 = vmatmul.mubr.msk.f32.gmra.mxu0 %vm514_vm0, %v22194_v35  ;;  %v22201_v58 = vld [vmem:[#allocation3 + $0x139] sm:$0xff]  ;;  %6959 = vst.msk [vmem:[#allocation3 + $0x169] sm:$0xff] %vm514_vm0, %v6926_v37  ;;  %v6896_v54 = vadd.f32 %v21658_v16, %v6859_v51  ;;  %v10938_v46 = vpop.permute.xlu0 %10937  ;;  %v22219_v16 = vld [vmem:[#allocation3 + $0x141] sm:$0xff] }
 0x41b   : > { %18333 = vmatmul.mubr.msk.f32.gmra.mxu1 %vm514_vm0, %v22179_v43  ;;  %v22203_v40 = vld [vmem:[#allocation3 + $0x138] sm:$0xff]  ;;  %11296 = vst.msk [vmem:[#allocation4 + $0x4f] sm:$0x1] %vm523_vm5, %v11258_v1  ;;  %18285 = vmatprep.mubr.msk.f32.mxu0 %vm514_vm0, %v22201_v58  ;;  %v22212_v60 = vld [vmem:[#allocation3 + $0x140] sm:$0xff]  ;;  %v6929_v38 = vmax.f32 %v6897_v6, 0.0 }
 0x41c   : > { %18335 = vmatprep.mubr.msk.f32.mxu1 %vm514_vm0, %v22203_v40  ;;  %10976 = vst.msk [vmem:[#allocation4 + $0x4a] sm:$0x1] %vm523_vm5, %v10938_v46  ;;  %v6928_v0 = vmax.f32 %v6896_v54, 0.0  ;;  %v22243_v59 = vld [vmem:[#allocation3 + $0x159] sm:$0xff]  ;;  %v7672_v51 = vld [vmem:[#allocation3 + $0x2] sm:$0xff]  ;;  %v7673_v46 = vld [vmem:[#allocation3 + $0xa] sm:$0xff] }
 0x41d   : > { %11201 = vrot.lane.b32.xlu0 %v21571_v62, %s25502_s21  ;;  %6962 = vst.msk [vmem:[#allocation3 + $0x189] sm:$0xff] %vm514_vm0, %v6929_v38  ;;  %v10940_v8 = vpop.permute.xlu1 %10939  ;;  %v22279_v38 = vld [vmem:[#allocation3 + $0x1a] sm:$0xff] }
 0x41e   : > { %11265 = vrot.lane.b32.xlu1 %v21571_v62, %s25423_s22  ;;  %18286 = vmatmul.mubr.msk.f32.gmra.mxu0 %vm514_vm0, %v22219_v16  ;;  %6961 = vst.msk [vmem:[#allocation3 + $0x181] sm:$0xff] %vm514_vm0, %v6928_v0  ;;  %v11066_v22 = vpop.permute.xlu0 %11065  ;;  %v25582_v62 = vld [vmem:[#allocation88_spill] sm:$0xff] }
 0x41f   : > { %18336 = vmatmul.mubr.msk.f32.gmra.mxu1 %vm514_vm0, %v22212_v60  ;;  %10977 = vst.msk [vmem:[#allocation4 + $0x52] sm:$0x1] %vm523_vm5, %v10940_v8  ;;  %v22228_v47 = vld [vmem:[#allocation3 + $0x151] sm:$0xff]  ;;  %v10850_v24 = vrot.slane %v25582_v62, %v21034_v31  ;;  %11104 = vst.msk [vmem:[#allocation4 + $0x4c] sm:$0x1] %vm523_vm5, %v11066_v22  ;;  %v18931_v62 = vld [vmem:[%s25140_s9 + $0x20] sm:$0xff] }
 0x420   : > { %v22230_v57 = vld [vmem:[#allocation3 + $0x150] sm:$0xff]  ;;  %v22234_v10 = vld [vmem:[#allocation3 + $0x158] sm:$0xff]  ;;  %18288 = vmatprep.mubr.msk.f32.mxu0 %vm514_vm0, %v22228_v47 }
 0x421   : > { %18338 = vmatprep.mubr.msk.f32.mxu1 %vm514_vm0, %v22230_v57  ;;  %10883 = vrot.lane.b32.xlu0 %v10850_v24, %s25412_s27  ;;  %v11068_v30 = vpop.permute.xlu1 %11067  ;;  %v22249_v29 = vld [vmem:[#allocation3 + $0x169] sm:$0xff]  ;;  %v22263_v6 = vld [vmem:[#allocation3 + $0x171] sm:$0xff] }
 0x422   : > { %10947 = vrot.lane.b32.xlu1 %v10850_v24, %s25538_s20  ;;  %18289 = vmatmul.mubr.msk.f32.gmra.mxu0 %vm514_vm0, %v22243_v59  ;;  %v22251_v56 = vld [vmem:[#allocation3 + $0x168] sm:$0xff]  ;;  %11105 = vst.msk [vmem:[#allocation4 + $0x54] sm:$0x1] %vm523_vm5, %v11068_v30  ;;  %v11194_v13 = vpop.permute.xlu0 %11193  ;;  %v22258_v37 = vld [vmem:[#allocation3 + $0x170] sm:$0xff]  ;;  %v22305_v30 = vld [vmem:[%s25140_s9 + $0x38] sm:$0xff] }
 0x423   : > { %18339 = vmatmul.mubr.msk.f32.gmra.mxu1 %vm514_vm0, %v22234_v10  ;;  %18291 = vmatprep.mubr.msk.f32.mxu0 %vm514_vm0, %v22249_v29  ;;  %11232 = vst.msk [vmem:[#allocation4 + $0x4e] sm:$0x1] %vm523_vm5, %v11194_v13  ;;  %v25583_v8 = vld [vmem:[#allocation89_spill] sm:$0xff]  ;;  %v18248_v13 = vpop.f32.mrf.mxu0 }
 0x424   : > { %18341 = vmatprep.mubr.msk.f32.mxu1 %vm514_vm0, %v22251_v56  ;;  %v10854_v22 = vrot.slane %v25583_v8, %v21034_v31 }
 0x425   : > { %11011 = vrot.lane.b32.xlu0 %v10850_v24, %s25379_s26  ;;  %v11196_v1 = vpop.permute.xlu1 %11195 }
 0x426   : > { %11075 = vrot.lane.b32.xlu1 %v10850_v24, %s25175_s25  ;;  %18292 = vmatmul.mubr.msk.f32.gmra.mxu0 %vm514_vm0, %v22263_v6  ;;  %11233 = vst.msk [vmem:[#allocation4 + $0x56] sm:$0x1] %vm523_vm5, %v11196_v1  ;;  %v10876_v54 = vpop.permute.xlu0 %10875  ;;  %v18298_v1 = vpop.f32.mrf.mxu1  ;;  %s19005_s25 = smov 16  }
 0x427   : > { %18342 = vmatmul.mubr.msk.f32.gmra.mxu1 %vm514_vm0, %v22258_v37  ;;  %18346 = vmatprep.mubr.msk.f32.mxu0 %vm514_vm0, %v7672_v51  ;;  %10913 = vst.msk [vmem:[#allocation4 + $0x51] sm:$0x1] %vm523_vm5, %v10876_v54  ;;  %v22320_v54 = vadd.f32 %v18298_v1, %v18248_v13 }
 0x428   : > { %18396 = vmatprep.mubr.msk.f32.mxu1 %vm514_vm0, %v21779_v45 }
 0x429   : > { %11139 = vrot.lane.b32.xlu0 %v10850_v24, %s25419_s28  ;;  %v10944_v45 = vpop.permute.xlu1 %10943 }
 0x42a   : > { %11203 = vrot.lane.b32.xlu1 %v10850_v24, %s25502_s21  ;;  %18347 = vmatmul.mubr.msk.f32.vlgmr.msra.gmra.mxu0 %vm514_vm0, %v7673_v46  ;;  %10979 = vst.msk [vmem:[#allocation4 + $0x62] sm:$0x1] %vm523_vm5, %v10944_v45  ;;  %v11004_v0 = vpop.permute.xlu0 %11003 }
 0x42b   : > { %18397 = vmatmul.mubr.msk.f32.vlgmr.msra.gmra.mxu1 %vm514_vm0, %v21781_v23  ;;  %18349 = vmatprep.mubr.msk.f32.mxu0 %vm514_vm0, %v22279_v38  ;;  %11041 = vst.msk [vmem:[#allocation4 + $0x53] sm:$0x1] %vm523_vm5, %v11004_v0  ;;  %v22295_v23 = vld [vmem:[#allocation3 + $0x22] sm:$0xff]  ;;  %v22341_v0 = vld [vmem:[#allocation3 + $0x52] sm:$0xff] }
 0x42c   : > { %18399 = vmatprep.mubr.msk.f32.mxu1 %vm514_vm0, %v21815_v26  ;;  %18445 = vmatpush3.msra.mxu0 %v18931_v62  ;;  %v22300_v26 = vld [vmem:[%s25140_s9 + $0x30] sm:$0xff] }
 0x42d   : > { %18495 = vmatpush3.msra.mxu1 %v21762_v32  ;;  %11267 = vrot.lane.b32.xlu0 %v10850_v24, %s25423_s22  ;;  %v22311_v32 = vld [vmem:[#allocation3 + $0x32] sm:$0xff]  ;;  %v11072_v24 = vpop.permute.xlu1 %11071  ;;  %v22357_v62 = vld [vmem:[#allocation3 + $0x6a] sm:$0xff] }
 0x42e   : > { %10885 = vrot.lane.b32.xlu1 %v10854_v22, %s25412_s27  ;;  %18350 = vmatmul.mubr.msk.f32.gmra.mxu0 %vm514_vm0, %v22295_v23  ;;  %11107 = vst.msk [vmem:[#allocation4 + $0x64] sm:$0x1] %vm523_vm5, %v11072_v24  ;;  %v11132_v51 = vpop.permute.xlu0 %11131  ;;  %s19007_s27 = smov 64  }
 0x42f   : > { %18400 = vmatmul.mubr.msk.f32.gmra.mxu1 %vm514_vm0, %v21824_v5  ;;  %18352 = vmatprep.mubr.msk.f32.mxu0 %vm514_vm0, %v22311_v32  ;;  %11169 = vst.msk [vmem:[#allocation4 + $0x55] sm:$0x1] %vm523_vm5, %v11132_v51  ;;  %v22325_v5 = vld [vmem:[#allocation3 + $0x3a] sm:$0xff] }
 0x430   : > { %18402 = vmatprep.mubr.msk.f32.mxu1 %vm514_vm0, %v21849_v34  ;;  %18544 = vmatprep.subr.mxu0 %v22300_v26  ;;  %v22331_v34 = vld [vmem:[#allocation3 + $0x4a] sm:$0xff]  ;;  %v22385_v51 = vld [vmem:[#allocation3 + $0x9a] sm:$0xff] }
 0x431   : > { %18594 = vmatprep.subr.mxu1 %v22305_v30  ;;  %10949 = vrot.lane.b32.xlu0 %v10854_v22, %s25538_s20  ;;  %v11200_v46 = vpop.permute.xlu1 %11199 }
 0x432   : > { %11013 = vrot.lane.b32.xlu1 %v10854_v22, %s25379_s26  ;;  %18353 = vmatmul.mubr.msk.f32.gmra.mxu0 %vm514_vm0, %v22325_v5  ;;  %11235 = vst.msk [vmem:[#allocation4 + $0x66] sm:$0x1] %vm523_vm5, %v11200_v46  ;;  %v11260_v45 = vpop.permute.xlu0 %11259  ;;  %v22399_v46 = vld [vmem:[#allocation3 + $0xb2] sm:$0xff]  ;;  %s19006_s26 = smov 32  }
 0x433   : > { %18403 = vmatmul.mubr.msk.f32.gmra.mxu1 %vm514_vm0, %v21858_v18  ;;  %18355 = vmatprep.mubr.msk.f32.mxu0 %vm514_vm0, %v22331_v34  ;;  %11297 = vst.msk [vmem:[#allocation4 + $0x57] sm:$0x1] %vm523_vm5, %v11260_v45  ;;  %v22347_v18 = vld [vmem:[#allocation3 + $0x62] sm:$0xff] }
 0x434   : > { %18405 = vmatprep.mubr.msk.f32.mxu1 %vm514_vm0, %v21886_v9 }
 0x435   : > { %11077 = vrot.lane.b32.xlu0 %v10854_v22, %s25584_s0  ;;  %v10862_v9 = vpop.permute.xlu1 %10861 }
 0x436   : > { %11141 = vrot.lane.b32.xlu1 %v10854_v22, %s25419_s28  ;;  %18356 = vmatmul.mubr.msk.f32.gmra.mxu0 %vm514_vm0, %v22341_v0  ;;  %10906 = vst.msk [vmem:[#allocation4 + $0x19] sm:$0x1] %vm523_vm5, %v10862_v9  ;;  %v10880_v8 = vpop.permute.xlu0 %10879  ;;  %v22413_v9 = vld [vmem:[#allocation3 + $0xca] sm:$0xff]  ;;  %s19008_s28 = smov 48  }
 0x437   : > { %18406 = vmatmul.mubr.msk.f32.gmra.mxu1 %vm514_vm0, %v21895_v21  ;;  %18358 = vmatprep.mubr.msk.f32.mxu0 %vm514_vm0, %v22347_v18  ;;  %10915 = vst.msk [vmem:[#allocation4 + $0x61] sm:$0x1] %vm523_vm5, %v10880_v8  ;;  %v22363_v21 = vld [vmem:[#allocation3 + $0x7a] sm:$0xff] }
 0x438   : > { %18408 = vmatprep.mubr.msk.f32.mxu1 %vm514_vm0, %v21929_v17 }
 0x439   : > { %11205 = vrot.lane.b32.xlu0 %v10854_v22, %s25502_s21  ;;  %v10866_v17 = vpop.permute.xlu1 %10865 }
 0x43a   : > { %11269 = vrot.lane.b32.xlu1 %v10854_v22, %s25423_s22  ;;  %18359 = vmatmul.mubr.msk.f32.gmra.mxu0 %vm514_vm0, %v22357_v62  ;;  %v11008_v24 = vpop.permute.xlu0 %11007  ;;  %10908 = vst.msk [vmem:[#allocation4 + $0x29] sm:$0x1] %vm523_vm5, %v10866_v17  ;;  %v22371_v22 = vld [vmem:[#allocation3 + $0x82] sm:$0xff] }
 0x43b   : > { %18409 = vmatmul.mubr.msk.f32.gmra.mxu1 %vm514_vm0, %v21931_v44  ;;  %18361 = vmatprep.mubr.msk.f32.mxu0 %vm514_vm0, %v22363_v21  ;;  %11043 = vst.msk [vmem:[#allocation4 + $0x63] sm:$0x1] %vm523_vm5, %v11008_v24  ;;  %v22377_v44 = vld [vmem:[#allocation3 + $0x92] sm:$0xff]  ;;  %v22427_v17 = vld [vmem:[#allocation3 + $0xe2] sm:$0xff] }
 0x43c   : > { %18411 = vmatprep.mubr.msk.f32.mxu1 %vm514_vm0, %v21960_v11 }
 0x43d   : > { %v10990_v13 = vpop.permute.xlu1 %10989 }
 0x43e   : > { %18362 = vmatmul.mubr.msk.f32.gmra.mxu0 %vm514_vm0, %v22371_v22  ;;  %v11136_v11 = vpop.permute.xlu0 %11135  ;;  %11034 = vst.msk [vmem:[#allocation4 + $0x1b] sm:$0x1] %vm523_vm5, %v10990_v13  ;;  %v22441_v13 = vld [vmem:[#allocation3 + $0xfa] sm:$0xff] }
 0x43f   : > { %18412 = vmatmul.mubr.msk.f32.gmra.mxu1 %vm514_vm0, %v21970_v3  ;;  %18364 = vmatprep.mubr.msk.f32.mxu0 %vm514_vm0, %v22377_v44  ;;  %11171 = vst.msk [vmem:[#allocation4 + $0x65] sm:$0x1] %vm523_vm5, %v11136_v11  ;;  %v22391_v3 = vld [vmem:[#allocation3 + $0xaa] sm:$0xff] }
 0x440   : > { %18414 = vmatprep.mubr.msk.f32.mxu1 %vm514_vm0, %v22003_v63 }
 0x441   : > { %v11118_v1 = vpop.permute.xlu1 %11117 }
 0x442   : > { %18365 = vmatmul.mubr.msk.f32.gmra.mxu0 %vm514_vm0, %v22385_v51  ;;  %v11264_v63 = vpop.permute.xlu0 %11263  ;;  %11162 = vst.msk [vmem:[#allocation4 + $0x1d] sm:$0x1] %vm523_vm5, %v11118_v1  ;;  %v22455_v1 = vld [vmem:[#allocation3 + $0x112] sm:$0xff] }
 0x443   : > { %18415 = vmatmul.mubr.msk.f32.gmra.mxu1 %vm514_vm0, %v22013_v4  ;;  %18367 = vmatprep.mubr.msk.f32.mxu0 %vm514_vm0, %v22391_v3  ;;  %11299 = vst.msk [vmem:[#allocation4 + $0x67] sm:$0x1] %vm523_vm5, %v11264_v63  ;;  %v22405_v4 = vld [vmem:[#allocation3 + $0xc2] sm:$0xff] }
 0x444   : > { %18417 = vmatprep.mubr.msk.f32.mxu1 %vm514_vm0, %v22042_v61 }
 0x445   : > { %v11246_v45 = vpop.permute.xlu1 %11245 }
 0x446   : > { %18368 = vmatmul.mubr.msk.f32.gmra.mxu0 %vm514_vm0, %v22399_v46  ;;  %v10868_v61 = vpop.permute.xlu0 %10867  ;;  %11290 = vst.msk [vmem:[#allocation4 + $0x1f] sm:$0x1] %vm523_vm5, %v11246_v45  ;;  %v22469_v45 = vld [vmem:[#allocation3 + $0x12a] sm:$0xff] }
 0x447   : > { %18418 = vmatmul.mubr.msk.f32.gmra.mxu1 %vm514_vm0, %v22051_v27  ;;  %18370 = vmatprep.mubr.msk.f32.mxu0 %vm514_vm0, %v22405_v4  ;;  %10909 = vst.msk [vmem:[#allocation4 + $0x31] sm:$0x1] %vm523_vm5, %v10868_v61  ;;  %v22419_v27 = vld [vmem:[#allocation3 + $0xda] sm:$0xff] }
 0x448   : > { %18420 = vmatprep.mubr.msk.f32.mxu1 %vm514_vm0, %v22080_v25 }
 0x449   : > { %v10994_v8 = vpop.permute.xlu1 %10993 }
 0x44a   : > { %18371 = vmatmul.mubr.msk.f32.gmra.mxu0 %vm514_vm0, %v22413_v9  ;;  %v10926_v25 = vpop.permute.xlu0 %10925  ;;  %11036 = vst.msk [vmem:[#allocation4 + $0x2b] sm:$0x1] %vm523_vm5, %v10994_v8  ;;  %v22483_v8 = vld [vmem:[#allocation3 + $0x142] sm:$0xff] }
 0x44b   : > { %18421 = vmatmul.mubr.msk.f32.gmra.mxu1 %vm514_vm0, %v22090_v7  ;;  %18373 = vmatprep.mubr.msk.f32.mxu0 %vm514_vm0, %v22419_v27  ;;  %10970 = vst.msk [vmem:[#allocation4 + $0x1a] sm:$0x1] %vm523_vm5, %v10926_v25  ;;  %v22433_v7 = vld [vmem:[#allocation3 + $0xf2] sm:$0xff] }
 0x44c   : > { %18423 = vmatprep.mubr.msk.f32.mxu1 %vm514_vm0, %v22119_v52 }
 0x44d   : > { %v11122_v24 = vpop.permute.xlu1 %11121 }
 0x44e   : > { %18374 = vmatmul.mubr.msk.f32.gmra.mxu0 %vm514_vm0, %v22427_v17  ;;  %v11054_v52 = vpop.permute.xlu0 %11053  ;;  %11164 = vst.msk [vmem:[#allocation4 + $0x2d] sm:$0x1] %vm523_vm5, %v11122_v24  ;;  %v22497_v24 = vld [vmem:[#allocation3 + $0x15a] sm:$0xff] }
 0x44f   : > { %18424 = vmatmul.mubr.msk.f32.gmra.mxu1 %vm514_vm0, %v22121_v42  ;;  %18376 = vmatprep.mubr.msk.f32.mxu0 %vm514_vm0, %v22433_v7  ;;  %11098 = vst.msk [vmem:[#allocation4 + $0x1c] sm:$0x1] %vm523_vm5, %v11054_v52  ;;  %v22447_v42 = vld [vmem:[#allocation3 + $0x10a] sm:$0xff]  ;;  %v22505_v52 = vld [vmem:[#allocation3 + $0x180] sm:$0xff] }
 0x450   : > { %18426 = vmatprep.mubr.msk.f32.mxu1 %vm514_vm0, %v22147_v55 }
 0x451   : > { %v11250_v11 = vpop.permute.xlu1 %11249 }
 0x452   : > { %18377 = vmatmul.mubr.msk.f32.gmra.mxu0 %vm514_vm0, %v22441_v13  ;;  %v11182_v55 = vpop.permute.xlu0 %11181  ;;  %11292 = vst.msk [vmem:[#allocation4 + $0x2f] sm:$0x1] %vm523_vm5, %v11250_v11 }
 0x453   : > { %18427 = vmatmul.mubr.msk.f32.gmra.mxu1 %vm514_vm0, %v22156_v33  ;;  %18379 = vmatprep.mubr.msk.f32.mxu0 %vm514_vm0, %v22447_v42  ;;  %11226 = vst.msk [vmem:[#allocation4 + $0x1e] sm:$0x1] %vm523_vm5, %v11182_v55  ;;  %v22461_v33 = vld [vmem:[#allocation3 + $0x122] sm:$0xff]  ;;  %v22513_v55 = vld [vmem:[#allocation3 + $0x172] sm:$0xff] }
 0x454   : > { %18429 = vmatprep.mubr.msk.f32.mxu1 %vm514_vm0, %v22177_v12 }
 0x455   : > { %v10996_v63 = vpop.permute.xlu1 %10995 }
 0x456   : > { %18380 = vmatmul.mubr.msk.f32.gmra.mxu0 %vm514_vm0, %v22455_v1  ;;  %v10930_v12 = vpop.permute.xlu0 %10929  ;;  %11037 = vst.msk [vmem:[#allocation4 + $0x33] sm:$0x1] %vm523_vm5, %v10996_v63  ;;  %v22515_v63 = vld [vmem:[#allocation3 + $0x188] sm:$0xff] }
 0x457   : > { %18430 = vmatmul.mubr.msk.f32.gmra.mxu1 %vm514_vm0, %v22179_v43  ;;  %18382 = vmatprep.mubr.msk.f32.mxu0 %vm514_vm0, %v22461_v33  ;;  %10972 = vst.msk [vmem:[#allocation4 + $0x2a] sm:$0x1] %vm523_vm5, %v10930_v12  ;;  %v22475_v43 = vld [vmem:[#allocation3 + $0x13a] sm:$0xff] }
 0x458   : > { %18432 = vmatprep.mubr.msk.f32.mxu1 %vm514_vm0, %v22203_v40 }
 0x459   : > { %v11124_v61 = vpop.permute.xlu1 %11123 }
 0x45a   : > { %18383 = vmatmul.mubr.msk.f32.gmra.mxu0 %vm514_vm0, %v22469_v45  ;;  %v11058_v40 = vpop.permute.xlu0 %11057  ;;  %11165 = vst.msk [vmem:[#allocation4 + $0x35] sm:$0x1] %vm523_vm5, %v11124_v61 }
 0x45b   : > { %18433 = vmatmul.mubr.msk.f32.gmra.mxu1 %vm514_vm0, %v22212_v60  ;;  %18385 = vmatprep.mubr.msk.f32.mxu0 %vm514_vm0, %v22475_v43  ;;  %11100 = vst.msk [vmem:[#allocation4 + $0x2c] sm:$0x1] %vm523_vm5, %v11058_v40  ;;  %v22489_v60 = vld [vmem:[#allocation3 + $0x152] sm:$0xff]  ;;  %v8447_v40 = vld [vmem:[#allocation3 + $0x21] sm:$0xff] }
 0x45c   : > { %18435 = vmatprep.mubr.msk.f32.mxu1 %vm514_vm0, %v22230_v57 }
 0x45d   : > { %v11252_v25 = vpop.permute.xlu1 %11251 }
 0x45e   : > { %18386 = vmatmul.mubr.msk.f32.gmra.mxu0 %vm514_vm0, %v22483_v8  ;;  %v11186_v57 = vpop.permute.xlu0 %11185  ;;  %11293 = vst.msk [vmem:[#allocation4 + $0x37] sm:$0x1] %vm523_vm5, %v11252_v25  ;;  %v22529_v25 = vld [vmem:[#allocation3 + $0x31] sm:$0xff] }
 0x45f   : > { %18436 = vmatmul.mubr.msk.f32.gmra.mxu1 %vm514_vm0, %v22234_v10  ;;  %18388 = vmatprep.mubr.msk.f32.mxu0 %vm514_vm0, %v22489_v60  ;;  %11228 = vst.msk [vmem:[#allocation4 + $0x2e] sm:$0x1] %vm523_vm5, %v11186_v57  ;;  %v22503_v10 = vld [vmem:[#allocation3 + $0x16a] sm:$0xff] }
 0x460   : > { %18438 = vmatprep.mubr.msk.f32.mxu1 %vm514_vm0, %v22251_v56 }
 0x461   : > { %v10878_v11 = vpop.permute.xlu1 %10877 }
 0x462   : > { %18389 = vmatmul.mubr.msk.f32.gmra.mxu0 %vm514_vm0, %v22497_v24  ;;  %v10932_v56 = vpop.permute.xlu0 %10931  ;;  %10914 = vst.msk [vmem:[#allocation4 + $0x59] sm:$0x1] %vm523_vm5, %v10878_v11  ;;  %v22534_v11 = vld [vmem:[%s25140_s9 + $0x40] sm:$0xff] }
 0x463   : > { %18439 = vmatmul.mubr.msk.f32.gmra.mxu1 %vm514_vm0, %v22258_v37  ;;  %18391 = vmatprep.mubr.msk.f32.mxu0 %vm514_vm0, %v22503_v10  ;;  %10973 = vst.msk [vmem:[#allocation4 + $0x32] sm:$0x1] %vm523_vm5, %v10932_v56  ;;  %v8446_v37 = vld [vmem:[#allocation3 + $0x19] sm:$0xff]  ;;  %v22559_v56 = vld [vmem:[#allocation3 + $0x51] sm:$0xff] }
 0x464   : > { %18441 = vmatprep.mubr.msk.f32.mxu1 %vm514_vm0, %v22505_v52 }
 0x465   : > { %v11006_v12 = vpop.permute.xlu1 %11005 }
 0x466   : > { %18392 = vmatmul.mubr.msk.f32.gmra.mxu0 %vm514_vm0, %v22513_v55  ;;  %v11060_v61 = vpop.permute.xlu0 %11059  ;;  %11042 = vst.msk [vmem:[#allocation4 + $0x5b] sm:$0x1] %vm523_vm5, %v11006_v12  ;;  %v22573_v12 = vld [vmem:[#allocation3 + $0x69] sm:$0xff] }
 0x467   : > { %18442 = vmatmul.mubr.msk.f32.gmra.mxu1 %vm514_vm0, %v22515_v63  ;;  %18446 = vmatprep.mubr.msk.f32.mxu0 %vm514_vm0, %v8446_v37  ;;  %11101 = vst.msk [vmem:[#allocation4 + $0x34] sm:$0x1] %vm523_vm5, %v11060_v61 }
 0x468   : > { %18496 = vmatprep.mubr.msk.f32.mxu1 %vm514_vm0, %v22279_v38 }
 0x469   : > { %v11134_v57 = vpop.permute.xlu1 %11133 }
 0x46a   : > { %18447 = vmatmul.mubr.msk.f32.vlgmr.msra.gmra.mxu0 %vm514_vm0, %v8447_v40  ;;  %v11188_v38 = vpop.permute.xlu0 %11187  ;;  %11170 = vst.msk [vmem:[#allocation4 + $0x5d] sm:$0x1] %vm523_vm5, %v11134_v57  ;;  %v22587_v40 = vld [vmem:[#allocation3 + $0x81] sm:$0xff] }
 0x46b   : > { %18497 = vmatmul.mubr.msk.f32.vlgmr.msra.gmra.mxu1 %vm514_vm0, %v22295_v23  ;;  %18449 = vmatprep.mubr.msk.f32.mxu0 %vm514_vm0, %v22529_v25  ;;  %11229 = vst.msk [vmem:[#allocation4 + $0x36] sm:$0x1] %vm523_vm5, %v11188_v38  ;;  %v22544_v23 = vld [vmem:[#allocation3 + $0x39] sm:$0xff] }
 0x46c   : > { %18499 = vmatprep.mubr.msk.f32.mxu1 %vm514_vm0, %v22311_v32  ;;  %18545 = vmatpush3.msra.mxu0 %v22300_v26  ;;  %v22551_v32 = vld [vmem:[#allocation3 + $0x49] sm:$0xff] }
 0x46d   : > { %18595 = vmatpush3.msra.mxu1 %v22305_v30  ;;  %18644 = vmatprep.subr.mxu0 %v22534_v11  ;;  %v11262_v30 = vpop.permute.xlu1 %11261 }
 0x46e   : > { %18450 = vmatmul.mubr.msk.f32.gmra.mxu0 %vm514_vm0, %v22544_v23  ;;  %v10942_v26 = vpop.permute.xlu0 %10941  ;;  %11298 = vst.msk [vmem:[#allocation4 + $0x5f] sm:$0x1] %vm523_vm5, %v11262_v30 }
 0x46f   : > { %18500 = vmatmul.mubr.msk.f32.gmra.mxu1 %vm514_vm0, %v22325_v5  ;;  %18452 = vmatprep.mubr.msk.f32.mxu0 %vm514_vm0, %v22551_v32  ;;  %10978 = vst.msk [vmem:[#allocation4 + $0x5a] sm:$0x1] %vm523_vm5, %v10942_v26  ;;  %v22565_v5 = vld [vmem:[#allocation3 + $0x61] sm:$0xff] }
 0x470   : > { %18502 = vmatprep.mubr.msk.f32.mxu1 %vm514_vm0, %v22331_v34 }
 0x472   : > { %18453 = vmatmul.mubr.msk.f32.gmra.mxu0 %vm514_vm0, %v22559_v56  ;;  %v11070_v34 = vpop.permute.xlu0 %11069  ;;  %v10882_v37 = vpop.permute.xlu1 %10881 }
 0x473   : > { %18503 = vmatmul.mubr.msk.f32.gmra.mxu1 %vm514_vm0, %v22341_v0  ;;  %18455 = vmatprep.mubr.msk.f32.mxu0 %vm514_vm0, %v22565_v5  ;;  %11106 = vst.msk [vmem:[#allocation4 + $0x5c] sm:$0x1] %vm523_vm5, %v11070_v34  ;;  %10916 = vst.msk [vmem:[#allocation4 + $0x69] sm:$0x1] %vm523_vm5, %v10882_v37  ;;  %v22579_v0 = vld [vmem:[#allocation3 + $0x79] sm:$0xff] }
 0x474   : > { %18505 = vmatprep.mubr.msk.f32.mxu1 %vm514_vm0, %v22347_v18  ;;  %v9228_v34 = vld [vmem:[#allocation3 + $0x80] sm:$0xff] }
 0x476   : > { %18456 = vmatmul.mubr.msk.f32.gmra.mxu0 %vm514_vm0, %v22573_v12  ;;  %v11198_v18 = vpop.permute.xlu0 %11197  ;;  %v11010_v61 = vpop.permute.xlu1 %11009 }
 0x477   : > { %18506 = vmatmul.mubr.msk.f32.gmra.mxu1 %vm514_vm0, %v22357_v62  ;;  %18458 = vmatprep.mubr.msk.f32.mxu0 %vm514_vm0, %v22579_v0  ;;  %11234 = vst.msk [vmem:[#allocation4 + $0x5e] sm:$0x1] %vm523_vm5, %v11198_v18  ;;  %11044 = vst.msk [vmem:[#allocation4 + $0x6b] sm:$0x1] %vm523_vm5, %v11010_v61  ;;  %v9616_v18 = vld [vmem:[#allocation3 + $0x91] sm:$0xff] }
 0x478   : > { %18508 = vmatprep.mubr.msk.f32.mxu1 %vm514_vm0, %v22363_v21 }
 0x47a   : > { %18459 = vmatmul.mubr.msk.f32.gmra.mxu0 %vm514_vm0, %v22587_v40  ;;  %v10946_v62 = vpop.permute.xlu0 %10945  ;;  %v11138_v21 = vpop.permute.xlu1 %11137 }
 0x47b   : > { %18509 = vmatmul.mubr.msk.f32.gmra.mxu1 %vm514_vm0, %v22371_v22  ;;  %18461 = vmatprep.mubr.msk.f32.mxu0 %vm514_vm0, %v21958_v14  ;;  %10980 = vst.msk [vmem:[#allocation4 + $0x6a] sm:$0x1] %vm523_vm5, %v10946_v62  ;;  %11172 = vst.msk [vmem:[#allocation4 + $0x6d] sm:$0x1] %vm523_vm5, %v11138_v21 }
 0x47c   : > { %18511 = vmatprep.mubr.msk.f32.mxu1 %vm514_vm0, %v22377_v44  ;;  %v22695_v44 = vld [vmem:[#allocation3 + $0x182] sm:$0xff] }
 0x47e   : > { %18462 = vmatmul.mubr.msk.f32.gmra.mxu0 %vm514_vm0, %v21986_v41 }
 0x47f   : > { %18512 = vmatmul.mubr.msk.f32.gmra.mxu1 %vm514_vm0, %v22385_v51  ;;  %18464 = vmatprep.mubr.msk.f32.mxu0 %vm514_vm0, %v22001_v49  ;;  %v11074_v14 = vpop.permute.xlu0 %11073  ;;  %v10870_v22 = vpop.permute.xlu1 %10869 }
 0x480   : > { %18514 = vmatprep.mubr.msk.f32.mxu1 %vm514_vm0, %v22391_v3  ;;  %11108 = vst.msk [vmem:[#allocation4 + $0x6c] sm:$0x1] %vm523_vm5, %v11074_v14  ;;  %10910 = vst.msk [vmem:[#allocation4 + $0x39] sm:$0x1] %vm523_vm5, %v10870_v22  ;;  %v22705_v3 = vld [vmem:[#allocation3 + $0x18a] sm:$0xff]  ;;  %v9230_v22 = vld [vmem:[#allocation3 + $0x98] sm:$0xff] }
 0x482   : > { %18465 = vmatmul.mubr.msk.f32.gmra.mxu0 %vm514_vm0, %v22029_v50 }
 0x483   : > { %18515 = vmatmul.mubr.msk.f32.gmra.mxu1 %vm514_vm0, %v22399_v46  ;;  %18467 = vmatprep.mubr.msk.f32.mxu0 %vm514_vm0, %v22040_v15  ;;  %v10934_v41 = vpop.permute.xlu0 %10933  ;;  %v10998_v49 = vpop.permute.xlu1 %10997  ;;  %v9221_v46 = vld [vmem:[#allocation3 + $0x30] sm:$0xff] }
 0x484   : > { %18517 = vmatprep.mubr.msk.f32.mxu1 %vm514_vm0, %v22405_v4  ;;  %10974 = vst.msk [vmem:[#allocation4 + $0x3a] sm:$0x1] %vm523_vm5, %v10934_v41  ;;  %11038 = vst.msk [vmem:[#allocation4 + $0x3b] sm:$0x1] %vm523_vm5, %v10998_v49  ;;  %v9617_v41 = vld [vmem:[#allocation3 + $0x99] sm:$0xff] }
 0x486   : > { %18468 = vmatmul.mubr.msk.f32.gmra.mxu0 %vm514_vm0, %v22068_v19 }
 0x487   : > { %18518 = vmatmul.mubr.msk.f32.gmra.mxu1 %vm514_vm0, %v22413_v9  ;;  %18470 = vmatprep.mubr.msk.f32.mxu0 %vm514_vm0, %v22078_v20  ;;  %v11062_v50 = vpop.permute.xlu0 %11061  ;;  %v11126_v15 = vpop.permute.xlu1 %11125 }
 0x488   : > { %18520 = vmatprep.mubr.msk.f32.mxu1 %vm514_vm0, %v22419_v27  ;;  %11102 = vst.msk [vmem:[#allocation4 + $0x3c] sm:$0x1] %vm523_vm5, %v11062_v50  ;;  %11166 = vst.msk [vmem:[#allocation4 + $0x3d] sm:$0x1] %vm523_vm5, %v11126_v15  ;;  %v9222_v27 = vld [vmem:[#allocation3 + $0x38] sm:$0xff]  ;;  %v9618_v50 = vld [vmem:[#allocation3 + $0xa9] sm:$0xff] }
 0x48a   : > { %18471 = vmatmul.mubr.msk.f32.gmra.mxu0 %vm514_vm0, %v22106_v28 }
 0x48b   : > { %18521 = vmatmul.mubr.msk.f32.gmra.mxu1 %vm514_vm0, %v22427_v17  ;;  %18473 = vmatprep.mubr.msk.f32.mxu0 %vm514_vm0, %v22117_v53  ;;  %v11190_v19 = vpop.permute.xlu0 %11189  ;;  %v22716_v17 = vpop.f32.mrf.mxu0 }
 0x48c   : > { %18523 = vmatprep.mubr.msk.f32.mxu1 %vm514_vm0, %v22433_v7  ;;  %v11254_v20 = vpop.permute.xlu1 %11253  ;;  %11230 = vst.msk [vmem:[#allocation4 + $0x3e] sm:$0x1] %vm523_vm5, %v11190_v19  ;;  %v22718_v7 = vpop.f32.mrf.mxu1 }
 0x48d   : > { %11294 = vst.msk [vmem:[#allocation4 + $0x3f] sm:$0x1] %vm523_vm5, %v11254_v20 }
 0x48e   : > { %18474 = vmatmul.mubr.msk.f32.gmra.mxu0 %vm514_vm0, %v22137_v39 }
 0x48f   : > { %18524 = vmatmul.mubr.msk.f32.gmra.mxu1 %vm514_vm0, %v22441_v13  ;;  %18476 = vmatprep.mubr.msk.f32.mxu0 %vm514_vm0, %v22145_v36  ;;  %v11202_v28 = vpop.permute.xlu0 %11201  ;;  %v9223_v13 = vld [vmem:[#allocation3 + $0x48] sm:$0xff] }
 0x490   : > { %18526 = vmatprep.mubr.msk.f32.mxu1 %vm514_vm0, %v22447_v42  ;;  %v11266_v53 = vpop.permute.xlu1 %11265  ;;  %11236 = vst.msk [vmem:[#allocation4 + $0x6e] sm:$0x1] %vm523_vm5, %v11202_v28  ;;  %v22725_v42 = vld [vmem:[#allocation4 + $0x20] sm:$0xff] }
 0x491   : > { %11300 = vst.msk [vmem:[#allocation4 + $0x6f] sm:$0x1] %vm523_vm5, %v11266_v53  ;;  %v9232_v53 = vld [vmem:[#allocation3 + $0xb0] sm:$0xff] }
 0x492   : > { %18477 = vmatmul.mubr.msk.f32.gmra.mxu0 %vm514_vm0, %v22167_v2 }
 0x493   : > { %18527 = vmatmul.mubr.msk.f32.gmra.mxu1 %vm514_vm0, %v22455_v1  ;;  %18479 = vmatprep.mubr.msk.f32.mxu0 %vm514_vm0, %v22175_v48  ;;  %v10884_v39 = vpop.permute.xlu0 %10883 }
 0x494   : > { %18529 = vmatprep.mubr.msk.f32.mxu1 %vm514_vm0, %v22461_v33  ;;  %v10948_v36 = vpop.permute.xlu1 %10947  ;;  %10917 = vst.msk [vmem:[#allocation4 + $0x71] sm:$0x1] %vm523_vm5, %v10884_v39  ;;  %v9619_v39 = vld [vmem:[#allocation3 + $0xb1] sm:$0xff] }
 0x495   : > { %10981 = vst.msk [vmem:[#allocation4 + $0x72] sm:$0x1] %vm523_vm5, %v10948_v36 }
 0x496   : > { %18480 = vmatmul.mubr.msk.f32.gmra.mxu0 %vm514_vm0, %v22194_v35 }
 0x497   : > { %18530 = vmatmul.mubr.msk.f32.gmra.mxu1 %vm514_vm0, %v22469_v45  ;;  %18482 = vmatprep.mubr.msk.f32.mxu0 %vm514_vm0, %v22201_v58  ;;  %v11012_v2 = vpop.permute.xlu0 %11011 }
 0x498   : > { %18532 = vmatprep.mubr.msk.f32.mxu1 %vm514_vm0, %v22475_v43  ;;  %v11076_v48 = vpop.permute.xlu1 %11075  ;;  %11045 = vst.msk [vmem:[#allocation4 + $0x73] sm:$0x1] %vm523_vm5, %v11012_v2 }
 0x499   : > { %11109 = vst.msk [vmem:[#allocation4 + $0x74] sm:$0x1] %vm523_vm5, %v11076_v48  ;;  %v9233_v48 = vld [vmem:[#allocation3 + $0xc0] sm:$0xff] }
 0x49a   : > { %18483 = vmatmul.mubr.msk.f32.gmra.mxu0 %vm514_vm0, %v22219_v16 }
 0x49b   : > { %18533 = vmatmul.mubr.msk.f32.gmra.mxu1 %vm514_vm0, %v22483_v8  ;;  %18485 = vmatprep.mubr.msk.f32.mxu0 %vm514_vm0, %v22228_v47  ;;  %v11140_v35 = vpop.permute.xlu0 %11139  ;;  %v9224_v8 = vld [vmem:[#allocation3 + $0x50] sm:$0xff] }
 0x49c   : > { %18535 = vmatprep.mubr.msk.f32.mxu1 %vm514_vm0, %v22489_v60  ;;  %v11204_v58 = vpop.permute.xlu1 %11203  ;;  %11173 = vst.msk [vmem:[#allocation4 + $0x75] sm:$0x1] %vm523_vm5, %v11140_v35  ;;  %v9620_v35 = vld [vmem:[#allocation3 + $0xc1] sm:$0xff] }
 0x49d   : > { %11237 = vst.msk [vmem:[#allocation4 + $0x76] sm:$0x1] %vm523_vm5, %v11204_v58 }
 0x49e   : > { %18486 = vmatmul.mubr.msk.f32.gmra.mxu0 %vm514_vm0, %v22243_v59  ;;  %v22693_v59 = vld [vmem:[#allocation3 + $0x181] sm:$0xff] }
 0x49f   : > { %18536 = vmatmul.mubr.msk.f32.gmra.mxu1 %vm514_vm0, %v22497_v24  ;;  %18488 = vmatprep.mubr.msk.f32.mxu0 %vm514_vm0, %v22249_v29  ;;  %v11268_v16 = vpop.permute.xlu0 %11267  ;;  %v9225_v24 = vld [vmem:[#allocation3 + $0x60] sm:$0xff] }
 0x4a0   : > { %18538 = vmatprep.mubr.msk.f32.mxu1 %vm514_vm0, %v22503_v10  ;;  %v10886_v47 = vpop.permute.xlu1 %10885  ;;  %11301 = vst.msk [vmem:[#allocation4 + $0x77] sm:$0x1] %vm523_vm5, %v11268_v16 }
 0x4a1   : > { %10918 = vst.msk [vmem:[#allocation4 + $0x79] sm:$0x1] %vm523_vm5, %v10886_v47 }
 0x4a2   : > { %18489 = vmatmul.mubr.msk.f32.gmra.mxu0 %vm514_vm0, %v22263_v6  ;;  %v22703_v6 = vld [vmem:[#allocation3 + $0x189] sm:$0xff] }
 0x4a3   : > { %18539 = vmatmul.mubr.msk.f32.gmra.mxu1 %vm514_vm0, %v22513_v55  ;;  %18491 = vmatprep.mubr.msk.f32.mxu0 %vm514_vm0, %v22693_v59  ;;  %v10950_v29 = vpop.permute.xlu0 %10949 }
 0x4a4   : > { %18541 = vmatprep.mubr.msk.f32.mxu1 %vm514_vm0, %v22695_v44  ;;  %v11014_v51 = vpop.permute.xlu1 %11013  ;;  %10982 = vst.msk [vmem:[#allocation4 + $0x7a] sm:$0x1] %vm523_vm5, %v10950_v29 }
 0x4a5   : > { %11046 = vst.msk [vmem:[#allocation4 + $0x7b] sm:$0x1] %vm523_vm5, %v11014_v51  ;;  %v9234_v51 = vld [vmem:[#allocation3 + $0xc8] sm:$0xff] }
 0x4a6   : > { %18492 = vmatmul.mubr.msk.f32.gmra.mxu0 %vm514_vm0, %v22703_v6 }
 0x4a7   : > { %18542 = vmatmul.mubr.msk.f32.gmra.mxu1 %vm514_vm0, %v22705_v3  ;;  %18546 = vmatprep.mubr.msk.f32.mxu0 %vm514_vm0, %v9221_v46  ;;  %v11078_v4 = vpop.permute.xlu0 %11077  ;;  %v18251_v45 = vpop.f32.mrf.mxu0  ;;  %v9621_v46 = vld [vmem:[#allocation3 + $0xc9] sm:$0xff] }
 0x4a8   : > { %18596 = vmatprep.mubr.msk.f32.mxu1 %vm514_vm0, %v22529_v25  ;;  %v11142_v9 = vpop.permute.xlu1 %11141  ;;  %11110 = vst.msk [vmem:[#allocation4 + $0x7c] sm:$0x1] %vm523_vm5, %v11078_v4 }
 0x4a9   : > { %11174 = vst.msk [vmem:[#allocation4 + $0x7d] sm:$0x1] %vm523_vm5, %v11142_v9  ;;  %v18301_v43 = vpop.f32.mrf.mxu1  ;;  %v7202_v10 = vpop.f32.mrf.mxu0 }
 0x4aa   : > { %18547 = vmatmul.mubr.msk.f32.vlgmr.msra.gmra.mxu0 %vm514_vm0, %v9222_v27  ;;  %v22732_v60 = vadd.f32 %v18301_v43, %v18251_v45  ;;  %v9235_v27 = vld [vmem:[#allocation3 + $0xd8] sm:$0xff] }
 0x4ab   : > { %18597 = vmatmul.mubr.msk.f32.vlgmr.msra.gmra.mxu1 %vm514_vm0, %v22544_v23  ;;  %18645 = vmatpush3.msra.mxu0 %v22534_v11  ;;  %v11206_v1 = vpop.permute.xlu0 %11205  ;;  %v7523_v55 = vpop.f32.mrf.mxu1  ;;  %v9226_v11 = vld [vmem:[#allocation3 + $0x68] sm:$0xff]  ;;  %v9227_v23 = vld [vmem:[#allocation3 + $0x78] sm:$0xff] }
 0x4ac   : > { %18549 = vmatprep.mubr.msk.f32.mxu0 %vm514_vm0, %v9223_v13  ;;  %v11270_v33 = vpop.permute.xlu1 %11269  ;;  %18599 = vmatprep.mubr.msk.f32.mxu1 %vm514_vm0, %v22551_v32  ;;  %11238 = vst.msk [vmem:[#allocation4 + $0x7e] sm:$0x1] %vm523_vm5, %v11206_v1  ;;  %v22740_v25 = vadd.f32 %v7523_v55, %v7202_v10  ;;  %v18254_v57 = vpop.f32.mrf.mxu0  ;;  %v9622_v13 = vld [vmem:[#allocation3 + $0xd9] sm:$0xff] }
 0x4ad   : > { %18714 = vmatprep.subr.mxu0 %v22725_v42  ;;  %11302 = vst.msk [vmem:[#allocation4 + $0x7f] sm:$0x1] %vm523_vm5, %v11270_v33 }
 0x4ae   : > { %18550 = vmatmul.mubr.msk.f32.gmra.mxu0 %vm514_vm0, %v9224_v8  ;;  %v18304_v38 = vpop.f32.mrf.mxu1  ;;  %v7212_v32 = vpop.f32.mrf.mxu0  ;;  %v9236_v8 = vld [vmem:[#allocation3 + $0xe0] sm:$0xff] }
 0x4af   : > { %18600 = vmatmul.mubr.msk.f32.gmra.mxu1 %vm514_vm0, %v22559_v56  ;;  %18552 = vmatprep.mubr.msk.f32.mxu0 %vm514_vm0, %v9225_v24  ;;  %v22745_v26 = vadd.f32 %v18304_v38, %v18254_v57  ;;  %v9623_v24 = vld [vmem:[#allocation3 + $0xe1] sm:$0xff]  ;;  %v9237_v57 = vld [vmem:[#allocation3 + $0xf0] sm:$0xff] }
 0x4b0   : > { %18602 = vmatprep.mubr.msk.f32.mxu1 %vm514_vm0, %v22565_v5  ;;  %v7533_v30 = vpop.f32.mrf.mxu1  ;;  %v18257_v56 = vpop.f32.mrf.mxu0 }
 0x4b1   : > { %v22750_v5 = vadd.f32 %v7533_v30, %v7212_v32 }
 0x4b2   : > { %18553 = vmatmul.mubr.msk.f32.gmra.mxu0 %vm514_vm0, %v9226_v11  ;;  %v18307_v37 = vpop.f32.mrf.mxu1  ;;  %v7222_v61 = vpop.f32.mrf.mxu0  ;;  %v9624_v11 = vld [vmem:[#allocation3 + $0xf1] sm:$0xff] }
 0x4b3   : > { %18603 = vmatmul.mubr.msk.f32.gmra.mxu1 %vm514_vm0, %v22573_v12  ;;  %18555 = vmatprep.mubr.msk.f32.mxu0 %vm514_vm0, %v9227_v23  ;;  %v9229_v12 = vld [vmem:[#allocation3 + $0x90] sm:$0xff]  ;;  %v22755_v62 = vadd.f32 %v18307_v37, %v18257_v56  ;;  %v9238_v56 = vld [vmem:[#allocation3 + $0xf8] sm:$0xff] }
 0x4b4   : > { %18605 = vmatprep.mubr.msk.f32.mxu1 %vm514_vm0, %v22579_v0  ;;  %v7543_v0 = vpop.f32.mrf.mxu1 }
 0x4b5   : > { %v18260_v21 = vpop.f32.mrf.mxu0  ;;  %v22759_v14 = vadd.f32 %v7543_v0, %v7222_v61  ;;  %v9626_v61 = vld [vmem:[#allocation3 + $0x109] sm:$0xff] }
 0x4b6   : > { %18556 = vmatmul.mubr.msk.f32.gmra.mxu0 %vm514_vm0, %v9228_v34  ;;  %v18310_v49 = vpop.f32.mrf.mxu1  ;;  %v9625_v34 = vld [vmem:[#allocation3 + $0xf9] sm:$0xff] }
 0x4b7   : > { %18606 = vmatmul.mubr.msk.f32.gmra.mxu1 %vm514_vm0, %v22587_v40  ;;  %18558 = vmatprep.mubr.msk.f32.mxu0 %vm514_vm0, %v9229_v12  ;;  %v9231_v40 = vld [vmem:[#allocation3 + $0xa8] sm:$0xff]  ;;  %v7232_v15 = vpop.f32.mrf.mxu0  ;;  %v22763_v19 = vadd.f32 %v18310_v49, %v18260_v21  ;;  %v9627_v49 = vld [vmem:[#allocation3 + $0x111] sm:$0xff] }
 0x4b8   : > { %18608 = vmatprep.mubr.msk.f32.mxu1 %vm514_vm0, %v9616_v18  ;;  %v7553_v20 = vpop.f32.mrf.mxu1  ;;  %v9239_v18 = vld [vmem:[#allocation3 + $0x108] sm:$0xff] }
 0x4b9   : > { %v22767_v28 = vadd.f32 %v7553_v20, %v7232_v15  ;;  %v9241_v15 = vld [vmem:[#allocation3 + $0x120] sm:$0xff] }
 0x4ba   : > { %18559 = vmatmul.mubr.msk.f32.gmra.mxu0 %vm514_vm0, %v9230_v22  ;;  %v9628_v20 = vld [vmem:[#allocation3 + $0x121] sm:$0xff] }
 0x4bb   : > { %18609 = vmatmul.mubr.msk.f32.gmra.mxu1 %vm514_vm0, %v9617_v41  ;;  %18561 = vmatprep.mubr.msk.f32.mxu0 %vm514_vm0, %v9231_v40  ;;  %v18313_v2 = vpop.f32.mrf.mxu1  ;;  %v9240_v41 = vld [vmem:[#allocation3 + $0x110] sm:$0xff] }
 0x4bc   : > { %18611 = vmatprep.mubr.msk.f32.mxu1 %vm514_vm0, %v9618_v50  ;;  %v18263_v36 = vpop.f32.mrf.mxu0 }
 0x4bd   : > { %v22771_v58 = vadd.f32 %v18313_v2, %v18263_v36  ;;  %v7563_v47 = vpop.f32.mrf.mxu1  ;;  %v9242_v2 = vld [vmem:[#allocation3 + $0x128] sm:$0xff] }
 0x4be   : > { %18562 = vmatmul.mubr.msk.f32.gmra.mxu0 %vm514_vm0, %v9232_v53  ;;  %v7242_v16 = vpop.f32.mrf.mxu0 }
 0x4bf   : > { %18612 = vmatmul.mubr.msk.f32.gmra.mxu1 %vm514_vm0, %v9619_v39  ;;  %18564 = vmatprep.mubr.msk.f32.mxu0 %vm514_vm0, %v9233_v48  ;;  %v22775_v29 = vadd.f32 %v7563_v47, %v7242_v16  ;;  %v9629_v48 = vld [vmem:[#allocation3 + $0x129] sm:$0xff]  ;;  %v9243_v47 = vld [vmem:[#allocation3 + $0x138] sm:$0xff] }
 0x4c0   : > { %18614 = vmatprep.mubr.msk.f32.mxu1 %vm514_vm0, %v9620_v35  ;;  %v18266_v4 = vpop.f32.mrf.mxu0 }
 0x4c1   : > { %v18316_v9 = vpop.f32.mrf.mxu1 }
 0x4c2   : > { %18565 = vmatmul.mubr.msk.f32.gmra.mxu0 %vm514_vm0, %v9234_v51  ;;  %v22779_v1 = vadd.f32 %v18316_v9, %v18266_v4  ;;  %v7252_v33 = vpop.f32.mrf.mxu0  ;;  %v9630_v51 = vld [vmem:[#allocation3 + $0x139] sm:$0xff] }
 0x4c3   : > { %18615 = vmatmul.mubr.msk.f32.gmra.mxu1 %vm514_vm0, %v9621_v46  ;;  %18567 = vmatprep.mubr.msk.f32.mxu0 %vm514_vm0, %v9235_v27  ;;  %v7573_v45 = vpop.f32.mrf.mxu1  ;;  %v9244_v27 = vld [vmem:[#allocation3 + $0x140] sm:$0xff] }
 0x4c4   : > { %18617 = vmatprep.mubr.msk.f32.mxu1 %vm514_vm0, %v9622_v13  ;;  %v22783_v43 = vadd.f32 %v7573_v45, %v7252_v33  ;;  %v9631_v13 = vld [vmem:[#allocation3 + $0x141] sm:$0xff] }
 0x4c5   : > { %v18269_v10 = vpop.f32.mrf.mxu0  ;;  %v18319_v55 = vpop.f32.mrf.mxu1 }
 0x4c6   : > { %18568 = vmatmul.mubr.msk.f32.gmra.mxu0 %vm514_vm0, %v9236_v8  ;;  %v22787_v38 = vadd.f32 %v18319_v55, %v18269_v10  ;;  %v9245_v8 = vld [vmem:[#allocation3 + $0x150] sm:$0xff] }
 0x4c7   : > { %18618 = vmatmul.mubr.msk.f32.gmra.mxu1 %vm514_vm0, %v9623_v24  ;;  %18570 = vmatprep.mubr.msk.f32.mxu0 %vm514_vm0, %v9237_v57  ;;  %v7262_v23 = vpop.f32.mrf.mxu0  ;;  %v7583_v32 = vpop.f32.mrf.mxu1  ;;  %v9632_v24 = vld [vmem:[#allocation3 + $0x151] sm:$0xff] }
 0x4c8   : > { %18620 = vmatprep.mubr.msk.f32.mxu1 %vm514_vm0, %v9624_v11  ;;  %v22791_v30 = vadd.f32 %v7583_v32, %v7262_v23  ;;  %v9246_v11 = vld [vmem:[#allocation3 + $0x158] sm:$0xff] }
 0x4c9   : > { %v9633_v23 = vld [vmem:[#allocation3 + $0x159] sm:$0xff] }
 0x4ca   : > { %v18272_v37 = vpop.f32.mrf.mxu0  ;;  %v18322_v12 = vpop.f32.mrf.mxu1  ;;  %18571 = vmatmul.mubr.msk.f32.gmra.mxu0 %vm514_vm0, %v9238_v56 }
 0x4cb   : > { %18621 = vmatmul.mubr.msk.f32.gmra.mxu1 %vm514_vm0, %v9625_v34  ;;  %v22795_v0 = vadd.f32 %v18322_v12, %v18272_v37  ;;  %18573 = vmatprep.mubr.msk.f32.mxu0 %vm514_vm0, %v9239_v18  ;;  %v9247_v34 = vld [vmem:[#allocation3 + $0x168] sm:$0xff] }
 0x4cc   : > { %18623 = vmatprep.mubr.msk.f32.mxu1 %vm514_vm0, %v9626_v61  ;;  %v22799_v21 = vpop.f32.mrf.mxu0  ;;  %v22801_v22 = vpop.f32.mrf.mxu1  ;;  %v9634_v37 = vld [vmem:[#allocation3 + $0x169] sm:$0xff] }
 0x4ce   : > { %v18275_v40 = vpop.f32.mrf.mxu0  ;;  %v18325_v50 = vpop.f32.mrf.mxu1  ;;  %18574 = vmatmul.mubr.msk.f32.gmra.mxu0 %vm514_vm0, %v9240_v41  ;;  %v9248_v41 = vld [vmem:[#allocation3 + $0x170] sm:$0xff] }
 0x4cf   : > { %18624 = vmatmul.mubr.msk.f32.gmra.mxu1 %vm514_vm0, %v9627_v49  ;;  %v22805_v53 = vadd.f32 %v18325_v50, %v18275_v40  ;;  %18576 = vmatprep.mubr.msk.f32.mxu0 %vm514_vm0, %v9241_v15  ;;  %v9635_v49 = vld [vmem:[#allocation3 + $0x171] sm:$0xff] }
 0x4d0   : > { %18626 = vmatprep.mubr.msk.f32.mxu1 %vm514_vm0, %v9628_v20  ;;  %v22809_v39 = vpop.f32.mrf.mxu0  ;;  %v22811_v36 = vpop.f32.mrf.mxu1 }
 0x4d2   : > { %v18278_v35 = vpop.f32.mrf.mxu0  ;;  %v18328_v16 = vpop.f32.mrf.mxu1  ;;  %18577 = vmatmul.mubr.msk.f32.gmra.mxu0 %vm514_vm0, %v9242_v2 }
 0x4d3   : > { %18627 = vmatmul.mubr.msk.f32.gmra.mxu1 %vm514_vm0, %v9629_v48  ;;  %v22815_v46 = vadd.f32 %v18328_v16, %v18278_v35  ;;  %18579 = vmatprep.mubr.msk.f32.mxu0 %vm514_vm0, %v9243_v47  ;;  %v9251_v48 = vld [vmem:[#allocation3 + $0x198] sm:$0xff] }
 0x4d4   : > { %18629 = vmatprep.mubr.msk.f32.mxu1 %vm514_vm0, %v9630_v51  ;;  %v22819_v4 = vpop.f32.mrf.mxu0  ;;  %v22821_v9 = vpop.f32.mrf.mxu1  ;;  %v9638_v35 = vld [vmem:[#allocation3 + $0x199] sm:$0xff] }
 0x4d6   : > { %v18281_v33 = vpop.f32.mrf.mxu0  ;;  %v18331_v45 = vpop.f32.mrf.mxu1  ;;  %18580 = vmatmul.mubr.msk.f32.gmra.mxu0 %vm514_vm0, %v9244_v27 }
 0x4d7   : > { %18630 = vmatmul.mubr.msk.f32.gmra.mxu1 %vm514_vm0, %v9631_v13  ;;  %v22825_v10 = vadd.f32 %v18331_v45, %v18281_v33  ;;  %18582 = vmatprep.mubr.msk.f32.mxu0 %vm514_vm0, %v9245_v8 }
 0x4d8   : > { %18632 = vmatprep.mubr.msk.f32.mxu1 %vm514_vm0, %v9632_v24  ;;  %v22829_v55 = vpop.f32.mrf.mxu0  ;;  %v22831_v57 = vpop.f32.mrf.mxu1 }
 0x4da   : > { %v18284_v32 = vpop.f32.mrf.mxu0  ;;  %18583 = vmatmul.mubr.msk.f32.gmra.mxu0 %vm514_vm0, %v9246_v11  ;;  %v9996_v11 = vld [vmem:[#allocation3 + $0x3a] sm:$0xff] }
 0x4db   : > { %v18334_v56 = vpop.f32.mrf.mxu1  ;;  %18633 = vmatmul.mubr.msk.f32.gmra.mxu1 %vm514_vm0, %v9633_v23  ;;  %18585 = vmatprep.mubr.msk.f32.mxu0 %vm514_vm0, %v9247_v34 }
 0x4dc   : > { %v22835_v12 = vadd.f32 %v18334_v56, %v18284_v32  ;;  %18635 = vmatprep.mubr.msk.f32.mxu1 %vm514_vm0, %v9634_v37  ;;  %v22839_v18 = vpop.f32.mrf.mxu0  ;;  %v9997_v56 = vld [vmem:[#allocation3 + $0x4a] sm:$0xff]  ;;  %v22880_v37 = vld [vmem:[#allocation4 + $0x30] sm:$0xff] }
 0x4dd   : > { %v22841_v61 = vpop.f32.mrf.mxu1 }
 0x4de   : > { %v18287_v40 = vpop.f32.mrf.mxu0  ;;  %18586 = vmatmul.mubr.msk.f32.gmra.mxu0 %vm514_vm0, %v9248_v41 }
 0x4df   : > { %v18337_v50 = vpop.f32.mrf.mxu1  ;;  %18636 = vmatmul.mubr.msk.f32.gmra.mxu1 %vm514_vm0, %v9635_v49  ;;  %18588 = vmatprep.mubr.msk.f32.mxu0 %vm514_vm0, %v22505_v52  ;;  %v9252_v52 = vld [vmem:[#allocation3 + $0x1a0] sm:$0xff] }
 0x4e0   : > { %v22845_v15 = vadd.f32 %v18337_v50, %v18287_v40  ;;  %18638 = vmatprep.mubr.msk.f32.mxu1 %vm514_vm0, %v22693_v59  ;;  %v22851_v20 = vpop.f32.mrf.mxu0  ;;  %v9639_v59 = vld [vmem:[#allocation3 + $0x1a1] sm:$0xff]  ;;  %v9998_v50 = vld [vmem:[#allocation3 + $0x52] sm:$0xff] }
 0x4e1   : > { %v22853_v2 = vpop.f32.mrf.mxu1 }
 0x4e2   : > { %v18290_v16 = vpop.f32.mrf.mxu0  ;;  %18589 = vmatmul.mubr.msk.f32.gmra.mxu0 %vm514_vm0, %v22515_v63  ;;  %v9995_v63 = vld [vmem:[#allocation3 + $0x32] sm:$0xff] }
 0x4e3   : > { %v18340_v47 = vpop.f32.mrf.mxu1  ;;  %18639 = vmatmul.mubr.msk.f32.gmra.mxu1 %vm514_vm0, %v22703_v6  ;;  %18591 = vmatprep.mubr.msk.f32.mxu0 %vm514_vm0, %v9251_v48 }
 0x4e4   : > { %v22859_v51 = vadd.f32 %v18340_v47, %v18290_v16  ;;  %18641 = vmatprep.mubr.msk.f32.mxu1 %vm514_vm0, %v9638_v35  ;;  %v22863_v27 = vpop.f32.mrf.mxu0 }
 0x4e5   : > { %v22865_v13 = vpop.f32.mrf.mxu1 }
 0x4e6   : > { %v18293_v33 = vpop.f32.mrf.mxu0  ;;  %18592 = vmatmul.mubr.msk.f32.gmra.mxu0 %vm514_vm0, %v9252_v52 }
 0x4e7   : > { %v18343_v45 = vpop.f32.mrf.mxu1  ;;  %18642 = vmatmul.mubr.msk.f32.gmra.mxu1 %vm514_vm0, %v9639_v59  ;;  %18646 = vmatprep.mubr.msk.f32.mxu0 %vm514_vm0, %v9995_v63 }
 0x4e8   : > { %v22869_v6 = vadd.f32 %v18343_v45, %v18293_v33  ;;  %v22872_v8 = vpop.f32.mrf.mxu0  ;;  %v10000_v33 = vld [vmem:[#allocation3 + $0x6a] sm:$0xff] }
 0x4e9   : > { %v22874_v24 = vpop.f32.mrf.mxu1 }
 0x4ea   : > { %v18348_v23 = vpop.f32.mrf.mxu0  ;;  %18647 = vmatmul.mubr.msk.f32.vlgmr.msra.gmra.mxu0 %vm514_vm0, %v9996_v11  ;;  %v10001_v11 = vld [vmem:[#allocation3 + $0x7a] sm:$0xff] }
 0x4eb   : > { %v18398_v32 = vpop.f32.mrf.mxu1  ;;  %v8028_v34 = vadd.f32 %v18348_v23, %v22320_v54  ;;  %18715 = vmatpush3.msra.mxu0 %v22725_v42  ;;  %18649 = vmatprep.mubr.msk.f32.mxu0 %vm514_vm0, %v9997_v56  ;;  %v9999_v54 = vld [vmem:[#allocation3 + $0x62] sm:$0xff] }
 0x4ec   : > { %18724 = vmatprep.subr.mxu0 %v22880_v37  ;;  %v22883_v41 = vpop.f32.mrf.mxu0 }
 0x4ed   : > { %v22885_v49 = vpop.f32.mrf.mxu1  ;;  %v22887_v40 = vadd.f32 %v18398_v32, %v8028_v34 }
 0x4ee   : > { %v18351_v48 = vpop.f32.mrf.mxu0  ;;  %18650 = vmatmul.mubr.msk.f32.gmra.mxu0 %vm514_vm0, %v9998_v50 }
 0x4ef   : > { %v18401_v35 = vpop.f32.mrf.mxu1  ;;  %v8030_v42 = vadd.f32 %v18351_v48, %v22732_v60  ;;  %18652 = vmatprep.mubr.msk.f32.mxu0 %vm514_vm0, %v9999_v54 }
 0x4f0   : > { %v7878_v16 = vpop.f32.mrf.mxu0 }
 0x4f1   : > { %v22892_v47 = vpop.f32.mrf.mxu1  ;;  %v22894_v52 = vadd.f32 %v18401_v35, %v8030_v42  ;;  %v22897_v59 = vadd.f32 %v7878_v16, %v22740_v25  ;;  %v10002_v25 = vld [vmem:[#allocation3 + $0x82] sm:$0xff]  ;;  %v10003_v35 = vld [vmem:[#allocation3 + $0x92] sm:$0xff] }
 0x4f2   : > { %v18354_v45 = vpop.f32.mrf.mxu0  ;;  %18653 = vmatmul.mubr.msk.f32.gmra.mxu0 %vm514_vm0, %v10000_v33 }
 0x4f3   : > { %v18404_v63 = vpop.f32.mrf.mxu1  ;;  %v8032_v23 = vadd.f32 %v18354_v45, %v22745_v26  ;;  %18655 = vmatprep.mubr.msk.f32.mxu0 %vm514_vm0, %v10001_v11  ;;  %v10004_v45 = vld [vmem:[#allocation3 + $0x9a] sm:$0xff]  ;;  %v10005_v11 = vld [vmem:[#allocation3 + $0xaa] sm:$0xff] }
 0x4f4   : > { %v7888_v60 = vpop.f32.mrf.mxu0 }
 0x4f5   : > { %v22902_v32 = vpop.f32.mrf.mxu1  ;;  %v22904_v56 = vadd.f32 %v18404_v63, %v8032_v23  ;;  %v22907_v34 = vadd.f32 %v7888_v60, %v22750_v5 }
 0x4f6   : > { %v18357_v50 = vpop.f32.mrf.mxu0  ;;  %18656 = vmatmul.mubr.msk.f32.gmra.mxu0 %vm514_vm0, %v10002_v25 }
 0x4f7   : > { %v18407_v48 = vpop.f32.mrf.mxu1  ;;  %v8034_v54 = vadd.f32 %v18357_v50, %v22755_v62  ;;  %18658 = vmatprep.mubr.msk.f32.mxu0 %vm514_vm0, %v10003_v35  ;;  %v10006_v35 = vld [vmem:[#allocation3 + $0xb2] sm:$0xff] }
 0x4f8   : > { %v7898_v26 = vpop.f32.mrf.mxu0 }
 0x4f9   : > { %v8285_v42 = vpop.f32.mrf.mxu1  ;;  %v22912_v16 = vadd.f32 %v18407_v48, %v8034_v54  ;;  %v8033_v33 = vadd.f32 %v7898_v26, %v22759_v14  ;;  %v10007_v26 = vld [vmem:[#allocation3 + $0xc2] sm:$0xff] }
 0x4fa   : > { %v18360_v63 = vpop.f32.mrf.mxu0  ;;  %18659 = vmatmul.mubr.msk.f32.gmra.mxu0 %vm514_vm0, %v10004_v45 }
 0x4fb   : > { %v18410_v5 = vpop.f32.mrf.mxu1  ;;  %v22916_v23 = vadd.f32 %v8285_v42, %v8033_v33  ;;  %v8036_v60 = vadd.f32 %v18360_v63, %v22763_v19  ;;  %18661 = vmatprep.mubr.msk.f32.mxu0 %vm514_vm0, %v10005_v11  ;;  %v10008_v11 = vld [vmem:[#allocation3 + $0xca] sm:$0xff] }
 0x4fc   : > { %v7908_v62 = vpop.f32.mrf.mxu0 }
 0x4fd   : > { %v8295_v25 = vpop.f32.mrf.mxu1  ;;  %v22920_v50 = vadd.f32 %v18410_v5, %v8036_v60  ;;  %v8035_v48 = vadd.f32 %v7908_v62, %v22767_v28  ;;  %v10009_v62 = vld [vmem:[#allocation3 + $0xda] sm:$0xff] }
 0x4fe   : > { %v18363_v14 = vpop.f32.mrf.mxu0  ;;  %18662 = vmatmul.mubr.msk.f32.gmra.mxu0 %vm514_vm0, %v10006_v35 }
 0x4ff   : > { %v18413_v54 = vpop.f32.mrf.mxu1  ;;  %v22924_v45 = vadd.f32 %v8295_v25, %v8035_v48  ;;  %v8038_v42 = vadd.f32 %v18363_v14, %v22771_v58  ;;  %18664 = vmatprep.mubr.msk.f32.mxu0 %vm514_vm0, %v10007_v26  ;;  %v10010_v26 = vld [vmem:[#allocation3 + $0xe2] sm:$0xff] }
 0x500   : > { %v7918_v19 = vpop.f32.mrf.mxu0 }
 0x501   : > { %v8305_v33 = vpop.f32.mrf.mxu1  ;;  %v22928_v63 = vadd.f32 %v18413_v54, %v8038_v42  ;;  %v8037_v5 = vadd.f32 %v7918_v19, %v22775_v29  ;;  %v10011_v19 = vld [vmem:[#allocation3 + $0xf2] sm:$0xff] }
 0x502   : > { %v18366_v28 = vpop.f32.mrf.mxu0  ;;  %18665 = vmatmul.mubr.msk.f32.gmra.mxu0 %vm514_vm0, %v10008_v11 }
 0x503   : > { %v18416_v60 = vpop.f32.mrf.mxu1  ;;  %v22932_v35 = vadd.f32 %v8305_v33, %v8037_v5  ;;  %v8040_v25 = vadd.f32 %v18366_v28, %v22779_v1  ;;  %18667 = vmatprep.mubr.msk.f32.mxu0 %vm514_vm0, %v10009_v62  ;;  %v10012_v62 = vld [vmem:[#allocation3 + $0xfa] sm:$0xff] }
 0x504   : > { %v7928_v58 = vpop.f32.mrf.mxu0 }
 0x505   : > { %v8315_v48 = vpop.f32.mrf.mxu1  ;;  %v22936_v14 = vadd.f32 %v18416_v60, %v8040_v25  ;;  %v8039_v54 = vadd.f32 %v7928_v58, %v22783_v43  ;;  %v10013_v58 = vld [vmem:[#allocation3 + $0x10a] sm:$0xff] }
 0x506   : > { %v18369_v29 = vpop.f32.mrf.mxu0  ;;  %18668 = vmatmul.mubr.msk.f32.gmra.mxu0 %vm514_vm0, %v10010_v26 }
 0x507   : > { %v18419_v42 = vpop.f32.mrf.mxu1  ;;  %v22940_v11 = vadd.f32 %v8315_v48, %v8039_v54  ;;  %v8042_v33 = vadd.f32 %v18369_v29, %v22787_v38  ;;  %18670 = vmatprep.mubr.msk.f32.mxu0 %vm514_vm0, %v10011_v19  ;;  %v7594_v48 = vadd.f32 %v22801_v22, %v22799_v21  ;;  %v10014_v19 = vld [vmem:[#allocation3 + $0x112] sm:$0xff]  ;;  %v7604_v21 = vadd.f32 %v22811_v36, %v22809_v39 }
 0x508   : > { %v7938_v1 = vpop.f32.mrf.mxu0  ;;  %v7614_v39 = vadd.f32 %v22821_v9, %v22819_v4  ;;  %v7624_v4 = vadd.f32 %v22831_v57, %v22829_v55  ;;  %v7634_v55 = vadd.f32 %v22841_v61, %v22839_v18 }
 0x509   : > { %v8325_v5 = vpop.f32.mrf.mxu1  ;;  %v22944_v28 = vadd.f32 %v18419_v42, %v8042_v33  ;;  %v8041_v60 = vadd.f32 %v7938_v1, %v22791_v30 }
 0x50a   : > { %v18372_v43 = vpop.f32.mrf.mxu0  ;;  %18671 = vmatmul.mubr.msk.f32.gmra.mxu0 %vm514_vm0, %v10012_v62  ;;  %v10015_v62 = vld [vmem:[#allocation3 + $0x122] sm:$0xff] }
 0x50b   : > { %v18422_v25 = vpop.f32.mrf.mxu1  ;;  %v22950_v54 = vadd.f32 %v8325_v5, %v8041_v60  ;;  %v8044_v38 = vadd.f32 %v18372_v43, %v22795_v0  ;;  %18673 = vmatprep.mubr.msk.f32.mxu0 %vm514_vm0, %v10013_v58  ;;  %v10016_v58 = vld [vmem:[#allocation3 + $0x12a] sm:$0xff] }
 0x50c   : > { %v7948_v26 = vpop.f32.mrf.mxu0 }
 0x50d   : > { %v8335_v29 = vpop.f32.mrf.mxu1  ;;  %v22954_v42 = vadd.f32 %v18422_v25, %v8044_v38  ;;  %v8043_v30 = vadd.f32 %v7948_v26, %v7594_v48  ;;  %v10017_v26 = vld [vmem:[#allocation3 + $0x13a] sm:$0xff] }
 0x50e   : > { %v18375_v33 = vpop.f32.mrf.mxu0  ;;  %18674 = vmatmul.mubr.msk.f32.gmra.mxu0 %vm514_vm0, %v10014_v19 }
 0x50f   : > { %v18425_v1 = vpop.f32.mrf.mxu1  ;;  %v22959_v22 = vadd.f32 %v8335_v29, %v8043_v30  ;;  %v8046_v0 = vadd.f32 %v18375_v33, %v22805_v53  ;;  %18676 = vmatprep.mubr.msk.f32.mxu0 %vm514_vm0, %v10015_v62 }
 0x510   : > { %v7958_v5 = vpop.f32.mrf.mxu0 }
 0x511   : > { %v8345_v60 = vpop.f32.mrf.mxu1  ;;  %v22963_v43 = vadd.f32 %v18425_v1, %v8046_v0  ;;  %v8045_v25 = vadd.f32 %v7958_v5, %v7604_v21  ;;  %v10018_v1 = vld [vmem:[#allocation3 + $0x142] sm:$0xff]  ;;  %v10019_v0 = vld [vmem:[#allocation3 + $0x152] sm:$0xff] }
 0x512   : > { %v18378_v48 = vpop.f32.mrf.mxu0  ;;  %18677 = vmatmul.mubr.msk.f32.gmra.mxu0 %vm514_vm0, %v10016_v58 }
 0x513   : > { %v18428_v38 = vpop.f32.mrf.mxu1  ;;  %v22968_v36 = vadd.f32 %v8345_v60, %v8045_v25  ;;  %v8048_v53 = vadd.f32 %v18378_v48, %v22815_v46  ;;  %18679 = vmatprep.mubr.msk.f32.mxu0 %vm514_vm0, %v10017_v26  ;;  %v10020_v48 = vld [vmem:[#allocation3 + $0x15a] sm:$0xff] }
 0x514   : > { %v7968_v29 = vpop.f32.mrf.mxu0 }
 0x515   : > { %v8355_v30 = vpop.f32.mrf.mxu1  ;;  %v22972_v19 = vadd.f32 %v18428_v38, %v8048_v53  ;;  %v8047_v33 = vadd.f32 %v7968_v29, %v7614_v39  ;;  %v10021_v39 = vld [vmem:[#allocation3 + $0x16a] sm:$0xff] }
 0x516   : > { %v18381_v62 = vpop.f32.mrf.mxu0  ;;  %18680 = vmatmul.mubr.msk.f32.gmra.mxu0 %vm514_vm0, %v10018_v1  ;;  %v10022_v1 = vld [vmem:[#allocation3 + $0x172] sm:$0xff] }
 0x517   : > { %v18431_v21 = vpop.f32.mrf.mxu1  ;;  %v22977_v9 = vadd.f32 %v8355_v30, %v8047_v33  ;;  %v8050_v46 = vadd.f32 %v18381_v62, %v22825_v10  ;;  %18682 = vmatprep.mubr.msk.f32.mxu0 %vm514_vm0, %v10019_v0  ;;  %v7644_v0 = vadd.f32 %v22853_v2, %v22851_v20  ;;  %v7654_v20 = vadd.f32 %v22865_v13, %v22863_v27 }
 0x518   : > { %v7978_v5 = vpop.f32.mrf.mxu0 }
 0x519   : > { %v8365_v60 = vpop.f32.mrf.mxu1  ;;  %v22981_v25 = vadd.f32 %v18431_v21, %v8050_v46  ;;  %v8049_v58 = vadd.f32 %v7978_v5, %v7624_v4  ;;  %v10025_v46 = vld [vmem:[#allocation3 + $0x19a] sm:$0xff] }
 0x51a   : > { %v18384_v38 = vpop.f32.mrf.mxu0  ;;  %18683 = vmatmul.mubr.msk.f32.gmra.mxu0 %vm514_vm0, %v10020_v48 }
 0x51b   : > { %v18434_v26 = vpop.f32.mrf.mxu1  ;;  %v22986_v57 = vadd.f32 %v8365_v60, %v8049_v58  ;;  %v8052_v10 = vadd.f32 %v18384_v38, %v22835_v12  ;;  %18685 = vmatprep.mubr.msk.f32.mxu0 %vm514_vm0, %v10021_v39  ;;  %v23013_v39 = vld [vmem:[%s25143_s12] sm:$0xff] }
 0x51c   : > { %v7988_v53 = vpop.f32.mrf.mxu0  ;;  %25585 = vst [vmem:[#allocation19_spill] sm:$0xff] %v23013_v39 }
 0x51d   : > { %v8375_v29 = vpop.f32.mrf.mxu1  ;;  %v22990_v30 = vadd.f32 %v18434_v26, %v8052_v10  ;;  %v8051_v33 = vadd.f32 %v7988_v53, %v7634_v55 }
 0x51e   : > { %v18387_v62 = vpop.f32.mrf.mxu0  ;;  %18686 = vmatmul.mubr.msk.f32.gmra.mxu0 %vm514_vm0, %v10022_v1 }
 0x51f   : > { %v18437_v21 = vpop.f32.mrf.mxu1  ;;  %v22995_v18 = vadd.f32 %v8375_v29, %v8051_v33  ;;  %v8054_v61 = vadd.f32 %v18387_v62, %v22845_v15  ;;  %18688 = vmatprep.mubr.msk.f32.mxu0 %vm514_vm0, %v22695_v44  ;;  %v10026_v44 = vld [vmem:[#allocation3 + $0x1a2] sm:$0xff] }
 0x520   : > { %v7998_v12 = vpop.f32.mrf.mxu0 }
 0x521   : > { %v8385_v4 = vpop.f32.mrf.mxu1  ;;  %v23000_v5 = vadd.f32 %v18437_v21, %v8054_v61  ;;  %v8053_v60 = vadd.f32 %v7998_v12, %v7644_v0  ;;  %v11313_v61 = vld [vmem:[#allocation4 + $0x40] sm:$0xff] }
 0x522   : > { %v18390_v58 = vpop.f32.mrf.mxu0  ;;  %18689 = vmatmul.mubr.msk.f32.gmra.mxu0 %vm514_vm0, %v22705_v3  ;;  %v7514_v3 = vadd.f32 %v22718_v7, %v22716_v17  ;;  %v23031_v17 = vld [vmem:[%s25143_s12 + $0x8] sm:$0xff] }
 0x523   : > { %v18440_v48 = vpop.f32.mrf.mxu1  ;;  %v23006_v2 = vadd.f32 %v8385_v4, %v8053_v60  ;;  %v8056_v15 = vadd.f32 %v18390_v58, %v22859_v51  ;;  %18691 = vmatprep.mubr.msk.f32.mxu0 %vm514_vm0, %v10025_v46  ;;  %v7664_v51 = vadd.f32 %v22874_v24, %v22872_v8  ;;  %25586 = vst [vmem:[#allocation11_spill] sm:$0xff] %v23031_v17 }
 0x524   : > { %v8008_v38 = vpop.f32.mrf.mxu0  ;;  %v8027_v53 = vadd.f32 %v22883_v41, %v7514_v3 }
 0x525   : > { %v8395_v26 = vpop.f32.mrf.mxu1  ;;  %v23017_v55 = vadd.f32 %v18440_v48, %v8056_v15  ;;  %v8055_v27 = vadd.f32 %v8008_v38, %v7654_v20  ;;  %v11315_v20 = vld [vmem:[#allocation4 + $0x50] sm:$0xff] }
 0x526   : > { %v18393_v13 = vpop.f32.mrf.mxu0  ;;  %18692 = vmatmul.mubr.msk.f32.gmra.mxu0 %vm514_vm0, %v10026_v44 }
 0x527   : > { %v18443_v10 = vpop.f32.mrf.mxu1  ;;  %v23023_v29 = vadd.f32 %v8395_v26, %v8055_v27  ;;  %v8058_v33 = vadd.f32 %v18393_v13, %v22869_v6  ;;  %18716 = vmatprep.mubr.msk.f32.mxu0 %vm514_vm0, %v23013_v39  ;;  %v8414_v6 = vadd.f32 %v22885_v49, %v8027_v53  ;;  %v8416_v49 = vadd.f32 %v22892_v47, %v22897_v59  ;;  %v11317_v13 = vld [vmem:[#allocation4 + $0x60] sm:$0xff] }
 0x528   : > { %v8018_v7 = vpop.f32.mrf.mxu0  ;;  %v8418_v47 = vadd.f32 %v22902_v32, %v22907_v34  ;;  %v11319_v34 = vld [vmem:[#allocation4 + $0x70] sm:$0xff] }
 0x529   : > { %v8405_v1 = vpop.f32.mrf.mxu1  ;;  %v23033_v62 = vadd.f32 %v18443_v10, %v8058_v33  ;;  %v8057_v21 = vadd.f32 %v8018_v7, %v7664_v51 }
 0x52a   : > { %v18448_v8 = vpop.f32.mrf.mxu0  ;;  %18717 = vmatmul.mubr.msk.f32.vlgmr.msra.gmra.mxu0 %vm514_vm0, %v23031_v17 }
 0x52b   : > { %v18498_v24 = vpop.f32.mrf.mxu1  ;;  %v23038_v41 = vadd.f32 %v8405_v1, %v8057_v21  ;;  %v8802_v0 = vadd.f32 %v18448_v8, %v22887_v40  ;;  %18725 = vmatpush3.msra.mxu0 %v22880_v37  ;;  %18726 = vmatprep.mubr.msk.f32.mxu0 %vm514_vm0, %v23013_v39 }
 0x52c   : > { %18734 = vmatprep.subr.mxu0 %v11313_v61  ;;  %v8642_v12 = vpop.f32.mrf.mxu0 }
 0x52d   : > { %v9029_v4 = vpop.f32.mrf.mxu1  ;;  %v23044_v46 = vadd.f32 %v18498_v24, %v8802_v0  ;;  %v8801_v60 = vadd.f32 %v8642_v12, %v8414_v6 }
 0x52e   : > { %v18451_v58 = vpop.f32.mrf.mxu0  ;;  %18727 = vmatmul.mubr.msk.f32.vlgmr.msra.gmra.mxu0 %vm514_vm0, %v23031_v17 }
 0x52f   : > { %v18501_v48 = vpop.f32.mrf.mxu1  ;;  %v23050_v40 = vadd.f32 %v9029_v4, %v8801_v60  ;;  %v8804_v37 = vadd.f32 %v18451_v58, %v22894_v52  ;;  %18735 = vmatpush3.msra.mxu0 %v11313_v61  ;;  %18736 = vmatprep.mubr.msk.f32.mxu0 %vm514_vm0, %v23013_v39 }
 0x530   : > { %18744 = vmatprep.subr.mxu0 %v11315_v20  ;;  %v8652_v15 = vpop.f32.mrf.mxu0 }
 0x531   : > { %v9039_v44 = vpop.f32.mrf.mxu1  ;;  %v23055_v38 = vadd.f32 %v18501_v48, %v8804_v37  ;;  %v8803_v26 = vadd.f32 %v8652_v15, %v8416_v49 }
 0x532   : > { %v18454_v3 = vpop.f32.mrf.mxu0  ;;  %18737 = vmatmul.mubr.msk.f32.vlgmr.msra.gmra.mxu0 %vm514_vm0, %v23031_v17 }
 0x533   : > { %v18504_v27 = vpop.f32.mrf.mxu1  ;;  %v23061_v52 = vadd.f32 %v9039_v44, %v8803_v26  ;;  %v8806_v59 = vadd.f32 %v18454_v3, %v22904_v56  ;;  %18745 = vmatpush3.msra.mxu0 %v11315_v20  ;;  %18746 = vmatprep.mubr.msk.f32.mxu0 %vm514_vm0, %v23013_v39 }
 0x534   : > { %18754 = vmatprep.subr.mxu0 %v11317_v13  ;;  %v8662_v10 = vpop.f32.mrf.mxu0 }
 0x535   : > { %v9049_v51 = vpop.f32.mrf.mxu1  ;;  %v23066_v53 = vadd.f32 %v18504_v27, %v8806_v59  ;;  %v8805_v33 = vadd.f32 %v8662_v10, %v8418_v47 }
 0x536   : > { %v18457_v7 = vpop.f32.mrf.mxu0  ;;  %18747 = vmatmul.mubr.msk.f32.vlgmr.msra.gmra.mxu0 %vm514_vm0, %v23031_v17 }
 0x537   : > { %v18507_v1 = vpop.f32.mrf.mxu1  ;;  %v23070_v32 = vadd.f32 %v9049_v51, %v8805_v33  ;;  %v8808_v56 = vadd.f32 %v18457_v7, %v22912_v16  ;;  %18755 = vmatpush3.msra.mxu0 %v11317_v13  ;;  %18756 = vmatprep.mubr.msk.f32.mxu0 %vm514_vm0, %v23013_v39 }
 0x538   : > { %18764 = vmatprep.subr.mxu0 %v11319_v34  ;;  %v8672_v21 = vpop.f32.mrf.mxu0 }
 0x539   : > { %v9059_v8 = vpop.f32.mrf.mxu1  ;;  %v23075_v24 = vadd.f32 %v18507_v1, %v8808_v56  ;;  %v8807_v6 = vadd.f32 %v8672_v21, %v22916_v23 }
 0x53a   : > { %v18460_v0 = vpop.f32.mrf.mxu0  ;;  %18757 = vmatmul.mubr.msk.f32.vlgmr.msra.gmra.mxu0 %vm514_vm0, %v23031_v17 }
 0x53b   : > { %v18510_v61 = vpop.f32.mrf.mxu1  ;;  %v23080_v12 = vadd.f32 %v9059_v8, %v8807_v6  ;;  %v8810_v16 = vadd.f32 %v18460_v0, %v22920_v50  ;;  %18765 = vmatpush3.msra.mxu0 %v11319_v34  ;;  %18766 = vmatprep.mubr.msk.f32.mxu0 %vm514_vm0, %v23013_v39 }
 0x53c   : > { %v8682_v4 = vpop.f32.mrf.mxu0 }
 0x53d   : > { %v9069_v60 = vpop.f32.mrf.mxu1  ;;  %v23085_v58 = vadd.f32 %v18510_v61, %v8810_v16  ;;  %v8809_v48 = vadd.f32 %v8682_v4, %v22924_v45 }
 0x53e   : > { %v18463_v23 = vpop.f32.mrf.mxu0  ;;  %18767 = vmatmul.mubr.msk.f32.vlgmr.msra.gmra.mxu0 %vm514_vm0, %v23031_v17 }
 0x53f   : > { %v18513_v49 = vpop.f32.mrf.mxu1  ;;  %v23090_v37 = vadd.f32 %v9069_v60, %v8809_v48  ;;  %v8812_v20 = vadd.f32 %v18463_v23, %v22928_v63 }
 0x540   : > { %v8692_v50 = vpop.f32.mrf.mxu0 }
 0x541   : > { %v9079_v15 = vpop.f32.mrf.mxu1  ;;  %v23093_v44 = vadd.f32 %v18513_v49, %v8812_v20  ;;  %v8811_v26 = vadd.f32 %v8692_v50, %v22932_v35 }
 0x542   : > { %v18466_v3 = vpop.f32.mrf.mxu0 }
 0x543   : > { %v18516_v27 = vpop.f32.mrf.mxu1  ;;  %v23096_v47 = vadd.f32 %v9079_v15, %v8811_v26  ;;  %v8814_v45 = vadd.f32 %v18466_v3, %v22936_v14 }
 0x544   : > { %v8702_v59 = vpop.f32.mrf.mxu0 }
 0x545   : > { %v9089_v13 = vpop.f32.mrf.mxu1  ;;  %v23099_v10 = vadd.f32 %v18516_v27, %v8814_v45  ;;  %v8813_v51 = vadd.f32 %v8702_v59, %v22940_v11 }
 0x546   : > { %v18469_v33 = vpop.f32.mrf.mxu0 }
 0x547   : > { %v18519_v63 = vpop.f32.mrf.mxu1  ;;  %v23102_v7 = vadd.f32 %v9089_v13, %v8813_v51  ;;  %v8816_v1 = vadd.f32 %v18469_v33, %v22944_v28 }
 0x548   : > { %v8712_v56 = vpop.f32.mrf.mxu0 }
 0x549   : > { %v9099_v35 = vpop.f32.mrf.mxu1  ;;  %v23105_v34 = vadd.f32 %v18519_v63, %v8816_v1  ;;  %v8815_v21 = vadd.f32 %v8712_v56, %v22950_v54 }
 0x54a   : > { %v18472_v8 = vpop.f32.mrf.mxu0 }
 0x54b   : > { %v18522_v14 = vpop.f32.mrf.mxu1  ;;  %v23108_v6 = vadd.f32 %v9099_v35, %v8815_v21  ;;  %v8818_v0 = vadd.f32 %v18472_v8, %v22954_v42 }
 0x54c   : > { %v8722_v61 = vpop.f32.mrf.mxu0 }
 0x54d   : > { %v9109_v11 = vpop.f32.mrf.mxu1  ;;  %v23111_v16 = vadd.f32 %v18522_v14, %v8818_v0  ;;  %v8817_v4 = vadd.f32 %v8722_v61, %v22959_v22 }
 0x54e   : > { %v18475_v60 = vpop.f32.mrf.mxu0 }
 0x54f   : > { %v18525_v28 = vpop.f32.mrf.mxu1  ;;  %v23114_v48 = vadd.f32 %v9109_v11, %v8817_v4  ;;  %v8820_v23 = vadd.f32 %v18475_v60, %v22963_v43 }
 0x550   : > { %v8732_v49 = vpop.f32.mrf.mxu0 }
 0x551   : > { %v9119_v54 = vpop.f32.mrf.mxu1  ;;  %v23117_v20 = vadd.f32 %v18525_v28, %v8820_v23  ;;  %v8819_v50 = vadd.f32 %v8732_v49, %v22968_v36 }
 0x552   : > { %v18478_v15 = vpop.f32.mrf.mxu0 }
 0x553   : > { %v18528_v42 = vpop.f32.mrf.mxu1  ;;  %v23120_v26 = vadd.f32 %v9119_v54, %v8819_v50  ;;  %v8822_v3 = vadd.f32 %v18478_v15, %v22972_v19 }
 0x554   : > { %v8742_v27 = vpop.f32.mrf.mxu0 }
 0x555   : > { %v9129_v22 = vpop.f32.mrf.mxu1  ;;  %v23123_v45 = vadd.f32 %v18528_v42, %v8822_v3  ;;  %v8821_v59 = vadd.f32 %v8742_v27, %v22977_v9 }
 0x556   : > { %v18481_v13 = vpop.f32.mrf.mxu0 }
 0x557   : > { %v18531_v43 = vpop.f32.mrf.mxu1  ;;  %v23126_v51 = vadd.f32 %v9129_v22, %v8821_v59  ;;  %v8824_v33 = vadd.f32 %v18481_v13, %v22981_v25 }
 0x558   : > { %v8752_v63 = vpop.f32.mrf.mxu0 }
 0x559   : > { %v9139_v36 = vpop.f32.mrf.mxu1  ;;  %v23129_v1 = vadd.f32 %v18531_v43, %v8824_v33  ;;  %v8823_v56 = vadd.f32 %v8752_v63, %v22986_v57 }
 0x55a   : > { %v18484_v35 = vpop.f32.mrf.mxu0 }
 0x55b   : > { %v18534_v19 = vpop.f32.mrf.mxu1  ;;  %v23132_v21 = vadd.f32 %v9139_v36, %v8823_v56  ;;  %v8826_v8 = vadd.f32 %v18484_v35, %v22990_v30 }
 0x55c   : > { %v8762_v14 = vpop.f32.mrf.mxu0 }
 0x55d   : > { %v9149_v9 = vpop.f32.mrf.mxu1  ;;  %v23135_v0 = vadd.f32 %v18534_v19, %v8826_v8  ;;  %v8825_v61 = vadd.f32 %v8762_v14, %v22995_v18 }
 0x55e   : > { %v18487_v11 = vpop.f32.mrf.mxu0 }
 0x55f   : > { %v18537_v25 = vpop.f32.mrf.mxu1  ;;  %v23138_v4 = vadd.f32 %v9149_v9, %v8825_v61  ;;  %v8828_v60 = vadd.f32 %v18487_v11, %v23000_v5 }
 0x560   : > { %v8772_v28 = vpop.f32.mrf.mxu0 }
 0x561   : > { %v9159_v57 = vpop.f32.mrf.mxu1  ;;  %v23141_v23 = vadd.f32 %v18537_v25, %v8828_v60  ;;  %v8827_v49 = vadd.f32 %v8772_v28, %v23006_v2 }
 0x562   : > { %v18490_v54 = vpop.f32.mrf.mxu0 }
 0x563   : > { %v18540_v30 = vpop.f32.mrf.mxu1  ;;  %v23144_v50 = vadd.f32 %v9159_v57, %v8827_v49  ;;  %v8830_v15 = vadd.f32 %v18490_v54, %v23017_v55 }
 0x564   : > { %v8782_v42 = vpop.f32.mrf.mxu0 }
 0x565   : > { %v9169_v18 = vpop.f32.mrf.mxu1  ;;  %v23147_v3 = vadd.f32 %v18540_v30, %v8830_v15  ;;  %v8829_v27 = vadd.f32 %v8782_v42, %v23023_v29 }
 0x566   : > { %v18493_v22 = vpop.f32.mrf.mxu0 }
 0x567   : > { %v23150_v5 = vpop.f32.mrf.mxu1  ;;  %v23152_v59 = vadd.f32 %v9169_v18, %v8829_v27  ;;  %v23155_v13 = vadd.f32 %v18493_v22, %v23033_v62 }
 0x568   : > { %v8792_v2 = vpop.f32.mrf.mxu0 }
 0x569   : > { %v23157_v43 = vpop.f32.mrf.mxu1  ;;  %v23160_v33 = vadd.f32 %v8792_v2, %v23038_v41 }
 0x56a   : > { %v18548_v55 = vpop.f32.mrf.mxu0 }
 0x56b   : > { %v18598_v63 = vpop.f32.mrf.mxu1  ;;  %v9577_v36 = vadd.f32 %v18548_v55, %v23044_v46 }
 0x56c   : > { %v9417_v56 = vpop.f32.mrf.mxu0 }
 0x56d   : > { %v9804_v29 = vpop.f32.mrf.mxu1  ;;  %v23163_v35 = vadd.f32 %v18598_v63, %v9577_v36  ;;  %v9576_v19 = vadd.f32 %v9417_v56, %v23050_v40 }
 0x56e   : > { %v18551_v8 = vpop.f32.mrf.mxu0 }
 0x56f   : > { %v18601_v14 = vpop.f32.mrf.mxu1  ;;  %v23166_v62 = vadd.f32 %v9804_v29, %v9576_v19  ;;  %v9579_v9 = vadd.f32 %v18551_v8, %v23055_v38 }
 0x570   : > { %v9427_v61 = vpop.f32.mrf.mxu0 }
 0x571   : > { %v9814_v11 = vpop.f32.mrf.mxu1  ;;  %v23169_v41 = vadd.f32 %v18601_v14, %v9579_v9  ;;  %v9578_v25 = vadd.f32 %v9427_v61, %v23061_v52 }
 0x572   : > { %v18554_v60 = vpop.f32.mrf.mxu0 }
 0x573   : > { %v18604_v46 = vpop.f32.mrf.mxu1  ;;  %v23172_v28 = vadd.f32 %v9814_v11, %v9578_v25  ;;  %v9581_v57 = vadd.f32 %v18554_v60, %v23066_v53 }
 0x574   : > { %v9437_v49 = vpop.f32.mrf.mxu0 }
 0x575   : > { %v9824_v40 = vpop.f32.mrf.mxu1  ;;  %v23175_v54 = vadd.f32 %v18604_v46, %v9581_v57  ;;  %v9580_v30 = vadd.f32 %v9437_v49, %v23070_v32 }
 0x576   : > { %v18557_v15 = vpop.f32.mrf.mxu0 }
 0x577   : > { %v18607_v38 = vpop.f32.mrf.mxu1  ;;  %v23178_v42 = vadd.f32 %v9824_v40, %v9580_v30  ;;  %v9583_v18 = vadd.f32 %v18557_v15, %v23075_v24 }
 0x578   : > { %v9447_v27 = vpop.f32.mrf.mxu0 }
 0x579   : > { %v9834_v52 = vpop.f32.mrf.mxu1  ;;  %v23181_v22 = vadd.f32 %v18607_v38, %v9583_v18  ;;  %v9582_v2 = vadd.f32 %v9447_v27, %v23080_v12 }
 0x57a   : > { %v18560_v55 = vpop.f32.mrf.mxu0 }
 0x57b   : > { %v18610_v53 = vpop.f32.mrf.mxu1  ;;  %v23184_v63 = vadd.f32 %v9834_v52, %v9582_v2  ;;  %v9585_v36 = vadd.f32 %v18560_v55, %v23085_v58 }
 0x57c   : > { %v9457_v56 = vpop.f32.mrf.mxu0 }
 0x57d   : > { %v9844_v32 = vpop.f32.mrf.mxu1  ;;  %v23187_v29 = vadd.f32 %v18610_v53, %v9585_v36  ;;  %v9584_v19 = vadd.f32 %v9457_v56, %v23090_v37 }
 0x57e   : > { %v18563_v8 = vpop.f32.mrf.mxu0 }
 0x57f   : > { %v23190_v24 = vpop.f32.mrf.mxu1  ;;  %v23192_v14 = vadd.f32 %v9844_v32, %v9584_v19  ;;  %v23195_v9 = vadd.f32 %v18563_v8, %v23093_v44 }
 0x580   : > { %v9467_v12 = vpop.f32.mrf.mxu0 }
 0x581   : > { %v23197_v61 = vpop.f32.mrf.mxu1  ;;  %v23200_v11 = vadd.f32 %v9467_v12, %v23096_v47 }
 0x582   : > { %v18566_v58 = vpop.f32.mrf.mxu0 }
 0x583   : > { %v23202_v25 = vpop.f32.mrf.mxu1  ;;  %v23205_v60 = vadd.f32 %v18566_v58, %v23099_v10 }
 0x584   : > { %v9477_v37 = vpop.f32.mrf.mxu0 }
 0x585   : > { %v23207_v46 = vpop.f32.mrf.mxu1  ;;  %v23210_v57 = vadd.f32 %v9477_v37, %v23102_v7 }
 0x586   : > { %v18569_v44 = vpop.f32.mrf.mxu0 }
 0x587   : > { %v23212_v49 = vpop.f32.mrf.mxu1  ;;  %v23215_v40 = vadd.f32 %v18569_v44, %v23105_v34 }
 0x588   : > { %v9487_v47 = vpop.f32.mrf.mxu0 }
 0x589   : > { %v23217_v30 = vpop.f32.mrf.mxu1  ;;  %v23220_v15 = vadd.f32 %v9487_v47, %v23108_v6 }
 0x58a   : > { %v18572_v10 = vpop.f32.mrf.mxu0 }
 0x58b   : > { %v18622_v38 = vpop.f32.mrf.mxu1  ;;  %v9593_v18 = vadd.f32 %v18572_v10, %v23111_v16 }
 0x58c   : > { %v9497_v27 = vpop.f32.mrf.mxu0 }
 0x58d   : > { %v9884_v52 = vpop.f32.mrf.mxu1  ;;  %v23223_v7 = vadd.f32 %v18622_v38, %v9593_v18  ;;  %v9592_v2 = vadd.f32 %v9497_v27, %v23114_v48 }
 0x58e   : > { %v18575_v55 = vpop.f32.mrf.mxu0 }
 0x58f   : > { %v18625_v53 = vpop.f32.mrf.mxu1  ;;  %v23226_v34 = vadd.f32 %v9884_v52, %v9592_v2  ;;  %v9595_v36 = vadd.f32 %v18575_v55, %v23117_v20 }
 0x590   : > { %v9507_v56 = vpop.f32.mrf.mxu0 }
 0x591   : > { %v23229_v32 = vadd.f32 %v18625_v53, %v9595_v36  ;;  %v9594_v6 = vadd.f32 %v9507_v56, %v23120_v26  ;;  %v9894_v19 = vpop.f32.mrf.mxu1 }
 0x592   : > { %v18578_v8 = vpop.f32.mrf.mxu0 }
 0x593   : > { %v23232_v16 = vadd.f32 %v9894_v19, %v9594_v6  ;;  %v23235_v12 = vadd.f32 %v18578_v8, %v23123_v45 }
 0x594   : > { %v9517_v58 = vpop.f32.mrf.mxu0 }
 0x595   : > { %v23238_v48 = vadd.f32 %v9517_v58, %v23126_v51 }
 0x596   : > { %v18581_v37 = vpop.f32.mrf.mxu0 }
 0x597   : > { %25587 = vst [vmem:[#allocation20_spill] sm:$0xff] %v23238_v48  ;;  %v23241_v44 = vadd.f32 %v18581_v37, %v23129_v1 }
 0x598   : > { %v9527_v20 = vpop.f32.mrf.mxu0 }
 0x599   : > { %v23244_v47 = vadd.f32 %v9527_v20, %v23132_v21 }
 0x59a   : > { %v18584_v26 = vpop.f32.mrf.mxu0 }
 0x59b   : > { %v23247_v10 = vadd.f32 %v18584_v26, %v23135_v0 }
 0x59c   : > { %v9537_v38 = vpop.f32.mrf.mxu0 }
 0x59d   : > { %v23250_v45 = vadd.f32 %v9537_v38, %v23138_v4  ;;  %v23295_v38 = vpop.f32.mrf.mxu1 }
 0x59e   : > { %v18587_v18 = vpop.f32.mrf.mxu0 }
 0x59f   : > { %v23253_v51 = vadd.f32 %v18587_v18, %v23141_v23 }
 0x5a0   : > { %v9547_v27 = vpop.f32.mrf.mxu0 }
 0x5a1   : > { %v23256_v1 = vadd.f32 %v9547_v27, %v23144_v50  ;;  %v23273_v50 = vld [vmem:[%s25142_s11] sm:$0xff] }
 0x5a2   : > { %v18590_v52 = vpop.f32.mrf.mxu0  ;;  %25590 = vst [vmem:[#allocation27_spill] sm:$0xff] %v23273_v50  ;;  %17422 = vmatprep.mubr.msk.f32.mxu1 %vm514_vm0, %v23273_v50 }
 0x5a3   : > { %v23259_v21 = vadd.f32 %v18590_v52, %v23147_v3 }
 0x5a4   : > { %v9557_v2 = vpop.f32.mrf.mxu0 }
 0x5a5   : > { %v23262_v0 = vadd.f32 %v9557_v2, %v23152_v59 }
 0x5a6   : > { %v18593_v55 = vpop.f32.mrf.mxu0 }
 0x5a8   : > { %v9567_v53 = vpop.f32.mrf.mxu0 }
 0x5aa   : > { %v18648_v4 = vpop.f32.mrf.mxu0 }
 0x5ab   : > { %v23265_v36 = vadd.f32 %v18648_v4, %v23163_v35 }
 0x5ac   : > { %v10191_v23 = vpop.f32.mrf.mxu0 }
 0x5ad   : > { %25588 = vst [vmem:[#allocation16_spill] sm:$0xff] %v23265_v36  ;;  %v23268_v56 = vadd.f32 %v10191_v23, %v23166_v62 }
 0x5ae   : > { %v18651_v3 = vpop.f32.mrf.mxu0 }
 0x5af   : > { %25589 = vst [vmem:[#allocation12_spill] sm:$0xff] %v23268_v56  ;;  %v23278_v59 = vadd.f32 %v18651_v3, %v23169_v41 }
 0x5b0   : > { %v10201_v6 = vpop.f32.mrf.mxu0 }
 0x5b1   : > { %25591 = vst [vmem:[#allocation10_spill] sm:$0xff] %v23278_v59  ;;  %v23281_v35 = vadd.f32 %v10201_v6, %v23172_v28 }
 0x5b2   : > { %v18654_v19 = vpop.f32.mrf.mxu0 }
 0x5b3   : > { %25592 = vst [vmem:[#allocation13_spill] sm:$0xff] %v23281_v35  ;;  %v23284_v62 = vadd.f32 %v18654_v19, %v23175_v54 }
 0x5b4   : > { %v10211_v8 = vpop.f32.mrf.mxu0 }
 0x5b5   : > { %25593 = vst [vmem:[#allocation28_spill] sm:$0xff] %v23284_v62  ;;  %v23287_v58 = vadd.f32 %v10211_v8, %v23178_v42  ;;  %v23303_v42 = vpop.f32.mrf.mxu1 }
 0x5b6   : > { %v18657_v37 = vpop.f32.mrf.mxu0  ;;  %25596 = vst [vmem:[#allocation21_spill] sm:$0xff] %v23303_v42 }
 0x5b7   : > { %25594 = vst [vmem:[#allocation22_spill] sm:$0xff] %v23287_v58  ;;  %v23290_v20 = vadd.f32 %v18657_v37, %v23181_v22  ;;  %v23309_v2 = vpop.f32.mrf.mxu1 }
 0x5b8   : > { %v10221_v26 = vpop.f32.mrf.mxu0 }
 0x5b9   : > { %v23293_v41 = vadd.f32 %v10221_v26, %v23184_v63  ;;  %v23313_v23 = vpop.f32.mrf.mxu1 }
 0x5ba   : > { %v18660_v28 = vpop.f32.mrf.mxu0 }
 0x5bb   : > { %25595 = vst [vmem:[#allocation29_spill] sm:$0xff] %v23293_v41  ;;  %v23298_v18 = vadd.f32 %v18660_v28, %v23187_v29  ;;  %v23315_v6 = vpop.f32.mrf.mxu1 }
 0x5bc   : > { %v10231_v54 = vpop.f32.mrf.mxu0 }
 0x5bd   : > { %v23301_v27 = vadd.f32 %v10231_v54, %v23192_v14  ;;  %v23323_v26 = vpop.f32.mrf.mxu1 }
 0x5be   : > { %v23305_v52 = vpop.f32.mrf.mxu0 }
 0x5bf   : > { %v18637_v39 = vpop.f32.mrf.mxu1 }
 0x5c0   : > { %v23307_v22 = vpop.f32.mrf.mxu0 }
 0x5c2   : > { %v18666_v63 = vpop.f32.mrf.mxu0 }
 0x5c4   : > { %v23311_v4 = vpop.f32.mrf.mxu0 }
 0x5c6   : > { %v18669_v3 = vpop.f32.mrf.mxu0 }
 0x5c8   : > { %v10261_v29 = vpop.f32.mrf.mxu0 }
 0x5ca   : > { %v18672_v19 = vpop.f32.mrf.mxu0 }
 0x5cb   : > { %v23318_v14 = vadd.f32 %v18672_v19, %v23223_v7  ;;  %v9934_v7 = vpop.f32.mrf.mxu1 }
 0x5cc   : > { %v10271_v8 = vpop.f32.mrf.mxu0 }
 0x5cd   : > { %25597 = vst [vmem:[#allocation30_spill] sm:$0xff] %v23318_v14  ;;  %v23321_v37 = vadd.f32 %v10271_v8, %v23226_v34  ;;  %v18640_v8 = vpop.f32.mrf.mxu1 }
 0x5ce   : > { %v18675_v28 = vpop.f32.mrf.mxu0  ;;  %v9992_v48 = vadd.f32 %v18640_v8, %v23259_v21  ;;  %v23364_v21 = vld [vmem:[%s25141_s10 + $0x1] ss:$0 sm:$0xff] }
 0x5cf   : > { %25598 = vst [vmem:[#allocation31_spill] sm:$0xff] %v23321_v37  ;;  %v23326_v54 = vadd.f32 %v18675_v28, %v23229_v32  ;;  %v9944_v32 = vpop.f32.mrf.mxu1 }
 0x5d0   : > { %v10281_v31 = vpop.f32.mrf.mxu0 }
 0x5d1   : > { %25599 = vst [vmem:[#allocation23_spill] sm:$0xff] %v23326_v54  ;;  %v23329_v17 = vadd.f32 %v10281_v31, %v23232_v16  ;;  %v9219_v31 = vadd.f32 %v23150_v5, %v23155_v13  ;;  %v9978_v16 = vadd.f32 %v23212_v49, %v23215_v40  ;;  %v18643_v14 = vpop.f32.mrf.mxu1  ;;  %v23355_v13 = vld [vmem:[%s25141_s10] ss:$0 sm:$0xff] }
 0x5d2   : > { %v23331_v50 = vpop.f32.mrf.mxu0 }
 0x5d3   : > { %25600 = vst [vmem:[#allocation24_spill] sm:$0xff] %v23329_v17  ;;  %v9218_v17 = vadd.f32 %v23157_v43, %v23160_v33  ;;  %v9607_v59 = vadd.f32 %v18593_v55, %v9219_v31  ;;  %v10365_v54 = vadd.f32 %v18669_v3, %v9978_v16  ;;  %v9954_v41 = vpop.f32.mrf.mxu1 }
 0x5d4   : > { %v23333_v56 = vpop.f32.mrf.mxu0 }
 0x5d5   : > { %25601 = vst [vmem:[#allocation32_spill] sm:$0xff] %v23333_v56  ;;  %v9606_v62 = vadd.f32 %v9567_v53, %v9218_v17  ;;  %v9977_v56 = vadd.f32 %v23217_v30, %v23220_v15  ;;  %v9994_v5 = vadd.f32 %v18643_v14, %v9607_v59  ;;  %v10402_v49 = vmul.f32 %v23355_v13, %v10365_v54 }
 0x5d6   : > { %v23335_v19 = vpop.f32.mrf.mxu0  ;;  %v9976_v30 = vadd.f32 %v23202_v25, %v23205_v60  ;;  %v9991_v53 = vadd.f32 %v9944_v32, %v23262_v0  ;;  %v9975_v0 = vadd.f32 %v23207_v46, %v23210_v57  ;;  %v9989_v46 = vadd.f32 %v9934_v7, %v23256_v1 }
 0x5d7   : > { %v10364_v43 = vadd.f32 %v10261_v29, %v9977_v56  ;;  %v9993_v40 = vadd.f32 %v9954_v41, %v9606_v62  ;;  %v10439_v56 = vadd.f32 %v23364_v21, %v10402_v49  ;;  %v9990_v41 = vadd.f32 %v18637_v39, %v23253_v51 }
 0x5d8   : > { %v23337_v34 = vpop.f32.mrf.mxu0  ;;  %v10363_v14 = vadd.f32 %v18666_v63, %v9976_v30  ;;  %v10362_v8 = vadd.f32 %v23311_v4, %v9975_v0  ;;  %v9974_v39 = vadd.f32 %v23190_v24, %v23195_v9  ;;  %v9973_v24 = vadd.f32 %v23197_v61, %v23200_v11 }
 0x5d9   : > { %v10471_v32 = vmax.f32 %v10439_v56, 0.0  ;;  %v9988_v9 = vadd.f32 %v23315_v6, %v23247_v10  ;;  %v9987_v10 = vadd.f32 %v23323_v26, %v23250_v45  ;;  %v10396_v45 = vmul.f32 %v23355_v13, %v23298_v18 }
 0x5da   : > { %v23339_v37 = vpop.f32.mrf.mxu0  ;;  %v10400_v63 = vmul.f32 %v23355_v13, %v10363_v14  ;;  %v10361_v57 = vadd.f32 %v23305_v52, %v9974_v39  ;;  %v10399_v4 = vmul.f32 %v23355_v13, %v10362_v8  ;;  %v10360_v52 = vadd.f32 %v23307_v22, %v9973_v24  ;;  %v25607_v24 = vld [vmem:[#allocation22_spill] sm:$0xff] }
 0x5db   : > { %v9986_v14 = vadd.f32 %v23309_v2, %v23241_v44  ;;  %v9985_v44 = vadd.f32 %v23313_v23, %v23244_v47  ;;  %v10433_v2 = vadd.f32 %v23364_v21, %v10396_v45  ;;  %v10395_v18 = vmul.f32 %v23355_v13, %v23301_v27  ;;  %v25612_v45 = vld [vmem:[#allocation30_spill] sm:$0xff] }
 0x5dc   : > { %v23341_v36 = vpop.f32.mrf.mxu0  ;;  %v10437_v51 = vadd.f32 %v23364_v21, %v10400_v63  ;;  %v10398_v1 = vmul.f32 %v23355_v13, %v10361_v57  ;;  %v10397_v22 = vmul.f32 %v23355_v13, %v10360_v52  ;;  %v9984_v47 = vadd.f32 %v23295_v38, %v23235_v12  ;;  %v25606_v57 = vld [vmem:[#allocation28_spill] sm:$0xff]  ;;  %v25608_v52 = vld [vmem:[#allocation23_spill] sm:$0xff] }
 0x5dd   : > { %v10394_v23 = vmul.f32 %v23355_v13, %v23290_v20  ;;  %v10432_v27 = vadd.f32 %v23364_v21, %v10395_v18  ;;  %v25604_v20 = vld [vmem:[#allocation29_spill] sm:$0xff]  ;;  %v25614_v18 = vld [vmem:[#allocation31_spill] sm:$0xff] }
 0x5de   : > { %v18687_v28 = vpop.f32.mrf.mxu0  ;;  %v10469_v7 = vmax.f32 %v10437_v51, 0.0  ;;  %v10435_v6 = vadd.f32 %v23364_v21, %v10398_v1  ;;  %v10434_v56 = vadd.f32 %v23364_v21, %v10397_v22  ;;  %v10392_v51 = vmul.f32 %v23355_v13, %v25606_v57  ;;  %v25610_v22 = vld [vmem:[#allocation24_spill] sm:$0xff]  ;;  %v12527_v57 = vld [vmem:[%s25144_s13] sm:$0xff] }
 0x5df   : > { %v10431_v38 = vadd.f32 %v23364_v21, %v10394_v23  ;;  %18774 = vmatprep.subr.mxu0 %v12527_v57 }
 0x5e0   : > { %v10321_v35 = vpop.f32.mrf.mxu0  ;;  %v10467_v26 = vmax.f32 %v10435_v6, 0.0  ;;  %18775 = vmatpush3.msra.mxu0 %v12527_v57 }
 0x5e2   : > { %v18690_v58 = vpop.f32.mrf.mxu0 }
 0x5e3   : > { %v10379_v55 = vadd.f32 %v18690_v58, %v9992_v48  ;;  %v10401_v48 = vmul.f32 %v23355_v13, %v10364_v43 }
 0x5e4   : > { %v10331_v42 = vpop.f32.mrf.mxu0 }
 0x5e5   : > { %v10416_v62 = vmul.f32 %v23355_v13, %v10379_v55  ;;  %v10378_v58 = vadd.f32 %v10331_v42, %v9991_v53  ;;  %v10438_v31 = vadd.f32 %v23364_v21, %v10401_v48  ;;  %v10377_v42 = vadd.f32 %v18687_v28, %v9990_v41 }
 0x5e6   : > { %v18693_v33 = vpop.f32.mrf.mxu0  ;;  %v10373_v48 = vadd.f32 %v23335_v19, %v9986_v14 }
 0x5e7   : > { %v10381_v17 = vadd.f32 %v18693_v33, %v9994_v5  ;;  %v10453_v16 = vadd.f32 %v23364_v21, %v10416_v62  ;;  %v10415_v5 = vmul.f32 %v23355_v13, %v10378_v58  ;;  %v10470_v28 = vmax.f32 %v10438_v31, 0.0  ;;  %v25603_v31 = vld [vmem:[#allocation21_spill] sm:$0xff] }
 0x5e8   : > { %v10341_v15 = vpop.f32.mrf.mxu0  ;;  %v10414_v43 = vmul.f32 %v23355_v13, %v10377_v42  ;;  %v10376_v33 = vadd.f32 %v10321_v35, %v9989_v46  ;;  %v10436_v35 = vadd.f32 %v23364_v21, %v10399_v4  ;;  %v10410_v19 = vmul.f32 %v23355_v13, %v10373_v48 }
 0x5e9   : > { %v10418_v59 = vmul.f32 %v23355_v13, %v10381_v17  ;;  %v10380_v3 = vadd.f32 %v10341_v15, %v9993_v40  ;;  %v10485_v40 = vmax.f32 %v10453_v16, 0.0  ;;  %v10452_v55 = vadd.f32 %v23364_v21, %v10415_v5  ;;  %v25605_v5 = vld [vmem:[#allocation32_spill] sm:$0xff] }
 0x5ea   : > { %v10375_v17 = vadd.f32 %v23339_v37, %v9988_v9  ;;  %v10451_v30 = vadd.f32 %v23364_v21, %v10414_v43  ;;  %v10413_v61 = vmul.f32 %v23355_v13, %v10376_v33  ;;  %v10468_v15 = vmax.f32 %v10436_v35, 0.0 }
 0x5eb   : > { %v10455_v25 = vadd.f32 %v23364_v21, %v10418_v59  ;;  %v10417_v60 = vmul.f32 %v23355_v13, %v10380_v3  ;;  %v10484_v11 = vmax.f32 %v10452_v55, 0.0  ;;  %v10374_v37 = vadd.f32 %v23341_v36, %v9987_v10 }
 0x5ec   : > { %v10412_v53 = vmul.f32 %v23355_v13, %v10375_v17  ;;  %v10483_v59 = vmax.f32 %v10451_v30, 0.0  ;;  %v10450_v3 = vadd.f32 %v23364_v21, %v10413_v61  ;;  %v10393_v42 = vmul.f32 %v23355_v13, %v25604_v20  ;;  %v25609_v30 = vld [vmem:[#allocation10_spill] sm:$0xff]  ;;  %v18932_v20 = vld [vmem:[%s25143_s12] sm:$0xff] }
 0x5ed   : > { %v10487_v29 = vmax.f32 %v10455_v25, 0.0  ;;  %v10454_v54 = vadd.f32 %v23364_v21, %v10417_v60  ;;  %v10411_v62 = vmul.f32 %v23355_v13, %v10374_v37  ;;  %v10466_v25 = vmax.f32 %v10434_v56, 0.0 }
 0x5ee   : > { %v10449_v36 = vadd.f32 %v23364_v21, %v10412_v53  ;;  %v10482_v58 = vmax.f32 %v10450_v3, 0.0  ;;  %v10372_v60 = vadd.f32 %v23337_v34, %v9985_v44  ;;  %v10447_v34 = vadd.f32 %v23364_v21, %v10410_v19 }
 0x5ef   : > { %v10486_v49 = vmax.f32 %v10454_v54, 0.0  ;;  %17390 = vmatprep.subr.msk.mxu1 %vm514_vm0, %v10487_v29  ;;  %v10448_v41 = vadd.f32 %v23364_v21, %v10411_v62  ;;  %v10465_v29 = vmax.f32 %v10433_v2, 0.0  ;;  %v10371_v54 = vadd.f32 %v23331_v50, %v9984_v47 }
 0x5f0   : > { %17391 = vmatpush3.xpose.msk.msra.mxu1 %vm514_vm0, %v10471_v32  ;;  %v10481_v0 = vmax.f32 %v10449_v36, 0.0  ;;  %v10409_v63 = vmul.f32 %v23355_v13, %v10372_v60  ;;  %v25602_v32 = vld [vmem:[#allocation20_spill] sm:$0xff]  ;;  %v10464_v16 = vmax.f32 %v10432_v27, 0.0  ;;  %v10479_v39 = vmax.f32 %v10447_v34, 0.0 }
 0x5f1   : > { %17392 = vmatprep.subr.msk.mxu1 %vm514_vm0, %v10486_v49  ;;  %v10480_v8 = vmax.f32 %v10448_v41, 0.0  ;;  %v9983_v12 = vadd.f32 %v25603_v31, %v25602_v32  ;;  %v10408_v50 = vmul.f32 %v23355_v13, %v10371_v54  ;;  %v10463_v4 = vmax.f32 %v10431_v38, 0.0  ;;  %v25613_v36 = vld [vmem:[#allocation16_spill] sm:$0xff]  ;;  %v11306_v32 = vld [vmem:[#allocation4 + $0x8] sm:$0xff]  ;;  %v25617_v31 = vld [vmem:[#allocation19_spill] sm:$0xff] }
 0x5f2   : > { %v10446_v46 = vadd.f32 %v23364_v21, %v10409_v63  ;;  %v10429_v55 = vadd.f32 %v23364_v21, %v10392_v51  ;;  %v10391_v9 = vmul.f32 %v23355_v13, %v25607_v24  ;;  %v10390_v61 = vmul.f32 %v23355_v13, %v25609_v30  ;;  %v11308_v38 = vld [vmem:[#allocation4 + $0x18] sm:$0xff] }
 0x5f3   : > { %v10370_v49 = vadd.f32 %v25605_v5, %v9983_v12  ;;  %v10445_v43 = vadd.f32 %v23364_v21, %v10408_v50  ;;  %v10388_v62 = vmul.f32 %v23355_v13, %v25613_v36  ;;  %v11307_v12 = vld [vmem:[#allocation4 + $0x10] sm:$0xff]  ;;  %v18933_v50 = vld [vmem:[%s25143_s12 + $0x8] sm:$0xff]  ;;  %v11314_v5 = vld [vmem:[#allocation4 + $0x48] sm:$0xff] }
 0x5f4   : > { %17393 = vmatpush3.xpose.msk.msra.mxu1 %vm514_vm0, %v10470_v28  ;;  %v10430_v28 = vadd.f32 %v23364_v21, %v10393_v42  ;;  %v10428_v10 = vadd.f32 %v23364_v21, %v10391_v9  ;;  %v10427_v37 = vadd.f32 %v23364_v21, %v10390_v61  ;;  %v11310_v42 = vld [vmem:[#allocation4 + $0x28] sm:$0xff]  ;;  %v18718_v9 = vpop.f32.mrf.mxu0 }
 0x5f5   : > { %17394 = vmatprep.subr.msk.mxu1 %vm514_vm0, %v10485_v40  ;;  %v10407_v33 = vmul.f32 %v23355_v13, %v10370_v49  ;;  %v10478_v40 = vmax.f32 %v10446_v46, 0.0  ;;  %v10477_v35 = vmax.f32 %v10445_v43, 0.0  ;;  %v10425_v60 = vadd.f32 %v23364_v21, %v10388_v62  ;;  %v11316_v49 = vld [vmem:[#allocation4 + $0x58] sm:$0xff] }
 0x5f6   : > { %v10462_v1 = vmax.f32 %v10430_v28, 0.0  ;;  %v10460_v14 = vmax.f32 %v10428_v10, 0.0  ;;  %v11320_v46 = vld [vmem:[#allocation4 + $0x78] sm:$0xff] }
 0x5f7   : > { %v10444_v17 = vadd.f32 %v23364_v21, %v10407_v33  ;;  %v10457_v27 = vmax.f32 %v10425_v60, 0.0 }
 0x5f8   : > { %17395 = vmatpush3.xpose.msk.msra.mxu1 %vm514_vm0, %v10469_v7  ;;  %v10406_v7 = vmul.f32 %v23355_v13, %v25608_v52 }
 0x5f9   : > { %17396 = vmatprep.subr.msk.mxu1 %vm514_vm0, %v10484_v11  ;;  %v10461_v11 = vmax.f32 %v10429_v55, 0.0  ;;  %v10476_v53 = vmax.f32 %v10444_v17, 0.0 }
 0x5fa   : > { %v10443_v6 = vadd.f32 %v23364_v21, %v10406_v7  ;;  %v11693_v7 = vpop.f32.mrf.mxu0 }
 0x5fc   : > { %17397 = vmatpush3.xpose.msk.msra.mxu1 %vm514_vm0, %v10468_v15  ;;  %v10405_v15 = vmul.f32 %v23355_v13, %v25610_v22  ;;  %v10475_v56 = vmax.f32 %v10443_v6, 0.0  ;;  %v18728_v30 = vpop.f32.mrf.mxu0 }
 0x5fd   : > { %17398 = vmatprep.subr.msk.mxu1 %vm514_vm0, %v10483_v59  ;;  %v25611_v59 = vld [vmem:[#allocation13_spill] sm:$0xff] }
 0x5fe   : > { %v10389_v3 = vmul.f32 %v23355_v13, %v25611_v59  ;;  %v10442_v48 = vadd.f32 %v23364_v21, %v10405_v15  ;;  %v11843_v61 = vpop.f32.mrf.mxu0 }
 0x600   : > { %17399 = vmatpush3.xpose.msk.msra.mxu1 %vm514_vm0, %v10467_v26  ;;  %v10404_v26 = vmul.f32 %v23355_v13, %v25612_v45  ;;  %v10426_v44 = vadd.f32 %v23364_v21, %v10389_v3  ;;  %v10474_v19 = vmax.f32 %v10442_v48, 0.0  ;;  %v18738_v6 = vpop.f32.mrf.mxu0 }
 0x601   : > { %17400 = vmatprep.subr.msk.mxu1 %vm514_vm0, %v10482_v58  ;;  %v10459_v58 = vmax.f32 %v10427_v37, 0.0 }
 0x602   : > { %v10441_v2 = vadd.f32 %v23364_v21, %v10404_v26  ;;  %v10458_v47 = vmax.f32 %v10426_v44, 0.0  ;;  %v11993_v22 = vpop.f32.mrf.mxu0 }
 0x604   : > { %17401 = vmatpush3.xpose.msk.msra.mxu1 %vm514_vm0, %v10466_v25  ;;  %v10403_v25 = vmul.f32 %v23355_v13, %v25614_v18  ;;  %v10473_v23 = vmax.f32 %v10441_v2, 0.0  ;;  %v18748_v37 = vpop.f32.mrf.mxu0 }
 0x605   : > { %17402 = vmatprep.subr.msk.mxu1 %vm514_vm0, %v10481_v0  ;;  %v25615_v0 = vld [vmem:[#allocation12_spill] sm:$0xff] }
 0x606   : > { %v10387_v41 = vmul.f32 %v23355_v13, %v25615_v0  ;;  %v11305_v13 = vld [vmem:[#allocation4] sm:$0xff]  ;;  %v12143_v59 = vpop.f32.mrf.mxu0 }
 0x608   : > { %17403 = vmatpush3.xpose.msk.msra.mxu1 %vm514_vm0, %v10465_v29  ;;  %v10440_v29 = vadd.f32 %v23364_v21, %v10403_v25  ;;  %v10424_v54 = vadd.f32 %v23364_v21, %v10387_v41  ;;  %v25618_v21 = vld [vmem:[#allocation11_spill] sm:$0xff]  ;;  %v18758_v45 = vpop.f32.mrf.mxu0 }
 0x609   : > { %17404 = vmatprep.subr.msk.mxu1 %vm514_vm0, %v10480_v8  ;;  %v25616_v8 = vld [vmem:[#allocation27_spill] sm:$0xff] }
 0x60a   : > { %v10472_v34 = vmax.f32 %v10440_v29, 0.0  ;;  %v10456_v63 = vmax.f32 %v10424_v54, 0.0  ;;  %v12293_v26 = vpop.f32.mrf.mxu0 }
 0x60c   : > { %17405 = vmatpush3.xpose.msk.msra.mxu1 %vm514_vm0, %v10464_v16  ;;  %v11312_v16 = vld [vmem:[#allocation4 + $0x38] sm:$0xff]  ;;  %v18768_v36 = vpop.f32.mrf.mxu0 }
 0x60d   : > { %17406 = vmatprep.subr.msk.mxu1 %vm514_vm0, %v10479_v39  ;;  %v11318_v39 = vld [vmem:[#allocation4 + $0x68] sm:$0xff] }
 0x60e   : > { %v12443_v62 = vpop.f32.mrf.mxu0 }
 0x610   : > { %17407 = vmatpush3.xpose.msk.msra.mxu1 %vm514_vm0, %v10463_v4 }
 0x611   : > { %17408 = vmatprep.subr.msk.mxu1 %vm514_vm0, %v10478_v40 }
 0x614   : > { %17409 = vmatpush3.xpose.msk.msra.mxu1 %vm514_vm0, %v10462_v1 }
 0x615   : > { %17410 = vmatprep.subr.msk.mxu1 %vm514_vm0, %v10477_v35 }
 0x618   : > { %17411 = vmatpush3.xpose.msk.msra.mxu1 %vm514_vm0, %v10461_v11 }
 0x619   : > { %17412 = vmatprep.subr.msk.mxu1 %vm514_vm0, %v10476_v53 }
 0x61c   : > { %17413 = vmatpush3.xpose.msk.msra.mxu1 %vm514_vm0, %v10460_v14 }
 0x61d   : > { %17414 = vmatprep.subr.msk.mxu1 %vm514_vm0, %v10475_v56 }
 0x620   : > { %17415 = vmatpush3.xpose.msk.msra.mxu1 %vm514_vm0, %v10459_v58 }
 0x621   : > { %17416 = vmatprep.subr.msk.mxu1 %vm514_vm0, %v10474_v19 }
 0x624   : > { %17417 = vmatpush3.xpose.msk.msra.mxu1 %vm514_vm0, %v10458_v47 }
 0x625   : > { %17418 = vmatprep.subr.msk.mxu1 %vm514_vm0, %v10473_v23 }
 0x628   : > { %17419 = vmatpush3.xpose.msk.msra.mxu1 %vm514_vm0, %v10457_v27 }
 0x629   : > { %17420 = vmatprep.subr.msk.mxu1 %vm514_vm0, %v10472_v34 }
 0x62c   : > { %17421 = vmatpush3.xpose.msk.msra.mxu1 %vm514_vm0, %v10456_v63 }
 0x62d   : > { %18694 = vmatprep.subr.mxu1 %v11305_v13 }
 0x62f   : > { %17423 = vmatmul.mubr.msk.f32.vlgmr.msra.gmra.mxu1 %vm514_vm0, %v25616_v8 }
 0x630   : > { %18695 = vmatpush3.msra.mxu1 %v11305_v13  ;;  %18696 = vmatprep.mubr.msk.f32.mxu1 %vm514_vm0, %v25617_v31  ;;  %v25633_v13 = vld [vmem:[#allocation80_spill] sm:$0xff] }
 0x631   : > { %18699 = vmatprep.subr.mxu1 %v11306_v32 }
 0x633   : > { %18697 = vmatmul.mubr.msk.f32.vlgmr.msra.gmra.mxu1 %vm514_vm0, %v25618_v21 }
 0x634   : > { %18700 = vmatpush3.msra.mxu1 %v11306_v32  ;;  %18701 = vmatprep.mubr.msk.f32.mxu1 %vm514_vm0, %v25617_v31 }
 0x635   : > { %18704 = vmatprep.subr.mxu1 %v11307_v12 }
 0x637   : > { %18702 = vmatmul.mubr.msk.f32.vlgmr.msra.gmra.mxu1 %vm514_vm0, %v25618_v21 }
 0x638   : > { %18705 = vmatpush3.msra.mxu1 %v11307_v12  ;;  %18706 = vmatprep.mubr.msk.f32.mxu1 %vm514_vm0, %v18932_v20 }
 0x639   : > { %18709 = vmatprep.subr.mxu1 %v11308_v38 }
 0x63b   : > { %18707 = vmatmul.mubr.msk.f32.vlgmr.msra.gmra.mxu1 %vm514_vm0, %v25618_v21 }
 0x63c   : > { %18710 = vmatpush3.msra.mxu1 %v11308_v38  ;;  %18711 = vmatprep.mubr.msk.f32.mxu1 %vm514_vm0, %v18932_v20 }
 0x63d   : > { %18719 = vmatprep.subr.mxu1 %v11310_v42 }
 0x63f   : > { %18712 = vmatmul.mubr.msk.f32.vlgmr.msra.gmra.mxu1 %vm514_vm0, %v25618_v21 }
 0x640   : > { %18720 = vmatpush3.msra.mxu1 %v11310_v42  ;;  %18721 = vmatprep.mubr.msk.f32.mxu1 %vm514_vm0, %v18932_v20 }
 0x641   : > { %18729 = vmatprep.subr.mxu1 %v11312_v16 }
 0x643   : > { %18722 = vmatmul.mubr.msk.f32.vlgmr.msra.gmra.mxu1 %vm514_vm0, %v18933_v50 }
 0x644   : > { %18730 = vmatpush3.msra.mxu1 %v11312_v16  ;;  %18731 = vmatprep.mubr.msk.f32.mxu1 %vm514_vm0, %v18932_v20 }
 0x645   : > { %18739 = vmatprep.subr.mxu1 %v11314_v5 }
 0x647   : > { %18732 = vmatmul.mubr.msk.f32.vlgmr.msra.gmra.mxu1 %vm514_vm0, %v18933_v50 }
 0x648   : > { %18740 = vmatpush3.msra.mxu1 %v11314_v5  ;;  %18741 = vmatprep.mubr.msk.f32.mxu1 %vm514_vm0, %v18932_v20 }
 0x649   : > { %18749 = vmatprep.subr.mxu1 %v11316_v49 }
 0x64b   : > { %18742 = vmatmul.mubr.msk.f32.vlgmr.msra.gmra.mxu1 %vm514_vm0, %v18933_v50 }
 0x64c   : > { %18750 = vmatpush3.msra.mxu1 %v11316_v49  ;;  %18751 = vmatprep.mubr.msk.f32.mxu1 %vm514_vm0, %v18932_v20 }
 0x64d   : > { %18759 = vmatprep.subr.mxu1 %v11318_v39 }
 0x64f   : > { %18752 = vmatmul.mubr.msk.f32.vlgmr.msra.gmra.mxu1 %vm514_vm0, %v18933_v50 }
 0x650   : > { %18760 = vmatpush3.msra.mxu1 %v11318_v39  ;;  %18761 = vmatprep.mubr.msk.f32.mxu1 %vm514_vm0, %v18932_v20 }
 0x651   : > { %18769 = vmatprep.subr.mxu1 %v11320_v46 }
 0x653   : > { %18762 = vmatmul.mubr.msk.f32.vlgmr.msra.gmra.mxu1 %vm514_vm0, %v18933_v50 }
 0x654   : > { %18770 = vmatpush3.msra.mxu1 %v11320_v46  ;;  %18771 = vmatprep.mubr.msk.f32.mxu1 %vm514_vm0, %v18932_v20 }
 0x657   : > { %18772 = vmatmul.mubr.msk.f32.vlgmr.msra.gmra.mxu1 %vm514_vm0, %v18933_v50 }
 0x6ef   : > { %v23541_v51 = vpop.f32.mrf.mxu1 }
 0x6f0   : > { %v12857_v31 = vrot.slane %v23541_v51, %v25633_v13 }
 0x6f1   : > { %v23543_v4 = vpop.f32.mrf.mxu1 }
 0x6f2   : > { %v14131_v8 = vrot.slane %v23543_v4, %v25633_v13  ;;  %v12865_v50 = vcombine.high %v12857_v31, %v12857_v31  ;;  %v23622_v5 = vrot.slane %v12857_v31, %v25633_v13 }
 0x6f3   : > { %v18698_v28 = vpop.f32.mrf.mxu1 }
 0x6f4   : > { %v14139_v12 = vcombine.high %v14131_v8, %v14131_v8  ;;  %v23615_v38 = vrot.slane %v14131_v8, %v25633_v13 }
 0x6f5   : > { %v11393_v43 = vpop.f32.mrf.mxu1 }
 0x6f6   : > { %18776 = vmatprep.mubr.msk.f32.mxu0 %vm514_vm0, %v11393_v43  ;;  %v23627_v39 = vrot.slane %v14139_v12, %v25633_v13 }
 0x6f7   : > { %v18703_v33 = vpop.f32.mrf.mxu1  ;;  %18777 = vmatmul.mubr.msk.f32.vlgmr.msra.gmra.mxu0 %vm514_vm0, %v18698_v28 }
 0x6f9   : > { %v11468_v40 = vpop.f32.mrf.mxu1 }
 0x6fa   : > { %18779 = vmatprep.mubr.msk.f32.mxu0 %vm514_vm0, %v11468_v40  ;;  %v23641_v40 = vrot.slane %v12865_v50, %v25633_v13 }
 0x6fb   : > { %v18708_v55 = vpop.f32.mrf.mxu1  ;;  %18780 = vmatmul.mubr.msk.f32.gmra.mxu0 %vm514_vm0, %v18703_v33 }
 0x6fd   : > { %v11543_v24 = vpop.f32.mrf.mxu1 }
 0x6fe   : > { %18782 = vmatprep.mubr.msk.f32.mxu0 %vm514_vm0, %v11543_v24 }
 0x6ff   : > { %v18713_v1 = vpop.f32.mrf.mxu1  ;;  %18783 = vmatmul.mubr.msk.f32.gmra.mxu0 %vm514_vm0, %v18708_v55 }
 0x701   : > { %v11618_v52 = vpop.f32.mrf.mxu1 }
 0x702   : > { %18785 = vmatprep.mubr.msk.f32.mxu0 %vm514_vm0, %v11618_v52 }
 0x703   : > { %18786 = vmatmul.mubr.msk.f32.gmra.mxu0 %vm514_vm0, %v18713_v1  ;;  %v18723_v35 = vpop.f32.mrf.mxu1 }
 0x704   : > { %18788 = vmatprep.mubr.msk.f32.mxu0 %vm514_vm0, %v11693_v7 }
 0x705   : > { %v11768_v17 = vpop.f32.mrf.mxu1 }
 0x707   : > { %18789 = vmatmul.mubr.msk.f32.gmra.mxu0 %vm514_vm0, %v18718_v9  ;;  %v18733_v11 = vpop.f32.mrf.mxu1 }
 0x708   : > { %18791 = vmatprep.mubr.msk.f32.mxu0 %vm514_vm0, %v11768_v17  ;;  %v12850_v17 = vcombine.high %v23541_v51, %v23541_v51  ;;  %v23676_v51 = vcombine.high %v23622_v5, %v23622_v5 }
 0x709   : > { %v11918_v10 = vpop.f32.mrf.mxu1 }
 0x70b   : > { %18792 = vmatmul.mubr.msk.f32.gmra.mxu0 %vm514_vm0, %v18723_v35  ;;  %v18743_v15 = vpop.f32.mrf.mxu1  ;;  %v23657_v35 = vcombine.high %v23615_v38, %v23615_v38 }
 0x70c   : > { %18794 = vmatprep.mubr.msk.f32.mxu0 %vm514_vm0, %v11843_v61 }
 0x70d   : > { %v12068_v53 = vpop.f32.mrf.mxu1 }
 0x70f   : > { %18795 = vmatmul.mubr.msk.f32.gmra.mxu0 %vm514_vm0, %v18728_v30  ;;  %v18753_v3 = vpop.f32.mrf.mxu1 }
 0x710   : > { %18797 = vmatprep.mubr.msk.f32.mxu0 %vm514_vm0, %v11918_v10 }
 0x711   : > { %v12218_v14 = vpop.f32.mrf.mxu1 }
 0x713   : > { %18798 = vmatmul.mubr.msk.f32.gmra.mxu0 %vm514_vm0, %v18733_v11  ;;  %v18763_v56 = vpop.f32.mrf.mxu1  ;;  %v14124_v11 = vcombine.high %v23543_v4, %v23543_v4 }
 0x714   : > { %18800 = vmatprep.mubr.msk.f32.mxu0 %vm514_vm0, %v11993_v22 }
 0x715   : > { %v12368_v48 = vpop.f32.mrf.mxu1 }
 0x717   : > { %18801 = vmatmul.mubr.msk.f32.gmra.mxu0 %vm514_vm0, %v18738_v6  ;;  %v18773_v58 = vpop.f32.mrf.mxu1 }
 0x718   : > { %18803 = vmatprep.mubr.msk.f32.mxu0 %vm514_vm0, %v12068_v53 }
 0x719   : > { %v12518_v44 = vpop.f32.mrf.mxu1 }
 0x71b   : > { %18804 = vmatmul.mubr.msk.f32.gmra.mxu0 %vm514_vm0, %v18743_v15 }
 0x71c   : > { %18806 = vmatprep.mubr.msk.f32.mxu0 %vm514_vm0, %v12143_v59 }
 0x71f   : > { %18807 = vmatmul.mubr.msk.f32.gmra.mxu0 %vm514_vm0, %v18748_v37 }
 0x720   : > { %18809 = vmatprep.mubr.msk.f32.mxu0 %vm514_vm0, %v12218_v14  ;;  %v23689_v14 = vcombine.high %v23627_v39, %v23627_v39 }
 0x723   : > { %18810 = vmatmul.mubr.msk.f32.gmra.mxu0 %vm514_vm0, %v18753_v3 }
 0x724   : > { %18812 = vmatprep.mubr.msk.f32.mxu0 %vm514_vm0, %v12293_v26  ;;  %v14138_v26 = vrot.slane %v14124_v11, %v25633_v13 }
 0x726   : > { %v23726_v50 = vrot.slane %v14138_v26, %v25633_v13 }
 0x727   : > { %18813 = vmatmul.mubr.msk.f32.gmra.mxu0 %vm514_vm0, %v18758_v45  ;;  %v12864_v45 = vrot.slane %v12850_v17, %v25633_v13 }
 0x728   : > { %18815 = vmatprep.mubr.msk.f32.mxu0 %vm514_vm0, %v12368_v48  ;;  %25637 = vst [vmem:[#allocation45_spill] sm:$0xff] %v23726_v50 }
 0x72b   : > { %18816 = vmatmul.mubr.msk.f32.gmra.mxu0 %vm514_vm0, %v18763_v56 }
 0x72c   : > { %18818 = vmatprep.mubr.msk.f32.mxu0 %vm514_vm0, %v12443_v62 }
 0x72f   : > { %18819 = vmatmul.mubr.msk.f32.gmra.mxu0 %vm514_vm0, %v18768_v36 }
 0x730   : > { %18821 = vmatprep.mubr.msk.f32.mxu0 %vm514_vm0, %v12518_v44  ;;  %v23707_v44 = vcombine.high %v23641_v40, %v23641_v40 }
 0x732   : > { %25636 = vst [vmem:[#allocation44_spill] sm:$0xff] %v23707_v44 }
 0x733   : > { %18822 = vmatmul.mubr.msk.f32.gmra.mxu0 %vm514_vm0, %v18773_v58 }
 0x7b7   : > { %v23577_v2 = vpop.f32.mrf.mxu0 }
 0x7b8   : > { %25619 = vst [vmem:[#allocation14_spill] sm:$0xff] %v23577_v2 }
 0x7b9   : > { %v23579_v18 = vpop.f32.mrf.mxu0 }
 0x7ba   : > { %25620 = vst [vmem:[#allocation15_spill] sm:$0xff] %v23579_v18 }
 0x7bb   : > { %v23581_v25 = vpop.f32.mrf.mxu0 }
 0x7bc   : > { %25621 = vst [vmem:[#allocation25_spill] sm:$0xff] %v23581_v25 }
 0x7bd   : > { %v23583_v19 = vpop.f32.mrf.mxu0 }
 0x7be   : > { %25622 = vst [vmem:[#allocation33_spill] sm:$0xff] %v23583_v19 }
 0x7bf   : > { %v23585_v60 = vpop.f32.mrf.mxu0 }
 0x7c0   : > { %25623 = vst [vmem:[#allocation34_spill] sm:$0xff] %v23585_v60 }
 0x7c1   : > { %v23587_v0 = vpop.f32.mrf.mxu0 }
 0x7c2   : > { %25624 = vst [vmem:[#allocation35_spill] sm:$0xff] %v23587_v0 }
 0x7c3   : > { %v23589_v41 = vpop.f32.mrf.mxu0 }
 0x7c4   : > { %25625 = vst [vmem:[#allocation36_spill] sm:$0xff] %v23589_v41 }
 0x7c5   : > { %v23591_v47 = vpop.f32.mrf.mxu0 }
 0x7c6   : > { %25626 = vst [vmem:[#allocation37_spill] sm:$0xff] %v23591_v47 }
 0x7c7   : > { %v23593_v23 = vpop.f32.mrf.mxu0 }
 0x7c8   : > { %25627 = vst [vmem:[#allocation38_spill] sm:$0xff] %v23593_v23 }
 0x7c9   : > { %v23595_v29 = vpop.f32.mrf.mxu0 }
 0x7ca   : > { %25628 = vst [vmem:[#allocation39_spill] sm:$0xff] %v23595_v29 }
 0x7cb   : > { %v23597_v27 = vpop.f32.mrf.mxu0 }
 0x7cc   : > { %25629 = vst [vmem:[#allocation63_spill] sm:$0xff] %v23597_v27 }
 0x7cd   : > { %v23599_v54 = vpop.f32.mrf.mxu0 }
 0x7ce   : > { %25630 = vst [vmem:[#allocation40_spill] sm:$0xff] %v23599_v54 }
 0x7cf   : > { %v23601_v34 = vpop.f32.mrf.mxu0 }
 0x7d0   : > { %25631 = vst [vmem:[#allocation41_spill] sm:$0xff] %v23601_v34 }
 0x7d1   : > { %v23603_v63 = vpop.f32.mrf.mxu0 }
 0x7d2   : > { %25632 = vst [vmem:[#allocation42_spill] sm:$0xff] %v23603_v63 }
 0x7d3   : > { %v23607_v32 = vpop.f32.mrf.mxu0 }
 0x7d4   : > { %25634 = vst [vmem:[#allocation43_spill] sm:$0xff] %v23607_v32 }
 0x7d5   : > { %v23612_v21 = vpop.f32.mrf.mxu0 }
 0x7d6   : > { %25635 = vst [vmem:[#allocation64_spill] sm:$0xff] %v23612_v21 }
 0x7d7   : > { %v18802_v20 = vpop.f32.mrf.mxu0 }
 0x7d8   : > { %v14181_v42 = vmul.f32 %v18802_v20, %v23615_v38  ;;  %v14219_v16 = vrot.slane %v18802_v20, %v25633_v13  ;;  %v14741_v53 = vcombine.high %v18802_v20, %v18802_v20 }
 0x7d9   : > { %v23624_v49 = vpop.f32.mrf.mxu0 }
 0x7da   : > { %v14189_v46 = vadd.f32 %v23577_v2, %v14181_v42  ;;  %v12907_v57 = vmul.f32 %v23622_v5, %v23624_v49  ;;  %v14220_v43 = vcombine.high %v14219_v16, %v14219_v16  ;;  %v14227_v30 = vrot.slane %v14219_v16, %v25633_v13 }
 0x7db   : > { %v23632_v28 = vpop.f32.mrf.mxu0  ;;  %v23710_v8 = vrot.slane %v14741_v53, %v25633_v13  ;;  %v12946_v31 = vrot.slane %v23624_v49, %v25633_v13 }
 0x7dc   : > { %14197 = vst.msk [vmem:[%s23634_s3 + $0x8] sm:$0x1] %vm12923_vm7, %v14189_v46  ;;  %v14182_v33 = vmul.f32 %v23632_v28, %v23627_v39  ;;  %v12915_v55 = vadd.f32 %v12907_v57, %v23579_v18  ;;  %v14241_v1 = vrot.slane %v23632_v28, %v25633_v13  ;;  %v23665_v61 = vrot.slane %v14220_v43, %v25633_v13 }
 0x7dd   : > { %v23644_v24 = vpop.f32.mrf.mxu0  ;;  %v14501_v3 = vcombine.high %v14227_v30, %v14227_v30  ;;  %v14756_v20 = vcombine.high %v23632_v28, %v23632_v28  ;;  %v12866_v57 = vcombine.high %v12864_v45, %v12864_v45  ;;  %v14140_v43 = vcombine.high %v14138_v26, %v14138_v26 }
 0x7de   : > { %v14190_v9 = vadd.f32 %v23581_v25, %v14182_v33  ;;  %12924 = vst.msk [vmem:[%s23634_s3] sm:$0x1] %vm12923_vm7, %v12915_v55  ;;  %v12908_v52 = vmul.f32 %v23641_v40, %v23644_v24  ;;  %v14242_v15 = vcombine.high %v14241_v1, %v14241_v1  ;;  %14389 = vrot.lane.b32.xlu0 %v23665_v61, %s19005_s25 }
 0x7df   : > { %v23653_v7 = vpop.f32.mrf.mxu0  ;;  %v14249_v36 = vrot.slane %v14241_v1, %v25633_v13  ;;  %v23734_v55 = vrot.slane %v12864_v45, %v25633_v13  ;;  %v23738_v1 = vrot.slane %v23710_v8, %v25633_v13  ;;  %v23745_v30 = vrot.slane %v14756_v20, %v25633_v13 }
 0x7e0   : > { %14198 = vst.msk [vmem:[%s23634_s3 + $0x18] sm:$0x1] %vm12923_vm7, %v14190_v9  ;;  %v12916_v10 = vadd.f32 %v12908_v52, %v23583_v19  ;;  %v14183_v6 = vmul.f32 %v23653_v7, %v23657_v35  ;;  %v23701_v62 = vrot.slane %v14242_v15, %v25633_v13  ;;  %v12947_v9 = vcombine.high %v12946_v31, %v12946_v31 }
 0x7e1   : > { %v23672_v22 = vpop.f32.mrf.mxu0  ;;  %v14502_v33 = vcombine.high %v14249_v36, %v14249_v36  ;;  %25638 = vst [vmem:[#allocation46_spill] sm:$0xff] %v23734_v55  ;;  %v12968_v11 = vrot.slane %v23644_v24, %v25633_v13  ;;  %v23760_v53 = vrot.slane %v14140_v43, %v25633_v13  ;;  %v23796_v43 = vcombine.high %v23734_v55, %v23734_v55 }
 0x7e2   : > { %12925 = vst.msk [vmem:[%s23634_s3 + $0x10] sm:$0x1] %vm12923_vm7, %v12916_v10  ;;  %v14191_v4 = vadd.f32 %v23585_v60, %v14183_v6  ;;  %v12909_v37 = vmul.f32 %v23676_v51, %v23672_v22  ;;  %14509 = vrot.lane.b32.xlu0 %v14501_v3, %s19006_s26  ;;  %14391 = vrot.lane.b32.xlu1 %v23701_v62, %s19005_s25 }
 0x7e3   : > { %v23685_v59 = vpop.f32.mrf.mxu0  ;;  %25639 = vst [vmem:[#allocation47_spill] sm:$0xff] %v23760_v53  ;;  %v23770_v45 = vrot.slane %v12947_v9, %v25633_v13  ;;  %v12969_v36 = vcombine.high %v12968_v11, %v12968_v11  ;;  %25642 = vst [vmem:[#allocation49_spill] sm:$0xff] %v23796_v43 }
 0x7e4   : > { %14199 = vst.msk [vmem:[%s23634_s3 + $0x28] sm:$0x1] %vm12923_vm7, %v14191_v4  ;;  %v12917_v56 = vadd.f32 %v12909_v37, %v23587_v0  ;;  %v14184_v58 = vmul.f32 %v23685_v59, %v23689_v14  ;;  %v23763_v4 = vrot.slane %v12866_v57, %v25633_v13  ;;  %v12954_v37 = vrot.slane %v12946_v31, %v25633_v13 }
 0x7e5   : > { %v23696_v48 = vpop.f32.mrf.mxu0  ;;  %v23792_v57 = vcombine.high %v23726_v50, %v23726_v50 }
 0x7e6   : > { %12926 = vst.msk [vmem:[%s23634_s3 + $0x20] sm:$0x1] %vm12923_vm7, %v12917_v56  ;;  %v14192_v42 = vadd.f32 %v23589_v41, %v14184_v58  ;;  %v12910_v16 = vmul.f32 %v23707_v44, %v23696_v48  ;;  %14511 = vrot.lane.b32.xlu1 %v14502_v33, %s19006_s26  ;;  %14861 = vrot.lane.b32.xlu0 %v23738_v1, %s19007_s27  ;;  %25640 = vst [vmem:[#allocation65_spill] sm:$0xff] %v23763_v4 }
 0x7e7   : > { %v23716_v12 = vpop.f32.mrf.mxu0  ;;  %v13471_v56 = vcombine.high %v23624_v49, %v23624_v49  ;;  %v14770_v58 = vrot.slane %v23745_v30, %v25633_v13  ;;  %25641 = vst [vmem:[#allocation48_spill] sm:$0xff] %v23792_v57 }
 0x7e8   : > { %14200 = vst.msk [vmem:[%s23634_s3 + $0x38] sm:$0x1] %vm12923_vm7, %v14192_v42  ;;  %v12918_v28 = vadd.f32 %v12910_v16, %v23591_v47  ;;  %v14185_v52 = vmul.f32 %v23716_v12, %v23726_v50  ;;  %v13229_v16 = vcombine.high %v12954_v37, %v12954_v37  ;;  %v13486_v37 = vcombine.high %v23644_v24, %v23644_v24 }
 0x7e9   : > { %v23728_v46 = vpop.f32.mrf.mxu0  ;;  %v13478_v33 = vrot.slane %v13471_v56, %v25633_v13  ;;  %v23819_v56 = vcombine.high %v23760_v53, %v23760_v53 }
 0x7ea   : > { %12927 = vst.msk [vmem:[%s23634_s3 + $0x30] sm:$0x1] %vm12923_vm7, %v12918_v28  ;;  %v14193_v10 = vadd.f32 %v23593_v23, %v14185_v52  ;;  %v12911_v6 = vmul.f32 %v23734_v55, %v23728_v46  ;;  %13116 = vrot.lane.b32.xlu0 %v23770_v45, %s19005_s25  ;;  %14863 = vrot.lane.b32.xlu1 %v14770_v58, %s19007_s27 }
 0x7eb   : > { %v23742_v17 = vpop.f32.mrf.mxu0  ;;  %v12976_v28 = vrot.slane %v12968_v11, %v25633_v13  ;;  %v12983_v52 = vrot.slane %v12969_v36, %v25633_v13  ;;  %25643 = vst [vmem:[#allocation66_spill] sm:$0xff] %v23819_v56 }
 0x7ec   : > { %14201 = vst.msk [vmem:[%s23634_s3 + $0x48] sm:$0x1] %vm12923_vm7, %v14193_v10  ;;  %v12919_v3 = vadd.f32 %v12911_v6, %v23595_v29  ;;  %v14186_v31 = vmul.f32 %v23742_v17, %v23760_v53 }
 0x7ed   : > { %v23757_v15 = vpop.f32.mrf.mxu0  ;;  %v13230_v36 = vcombine.high %v12976_v28, %v12976_v28 }
 0x7ee   : > { %12928 = vst.msk [vmem:[%s23634_s3 + $0x40] sm:$0x1] %vm12923_vm7, %v12919_v3  ;;  %v14194_v42 = vadd.f32 %v23597_v27, %v14186_v31  ;;  %v12912_v49 = vmul.f32 %v23763_v4, %v23757_v15  ;;  %13237 = vrot.lane.b32.xlu0 %v13229_v16, %s19006_s26  ;;  %13118 = vrot.lane.b32.xlu1 %v12983_v52, %s19005_s25 }
 0x7ef   : > { %v23772_v26 = vpop.f32.mrf.mxu0  ;;  %v23831_v16 = vcombine.high %v23763_v4, %v23763_v4 }
 0x7f0   : > { %14202 = vst.msk [vmem:[%s23634_s3 + $0x58] sm:$0x1] %vm12923_vm7, %v14194_v42  ;;  %v12920_v9 = vadd.f32 %v12912_v49, %v23599_v54  ;;  %v14187_v6 = vmul.f32 %v23772_v26, %v23792_v57  ;;  %v13485_v42 = vrot.slane %v13478_v33, %v25633_v13 }
 0x7f1   : > { %v23784_v20 = vpop.f32.mrf.mxu0  ;;  %25644 = vst [vmem:[#allocation50_spill] sm:$0xff] %v23831_v16 }
 0x7f2   : > { %12929 = vst.msk [vmem:[%s23634_s3 + $0x50] sm:$0x1] %vm12923_vm7, %v12920_v9  ;;  %v12913_v11 = vmul.f32 %v23796_v43, %v23784_v20  ;;  %v14195_v3 = vadd.f32 %v23601_v34, %v14187_v6  ;;  %v13493_v9 = vrot.slane %v13486_v37, %v25633_v13  ;;  %13591 = vrot.lane.b32.xlu0 %v13485_v42, %s19007_s27 }
 0x7f3   : > { %v23804_v10 = vpop.f32.mrf.mxu0  ;;  %13239 = vrot.lane.b32.xlu1 %v13230_v36, %s19006_s26  ;;  %v14621_v37 = vcombine.high %v23665_v61, %v23665_v61  ;;  %v15149_v61 = vcombine.high %v23738_v1, %v23738_v1  ;;  %v13881_v1 = vcombine.high %v13485_v42, %v13485_v42  ;;  %v14285_v42 = vrot.slane %v23685_v59, %v25633_v13 }
 0x7f4   : > { %v12921_v31 = vadd.f32 %v12913_v11, %v23603_v63  ;;  %14203 = vst.msk [vmem:[%s23634_s3 + $0x68] sm:$0x1] %vm12923_vm7, %v14195_v3  ;;  %v14188_v49 = vmul.f32 %v23804_v10, %v23819_v56  ;;  %v14973_v11 = vcombine.high %v23710_v8, %v23710_v8  ;;  %v14981_v8 = vcombine.high %v23745_v30, %v23745_v30 }
 0x7f5   : > { %v23823_v24 = vpop.f32.mrf.mxu0  ;;  %v13350_v30 = vcombine.high %v23770_v45, %v23770_v45  ;;  %v14263_v45 = vrot.slane %v23653_v7, %v25633_v13 }
 0x7f6   : > { %12930 = vst.msk [vmem:[%s23634_s3 + $0x60] sm:$0x1] %vm12923_vm7, %v12921_v31  ;;  %v14196_v28 = vadd.f32 %v23607_v32, %v14188_v49  ;;  %v12914_v6 = vmul.f32 %v23831_v16, %v23823_v24  ;;  %v13500_v31 = vrot.slane %v13493_v9, %v25633_v13  ;;  %14629 = vrot.lane.b32.xlu0 %v14621_v37, %s19008_s28 }
 0x7f7   : > { %v14980_v36 = vrot.slane %v14973_v11, %v25633_v13  ;;  %v14622_v49 = vcombine.high %v23701_v62, %v23701_v62  ;;  %v15150_v11 = vcombine.high %v14770_v58, %v14770_v58  ;;  %v13351_v37 = vcombine.high %v12983_v52, %v12983_v52 }
 0x7f8   : > { %14204 = vst.msk [vmem:[%s23634_s3 + $0x78] sm:$0x1] %vm12923_vm7, %v14196_v28  ;;  %v12922_v3 = vadd.f32 %v12914_v6, %v23612_v21  ;;  %13593 = vrot.lane.b32.xlu1 %v13500_v31, %s19007_s27  ;;  %v14988_v28 = vrot.slane %v14981_v8, %v25633_v13  ;;  %v13704_v6 = vcombine.high %v13478_v33, %v13478_v33 }
 0x7f9   : > { %v15269_v58 = vcombine.high %v14980_v36, %v14980_v36  ;;  %v13882_v33 = vcombine.high %v13500_v31, %v13500_v31  ;;  %v14264_v52 = vcombine.high %v14263_v45, %v14263_v45 }
 0x7fa   : > { %12931 = vst.msk [vmem:[%s23634_s3 + $0x70] sm:$0x1] %vm12923_vm7, %v12922_v3  ;;  %15037 = vrot.lane.b32.xlu0 %v14980_v36, %s25502_s21  ;;  %v13711_v62 = vrot.slane %v13704_v6, %v25633_v13  ;;  %v13712_v3 = vcombine.high %v13493_v9, %v13493_v9  ;;  %v14771_v36 = vcombine.high %v23653_v7, %v23653_v7 }
 0x7fb   : > { %v14278_v31 = vrot.slane %v14264_v52, %v25633_v13  ;;  %v14286_v6 = vcombine.high %v14285_v42, %v14285_v42  ;;  %v13501_v52 = vcombine.high %v23672_v22, %v23672_v22 }
 0x7fc   : > { %14631 = vrot.lane.b32.xlu1 %v14622_v49, %s19008_s28  ;;  %v13719_v8 = vrot.slane %v13712_v3, %v25633_v13  ;;  %v14002_v9 = vcombine.high %v13711_v62, %v13711_v62  ;;  %v15270_v49 = vcombine.high %v14988_v28, %v14988_v28  ;;  %v14293_v3 = vrot.slane %v14285_v42, %v25633_v13 }
 0x7fd   : > { %v14300_v7 = vrot.slane %v14286_v6, %v25633_v13 }
 0x7fe   : > { %15157 = vrot.lane.b32.xlu0 %v15149_v61, %s25584_s0  ;;  %v14271_v61 = vrot.slane %v14263_v45, %v25633_v13  ;;  %v14504_v45 = vcombine.high %v14293_v3, %v14293_v3 }
 0x800   : > { %15039 = vrot.lane.b32.xlu1 %v14988_v28, %s25502_s21  ;;  %v14778_v28 = vrot.slane %v14771_v36, %v25633_v13  ;;  %v13508_v36 = vrot.slane %v13501_v52, %v25633_v13 }
 0x802   : > { %13358 = vrot.lane.b32.xlu0 %v13350_v30, %s19008_s28  ;;  %v14003_v30 = vcombine.high %v13719_v8, %v13719_v8 }
 0x804   : > { %15159 = vrot.lane.b32.xlu1 %v15150_v11, %s25584_s0  ;;  %v14503_v11 = vcombine.high %v14271_v61, %v14271_v61 }
 0x806   : > { %13768 = vrot.lane.b32.xlu0 %v13711_v62, %s25502_s21  ;;  %v12990_v62 = vrot.slane %v23672_v22, %v25633_v13  ;;  %v13515_v22 = vrot.slane %v13508_v36, %v25633_v13 }
 0x808   : > { %13360 = vrot.lane.b32.xlu1 %v13351_v37, %s19008_s28  ;;  %v14786_v37 = vcombine.high %v23685_v59, %v23685_v59  ;;  %v12998_v59 = vrot.slane %v12990_v62, %v25633_v13 }
 0x80a   : > { %13889 = vrot.lane.b32.xlu0 %v13881_v1, %s25584_s0  ;;  %v12991_v1 = vcombine.high %v12990_v62, %v12990_v62  ;;  %v13231_v61 = vcombine.high %v12998_v59, %v12998_v59  ;;  %v14624_v59 = vcombine.high %v14300_v7, %v14300_v7 }
 0x80c   : > { %13770 = vrot.lane.b32.xlu1 %v13719_v8, %s25502_s21  ;;  %v14785_v8 = vrot.slane %v14778_v28, %v25633_v13 }
 0x80e   : > { %15277 = vrot.lane.b32.xlu0 %v15269_v58, %s25538_s20  ;;  %v14793_v58 = vrot.slane %v14786_v37, %v25633_v13  ;;  %v14989_v37 = vcombine.high %v14778_v28, %v14778_v28  ;;  %v15151_v52 = vcombine.high %v14785_v8, %v14785_v8 }
 0x810   : > { %13891 = vrot.lane.b32.xlu1 %v13882_v33, %s25584_s0  ;;  %v13012_v33 = vrot.slane %v23696_v48, %v25633_v13 }
 0x812   : > { %14010 = vrot.lane.b32.xlu0 %v14002_v9, %s25538_s20  ;;  %v13005_v9 = vrot.slane %v12991_v1, %v25633_v13  ;;  %v13013_v42 = vcombine.high %v13012_v33, %v13012_v33  ;;  %v13020_v6 = vrot.slane %v13012_v33, %v25633_v13  ;;  %v14623_v1 = vcombine.high %v14278_v31, %v14278_v31 }
 0x813   : > { %v14997_v33 = vcombine.high %v14793_v58, %v14793_v58 }
 0x814   : > { %15279 = vrot.lane.b32.xlu1 %v15270_v49, %s25538_s20  ;;  %v14800_v49 = vrot.slane %v14793_v58, %v25633_v13  ;;  %v13232_v62 = vcombine.high %v13020_v6, %v13020_v6  ;;  %v13352_v28 = vcombine.high %v13005_v9, %v13005_v9 }
 0x816   : > { %14393 = vrot.lane.b32.xlu0 %v14278_v31, %s19005_s25  ;;  %v13720_v31 = vcombine.high %v13508_v36, %v13508_v36 }
 0x818   : > { %14012 = vrot.lane.b32.xlu1 %v14003_v30, %s25538_s20  ;;  %v13516_v30 = vcombine.high %v23696_v48, %v23696_v48  ;;  %v14996_v48 = vrot.slane %v14989_v37, %v25633_v13 }
 0x81a   : > { %14513 = vrot.lane.b32.xlu0 %v14503_v11, %s19006_s26  ;;  %v13027_v11 = vrot.slane %v13013_v42, %v25633_v13  ;;  %v13523_v3 = vrot.slane %v13516_v30, %v25633_v13  ;;  %v15004_v42 = vrot.slane %v14997_v33, %v25633_v13 }
 0x81c   : > { %14395 = vrot.lane.b32.xlu1 %v14300_v7, %s19005_s25  ;;  %v13727_v7 = vrot.slane %v13720_v31, %v25633_v13  ;;  %v13728_v58 = vcombine.high %v13523_v3, %v13523_v3  ;;  %v13353_v6 = vcombine.high %v13027_v11, %v13027_v11  ;;  %v13034_v31 = vrot.slane %v23728_v46, %v25633_v13 }
 0x81e   : > { %14865 = vrot.lane.b32.xlu0 %v14785_v8, %s19007_s27  ;;  %v13883_v8 = vcombine.high %v13515_v22, %v13515_v22  ;;  %v13735_v30 = vrot.slane %v13728_v58, %v25633_v13 }
 0x820   : > { %14515 = vrot.lane.b32.xlu1 %v14504_v45, %s19006_s26  ;;  %v13530_v45 = vrot.slane %v13523_v3, %v25633_v13  ;;  %v15272_v3 = vcombine.high %v15004_v42, %v15004_v42 }
 0x822   : > { %13120 = vrot.lane.b32.xlu0 %v13005_v9, %s19005_s25  ;;  %v14307_v9 = vrot.slane %v23716_v12, %v25633_v13  ;;  %v13884_v36 = vcombine.high %v13530_v45, %v13530_v45 }
 0x824   : > { %14867 = vrot.lane.b32.xlu1 %v14800_v49, %s19007_s27 }
 0x826   : > { %13241 = vrot.lane.b32.xlu0 %v13231_v61, %s19006_s26  ;;  %v15152_v61 = vcombine.high %v14800_v49, %v14800_v49  ;;  %v15271_v49 = vcombine.high %v14996_v48, %v14996_v48 }
 0x828   : > { %13122 = vrot.lane.b32.xlu1 %v13027_v11, %s19005_s25  ;;  %v14308_v11 = vcombine.high %v14307_v9, %v14307_v9 }
 0x82a   : > { %13595 = vrot.lane.b32.xlu0 %v13515_v22, %s19007_s27  ;;  %v14329_v22 = vrot.slane %v23742_v17, %v25633_v13 }
 0x82c   : > { %13243 = vrot.lane.b32.xlu1 %v13232_v62, %s19006_s26  ;;  %v14004_v62 = vcombine.high %v13727_v7, %v13727_v7  ;;  %v14330_v33 = vcombine.high %v14329_v22, %v14329_v22 }
 0x82e   : > { %14633 = vrot.lane.b32.xlu0 %v14623_v1, %s19008_s28  ;;  %v14315_v1 = vrot.slane %v14307_v9, %v25633_v13 }
 0x830   : > { %13597 = vrot.lane.b32.xlu1 %v13530_v45, %s19007_s27  ;;  %v14801_v45 = vcombine.high %v23716_v12, %v23716_v12  ;;  %v14816_v12 = vcombine.high %v23742_v17, %v23742_v17 }
 0x832   : > { %15041 = vrot.lane.b32.xlu0 %v14996_v48, %s25502_s21  ;;  %v14322_v48 = vrot.slane %v14308_v11, %v25633_v13  ;;  %v14823_v9 = vrot.slane %v14816_v12, %v25633_v13  ;;  %v13042_v11 = vrot.slane %v13034_v31, %v25633_v13 }
 0x834   : > { %14635 = vrot.lane.b32.xlu1 %v14624_v59, %s19008_s28  ;;  %v14005_v59 = vcombine.high %v13735_v30, %v13735_v30 }
 0x836   : > { %15161 = vrot.lane.b32.xlu0 %v15151_v52, %s25584_s0  ;;  %v14505_v52 = vcombine.high %v14315_v1, %v14315_v1  ;;  %v14830_v1 = vrot.slane %v14823_v9, %v25633_v13 }
 0x838   : > { %15043 = vrot.lane.b32.xlu1 %v15004_v42, %s25502_s21  ;;  %v14808_v42 = vrot.slane %v14801_v45, %v25633_v13  ;;  %v15154_v29 = vcombine.high %v14830_v1, %v14830_v1 }
 0x83a   : > { %13362 = vrot.lane.b32.xlu0 %v13352_v28, %s19008_s28 }
 0x83c   : > { %15163 = vrot.lane.b32.xlu1 %v15152_v61, %s25584_s0  ;;  %v14337_v61 = vrot.slane %v14329_v22, %v25633_v13 }
 0x83e   : > { %13772 = vrot.lane.b32.xlu0 %v13727_v7, %s25502_s21  ;;  %v14344_v7 = vrot.slane %v14330_v33, %v25633_v13 }
 0x840   : > { %13364 = vrot.lane.b32.xlu1 %v13353_v6, %s19008_s28  ;;  %v13035_v6 = vcombine.high %v13034_v31, %v13034_v31 }
 0x842   : > { %13893 = vrot.lane.b32.xlu0 %v13883_v8, %s25584_s0  ;;  %v14815_v8 = vrot.slane %v14808_v42, %v25633_v13  ;;  %v13049_v22 = vrot.slane %v13035_v6, %v25633_v13 }
 0x844   : > { %13774 = vrot.lane.b32.xlu1 %v13735_v30, %s25502_s21  ;;  %v14506_v30 = vcombine.high %v14337_v61, %v14337_v61  ;;  %v13354_v54 = vcombine.high %v13049_v22, %v13049_v22 }
 0x846   : > { %15281 = vrot.lane.b32.xlu0 %v15271_v49, %s25538_s20  ;;  %v13056_v49 = vrot.slane %v23757_v15, %v25633_v13 }
 0x848   : > { %13895 = vrot.lane.b32.xlu1 %v13884_v36, %s25584_s0  ;;  %v13064_v31 = vrot.slane %v13056_v49, %v25633_v13 }
 0x84a   : > { %14014 = vrot.lane.b32.xlu0 %v14004_v62, %s25538_s20  ;;  %v13531_v62 = vcombine.high %v23728_v46, %v23728_v46  ;;  %v13546_v46 = vcombine.high %v23757_v15, %v23757_v15 }
 0x84c   : > { %15283 = vrot.lane.b32.xlu1 %v15272_v3, %s25538_s20  ;;  %v13057_v3 = vcombine.high %v13056_v49, %v13056_v49 }
 0x84e   : > { %14397 = vrot.lane.b32.xlu0 %v14322_v48, %s19005_s25  ;;  %v13071_v61 = vrot.slane %v13057_v3, %v25633_v13  ;;  %v15005_v3 = vcombine.high %v14808_v42, %v14808_v42 }
 0x850   : > { %v23947_v37 = vpop.permute.xlu0 %14389  ;;  %14016 = vrot.lane.b32.xlu1 %v14005_v59, %s25538_s20  ;;  %v13233_v59 = vcombine.high %v13042_v11, %v13042_v11  ;;  %v13234_v11 = vcombine.high %v13064_v31, %v13064_v31  ;;  %v15012_v31 = vrot.slane %v15005_v3, %v25633_v13 }
 0x852   : > { %14517 = vrot.lane.b32.xlu0 %v14505_v52, %s19006_s26  ;;  %v13538_v52 = vrot.slane %v13531_v62, %v25633_v13  ;;  %v13553_v62 = vrot.slane %v13546_v46, %v25633_v13  ;;  %v15013_v46 = vcombine.high %v14823_v9, %v14823_v9 }
 0x854   : > { %v23958_v28 = vpop.permute.xlu0 %14509  ;;  %v23964_v58 = vpop.permute.xlu1 %14391  ;;  %14399 = vrot.lane.b32.xlu1 %v14344_v7, %s19005_s25  ;;  %v13560_v21 = vrot.slane %v13553_v62, %v25633_v13  ;;  %v13736_v3 = vcombine.high %v13538_v52, %v13538_v52 }
 0x856   : > { %14869 = vrot.lane.b32.xlu0 %v14815_v8, %s19007_s27 }
 0x858   : > { %v23972_v36 = vpop.permute.xlu1 %14511  ;;  %v23975_v17 = vpop.permute.xlu0 %14861  ;;  %14519 = vrot.lane.b32.xlu1 %v14506_v30, %s19006_s26  ;;  %v13545_v30 = vrot.slane %v13538_v52, %v25633_v13 }
 0x85a   : > { %13124 = vrot.lane.b32.xlu0 %v13049_v22, %s19005_s25  ;;  %v13885_v52 = vcombine.high %v13545_v30, %v13545_v30 }
 0x85c   : > { %v23984_v45 = vpop.permute.xlu0 %13116  ;;  %14871 = vrot.lane.b32.xlu1 %v14830_v1, %s19007_s27  ;;  %v23987_v33 = vpop.permute.xlu1 %14863 }
 0x85e   : > { %13245 = vrot.lane.b32.xlu0 %v13233_v59, %s19006_s26  ;;  %v14625_v59 = vcombine.high %v14322_v48, %v14322_v48  ;;  %v15153_v48 = vcombine.high %v14815_v8, %v14815_v8 }
 0x860   : > { %v23995_v12 = vpop.permute.xlu0 %13237  ;;  %13126 = vrot.lane.b32.xlu1 %v13071_v61, %s19005_s25  ;;  %v23998_v6 = vpop.permute.xlu1 %13118 }
 0x862   : > { %13599 = vrot.lane.b32.xlu0 %v13545_v30, %s19007_s27 }
 0x864   : > { %13247 = vrot.lane.b32.xlu1 %v13234_v11, %s19006_s26  ;;  %v24004_v15 = vpop.permute.xlu0 %13591  ;;  %v14626_v11 = vcombine.high %v14344_v7, %v14344_v7 }
 0x865   : > { %v24006_v49 = vpop.permute.xlu1 %13239 }
 0x866   : > { %14637 = vrot.lane.b32.xlu0 %v14625_v59, %s19008_s28  ;;  %v15020_v59 = vrot.slane %v15013_v46, %v25633_v13  ;;  %v13744_v46 = vcombine.high %v13553_v62, %v13553_v62 }
 0x868   : > { %13601 = vrot.lane.b32.xlu1 %v13560_v21, %s19007_s27  ;;  %v24011_v63 = vpop.permute.xlu0 %14629  ;;  %v15274_v0 = vcombine.high %v15020_v59, %v15020_v59 }
 0x86a   : > { %v24014_v32 = vpop.permute.xlu1 %13593  ;;  %15045 = vrot.lane.b32.xlu0 %v15012_v31, %s25502_s21 }
 0x86c   : > { %14639 = vrot.lane.b32.xlu1 %v14626_v11, %s19008_s28  ;;  %v24018_v42 = vpop.permute.xlu0 %15037  ;;  %v13743_v11 = vrot.slane %v13736_v3, %v25633_v13 }
 0x86e   : > { %v24020_v34 = vpop.permute.xlu1 %14631  ;;  %15165 = vrot.lane.b32.xlu0 %v15153_v48, %s25584_s0  ;;  %v13355_v48 = vcombine.high %v13071_v61, %v13071_v61  ;;  %v15273_v61 = vcombine.high %v15012_v31, %v15012_v31  ;;  %v14831_v31 = vcombine.high %v23772_v26, %v23772_v26 }
 0x870   : > { %15047 = vrot.lane.b32.xlu1 %v15020_v59, %s25502_s21  ;;  %v24025_v9 = vpop.permute.xlu0 %15157 }
 0x872   : > { %v24027_v7 = vpop.permute.xlu1 %15039  ;;  %13366 = vrot.lane.b32.xlu0 %v13354_v54, %s19008_s28  ;;  %v13751_v54 = vrot.slane %v13744_v46, %v25633_v13  ;;  %v14006_v46 = vcombine.high %v13743_v11, %v13743_v11 }
 0x874   : > { %15167 = vrot.lane.b32.xlu1 %v15154_v29, %s25584_s0  ;;  %v24031_v8 = vpop.permute.xlu0 %13358  ;;  %v14351_v29 = vrot.slane %v23772_v26, %v25633_v13  ;;  %v14007_v41 = vcombine.high %v13751_v54, %v13751_v54 }
 0x876   : > { %v24034_v27 = vpop.permute.xlu1 %15159  ;;  %13776 = vrot.lane.b32.xlu0 %v13743_v11, %s25502_s21  ;;  %v14352_v30 = vcombine.high %v14351_v29, %v14351_v29 }
 0x878   : > { %13368 = vrot.lane.b32.xlu1 %v13355_v48, %s19008_s28  ;;  %v24038_v22 = vpop.permute.xlu0 %13768  ;;  %v13886_v48 = vcombine.high %v13560_v21, %v13560_v21  ;;  %v14359_v21 = vrot.slane %v14351_v29, %v25633_v13  ;;  %v13078_v29 = vrot.slane %v23784_v20, %v25633_v13 }
 0x87a   : > { %v24040_v1 = vpop.permute.xlu1 %13360  ;;  %13897 = vrot.lane.b32.xlu0 %v13885_v52, %s25584_s0  ;;  %v14373_v52 = vrot.slane %v23804_v10, %v25633_v13  ;;  %v14507_v59 = vcombine.high %v14359_v21, %v14359_v21 }
 0x87c   : > { %13778 = vrot.lane.b32.xlu1 %v13751_v54, %s25502_s21  ;;  %v24047_v62 = vpop.permute.xlu0 %13889  ;;  %v14374_v11 = vcombine.high %v14373_v52, %v14373_v52  ;;  %v14381_v26 = vrot.slane %v14373_v52, %v25633_v13  ;;  %v13100_v52 = vrot.slane %v23823_v24, %v25633_v13 }
 0x87e   : > { %v24049_v3 = vpop.permute.xlu1 %13770  ;;  %15285 = vrot.lane.b32.xlu0 %v15273_v61, %s25538_s20  ;;  %v14388_v54 = vrot.slane %v14374_v11, %v25633_v13  ;;  %v14508_v60 = vcombine.high %v14381_v26, %v14381_v26  ;;  %v13086_v11 = vrot.slane %v13078_v29, %v25633_v13  ;;  %v13101_v19 = vcombine.high %v13100_v52, %v13100_v52 }
 0x880   : > { %13899 = vrot.lane.b32.xlu1 %v13886_v48, %s25584_s0  ;;  %v24053_v23 = vpop.permute.xlu0 %15277  ;;  %v14366_v48 = vrot.slane %v14352_v30, %v25633_v13  ;;  %v14846_v30 = vcombine.high %v23804_v10, %v23804_v10  ;;  %v13235_v4 = vcombine.high %v13086_v11, %v13086_v11  ;;  %v13115_v25 = vrot.slane %v13101_v19, %v25633_v13 }
 0x882   : > { %v24057_v47 = vpop.permute.xlu1 %13891  ;;  %14018 = vrot.lane.b32.xlu0 %v14006_v46, %s25538_s20  ;;  %v14853_v56 = vrot.slane %v14846_v30, %v25633_v13 }
 0x884   : > { %15287 = vrot.lane.b32.xlu1 %v15274_v0, %s25538_s20  ;;  %v24064_v61 = vpop.permute.xlu0 %14010  ;;  %v14838_v0 = vrot.slane %v14831_v31, %v25633_v13  ;;  %v14860_v18 = vrot.slane %v14853_v56, %v25633_v13 }
 0x886   : > { %v24067_v16 = vpop.permute.xlu1 %15279  ;;  %14401 = vrot.lane.b32.xlu0 %v14366_v48, %s19005_s25  ;;  %v14845_v31 = vrot.slane %v14838_v0, %v25633_v13  ;;  %v15021_v19 = vcombine.high %v14838_v0, %v14838_v0 }
 0x888   : > { %14020 = vrot.lane.b32.xlu1 %v14007_v41, %s25538_s20  ;;  %v24074_v46 = vpop.permute.xlu0 %14393  ;;  %v13079_v41 = vcombine.high %v13078_v29, %v13078_v29  ;;  %v15155_v0 = vcombine.high %v14845_v31, %v14845_v31 }
 0x88a   : > { %v24079_v43 = vpop.permute.xlu1 %14012  ;;  %14521 = vrot.lane.b32.xlu0 %v14507_v59, %s19006_s26  ;;  %v13561_v59 = vcombine.high %v23784_v20, %v23784_v20  ;;  %v13093_v26 = vrot.slane %v13079_v41, %v25633_v13  ;;  %v13108_v20 = vrot.slane %v13100_v52, %v25633_v13  ;;  %v13576_v41 = vcombine.high %v23823_v24, %v23823_v24 }
 0x88b   : > { %v14627_v52 = vcombine.high %v14366_v48, %v14366_v48 }
 0x88c   : > { %14403 = vrot.lane.b32.xlu1 %v14388_v54, %s19005_s25  ;;  %v24084_v21 = vpop.permute.xlu0 %14513  ;;  %v13583_v53 = vrot.slane %v13576_v41, %v25633_v13  ;;  %v15028_v41 = vrot.slane %v15021_v19, %v25633_v13 }
 0x88e   : > { %v24090_v10 = vpop.permute.xlu1 %14395  ;;  %14873 = vrot.lane.b32.xlu0 %v14845_v31, %s19007_s27 }
 0x890   : > { %14523 = vrot.lane.b32.xlu1 %v14508_v60, %s19006_s26  ;;  %v24097_v57 = vpop.permute.xlu0 %14865  ;;  %v13568_v60 = vrot.slane %v13561_v59, %v25633_v13  ;;  %v13236_v59 = vcombine.high %v13108_v20, %v13108_v20 }
 0x892   : > { %v24100_v30 = vpop.permute.xlu1 %14515  ;;  %13128 = vrot.lane.b32.xlu0 %v13093_v26, %s19005_s25  ;;  %v13575_v11 = vrot.slane %v13568_v60, %v25633_v13  ;;  %v13752_v19 = vcombine.high %v13568_v60, %v13568_v60 }
 0x894   : > { %14875 = vrot.lane.b32.xlu1 %v14860_v18, %s19007_s27  ;;  %v24106_v29 = vpop.permute.xlu0 %13120  ;;  %v13887_v60 = vcombine.high %v13575_v11, %v13575_v11 }
 0x896   : > { %v24112_v55 = vpop.permute.xlu1 %14867  ;;  %13249 = vrot.lane.b32.xlu0 %v13235_v4, %s19006_s26  ;;  %v13590_v4 = vrot.slane %v13583_v53, %v25633_v13 }
 0x898   : > { %13130 = vrot.lane.b32.xlu1 %v13115_v25, %s19005_s25  ;;  %v24116_v2 = vpop.permute.xlu0 %13241 }
 0x899   : > { %25645 = vst [vmem:[#allocation51_spill] sm:$0xff] %v24116_v2 }
 0x89a   : > { %v24120_v50 = vpop.permute.xlu1 %13122  ;;  %13603 = vrot.lane.b32.xlu0 %v13575_v11, %s19007_s27  ;;  %v14413_v11 = vmul.f32 %v23947_v37, %v23615_v38  ;;  %v14414_v37 = vmul.f32 %v23964_v58, %v23627_v39 }
 0x89b   : > { %25646 = vst [vmem:[#allocation114_spill] sm:$0xff] %v24120_v50  ;;  %v15029_v50 = vcombine.high %v14853_v56, %v14853_v56 }
 0x89c   : > { %13251 = vrot.lane.b32.xlu1 %v13236_v59, %s19006_s26  ;;  %v24124_v24 = vpop.permute.xlu0 %13595  ;;  %v14628_v59 = vcombine.high %v14388_v54, %v14388_v54 }
 0x89e   : > { %v24127_v44 = vpop.permute.xlu1 %13243  ;;  %14641 = vrot.lane.b32.xlu0 %v14627_v52, %s19008_s28  ;;  %v15036_v52 = vrot.slane %v15029_v50, %v25633_v13  ;;  %v13760_v50 = vcombine.high %v13583_v53, %v13583_v53  ;;  %v15275_v53 = vcombine.high %v15028_v41, %v15028_v41 }
 0x89f   : > { %25647 = vst [vmem:[#allocation113_spill] sm:$0xff] %v24127_v44 }
 0x8a0   : > { %13605 = vrot.lane.b32.xlu1 %v13590_v4, %s19007_s27  ;;  %v24131_v20 = vpop.permute.xlu0 %14633 }
 0x8a1   : > { %25648 = vst [vmem:[#allocation9_spill] sm:$0xff] %v24131_v20  ;;  %v15156_v20 = vcombine.high %v14860_v18, %v14860_v18 }
 0x8a2   : > { %v24134_v2 = vpop.permute.xlu1 %13597  ;;  %15049 = vrot.lane.b32.xlu0 %v15028_v41, %s25502_s21  ;;  %v25652_v41 = vld [vmem:[#allocation84_spill] sm:$0xff] }
 0x8a3   : > { %25649 = vst [vmem:[#allocation99_spill] sm:$0xff] %v24134_v2  ;;  %v13356_v2 = vcombine.high %v13093_v26, %v13093_v26 }
 0x8a4   : > { %14643 = vrot.lane.b32.xlu1 %v14628_v59, %s19008_s28  ;;  %v24138_v48 = vpop.permute.xlu0 %15041  ;;  %v13759_v59 = vrot.slane %v13752_v19, %v25633_v13 }
 0x8a6   : > { %v24140_v44 = vpop.permute.xlu1 %14635  ;;  %15169 = vrot.lane.b32.xlu0 %v15155_v0, %s25584_s0  ;;  %v13357_v0 = vcombine.high %v13115_v25, %v13115_v25  ;;  %v13888_v25 = vcombine.high %v13590_v4, %v13590_v4  ;;  %v14533_v4 = vmul.f32 %v23958_v28, %v23615_v38  ;;  %v14436_v28 = vrot.slane %v14414_v37, %v25652_v41 }
 0x8a7   : > { %25650 = vst [vmem:[#allocation67_spill] sm:$0xff] %v24140_v44  ;;  %v14886_v37 = vmul.f32 %v23987_v33, %v23627_v39 }
 0x8a8   : > { %15051 = vrot.lane.b32.xlu1 %v15036_v52, %s25502_s21  ;;  %v24145_v56 = vpop.permute.xlu0 %15161 }
 0x8aa   : > { %v24147_v54 = vpop.permute.xlu1 %15043  ;;  %13370 = vrot.lane.b32.xlu0 %v13356_v2, %s19008_s28  ;;  %v13767_v2 = vrot.slane %v13760_v50, %v25633_v13  ;;  %v14008_v13 = vcombine.high %v13759_v59, %v13759_v59 }
 0x8ac   : > { %15171 = vrot.lane.b32.xlu1 %v15156_v20, %s25584_s0  ;;  %v24151_v31 = vpop.permute.xlu0 %13362 }
 0x8ae   : > { %v24154_v44 = vpop.permute.xlu1 %15163  ;;  %13780 = vrot.lane.b32.xlu0 %v13759_v59, %s25502_s21  ;;  %v14009_v59 = vcombine.high %v13767_v2, %v13767_v2 }
 0x8b0   : > { %13372 = vrot.lane.b32.xlu1 %v13357_v0, %s19008_s28  ;;  %v24158_v26 = vpop.permute.xlu0 %13772 }
 0x8b2   : > { %v24160_v18 = vpop.permute.xlu1 %13364  ;;  %13901 = vrot.lane.b32.xlu0 %v13887_v60, %s25584_s0  ;;  %v15276_v60 = vcombine.high %v15036_v52, %v15036_v52  ;;  %v14552_v52 = vrot.slane %v14533_v4, %v25652_v41 }
 0x8b4   : > { %13782 = vrot.lane.b32.xlu1 %v13767_v2, %s25502_s21  ;;  %v24165_v20 = vpop.permute.xlu0 %13893 }
 0x8b6   : > { %v24167_v19 = vpop.permute.xlu1 %13774  ;;  %15289 = vrot.lane.b32.xlu0 %v15275_v53, %s25538_s20 }
 0x8b7   : > { %25651 = vst [vmem:[#allocation68_spill] sm:$0xff] %v24167_v19  ;;  %v14432_v19 = vrot.slane %v14413_v11, %v25652_v41  ;;  %v14885_v11 = vmul.f32 %v23975_v17, %v23615_v38 }
 0x8b8   : > { %13903 = vrot.lane.b32.xlu1 %v13888_v25, %s25584_s0  ;;  %v24173_v0 = vpop.permute.xlu0 %15281 }
 0x8b9   : > { %v14904_v2 = vrot.slane %v14885_v11, %v25652_v41 }
 0x8ba   : > { %v24175_v50 = vpop.permute.xlu1 %13895  ;;  %14022 = vrot.lane.b32.xlu0 %v14008_v13, %s25538_s20 }
 0x8bc   : > { %15291 = vrot.lane.b32.xlu1 %v15276_v60, %s25538_s20  ;;  %v24182_v53 = vpop.permute.xlu0 %14014  ;;  %v14534_v60 = vmul.f32 %v23972_v36, %v23627_v39 }
 0x8be   : > { %v24186_v25 = vpop.permute.xlu1 %15283  ;;  %14461 = vrot.lane.b32.xlu0 %v14432_v19, %s25538_s20  ;;  %v13140_v19 = vmul.f32 %v23984_v45, %v23622_v5  ;;  %v14556_v17 = vrot.slane %v14534_v60, %v25652_v41  ;;  %v14908_v45 = vrot.slane %v14886_v37, %v25652_v41 }
 0x8c0   : > { %14024 = vrot.lane.b32.xlu1 %v14009_v59, %s25538_s20  ;;  %v24193_v13 = vpop.permute.xlu0 %14397  ;;  %v13159_v36 = vrot.slane %v13140_v19, %v25652_v41 }
 0x8c2   : > { %v24198_v58 = vpop.permute.xlu1 %14016  ;;  %14581 = vrot.lane.b32.xlu0 %v14552_v52, %s25584_s0  ;;  %v13261_v52 = vmul.f32 %v23995_v12, %v23622_v5 }
 0x8c4   : > { %14463 = vrot.lane.b32.xlu1 %v14436_v28, %s25538_s20  ;;  %v24205_v4 = vpop.permute.xlu0 %14517  ;;  %v13141_v28 = vmul.f32 %v23998_v6, %v23641_v40  ;;  %v13280_v33 = vrot.slane %v13261_v52, %v25652_v41 }
 0x8c6   : > { %v24210_v59 = vpop.permute.xlu1 %14399  ;;  %14933 = vrot.lane.b32.xlu0 %v14904_v2, %s19007_s27  ;;  %v13615_v2 = vmul.f32 %v24004_v15, %v23622_v5  ;;  %v13163_v12 = vrot.slane %v13141_v28, %v25652_v41 }
 0x8c8   : > { %14583 = vrot.lane.b32.xlu1 %v14556_v17, %s25584_s0  ;;  %v24217_v11 = vpop.permute.xlu0 %14869  ;;  %v13262_v17 = vmul.f32 %v24006_v49, %v23641_v40  ;;  %v13634_v6 = vrot.slane %v13615_v2, %v25652_v41 }
 0x8ca   : > { %v24222_v60 = vpop.permute.xlu1 %14519  ;;  %13188 = vrot.lane.b32.xlu0 %v13159_v36, %s25538_s20  ;;  %v14653_v36 = vmul.f32 %v24011_v63, %v23615_v38  ;;  %v13284_v15 = vrot.slane %v13262_v17, %v25652_v41 }
 0x8cc   : > { %14935 = vrot.lane.b32.xlu1 %v14908_v45, %s19007_s27  ;;  %v24229_v19 = vpop.permute.xlu0 %13124  ;;  %v13616_v45 = vmul.f32 %v24014_v32, %v23641_v40  ;;  %v14672_v49 = vrot.slane %v14653_v36, %v25652_v41 }
 0x8ce   : > { %v24234_v37 = vpop.permute.xlu1 %14871  ;;  %13309 = vrot.lane.b32.xlu0 %v13280_v33, %s25584_s0  ;;  %v15061_v33 = vmul.f32 %v24018_v42, %v23615_v38  ;;  %v13638_v63 = vrot.slane %v13616_v45, %v25652_v41 }
 0x8d0   : > { %13190 = vrot.lane.b32.xlu1 %v13163_v12, %s25538_s20  ;;  %v24241_v52 = vpop.permute.xlu0 %13245  ;;  %v14654_v12 = vmul.f32 %v24020_v34, %v23627_v39  ;;  %v15080_v32 = vrot.slane %v15061_v33, %v25652_v41 }
 0x8d2   : > { %v24246_v28 = vpop.permute.xlu1 %13126  ;;  %13663 = vrot.lane.b32.xlu0 %v13634_v6, %s19007_s27  ;;  %v15181_v6 = vmul.f32 %v24025_v9, %v23615_v38  ;;  %v14676_v42 = vrot.slane %v14654_v12, %v25652_v41 }
 0x8d4   : > { %13311 = vrot.lane.b32.xlu1 %v13284_v15, %s25584_s0  ;;  %v24253_v2 = vpop.permute.xlu0 %13599  ;;  %v15062_v15 = vmul.f32 %v24027_v7, %v23627_v39  ;;  %v15200_v34 = vrot.slane %v15181_v6, %v25652_v41 }
 0x8d6   : > { %v24258_v17 = vpop.permute.xlu1 %13247  ;;  %14701 = vrot.lane.b32.xlu0 %v14672_v49, %s25502_s21  ;;  %v13382_v49 = vmul.f32 %v24031_v8, %v23622_v5  ;;  %v15084_v9 = vrot.slane %v15062_v15, %v25652_v41 }
 0x8d8   : > { %13665 = vrot.lane.b32.xlu1 %v13638_v63, %s19007_s27  ;;  %v24265_v36 = vpop.permute.xlu0 %14637  ;;  %v15182_v63 = vmul.f32 %v24034_v27, %v23627_v39  ;;  %v13401_v7 = vrot.slane %v13382_v49, %v25652_v41 }
 0x8da   : > { %v24270_v45 = vpop.permute.xlu1 %13601  ;;  %15109 = vrot.lane.b32.xlu0 %v15080_v32, %s19008_s28  ;;  %v13792_v32 = vmul.f32 %v24038_v22, %v23622_v5  ;;  %v15204_v8 = vrot.slane %v15182_v63, %v25652_v41 }
 0x8dc   : > { %14703 = vrot.lane.b32.xlu1 %v14676_v42, %s25502_s21  ;;  %v24277_v33 = vpop.permute.xlu0 %15045  ;;  %v13383_v42 = vmul.f32 %v24040_v1, %v23641_v40  ;;  %v13811_v27 = vrot.slane %v13792_v32, %v25652_v41 }
 0x8de   : > { %v24282_v12 = vpop.permute.xlu1 %14639  ;;  %15229 = vrot.lane.b32.xlu0 %v15200_v34, %s19006_s26  ;;  %v13913_v34 = vmul.f32 %v24047_v62, %v23622_v5  ;;  %v13405_v22 = vrot.slane %v13383_v42, %v25652_v41 }
 0x8e0   : > { %15111 = vrot.lane.b32.xlu1 %v15084_v9, %s19008_s28  ;;  %v24289_v6 = vpop.permute.xlu0 %15165  ;;  %v13793_v9 = vmul.f32 %v24049_v3, %v23641_v40  ;;  %v13932_v1 = vrot.slane %v13913_v34, %v25652_v41 }
 0x8e2   : > { %v24294_v15 = vpop.permute.xlu1 %15047  ;;  %13430 = vrot.lane.b32.xlu0 %v13401_v7, %s25502_s21  ;;  %v15301_v7 = vmul.f32 %v24053_v23, %v23615_v38  ;;  %v13815_v62 = vrot.slane %v13793_v9, %v25652_v41  ;;  %v15302_v38 = vmul.f32 %v24067_v16, %v23627_v39  ;;  %v14415_v9 = vmul.f32 %v24074_v46, %v23657_v35 }
 0x8e3   : > { %v14535_v16 = vmul.f32 %v24084_v21, %v23657_v35 }
 0x8e4   : > { %15231 = vrot.lane.b32.xlu1 %v15204_v8, %s19006_s26  ;;  %v24301_v49 = vpop.permute.xlu0 %13366  ;;  %v13914_v8 = vmul.f32 %v24057_v47, %v23641_v40  ;;  %v15320_v3 = vrot.slane %v15301_v7, %v25652_v41  ;;  %v14440_v39 = vrot.slane %v14415_v9, %v25652_v41 }
 0x8e6   : > { %v24306_v63 = vpop.permute.xlu1 %15167  ;;  %13840 = vrot.lane.b32.xlu0 %v13811_v27, %s19008_s28  ;;  %v14034_v27 = vmul.f32 %v24064_v61, %v23622_v5  ;;  %v13936_v23 = vrot.slane %v13914_v8, %v25652_v41  ;;  %v15324_v5 = vrot.slane %v15302_v38, %v25652_v41  ;;  %v14035_v61 = vmul.f32 %v24079_v43, %v23641_v40 }
 0x8e7   : > { %v14416_v8 = vmul.f32 %v24090_v10, %v23689_v14  ;;  %v14560_v40 = vrot.slane %v14535_v16, %v25652_v41  ;;  %v14887_v43 = vmul.f32 %v24097_v57, %v23657_v35 }
 0x8e8   : > { %13432 = vrot.lane.b32.xlu1 %v13405_v22, %s25502_s21  ;;  %v24313_v32 = vpop.permute.xlu0 %13776  ;;  %v14053_v47 = vrot.slane %v14034_v27, %v25652_v41  ;;  %v14057_v46 = vrot.slane %v14035_v61, %v25652_v41 }
 0x8e9   : > { %v14444_v21 = vrot.slane %v14416_v8, %v25652_v41  ;;  %v14912_v10 = vrot.slane %v14887_v43, %v25652_v41  ;;  %v25654_v8 = vld [vmem:[#allocation44_spill] sm:$0xff] }
 0x8ea   : > { %v24318_v42 = vpop.permute.xlu1 %13368  ;;  %13961 = vrot.lane.b32.xlu0 %v13932_v1, %s19006_s26 }
 0x8ec   : > { %13842 = vrot.lane.b32.xlu1 %v13815_v62, %s19008_s28  ;;  %v24325_v34 = vpop.permute.xlu0 %13897 }
 0x8ee   : > { %v24330_v22 = vpop.permute.xlu1 %13778  ;;  %15349 = vrot.lane.b32.xlu0 %v15320_v3, %s19005_s25 }
 0x8f0   : > { %13963 = vrot.lane.b32.xlu1 %v13936_v23, %s19006_s26  ;;  %v24337_v1 = vpop.permute.xlu0 %15285  ;;  %v14536_v23 = vmul.f32 %v24100_v30, %v23689_v14 }
 0x8f2   : > { %v24342_v7 = vpop.permute.xlu1 %13899  ;;  %14082 = vrot.lane.b32.xlu0 %v14053_v47, %s19005_s25  ;;  %v13142_v47 = vmul.f32 %v24106_v29, %v23676_v51  ;;  %v14564_v57 = vrot.slane %v14536_v23, %v25652_v41  ;;  %v13617_v23 = vmul.f32 %v24124_v24, %v23676_v51 }
 0x8f4   : > { %15351 = vrot.lane.b32.xlu1 %v15324_v5, %s19005_s25  ;;  %v24349_v62 = vpop.permute.xlu0 %14018  ;;  %v14888_v5 = vmul.f32 %v24112_v55, %v23689_v14  ;;  %v13167_v30 = vrot.slane %v13142_v47, %v25652_v41 }
 0x8f6   : > { %v24354_v3 = vpop.permute.xlu1 %15287  ;;  %14465 = vrot.lane.b32.xlu0 %v14440_v39, %s25538_s20  ;;  %v25653_v39 = vld [vmem:[#allocation51_spill] sm:$0xff]  ;;  %v14916_v29 = vrot.slane %v14888_v5, %v25652_v41 }
 0x8f7   : > { %v13263_v16 = vmul.f32 %v25653_v39, %v23676_v51 }
 0x8f8   : > { %14084 = vrot.lane.b32.xlu1 %v14057_v46, %s19005_s25  ;;  %v24361_v27 = vpop.permute.xlu0 %14401 }
 0x8f9   : > { %v13288_v55 = vrot.slane %v13263_v16, %v25652_v41  ;;  %v25659_v16 = vld [vmem:[#allocation9_spill] sm:$0xff] }
 0x8fa   : > { %v24366_v38 = vpop.permute.xlu1 %14020  ;;  %14585 = vrot.lane.b32.xlu0 %v14560_v40, %s25584_s0  ;;  %v25655_v40 = vld [vmem:[#allocation114_spill] sm:$0xff] }
 0x8fb   : > { %v13143_v43 = vmul.f32 %v25655_v40, %v25654_v8 }
 0x8fc   : > { %14467 = vrot.lane.b32.xlu1 %v14444_v21, %s25538_s20  ;;  %v24373_v9 = vpop.permute.xlu0 %14521 }
 0x8fd   : > { %v13171_v47 = vrot.slane %v13143_v43, %v25652_v41  ;;  %v25661_v43 = vld [vmem:[#allocation99_spill] sm:$0xff] }
 0x8fe   : > { %v24378_v61 = vpop.permute.xlu1 %14403  ;;  %14937 = vrot.lane.b32.xlu0 %v14912_v10, %s19007_s27 }
 0x900   : > { %14587 = vrot.lane.b32.xlu1 %v14564_v57, %s25584_s0  ;;  %v24385_v46 = vpop.permute.xlu0 %14873  ;;  %v25658_v57 = vld [vmem:[#allocation113_spill] sm:$0xff] }
 0x901   : > { %v13264_v5 = vmul.f32 %v25658_v57, %v25654_v8 }
 0x902   : > { %v24390_v21 = vpop.permute.xlu1 %14523  ;;  %13192 = vrot.lane.b32.xlu0 %v13167_v30, %s25538_s20  ;;  %v13642_v30 = vrot.slane %v13617_v23, %v25652_v41  ;;  %v15063_v23 = vmul.f32 %v24138_v48, %v23657_v35 }
 0x903   : > { %25656 = vst [vmem:[#allocation115_spill] sm:$0xff] %v24390_v21  ;;  %v13292_v24 = vrot.slane %v13264_v5, %v25652_v41  ;;  %v25662_v5 = vld [vmem:[#allocation67_spill] sm:$0xff] }
 0x904   : > { %14939 = vrot.lane.b32.xlu1 %v14916_v29, %s19007_s27  ;;  %v24397_v10 = vpop.permute.xlu0 %13128  ;;  %v14655_v29 = vmul.f32 %v25659_v16, %v23657_v35  ;;  %v14656_v16 = vmul.f32 %v25662_v5, %v23689_v14  ;;  %v15184_v5 = vmul.f32 %v24154_v44, %v23689_v14 }
 0x905   : > { %25657 = vst [vmem:[#allocation116_spill] sm:$0xff] %v24397_v10  ;;  %v13618_v10 = vmul.f32 %v25661_v43, %v25654_v8 }
 0x906   : > { %v24402_v39 = vpop.permute.xlu1 %14875  ;;  %13313 = vrot.lane.b32.xlu0 %v13288_v55, %s25584_s0  ;;  %v14680_v55 = vrot.slane %v14655_v29, %v25652_v41  ;;  %v15183_v29 = vmul.f32 %v24145_v56, %v23657_v35  ;;  %v14684_v48 = vrot.slane %v14656_v16, %v25652_v41 }
 0x907   : > { %v13646_v57 = vrot.slane %v13618_v10, %v25652_v41  ;;  %v15064_v10 = vmul.f32 %v24147_v54, %v23689_v14 }
 0x908   : > { %13194 = vrot.lane.b32.xlu1 %v13171_v47, %s25538_s20  ;;  %v24409_v40 = vpop.permute.xlu0 %13249 }
 0x909   : > { %25660 = vst [vmem:[#allocation52_spill] sm:$0xff] %v24409_v40  ;;  %v15092_v56 = vrot.slane %v15064_v10, %v25652_v41 }
 0x90a   : > { %v24414_v21 = vpop.permute.xlu1 %13130  ;;  %13667 = vrot.lane.b32.xlu0 %v13642_v30, %s19007_s27  ;;  %v15088_v30 = vrot.slane %v15063_v23, %v25652_v41  ;;  %v13384_v23 = vmul.f32 %v24151_v31, %v23676_v51  ;;  %v15212_v31 = vrot.slane %v15184_v5, %v25652_v41 }
 0x90c   : > { %13315 = vrot.lane.b32.xlu1 %v13292_v24, %s25584_s0  ;;  %v24421_v47 = vpop.permute.xlu0 %13603  ;;  %v13409_v54 = vrot.slane %v13384_v23, %v25652_v41 }
 0x90e   : > { %v24426_v40 = vpop.permute.xlu1 %13251  ;;  %14705 = vrot.lane.b32.xlu0 %v14680_v55, %s25502_s21  ;;  %v15208_v55 = vrot.slane %v15183_v29, %v25652_v41 }
 0x910   : > { %13669 = vrot.lane.b32.xlu1 %v13646_v57, %s19007_s27  ;;  %v24433_v24 = vpop.permute.xlu0 %14641 }
 0x912   : > { %v24438_v43 = vpop.permute.xlu1 %13605  ;;  %15113 = vrot.lane.b32.xlu0 %v15088_v30, %s19008_s28  ;;  %v13794_v30 = vmul.f32 %v24158_v26, %v23676_v51 }
 0x914   : > { %14707 = vrot.lane.b32.xlu1 %v14684_v48, %s25502_s21  ;;  %v24445_v57 = vpop.permute.xlu0 %15049  ;;  %v13385_v48 = vmul.f32 %v24160_v18, %v25654_v8  ;;  %v13819_v44 = vrot.slane %v13794_v30, %v25652_v41 }
 0x916   : > { %v24450_v16 = vpop.permute.xlu1 %14643  ;;  %15233 = vrot.lane.b32.xlu0 %v15208_v55, %s19006_s26  ;;  %v13915_v55 = vmul.f32 %v24165_v20, %v23676_v51  ;;  %v13413_v26 = vrot.slane %v13385_v48, %v25652_v41 }
 0x918   : > { %15115 = vrot.lane.b32.xlu1 %v15092_v56, %s19008_s28  ;;  %v24457_v29 = vpop.permute.xlu0 %15169  ;;  %v25664_v56 = vld [vmem:[#allocation68_spill] sm:$0xff]  ;;  %v13940_v18 = vrot.slane %v13915_v55, %v25652_v41  ;;  %v14036_v55 = vmul.f32 %v24182_v53, %v23676_v51  ;;  %v14037_v53 = vmul.f32 %v24198_v58, %v25654_v8 }
 0x919   : > { %25663 = vst [vmem:[#allocation69_spill] sm:$0xff] %v24457_v29  ;;  %v13795_v5 = vmul.f32 %v25664_v56, %v25654_v8 }
 0x91a   : > { %v24462_v10 = vpop.permute.xlu1 %15051  ;;  %13434 = vrot.lane.b32.xlu0 %v13409_v54, %s25502_s21  ;;  %v15303_v54 = vmul.f32 %v24173_v0, %v23657_v35  ;;  %v15304_v0 = vmul.f32 %v24186_v25, %v23689_v14 }
 0x91b   : > { %v13823_v20 = vrot.slane %v13795_v5, %v25652_v41  ;;  %v25665_v5 = vld [vmem:[#allocation45_spill] sm:$0xff] }
 0x91c   : > { %15235 = vrot.lane.b32.xlu1 %v15212_v31, %s19006_s26  ;;  %v24469_v23 = vpop.permute.xlu0 %13370  ;;  %v13916_v31 = vmul.f32 %v24175_v50, %v25654_v8  ;;  %v14061_v50 = vrot.slane %v14036_v55, %v25652_v41  ;;  %v15332_v51 = vrot.slane %v15304_v0, %v25652_v41  ;;  %v14537_v25 = vmul.f32 %v24205_v4, %v25665_v5 }
 0x91e   : > { %v24474_v29 = vpop.permute.xlu1 %15171  ;;  %13844 = vrot.lane.b32.xlu0 %v13819_v44, %s19008_s28  ;;  %v15328_v44 = vrot.slane %v15303_v54, %v25652_v41  ;;  %v13944_v35 = vrot.slane %v13916_v31, %v25652_v41  ;;  %v14065_v31 = vrot.slane %v14037_v53, %v25652_v41  ;;  %v14568_v8 = vrot.slane %v14537_v25, %v25652_v41  ;;  %v25668_v53 = vld [vmem:[#allocation46_spill] sm:$0xff] }
 0x920   : > { %13436 = vrot.lane.b32.xlu1 %v13413_v26, %s25502_s21  ;;  %v24481_v30 = vpop.permute.xlu0 %13780 }
 0x922   : > { %v24486_v48 = vpop.permute.xlu1 %13372  ;;  %13965 = vrot.lane.b32.xlu0 %v13940_v18, %s19006_s26  ;;  %v14417_v18 = vmul.f32 %v24193_v13, %v25665_v5 }
 0x924   : > { %13846 = vrot.lane.b32.xlu1 %v13823_v20, %s19008_s28  ;;  %v24493_v26 = vpop.permute.xlu0 %13901  ;;  %v14448_v14 = vrot.slane %v14417_v18, %v25652_v41  ;;  %v25667_v18 = vld [vmem:[#allocation14_spill] sm:$0xff] }
 0x926   : > { %v24498_v56 = vpop.permute.xlu1 %13782  ;;  %15353 = vrot.lane.b32.xlu0 %v15328_v44, %s19005_s25  ;;  %v25666_v44 = vld [vmem:[#allocation47_spill] sm:$0xff] }
 0x927   : > { %v14418_v55 = vmul.f32 %v24210_v59, %v25666_v44 }
 0x928   : > { %13967 = vrot.lane.b32.xlu1 %v13944_v35, %s19006_s26  ;;  %v24505_v54 = vpop.permute.xlu0 %15289  ;;  %v14889_v35 = vmul.f32 %v24217_v11, %v25665_v5 }
 0x929   : > { %v14452_v0 = vrot.slane %v14418_v55, %v25652_v41 }
 0x92a   : > { %v24510_v20 = vpop.permute.xlu1 %13903  ;;  %14086 = vrot.lane.b32.xlu0 %v14061_v50, %s19005_s25  ;;  %v14538_v50 = vmul.f32 %v24222_v60, %v25666_v44  ;;  %v14920_v11 = vrot.slane %v14889_v35, %v25652_v41  ;;  %v13265_v35 = vmul.f32 %v24241_v52, %v25668_v53 }
 0x92c   : > { %15355 = vrot.lane.b32.xlu1 %v15332_v51, %s19005_s25  ;;  %v24517_v13 = vpop.permute.xlu0 %14022  ;;  %v14572_v60 = vrot.slane %v14538_v50, %v25652_v41  ;;  %v25670_v50 = vld [vmem:[#allocation65_spill] sm:$0xff]  ;;  %v13296_v52 = vrot.slane %v13265_v35, %v25652_v41  ;;  %v14657_v35 = vmul.f32 %v24265_v36, %v25665_v5 }
 0x92e   : > { %v24522_v58 = vpop.permute.xlu1 %15291  ;;  %14469 = vrot.lane.b32.xlu0 %v14448_v14, %s25538_s20  ;;  %v13144_v14 = vmul.f32 %v24229_v19, %v25668_v53  ;;  %v14688_v36 = vrot.slane %v14657_v35, %v25652_v41 }
 0x930   : > { %14088 = vrot.lane.b32.xlu1 %v14065_v31, %s19005_s25  ;;  %v14462_v4 = vpop.permute.xlu0 %14461  ;;  %v14890_v31 = vmul.f32 %v24234_v37, %v25666_v44  ;;  %v13175_v19 = vrot.slane %v13144_v14, %v25652_v41  ;;  %v13619_v14 = vmul.f32 %v24253_v2, %v25668_v53 }
 0x931   : > { %v14485_v59 = vadd.f32 %v25667_v18, %v14462_v4  ;;  %v25669_v4 = vld [vmem:[#allocation25_spill] sm:$0xff] }
 0x932   : > { %v24533_v51 = vpop.permute.xlu1 %14024  ;;  %14589 = vrot.lane.b32.xlu0 %v14568_v8, %s25584_s0  ;;  %v13650_v2 = vrot.slane %v13619_v14, %v25652_v41  ;;  %v15065_v14 = vmul.f32 %v24277_v33, %v25665_v5 }
 0x933   : > { %14493 = vst.msk [vmem:[%s23634_s3 + $0x8] sm:$0x2] %vm13220_vm8, %v14485_v59 }
 0x934   : > { %14471 = vrot.lane.b32.xlu1 %v14452_v0, %s25538_s20  ;;  %v14582_v25 = vpop.permute.xlu0 %14581  ;;  %v14924_v0 = vrot.slane %v14890_v31, %v25652_v41  ;;  %v15096_v33 = vrot.slane %v15065_v14, %v25652_v41 }
 0x935   : > { %v14605_v55 = vadd.f32 %v25667_v18, %v14582_v25  ;;  %v13145_v25 = vmul.f32 %v24246_v28, %v25670_v50 }
 0x936   : > { %v14464_v8 = vpop.permute.xlu1 %14463  ;;  %14941 = vrot.lane.b32.xlu0 %v14920_v11, %s19007_s27 }
 0x937   : > { %v14486_v59 = vadd.f32 %v25669_v4, %v14464_v8  ;;  %14613 = vst.msk [vmem:[%s23634_s3 + $0x8] sm:$0x4] %vm13341_vm9, %v14605_v55  ;;  %v13179_v31 = vrot.slane %v13145_v25, %v25652_v41  ;;  %v13266_v8 = vmul.f32 %v24258_v17, %v25670_v50  ;;  %v13620_v25 = vmul.f32 %v24270_v45, %v25670_v50 }
 0x938   : > { %14591 = vrot.lane.b32.xlu1 %v14572_v60, %s25584_s0  ;;  %v14934_v37 = vpop.permute.xlu0 %14933 }
 0x939   : > { %14494 = vst.msk [vmem:[%s23634_s3 + $0x18] sm:$0x2] %vm13220_vm8, %v14486_v59  ;;  %v14957_v11 = vadd.f32 %v25667_v18, %v14934_v37  ;;  %v25671_v59 = vld [vmem:[#allocation15_spill] sm:$0xff] }
 0x93a   : > { %v14584_v55 = vpop.permute.xlu1 %14583  ;;  %13196 = vrot.lane.b32.xlu0 %v13175_v19, %s25538_s20 }
 0x93b   : > { %v14606_v60 = vadd.f32 %v25669_v4, %v14584_v55  ;;  %14965 = vst.msk [vmem:[%s23634_s3 + $0x8] sm:$0x10] %vm13695_vm10, %v14957_v11 }
 0x93c   : > { %14943 = vrot.lane.b32.xlu1 %v14924_v0, %s19007_s27  ;;  %v13189_v28 = vpop.permute.xlu0 %13188  ;;  %v13300_v0 = vrot.slane %v13266_v8, %v25652_v41  ;;  %v14658_v8 = vmul.f32 %v24282_v12, %v25666_v44 }
 0x93d   : > { %14614 = vst.msk [vmem:[%s23634_s3 + $0x18] sm:$0x4] %vm13341_vm9, %v14606_v60  ;;  %v13212_v19 = vadd.f32 %v13189_v28, %v25671_v59 }
 0x93e   : > { %v14936_v37 = vpop.permute.xlu1 %14935  ;;  %13317 = vrot.lane.b32.xlu0 %v13296_v52, %s25584_s0  ;;  %v25672_v52 = vld [vmem:[#allocation33_spill] sm:$0xff]  ;;  %v14692_v35 = vrot.slane %v14658_v8, %v25652_v41  ;;  %v13796_v8 = vmul.f32 %v24313_v32, %v25668_v53 }
 0x93f   : > { %v14958_v11 = vadd.f32 %v25669_v4, %v14936_v37  ;;  %13221 = vst.msk [vmem:[%s23634_s3] sm:$0x2] %vm13220_vm8, %v13212_v19 }
 0x940   : > { %13198 = vrot.lane.b32.xlu1 %v13179_v31, %s25538_s20  ;;  %v13310_v17 = vpop.permute.xlu0 %13309  ;;  %v13654_v31 = vrot.slane %v13620_v25, %v25652_v41  ;;  %v13827_v32 = vrot.slane %v13796_v8, %v25652_v41 }
 0x941   : > { %14966 = vst.msk [vmem:[%s23634_s3 + $0x18] sm:$0x10] %vm13695_vm10, %v14958_v11  ;;  %v13333_v55 = vadd.f32 %v13310_v17, %v25671_v59  ;;  %v15066_v17 = vmul.f32 %v24294_v15, %v25666_v44 }
 0x942   : > { %v13191_v60 = vpop.permute.xlu1 %13190  ;;  %13671 = vrot.lane.b32.xlu0 %v13650_v2, %s19007_s27  ;;  %v15185_v2 = vmul.f32 %v24289_v6, %v25665_v5 }
 0x943   : > { %v13213_v28 = vadd.f32 %v13191_v60, %v25672_v52  ;;  %13342 = vst.msk [vmem:[%s23634_s3] sm:$0x4] %vm13341_vm9, %v13333_v55  ;;  %v13386_v60 = vmul.f32 %v24301_v49, %v25668_v53 }
 0x944   : > { %13319 = vrot.lane.b32.xlu1 %v13300_v0, %s25584_s0  ;;  %v13664_v45 = vpop.permute.xlu0 %13663  ;;  %v15216_v6 = vrot.slane %v15185_v2, %v25652_v41 }
 0x945   : > { %13222 = vst.msk [vmem:[%s23634_s3 + $0x10] sm:$0x2] %vm13220_vm8, %v13213_v28  ;;  %v13687_v19 = vadd.f32 %v13664_v45, %v25671_v59  ;;  %v15100_v28 = vrot.slane %v15066_v17, %v25652_v41  ;;  %v13417_v49 = vrot.slane %v13386_v60, %v25652_v41  ;;  %v13797_v17 = vmul.f32 %v24330_v22, %v25670_v50 }
 0x946   : > { %v13312_v37 = vpop.permute.xlu1 %13311  ;;  %14709 = vrot.lane.b32.xlu0 %v14688_v36, %s25502_s21  ;;  %v15186_v36 = vmul.f32 %v24306_v63, %v25666_v44 }
 0x947   : > { %v13334_v11 = vadd.f32 %v13312_v37, %v25672_v52  ;;  %13696 = vst.msk [vmem:[%s23634_s3] sm:$0x10] %vm13695_vm10, %v13687_v19  ;;  %v13387_v37 = vmul.f32 %v24318_v42, %v25670_v50  ;;  %v13831_v60 = vrot.slane %v13797_v17, %v25652_v41 }
 0x948   : > { %13673 = vrot.lane.b32.xlu1 %v13654_v31, %s19007_s27  ;;  %v14702_v12 = vpop.permute.xlu0 %14701  ;;  %v15220_v19 = vrot.slane %v15186_v36, %v25652_v41 }
 0x949   : > { %13343 = vst.msk [vmem:[%s23634_s3 + $0x10] sm:$0x4] %vm13341_vm9, %v13334_v11  ;;  %v14725_v0 = vadd.f32 %v25667_v18, %v14702_v12  ;;  %v13917_v12 = vmul.f32 %v24325_v34, %v25668_v53 }
 0x94a   : > { %v13666_v25 = vpop.permute.xlu1 %13665  ;;  %15117 = vrot.lane.b32.xlu0 %v15096_v33, %s19008_s28 }
 0x94b   : > { %v13688_v55 = vadd.f32 %v13666_v25, %v25672_v52  ;;  %14733 = vst.msk [vmem:[%s23634_s3 + $0x8] sm:$0x8] %vm13462_vm11, %v14725_v0  ;;  %v13948_v34 = vrot.slane %v13917_v12, %v25652_v41 }
 0x94c   : > { %14711 = vrot.lane.b32.xlu1 %v14692_v35, %s25502_s21  ;;  %v15110_v15 = vpop.permute.xlu0 %15109  ;;  %v13421_v35 = vrot.slane %v13387_v37, %v25652_v41  ;;  %v14039_v37 = vmul.f32 %v24366_v38, %v25670_v50 }
 0x94d   : > { %13697 = vst.msk [vmem:[%s23634_s3 + $0x10] sm:$0x10] %vm13695_vm10, %v13688_v55  ;;  %v15133_v14 = vadd.f32 %v25667_v18, %v15110_v15  ;;  %v13918_v15 = vmul.f32 %v24342_v7, %v25670_v50  ;;  %v25674_v50 = vld [vmem:[#allocation66_spill] sm:$0xff] }
 0x94e   : > { %v14704_v45 = vpop.permute.xlu1 %14703  ;;  %15237 = vrot.lane.b32.xlu0 %v15216_v6, %s19006_s26  ;;  %v15305_v6 = vmul.f32 %v24337_v1, %v25665_v5  ;;  %v14038_v5 = vmul.f32 %v24349_v62, %v25668_v53  ;;  %v25673_v53 = vld [vmem:[#allocation48_spill] sm:$0xff]  ;;  %v14420_v12 = vmul.f32 %v24378_v61, %v25674_v50 }
 0x94f   : > { %v14726_v31 = vadd.f32 %v25669_v4, %v14704_v45  ;;  %15141 = vst.msk [vmem:[%s23634_s3 + $0x8] sm:$0x20] %vm13872_vm12, %v15133_v14  ;;  %v13952_v45 = vrot.slane %v13918_v15, %v25652_v41  ;;  %v25678_v15 = vld [vmem:[#allocation116_spill] sm:$0xff] }
 0x950   : > { %15119 = vrot.lane.b32.xlu1 %v15100_v28, %s19008_s28  ;;  %v15230_v63 = vpop.permute.xlu0 %15229  ;;  %v15336_v1 = vrot.slane %v15305_v6, %v25652_v41  ;;  %v14069_v62 = vrot.slane %v14038_v5, %v25652_v41 }
 0x951   : > { %14734 = vst.msk [vmem:[%s23634_s3 + $0x18] sm:$0x8] %vm13462_vm11, %v14726_v31  ;;  %v15253_v11 = vadd.f32 %v25667_v18, %v15230_v63  ;;  %v15306_v31 = vmul.f32 %v24354_v3, %v25666_v44 }
 0x952   : > { %v15112_v33 = vpop.permute.xlu1 %15111  ;;  %13438 = vrot.lane.b32.xlu0 %v13417_v49, %s25502_s21 }
 0x953   : > { %v15134_v2 = vadd.f32 %v25669_v4, %v15112_v33  ;;  %15261 = vst.msk [vmem:[%s23634_s3 + $0x8] sm:$0x40] %vm13993_vm13, %v15253_v11  ;;  %v15340_v44 = vrot.slane %v15306_v31, %v25652_v41 }
 0x954   : > { %15239 = vrot.lane.b32.xlu1 %v15220_v19, %s19006_s26  ;;  %v13431_v42 = vpop.permute.xlu0 %13430  ;;  %v14419_v19 = vmul.f32 %v24361_v27, %v25673_v53 }
 0x955   : > { %15142 = vst.msk [vmem:[%s23634_s3 + $0x18] sm:$0x20] %vm13872_vm12, %v15134_v2  ;;  %v13454_v0 = vadd.f32 %v13431_v42, %v25671_v59 }
 0x956   : > { %v15232_v25 = vpop.permute.xlu1 %15231  ;;  %13848 = vrot.lane.b32.xlu0 %v13827_v32, %s19008_s28  ;;  %v14456_v27 = vrot.slane %v14419_v19, %v25652_v41  ;;  %v14539_v32 = vmul.f32 %v24373_v9, %v25673_v53 }
 0x957   : > { %v15254_v55 = vadd.f32 %v25669_v4, %v15232_v25  ;;  %13463 = vst.msk [vmem:[%s23634_s3] sm:$0x8] %vm13462_vm11, %v13454_v0  ;;  %v14891_v0 = vmul.f32 %v24385_v46, %v25673_v53  ;;  %v25675_v25 = vld [vmem:[#allocation115_spill] sm:$0xff] }
 0x958   : > { %13440 = vrot.lane.b32.xlu1 %v13421_v35, %s25502_s21  ;;  %v13841_v22 = vpop.permute.xlu0 %13840  ;;  %v14576_v9 = vrot.slane %v14539_v32, %v25652_v41  ;;  %v25682_v32 = vld [vmem:[#allocation35_spill] sm:$0xff] }
 0x959   : > { %15262 = vst.msk [vmem:[%s23634_s3 + $0x18] sm:$0x40] %vm13993_vm13, %v15254_v55  ;;  %v13864_v28 = vadd.f32 %v13841_v22, %v25671_v59  ;;  %v25676_v55 = vld [vmem:[#allocation34_spill] sm:$0xff]  ;;  %v14928_v46 = vrot.slane %v14891_v0, %v25652_v41 }
 0x95a   : > { %v13433_v36 = vpop.permute.xlu1 %13432  ;;  %13969 = vrot.lane.b32.xlu0 %v13948_v34, %s19006_s26 }
 0x95b   : > { %v13455_v14 = vadd.f32 %v13433_v36, %v25672_v52  ;;  %13873 = vst.msk [vmem:[%s23634_s3] sm:$0x20] %vm13872_vm12, %v13864_v28 }
 0x95c   : > { %13850 = vrot.lane.b32.xlu1 %v13831_v60, %s19008_s28  ;;  %v13962_v7 = vpop.permute.xlu0 %13961  ;;  %v25677_v60 = vld [vmem:[#allocation49_spill] sm:$0xff] }
 0x95d   : > { %13464 = vst.msk [vmem:[%s23634_s3 + $0x10] sm:$0x8] %vm13462_vm11, %v13455_v14  ;;  %v13985_v49 = vadd.f32 %v13962_v7, %v25671_v59  ;;  %v13146_v28 = vmul.f32 %v25678_v15, %v25677_v60  ;;  %v25679_v7 = vld [vmem:[#allocation36_spill] sm:$0xff]  ;;  %v25684_v15 = vld [vmem:[#allocation69_spill] sm:$0xff] }
 0x95e   : > { %v13843_v8 = vpop.permute.xlu1 %13842  ;;  %15357 = vrot.lane.b32.xlu0 %v15336_v1, %s19005_s25 }
 0x95f   : > { %v13865_v63 = vadd.f32 %v13843_v8, %v25672_v52  ;;  %13994 = vst.msk [vmem:[%s23634_s3] sm:$0x40] %vm13993_vm13, %v13985_v49  ;;  %v13183_v31 = vrot.slane %v13146_v28, %v25652_v41  ;;  %v25680_v49 = vld [vmem:[#allocation52_spill] sm:$0xff]  ;;  %v15187_v28 = vmul.f32 %v25684_v15, %v25673_v53 }
 0x960   : > { %13971 = vrot.lane.b32.xlu1 %v13952_v45, %s19006_s26  ;;  %v15350_v3 = vpop.permute.xlu0 %15349  ;;  %v13267_v8 = vmul.f32 %v25680_v49, %v25677_v60 }
 0x961   : > { %13874 = vst.msk [vmem:[%s23634_s3 + $0x10] sm:$0x20] %vm13872_vm12, %v13865_v63  ;;  %v15373_v11 = vadd.f32 %v25667_v18, %v15350_v3  ;;  %v14073_v18 = vrot.slane %v14039_v37, %v25652_v41 }
 0x962   : > { %v13964_v33 = vpop.permute.xlu1 %13963  ;;  %14090 = vrot.lane.b32.xlu0 %v14069_v62, %s19005_s25  ;;  %v25681_v62 = vld [vmem:[#allocation50_spill] sm:$0xff] }
 0x963   : > { %v13986_v2 = vadd.f32 %v13964_v33, %v25672_v52  ;;  %15381 = vst.msk [vmem:[%s23634_s3 + $0x8] sm:$0x80] %vm14114_vm14, %v15373_v11  ;;  %v13147_v19 = vmul.f32 %v24414_v21, %v25681_v62  ;;  %v13304_v11 = vrot.slane %v13267_v8, %v25652_v41  ;;  %v13621_v33 = vmul.f32 %v24421_v47, %v25677_v60 }
 0x964   : > { %15359 = vrot.lane.b32.xlu1 %v15340_v44, %s19005_s25  ;;  %v14083_v38 = vpop.permute.xlu0 %14082  ;;  %v15188_v8 = vmul.f32 %v24474_v29, %v25674_v50 }
 0x965   : > { %13995 = vst.msk [vmem:[%s23634_s3 + $0x10] sm:$0x40] %vm13993_vm13, %v13986_v2  ;;  %v14106_v42 = vadd.f32 %v14083_v38, %v25671_v59  ;;  %v14460_v59 = vrot.slane %v14420_v12, %v25652_v41  ;;  %v13187_v2 = vrot.slane %v13147_v19, %v25652_v41  ;;  %v13658_v47 = vrot.slane %v13621_v33, %v25652_v41 }
 0x966   : > { %v15352_v35 = vpop.permute.xlu1 %15351  ;;  %14473 = vrot.lane.b32.xlu0 %v14456_v27, %s25538_s20  ;;  %v13268_v27 = vmul.f32 %v24426_v40, %v25681_v62 }
 0x967   : > { %v15374_v17 = vadd.f32 %v25669_v4, %v15352_v35  ;;  %14115 = vst.msk [vmem:[%s23634_s3] sm:$0x80] %vm14114_vm14, %v14106_v42  ;;  %v14540_v4 = vmul.f32 %v25675_v25, %v25674_v50  ;;  %v14659_v42 = vmul.f32 %v24433_v24, %v25673_v53  ;;  %v15067_v25 = vmul.f32 %v24445_v57, %v25673_v53 }
 0x968   : > { %14092 = vrot.lane.b32.xlu1 %v14073_v18, %s19005_s25  ;;  %v14466_v61 = vpop.permute.xlu0 %14465  ;;  %v13308_v35 = vrot.slane %v13268_v27, %v25652_v41 }
 0x969   : > { %15382 = vst.msk [vmem:[%s23634_s3 + $0x18] sm:$0x80] %vm14114_vm14, %v15374_v17  ;;  %v14487_v34 = vadd.f32 %v25676_v55, %v14466_v61  ;;  %v14580_v14 = vrot.slane %v14540_v4, %v25652_v41  ;;  %v13622_v17 = vmul.f32 %v24438_v43, %v25681_v62  ;;  %v25683_v61 = vld [vmem:[#allocation37_spill] sm:$0xff]  ;;  %v14696_v24 = vrot.slane %v14659_v42, %v25652_v41 }
 0x96a   : > { %v14085_v6 = vpop.permute.xlu1 %14084  ;;  %14593 = vrot.lane.b32.xlu0 %v14576_v9, %s25584_s0  ;;  %v15104_v57 = vrot.slane %v15067_v25, %v25652_v41  ;;  %v14040_v42 = vmul.f32 %v24517_v13, %v25677_v60  ;;  %v15307_v13 = vmul.f32 %v24505_v54, %v25673_v53 }
 0x96b   : > { %v14107_v22 = vadd.f32 %v14085_v6, %v25672_v52  ;;  %14495 = vst.msk [vmem:[%s23634_s3 + $0x28] sm:$0x2] %vm13220_vm8, %v14487_v34  ;;  %v14892_v52 = vmul.f32 %v24402_v39, %v25674_v50  ;;  %v13662_v4 = vrot.slane %v13622_v17, %v25652_v41  ;;  %v14660_v34 = vmul.f32 %v24450_v16, %v25674_v50 }
 0x96c   : > { %14475 = vrot.lane.b32.xlu1 %v14460_v59, %s25538_s20  ;;  %v14586_v36 = vpop.permute.xlu0 %14585  ;;  %v15344_v54 = vrot.slane %v15307_v13, %v25652_v41 }
 0x96d   : > { %14116 = vst.msk [vmem:[%s23634_s3 + $0x10] sm:$0x80] %vm14114_vm14, %v14107_v22  ;;  %v14607_v1 = vadd.f32 %v25676_v55, %v14586_v36  ;;  %v14932_v63 = vrot.slane %v14892_v52, %v25652_v41  ;;  %v14700_v36 = vrot.slane %v14660_v34, %v25652_v41 }
 0x96e   : > { %v14468_v5 = vpop.permute.xlu1 %14467  ;;  %14945 = vrot.lane.b32.xlu0 %v14928_v46, %s19007_s27 }
 0x96f   : > { %v14488_v45 = vadd.f32 %v25679_v7, %v14468_v5  ;;  %14615 = vst.msk [vmem:[%s23634_s3 + $0x28] sm:$0x4] %vm13341_vm9, %v14607_v1 }
 0x970   : > { %14595 = vrot.lane.b32.xlu1 %v14580_v14, %s25584_s0  ;;  %v14938_v39 = vpop.permute.xlu0 %14937  ;;  %v15068_v14 = vmul.f32 %v24462_v10, %v25674_v50 }
 0x971   : > { %14496 = vst.msk [vmem:[%s23634_s3 + $0x38] sm:$0x2] %vm13220_vm8, %v14488_v45  ;;  %v14959_v3 = vadd.f32 %v25676_v55, %v14938_v39  ;;  %v15224_v45 = vrot.slane %v15187_v28, %v25652_v41  ;;  %v25685_v28 = vld [vmem:[#allocation38_spill] sm:$0xff] }
 0x972   : > { %v14588_v44 = vpop.permute.xlu1 %14587  ;;  %13200 = vrot.lane.b32.xlu0 %v13183_v31, %s25538_s20  ;;  %v13388_v31 = vmul.f32 %v24469_v23, %v25677_v60  ;;  %v15108_v49 = vrot.slane %v15068_v14, %v25652_v41 }
 0x973   : > { %v14608_v37 = vadd.f32 %v25679_v7, %v14588_v44  ;;  %14967 = vst.msk [vmem:[%s23634_s3 + $0x28] sm:$0x10] %vm13695_vm10, %v14959_v3  ;;  %v13798_v3 = vmul.f32 %v24481_v30, %v25677_v60  ;;  %v15228_v44 = vrot.slane %v15188_v8, %v25652_v41 }
 0x974   : > { %14947 = vrot.lane.b32.xlu1 %v14932_v63, %s19007_s27  ;;  %v13193_v21 = vpop.permute.xlu0 %13192  ;;  %v13425_v23 = vrot.slane %v13388_v31, %v25652_v41 }
 0x975   : > { %14616 = vst.msk [vmem:[%s23634_s3 + $0x38] sm:$0x4] %vm13341_vm9, %v14608_v37  ;;  %v13214_v38 = vadd.f32 %v13193_v21, %v25682_v32  ;;  %v13389_v37 = vmul.f32 %v24486_v48, %v25681_v62  ;;  %v13835_v30 = vrot.slane %v13798_v3, %v25652_v41 }
 0x976   : > { %v14940_v18 = vpop.permute.xlu1 %14939  ;;  %13321 = vrot.lane.b32.xlu0 %v13304_v11, %s25584_s0 }
 0x977   : > { %v14960_v12 = vadd.f32 %v25679_v7, %v14940_v18  ;;  %13223 = vst.msk [vmem:[%s23634_s3 + $0x20] sm:$0x2] %vm13220_vm8, %v13214_v38  ;;  %v13429_v27 = vrot.slane %v13389_v37, %v25652_v41  ;;  %v13799_v38 = vmul.f32 %v24498_v56, %v25681_v62 }
 0x978   : > { %13202 = vrot.lane.b32.xlu1 %v13187_v2, %s25538_s20  ;;  %v13314_v40 = vpop.permute.xlu0 %13313  ;;  %v13919_v2 = vmul.f32 %v24493_v26, %v25677_v60  ;;  %v14077_v60 = vrot.slane %v14040_v42, %v25652_v41  ;;  %s15403_s20 = sshll.u32 %s23634_s3, 4  ;;  %s25084_s20 = int_to_ptr.vmem [resolvable:$true] %s15403_s20 }
 0x979   : > { %14968 = vst.msk [vmem:[%s23634_s3 + $0x38] sm:$0x10] %vm13695_vm10, %v14960_v12  ;;  %v13335_v9 = vadd.f32 %v13314_v40, %v25682_v32  ;;  %v13839_v40 = vrot.slane %v13799_v38, %v25652_v41  ;;  %s18934_s2 = scalar_lea.vmem %s25084_s20, 2048 }
 0x97a   : > { %v13195_v0 = vpop.permute.xlu1 %13194  ;;  %13675 = vrot.lane.b32.xlu0 %v13658_v47, %s19007_s27  ;;  %v13956_v26 = vrot.slane %v13919_v2, %v25652_v41  ;;  %p18935_p11 = scmp.ne.s32.totalorder %s25084_s20, %s18934_s2 }
 0x97b   : > { %v13215_v59 = vadd.f32 %v13195_v0, %v25683_v61  ;;  %13344 = vst.msk [vmem:[%s23634_s3 + $0x20] sm:$0x4] %vm13341_vm9, %v13335_v9 }
 0x97c   : > { %13323 = vrot.lane.b32.xlu1 %v13308_v35, %s25584_s0  ;;  %v13668_v43 = vpop.permute.xlu0 %13667  ;;  %v13920_v35 = vmul.f32 %v24510_v20, %v25681_v62  ;;  %p18936_p12 = pnand %p18935_p11, %p19125_p5 }
 0x97d   : > { %13224 = vst.msk [vmem:[%s23634_s3 + $0x30] sm:$0x2] %vm13220_vm8, %v13215_v59  ;;  %v13689_v6 = vadd.f32 %v13668_v43, %v25682_v32 }
 0x97e   : > { %v13316_v22 = vpop.permute.xlu1 %13315  ;;  %14713 = vrot.lane.b32.xlu0 %v14696_v24, %s25502_s21  ;;  %v13960_v59 = vrot.slane %v13920_v35, %v25652_v41  ;;  %v14041_v24 = vmul.f32 %v24533_v51, %v25681_v62  ;;  %v15308_v51 = vmul.f32 %v24522_v58, %v25674_v50  ;;  %p18937_p13 = pneg %p18936_p12 }
 0x97f   : > { %v13336_v46 = vadd.f32 %v13316_v22, %v25683_v61  ;;  %13698 = vst.msk [vmem:[%s23634_s3 + $0x20] sm:$0x10] %vm13695_vm10, %v13689_v6 }
 0x980   : > { %13677 = vrot.lane.b32.xlu1 %v13662_v4, %s19007_s27  ;;  %v14706_v16 = vpop.permute.xlu0 %14705  ;;  %v14081_v62 = vrot.slane %v14041_v24, %v25652_v41  ;;  %v15348_v58 = vrot.slane %v15308_v51, %v25652_v41 }
 0x981   : > { %13345 = vst.msk [vmem:[%s23634_s3 + $0x30] sm:$0x4] %vm13341_vm9, %v13336_v46  ;;  %v14727_v52 = vadd.f32 %v25676_v55, %v14706_v16 }
 0x982   : > { %v13670_v1 = vpop.permute.xlu1 %13669  ;;  %15121 = vrot.lane.b32.xlu0 %v15104_v57, %s19008_s28 }
 0x983   : > { %v13690_v5 = vadd.f32 %v13670_v1, %v25683_v61  ;;  %14735 = vst.msk [vmem:[%s23634_s3 + $0x28] sm:$0x8] %vm13462_vm11, %v14727_v52  ;;  %v25686_v52 = vld [vmem:[#allocation63_spill] sm:$0xff] }
 0x984   : > { %14715 = vrot.lane.b32.xlu1 %v14700_v36, %s25502_s21  ;;  %v15114_v10 = vpop.permute.xlu0 %15113 }
 0x985   : > { %13699 = vst.msk [vmem:[%s23634_s3 + $0x30] sm:$0x10] %vm13695_vm10, %v13690_v5  ;;  %v15135_v39 = vadd.f32 %v25676_v55, %v15114_v10 }
 0x986   : > { %v14708_v63 = vpop.permute.xlu1 %14707  ;;  %15241 = vrot.lane.b32.xlu0 %v15224_v45, %s19006_s26 }
 0x987   : > { %v14728_v19 = vadd.f32 %v25679_v7, %v14708_v63  ;;  %15143 = vst.msk [vmem:[%s23634_s3 + $0x28] sm:$0x20] %vm13872_vm12, %v15135_v39 }
 0x988   : > { %15123 = vrot.lane.b32.xlu1 %v15108_v49, %s19008_s28  ;;  %v15234_v29 = vpop.permute.xlu0 %15233  ;;  %v25687_v49 = vld [vmem:[#allocation39_spill] sm:$0xff] }
 0x989   : > { %14736 = vst.msk [vmem:[%s23634_s3 + $0x38] sm:$0x8] %vm13462_vm11, %v14728_v19  ;;  %v15255_v11 = vadd.f32 %v25676_v55, %v15234_v29  ;;  %v25688_v29 = vld [vmem:[#allocation40_spill] sm:$0xff] }
 0x98a   : > { %v15116_v33 = vpop.permute.xlu1 %15115  ;;  %13442 = vrot.lane.b32.xlu0 %v13425_v23, %s25502_s21 }
 0x98b   : > { %v15136_v21 = vadd.f32 %v25679_v7, %v15116_v33  ;;  %15263 = vst.msk [vmem:[%s23634_s3 + $0x28] sm:$0x40] %vm13993_vm13, %v15255_v11 }
 0x98c   : > { %15243 = vrot.lane.b32.xlu1 %v15228_v44, %s19006_s26  ;;  %v13435_v48 = vpop.permute.xlu0 %13434 }
 0x98d   : > { %15144 = vst.msk [vmem:[%s23634_s3 + $0x38] sm:$0x20] %vm13872_vm12, %v15136_v21  ;;  %v13456_v18 = vadd.f32 %v13435_v48, %v25682_v32 }
 0x98e   : > { %v15236_v12 = vpop.permute.xlu1 %15235  ;;  %13852 = vrot.lane.b32.xlu0 %v13835_v30, %s19008_s28 }
 0x98f   : > { %v15256_v47 = vadd.f32 %v25679_v7, %v15236_v12  ;;  %13465 = vst.msk [vmem:[%s23634_s3 + $0x20] sm:$0x8] %vm13462_vm11, %v13456_v18 }
 0x990   : > { %13444 = vrot.lane.b32.xlu1 %v13429_v27, %s25502_s21  ;;  %v13845_v56 = vpop.permute.xlu0 %13844  ;;  %s16614_s21 = sshll.u32 %s19108_s17, 11  ;;  %s25091_s17 = scalar_lea.sflag [#allocation6], %s473_s1 }
 0x991   : > { %15264 = vst.msk [vmem:[%s23634_s3 + $0x38] sm:$0x40] %vm13993_vm13, %v15256_v47  ;;  %v13866_v17 = vadd.f32 %v13845_v56, %v25682_v32  ;;  %s25082_s18 = scalar_lea.hbm %s25145_s14, %s16614_s21 }
 0x992   : > { %v13437_v9 = vpop.permute.xlu1 %13436  ;;  %13973 = vrot.lane.b32.xlu0 %v13956_v26, %s19006_s26 }
 0x993   : > { %v13457_v0 = vadd.f32 %v13437_v9, %v25683_v61  ;;  %13875 = vst.msk [vmem:[%s23634_s3 + $0x20] sm:$0x20] %vm13872_vm12, %v13866_v17 }
 0x994   : > { %13854 = vrot.lane.b32.xlu1 %v13839_v40, %s19008_s28  ;;  %v13966_v20 = vpop.permute.xlu0 %13965 }
 0x995   : > { %13466 = vst.msk [vmem:[%s23634_s3 + $0x30] sm:$0x8] %vm13462_vm11, %v13457_v0  ;;  %v13987_v25 = vadd.f32 %v13966_v20, %v25682_v32 }
 0x996   : > { %v13847_v43 = vpop.permute.xlu1 %13846  ;;  %14094 = vrot.lane.b32.xlu0 %v14077_v60, %s19005_s25 }
 0x997   : > { %v13867_v4 = vadd.f32 %v13847_v43, %v25683_v61  ;;  %13996 = vst.msk [vmem:[%s23634_s3 + $0x20] sm:$0x40] %vm13993_vm13, %v13987_v25 }
 0x998   : > { %13975 = vrot.lane.b32.xlu1 %v13960_v59, %s19006_s26  ;;  %v15354_v53 = vpop.permute.xlu0 %15353 }
 0x999   : > { %13876 = vst.msk [vmem:[%s23634_s3 + $0x30] sm:$0x20] %vm13872_vm12, %v13867_v4  ;;  %v15375_v34 = vadd.f32 %v25676_v55, %v15354_v53 }
 0x99a   : > { %v13968_v6 = vpop.permute.xlu1 %13967  ;;  %15361 = vrot.lane.b32.xlu0 %v15344_v54, %s19005_s25 }
 0x99b   : > { %v13988_v22 = vadd.f32 %v13968_v6, %v25683_v61  ;;  %15383 = vst.msk [vmem:[%s23634_s3 + $0x28] sm:$0x80] %vm14114_vm14, %v15375_v34 }
 0x99c   : > { %14096 = vrot.lane.b32.xlu1 %v14081_v62, %s19005_s25  ;;  %v14087_v46 = vpop.permute.xlu0 %14086 }
 0x99d   : > { %13997 = vst.msk [vmem:[%s23634_s3 + $0x30] sm:$0x40] %vm13993_vm13, %v13988_v22  ;;  %v14108_v50 = vadd.f32 %v14087_v46, %v25682_v32 }
 0x99e   : > { %v15356_v55 = vpop.permute.xlu1 %15355 }
 0x99f   : > { %v15376_v57 = vadd.f32 %v25679_v7, %v15356_v55  ;;  %14117 = vst.msk [vmem:[%s23634_s3 + $0x20] sm:$0x80] %vm14114_vm14, %v14108_v50  ;;  %v25689_v50 = vld [vmem:[#allocation41_spill] sm:$0xff] }
 0x9a0   : > { %15363 = vrot.lane.b32.xlu1 %v15348_v58, %s19005_s25  ;;  %v14470_v15 = vpop.permute.xlu0 %14469  ;;  %s19009_s25 = smov [#allocation5]  }
 0x9a1   : > { %15384 = vst.msk [vmem:[%s23634_s3 + $0x38] sm:$0x80] %vm14114_vm14, %v15376_v57  ;;  %v14489_v16 = vadd.f32 %v25685_v28, %v14470_v15  ;;  %s18938_s26 = sshll.u32 %s19009_s25, 4  ;;  %s18939_s26 = int_to_ptr.vmem [resolvable:$false] %s18938_s26 }
 0x9a2   : > { %v14089_v36 = vpop.permute.xlu1 %14088  ;;  %s18940_s27 = scalar_lea.vmem %s18939_s26, 4096  ;;  %p18941_p0 = scmp.lt.s32.totalorder %s25084_s20, %s18939_s26 }
 0x9a3   : > { %v14109_v41 = vadd.f32 %v14089_v36, %v25683_v61  ;;  %14497 = vst.msk [vmem:[%s23634_s3 + $0x48] sm:$0x2] %vm13220_vm8, %v14489_v16  ;;  %p18942_p1 = scmp.lt.s32.totalorder %s18940_s27, %s18934_s2 }
 0x9a4   : > { %v14590_v32 = vpop.permute.xlu0 %14589 }
 0x9a5   : > { %14118 = vst.msk [vmem:[%s23634_s3 + $0x30] sm:$0x80] %vm14114_vm14, %v14109_v41  ;;  %v14609_v7 = vadd.f32 %v25685_v28, %v14590_v32  ;;  %v25690_v41 = vld [vmem:[#allocation43_spill] sm:$0xff]  ;;  %p18943_p2 = por %p18942_p1, %p18941_p0 }
 0x9a6   : > { %v14472_v14 = vpop.permute.xlu1 %14471 }
 0x9a7   : > { %v14490_v1 = vadd.f32 %v25686_v52, %v14472_v14  ;;  %14617 = vst.msk [vmem:[%s23634_s3 + $0x48] sm:$0x4] %vm13341_vm9, %v14609_v7  ;;  %p18944_p3 = pnand %p18943_p2, %p18937_p13 }
 0x9a8   : > { %v14942_v5 = vpop.permute.xlu0 %14941 }
 0x9a9   : > { %14498 = vst.msk [vmem:[%s23634_s3 + $0x58] sm:$0x2] %vm13220_vm8, %v14490_v1  ;;  %v14961_v61 = vadd.f32 %v25685_v28, %v14942_v5 }
 0x9aa   : > { %v14592_v45 = vpop.permute.xlu1 %14591 }
 0x9ab   : > { %v14610_v31 = vadd.f32 %v25686_v52, %v14592_v45  ;;  %14969 = vst.msk [vmem:[%s23634_s3 + $0x48] sm:$0x10] %vm13695_vm10, %v14961_v61  ;;  %v25691_v61 = vld [vmem:[#allocation42_spill] sm:$0xff] }
 0x9ac   : > { %v13197_v10 = vpop.permute.xlu0 %13196 }
 0x9ad   : > { %14618 = vst.msk [vmem:[%s23634_s3 + $0x58] sm:$0x4] %vm13341_vm9, %v14610_v31  ;;  %v13216_v8 = vadd.f32 %v13197_v10, %v25687_v49 }
 0x9ae   : > { %v14944_v39 = vpop.permute.xlu1 %14943 }
 0x9af   : > { %v14962_v63 = vadd.f32 %v25686_v52, %v14944_v39  ;;  %13225 = vst.msk [vmem:[%s23634_s3 + $0x40] sm:$0x2] %vm13220_vm8, %v13216_v8 }
 0x9b0   : > { %v13318_v19 = vpop.permute.xlu0 %13317 }
 0x9b1   : > { %14970 = vst.msk [vmem:[%s23634_s3 + $0x58] sm:$0x10] %vm13695_vm10, %v14962_v63  ;;  %v13337_v23 = vadd.f32 %v13318_v19, %v25687_v49  ;;  %v25692_v63 = vld [vmem:[#allocation64_spill] sm:$0xff] }
 0x9b2   : > { %v13199_v3 = vpop.permute.xlu1 %13198 }
 0x9b3   : > { %v13217_v44 = vadd.f32 %v13199_v3, %v25688_v29  ;;  %13346 = vst.msk [vmem:[%s23634_s3 + $0x40] sm:$0x4] %vm13341_vm9, %v13337_v23 }
 0x9b4   : > { %v13672_v37 = vpop.permute.xlu0 %13671 }
 0x9b5   : > { %13226 = vst.msk [vmem:[%s23634_s3 + $0x50] sm:$0x2] %vm13220_vm8, %v13217_v44  ;;  %v13691_v11 = vadd.f32 %v13672_v37, %v25687_v49 }
 0x9b6   : > { %v13320_v33 = vpop.permute.xlu1 %13319 }
 0x9b7   : > { %v13338_v21 = vadd.f32 %v13320_v33, %v25688_v29  ;;  %13700 = vst.msk [vmem:[%s23634_s3 + $0x40] sm:$0x10] %vm13695_vm10, %v13691_v11 }
 0x9b8   : > { %v14710_v30 = vpop.permute.xlu0 %14709 }
 0x9b9   : > { %13347 = vst.msk [vmem:[%s23634_s3 + $0x50] sm:$0x4] %vm13341_vm9, %v13338_v21  ;;  %v14729_v2 = vadd.f32 %v25685_v28, %v14710_v30 }
 0x9ba   : > { %v13674_v48 = vpop.permute.xlu1 %13673 }
 0x9bb   : > { %v13692_v27 = vadd.f32 %v13674_v48, %v25688_v29  ;;  %14737 = vst.msk [vmem:[%s23634_s3 + $0x48] sm:$0x8] %vm13462_vm11, %v14729_v2 }
 0x9bc   : > { %v15118_v38 = vpop.permute.xlu0 %15117 }
 0x9bd   : > { %13701 = vst.msk [vmem:[%s23634_s3 + $0x50] sm:$0x10] %vm13695_vm10, %v13692_v27  ;;  %v15137_v18 = vadd.f32 %v25685_v28, %v15118_v38 }
 0x9be   : > { %v14712_v12 = vpop.permute.xlu1 %14711 }
 0x9bf   : > { %v14730_v47 = vadd.f32 %v25686_v52, %v14712_v12  ;;  %15145 = vst.msk [vmem:[%s23634_s3 + $0x48] sm:$0x20] %vm13872_vm12, %v15137_v18 }
 0x9c0   : > { %v15238_v26 = vpop.permute.xlu0 %15237 }
 0x9c1   : > { %14738 = vst.msk [vmem:[%s23634_s3 + $0x58] sm:$0x8] %vm13462_vm11, %v14730_v47  ;;  %v15257_v42 = vadd.f32 %v25685_v28, %v15238_v26 }
 0x9c2   : > { %v15120_v56 = vpop.permute.xlu1 %15119 }
 0x9c3   : > { %v15138_v40 = vadd.f32 %v25686_v52, %v15120_v56  ;;  %15265 = vst.msk [vmem:[%s23634_s3 + $0x48] sm:$0x40] %vm13993_vm13, %v15257_v42 }
 0x9c4   : > { %v13439_v35 = vpop.permute.xlu0 %13438 }
 0x9c5   : > { %15146 = vst.msk [vmem:[%s23634_s3 + $0x58] sm:$0x20] %vm13872_vm12, %v15138_v40  ;;  %v13458_v17 = vadd.f32 %v13439_v35, %v25687_v49 }
 0x9c6   : > { %v15240_v9 = vpop.permute.xlu1 %15239 }
 0x9c7   : > { %v15258_v0 = vadd.f32 %v25686_v52, %v15240_v9  ;;  %13467 = vst.msk [vmem:[%s23634_s3 + $0x40] sm:$0x8] %vm13462_vm11, %v13458_v17 }
 0x9c8   : > { %v13849_v13 = vpop.permute.xlu0 %13848 }
 0x9c9   : > { %15266 = vst.msk [vmem:[%s23634_s3 + $0x58] sm:$0x40] %vm13993_vm13, %v15258_v0  ;;  %v13868_v60 = vadd.f32 %v13849_v13, %v25687_v49 }
 0x9ca   : > { %v13441_v20 = vpop.permute.xlu1 %13440 }
 0x9cb   : > { %v13459_v59 = vadd.f32 %v13441_v20, %v25688_v29  ;;  %13877 = vst.msk [vmem:[%s23634_s3 + $0x40] sm:$0x20] %vm13872_vm12, %v13868_v60 }
 0x9cc   : > { %v13970_v24 = vpop.permute.xlu0 %13969 }
 0x9cd   : > { %13468 = vst.msk [vmem:[%s23634_s3 + $0x50] sm:$0x8] %vm13462_vm11, %v13459_v59  ;;  %v13989_v25 = vadd.f32 %v13970_v24, %v25687_v49 }
 0x9ce   : > { %v13851_v43 = vpop.permute.xlu1 %13850 }
 0x9cf   : > { %v13869_v4 = vadd.f32 %v13851_v43, %v25688_v29  ;;  %13998 = vst.msk [vmem:[%s23634_s3 + $0x40] sm:$0x40] %vm13993_vm13, %v13989_v25 }
 0x9d0   : > { %v15358_v54 = vpop.permute.xlu0 %15357 }
 0x9d1   : > { %13878 = vst.msk [vmem:[%s23634_s3 + $0x50] sm:$0x20] %vm13872_vm12, %v13869_v4  ;;  %v15377_v53 = vadd.f32 %v25685_v28, %v15358_v54 }
 0x9d2   : > { %v13972_v51 = vpop.permute.xlu1 %13971 }
 0x9d3   : > { %v13990_v62 = vadd.f32 %v13972_v51, %v25688_v29  ;;  %15385 = vst.msk [vmem:[%s23634_s3 + $0x48] sm:$0x80] %vm14114_vm14, %v15377_v53 }
 0x9d4   : > { %v14091_v34 = vpop.permute.xlu0 %14090 }
 0x9d5   : > { %13999 = vst.msk [vmem:[%s23634_s3 + $0x50] sm:$0x40] %vm13993_vm13, %v13990_v62  ;;  %v14110_v6 = vadd.f32 %v14091_v34, %v25687_v49 }
 0x9d6   : > { %v15360_v22 = vpop.permute.xlu1 %15359 }
 0x9d7   : > { %v15378_v46 = vadd.f32 %v25686_v52, %v15360_v22  ;;  %14119 = vst.msk [vmem:[%s23634_s3 + $0x40] sm:$0x80] %vm14114_vm14, %v14110_v6 }
 0x9d8   : > { %v14474_v58 = vpop.permute.xlu0 %14473 }
 0x9d9   : > { %15386 = vst.msk [vmem:[%s23634_s3 + $0x58] sm:$0x80] %vm14114_vm14, %v15378_v46  ;;  %v14491_v55 = vadd.f32 %v25689_v50, %v14474_v58 }
 0x9da   : > { %v14093_v57 = vpop.permute.xlu1 %14092 }
 0x9db   : > { %v14111_v15 = vadd.f32 %v14093_v57, %v25688_v29  ;;  %14499 = vst.msk [vmem:[%s23634_s3 + $0x68] sm:$0x2] %vm13220_vm8, %v14491_v55 }
 0x9dc   : > { %v14594_v28 = vpop.permute.xlu0 %14593 }
 0x9dd   : > { %14120 = vst.msk [vmem:[%s23634_s3 + $0x50] sm:$0x80] %vm14114_vm14, %v14111_v15  ;;  %v14611_v16 = vadd.f32 %v25689_v50, %v14594_v28 }
 0x9de   : > { %v14476_v36 = vpop.permute.xlu1 %14475 }
 0x9df   : > { %v14492_v32 = vadd.f32 %v25690_v41, %v14476_v36  ;;  %14619 = vst.msk [vmem:[%s23634_s3 + $0x68] sm:$0x4] %vm13341_vm9, %v14611_v16 }
 0x9e0   : > { %v14946_v7 = vpop.permute.xlu0 %14945 }
 0x9e1   : > { %14500 = vst.msk [vmem:[%s23634_s3 + $0x78] sm:$0x2] %vm13220_vm8, %v14492_v32  ;;  %v14963_v14 = vadd.f32 %v25689_v50, %v14946_v7 }
 0x9e2   : > { %v14596_v52 = vpop.permute.xlu1 %14595 }
 0x9e3   : > { %v14612_v1 = vadd.f32 %v25690_v41, %v14596_v52  ;;  %14971 = vst.msk [vmem:[%s23634_s3 + $0x68] sm:$0x10] %vm13695_vm10, %v14963_v14 }
 0x9e4   : > { %v13201_v5 = vpop.permute.xlu0 %13200 }
 0x9e5   : > { %14620 = vst.msk [vmem:[%s23634_s3 + $0x78] sm:$0x4] %vm13341_vm9, %v14612_v1  ;;  %v13218_v45 = vadd.f32 %v13201_v5, %v25691_v61 }
 0x9e6   : > { %v14948_v31 = vpop.permute.xlu1 %14947 }
 0x9e7   : > { %v14964_v10 = vadd.f32 %v25690_v41, %v14948_v31  ;;  %13227 = vst.msk [vmem:[%s23634_s3 + $0x60] sm:$0x2] %vm13220_vm8, %v13218_v45 }
 0x9e8   : > { %v13322_v49 = vpop.permute.xlu0 %13321 }
 0x9e9   : > { %14972 = vst.msk [vmem:[%s23634_s3 + $0x78] sm:$0x10] %vm13695_vm10, %v14964_v10  ;;  %v13339_v8 = vadd.f32 %v13322_v49, %v25691_v61 }
 0x9ea   : > { %v13203_v39 = vpop.permute.xlu1 %13202 }
 0x9eb   : > { %v13219_v19 = vadd.f32 %v13203_v39, %v25692_v63  ;;  %13348 = vst.msk [vmem:[%s23634_s3 + $0x60] sm:$0x4] %vm13341_vm9, %v13339_v8 }
 0x9ec   : > { %v13676_v23 = vpop.permute.xlu0 %13675 }
 0x9ed   : > { %13228 = vst.msk [vmem:[%s23634_s3 + $0x70] sm:$0x2] %vm13220_vm8, %v13219_v19  ;;  %v13693_v3 = vadd.f32 %v13676_v23, %v25691_v61 }
 0x9ee   : > { %v13324_v29 = vpop.permute.xlu1 %13323 }
 0x9ef   : > { %v13340_v44 = vadd.f32 %v13324_v29, %v25692_v63  ;;  %13702 = vst.msk [vmem:[%s23634_s3 + $0x60] sm:$0x10] %vm13695_vm10, %v13693_v3 }
 0x9f0   : > { %v14714_v37 = vpop.permute.xlu0 %14713 }
 0x9f1   : > { %13349 = vst.msk [vmem:[%s23634_s3 + $0x70] sm:$0x4] %vm13341_vm9, %v13340_v44  ;;  %v14731_v11 = vadd.f32 %v25689_v50, %v14714_v37 }
 0x9f2   : > { %v13678_v33 = vpop.permute.xlu1 %13677 }
 0x9f3   : > { %v13694_v21 = vadd.f32 %v13678_v33, %v25692_v63  ;;  %14739 = vst.msk [vmem:[%s23634_s3 + $0x68] sm:$0x8] %vm13462_vm11, %v14731_v11 }
 0x9f4   : > { %v15122_v30 = vpop.permute.xlu0 %15121 }
 0x9f5   : > { %13703 = vst.msk [vmem:[%s23634_s3 + $0x70] sm:$0x10] %vm13695_vm10, %v13694_v21  ;;  %v15139_v2 = vadd.f32 %v25689_v50, %v15122_v30 }
 0x9f6   : > { %v14716_v48 = vpop.permute.xlu1 %14715 }
 0x9f7   : > { %v14732_v27 = vadd.f32 %v25690_v41, %v14716_v48  ;;  %15147 = vst.msk [vmem:[%s23634_s3 + $0x68] sm:$0x20] %vm13872_vm12, %v15139_v2 }
 0x9f8   : > { %v15242_v38 = vpop.permute.xlu0 %15241 }
 0x9f9   : > { %14740 = vst.msk [vmem:[%s23634_s3 + $0x78] sm:$0x8] %vm13462_vm11, %v14732_v27  ;;  %v15259_v18 = vadd.f32 %v25689_v50, %v15242_v38 }
 0x9fa   : > { %v15124_v12 = vpop.permute.xlu1 %15123 }
 0x9fb   : > { %v15140_v47 = vadd.f32 %v25690_v41, %v15124_v12  ;;  %15267 = vst.msk [vmem:[%s23634_s3 + $0x68] sm:$0x40] %vm13993_vm13, %v15259_v18 }
 0x9fc   : > { %v13443_v26 = vpop.permute.xlu0 %13442 }
 0x9fd   : > { %15148 = vst.msk [vmem:[%s23634_s3 + $0x78] sm:$0x20] %vm13872_vm12, %v15140_v47  ;;  %v13460_v42 = vadd.f32 %v13443_v26, %v25691_v61 }
 0x9fe   : > { %v15244_v56 = vpop.permute.xlu1 %15243 }
 0x9ff   : > { %v15260_v40 = vadd.f32 %v25690_v41, %v15244_v56  ;;  %13469 = vst.msk [vmem:[%s23634_s3 + $0x60] sm:$0x8] %vm13462_vm11, %v13460_v42 }
 0xa00   : > { %v13853_v35 = vpop.permute.xlu0 %13852 }
 0xa01   : > { %15268 = vst.msk [vmem:[%s23634_s3 + $0x78] sm:$0x40] %vm13993_vm13, %v15260_v40  ;;  %v13870_v17 = vadd.f32 %v13853_v35, %v25691_v61 }
 0xa02   : > { %v13445_v9 = vpop.permute.xlu1 %13444 }
 0xa03   : > { %v13461_v0 = vadd.f32 %v13445_v9, %v25692_v63  ;;  %13879 = vst.msk [vmem:[%s23634_s3 + $0x60] sm:$0x20] %vm13872_vm12, %v13870_v17 }
 0xa04   : > { %v13974_v13 = vpop.permute.xlu0 %13973 }
 0xa05   : > { %13470 = vst.msk [vmem:[%s23634_s3 + $0x70] sm:$0x8] %vm13462_vm11, %v13461_v0  ;;  %v13991_v60 = vadd.f32 %v13974_v13, %v25691_v61 }
 0xa06   : > { %v13855_v20 = vpop.permute.xlu1 %13854 }
 0xa07   : > { %v13871_v59 = vadd.f32 %v13855_v20, %v25692_v63  ;;  %14000 = vst.msk [vmem:[%s23634_s3 + $0x60] sm:$0x40] %vm13993_vm13, %v13991_v60 }
 0xa08   : > { %v14095_v24 = vpop.permute.xlu0 %14094 }
 0xa09   : > { %13880 = vst.msk [vmem:[%s23634_s3 + $0x70] sm:$0x20] %vm13872_vm12, %v13871_v59  ;;  %v14112_v25 = vadd.f32 %v14095_v24, %v25691_v61 }
 0xa0a   : > { %v13976_v43 = vpop.permute.xlu1 %13975 }
 0xa0b   : > { %v13992_v4 = vadd.f32 %v13976_v43, %v25692_v63  ;;  %14121 = vst.msk [vmem:[%s23634_s3 + $0x60] sm:$0x80] %vm14114_vm14, %v14112_v25 }
 0xa0c   : > { %v15362_v54 = vpop.permute.xlu0 %15361 }
 0xa0d   : > { %14001 = vst.msk [vmem:[%s23634_s3 + $0x70] sm:$0x40] %vm13993_vm13, %v13992_v4  ;;  %v15379_v53 = vadd.f32 %v25689_v50, %v15362_v54 }
 0xa0e   : > { %v14097_v51 = vpop.permute.xlu1 %14096 }
 0xa0f   : > { %v14113_v62 = vadd.f32 %v14097_v51, %v25692_v63  ;;  %15387 = vst.msk [vmem:[%s23634_s3 + $0x68] sm:$0x80] %vm14114_vm14, %v15379_v53 }
 0xa11   : > { %14122 = vst.msk [vmem:[%s23634_s3 + $0x70] sm:$0x80] %vm14114_vm14, %v14113_v62 }
 0xa12   : > { %v15364_v34 = vpop.permute.xlu1 %15363 }
 0xa13   : > { %v15380_v6 = vadd.f32 %v25690_v41, %v15364_v34 }
 0xa15   : > { %15388 = vst.msk [vmem:[%s23634_s3 + $0x78] sm:$0x80] %vm14114_vm14, %v15380_v6 }
 0xa16   : > { %18947 = shalt.err (!%p18944_p3)
}
 0xa17   : > { %s18948_s1 = scalar_lea.hbm %s25082_s18, 2048  ;;  %s18952_s21 = scalar_lea.hbm %s25145_s14, 4096 }
 0xa18   : > { %p18949_p4 = scmp.ne.s32.totalorder %s25082_s18, %s18948_s1  ;;  %p18953_p9 = scmp.lt.s32.totalorder %s25082_s18, %s25145_s14 }
 0xa19   : > { %p18954_p10 = scmp.lt.s32.totalorder %s18952_s21, %s18948_s1 }
 0xa1a   : > { %p18950_p7 = pnand %p18949_p4, %p19125_p5 }
 0xa1b   : > { %p18955_p11 = por %p18954_p10, %p18953_p9 }
 0xa1c   : > { %p18951_p8 = pneg %p18950_p7 }
 0xa1e   : > { %p18956_p12 = pnand %p18955_p11, %p18951_p8 }
 0xa20   : > { %18959 = shalt.err (!%p18956_p12)
}
 0xa21   : > { %s19010_s2 = smov 128   ;;  %s19011_s25 = smov 8  }
 0xa22   : > { %18828 = dma.vmem_to_hbm [thread:$0]  (%p19125_p5), %s25084_s20, 2048, %s25082_s18, %s25091_s17, %s19010_s2, %s19010_s2, %s19011_s25  }
 0xa23 PF: > { %p18834_p13 = scmp.ge.s32.totalorder %s18994_s16, 2  ;;  %s15418_s26 = sand.u32 1, %s18982_s29  }
 0xa24   : > { %s15419_s27 = scalar_lea.sflag [#allocation6], %s15418_s26 }
 0xa25   : > { %p18831_p0 = pnand %p18834_p13, %p19129_p6 }
 0xa27   : > { %p18832_p1 = pneg %p18831_p0 }
 0xa29   : > { %18977 = dma.done.wait (%p18832_p1), %s15419_s27, 2048  }
 0xa2a   : > { %18979 = vsyncadd (%p18832_p1), %s15419_s27, 4294965248  ;;  %s25693_s1 = sld [smem:[#allocation8_spill]]  ;;  %p24_p2 = scmp.ge.s32.totalorder %s19112_s19, 4  }
 0xa2b   : > { %s25694_s29 = smov %s18986_s30  ;;  %s25695_s30 = smov %s18990_s15 }
 0xa2c   : > { %s25697_s16 = smov %s19112_s19  ;;  %26 = sbr.rel (!%p24_p2) target bundleno = 8 (0x8), region = 156 }
 0xa30   : > { %s25696_s15 = smov %s25693_s1 }
 0xa31   :  { %15424 = vsyncpa [#allocation6], 1 }
 0xa32   :  { %15426 = vsyncpa [#allocation6 + $0x1], 1 }

</bundles_post_ra>
